<compile_context>
chip_gen: v7x
topology: tpu7x:2x2x1
jax: 0.10.0
libtpu: 0.0.40
codegen_flags: <defaults>
</compile_context>

<pallas_src>
import jax
import jax.numpy as jnp
from jax.experimental import pallas as pl
from jax.experimental.pallas import tpu as pltpu

FEATURE_DIM = 1024
BN_EPS = 1e-5
PADDED_CLASSES = 128          # lane-dense padded logits width (>= both num_classes)

# Concatenated-bias layout (all offsets are multiples of 128 -> lane-aligned slices).
_B1_OFF = 0        # Linear(1024,1024)+BN        len 1024
_RBS_OFF = 1024    # ResidualBlock shortcut      len  768
_RB1_OFF = 1792    # ResidualBlock linear1+bn1   len  768
_RB2_OFF = 2560    # ResidualBlock linear2+bn2   len  768
_B3_OFF = 3328     # Linear(768,512)+BN          len  512
_B4_OFF = 3840     # Linear(512,256)             len  256
_B5_OFF = 4096     # Linear(256,nc) padded       len  128
_BIAS_TOTAL = 4224


# --------------------------- Pallas kernel (fused 2 heads) ---------------------------

def fused_heads_kernel(x_ref, wA_ref, wB_ref, w4_ref, w5_ref, bias_ref, o_ref):
    # One grid step = (head, batch_tile).  All weight/bias refs are the (squeezed)
    # per-head slice; they are indexed only by the head axis, so they are NOT re-DMA'd
    # across batch tiles.
    x = x_ref[...]                                                  # (TB, 1024) bf16

    def lin(a, w, boff, bdim):
        # bf16 x bf16 on the MXU, f32 accumulation, f32 bias (BN already folded in).
        return (jnp.dot(a, w, preferred_element_type=jnp.float32)
                + bias_ref[:, boff:boff + bdim])

    # Linear(1024,1024) [+folded BN] -> ReLU -> Dropout(identity in eval)
    h = jnp.maximum(lin(x, wA_ref[:, 0:1024], _B1_OFF, 1024),
                    0.0).astype(jnp.bfloat16)                       # (TB, 1024)

    # ResidualBlock(1024, 768): shortcut is a plain Linear (no BN) per the PyTorch spec.
    ident = lin(h, wA_ref[:, 1024:1792], _RBS_OFF, 768)            # (TB, 768) f32
    r = jnp.maximum(lin(h, wA_ref[:, 1792:2560], _RB1_OFF, 768),
                    0.0).astype(jnp.bfloat16)
    r = lin(r, wB_ref[:, 0:768], _RB2_OFF, 768)
    r = jnp.maximum(r + ident, 0.0).astype(jnp.bfloat16)            # (TB, 768)
    # trailing ReLU in the Sequential is idempotent; Dropout is identity

    # Linear(768,512) [+folded BN] -> ReLU -> Dropout(identity)
    h = jnp.maximum(lin(r, wB_ref[:, 768:1280], _B3_OFF, 512),
                    0.0).astype(jnp.bfloat16)                       # (TB, 512)

    # Linear(512,256) -> ReLU
    h = jnp.maximum(lin(h, w4_ref[...], _B4_OFF, 256),
                    0.0).astype(jnp.bfloat16)                       # (TB, 256)

    # Linear(256, num_classes) zero-padded to 128 lanes (unmasked full-lane store)
    o_ref[...] = lin(h, w5_ref[...], _B5_OFF, PADDED_CLASSES)       # (TB, 128) f32


def _pick_batch_tile(b):
    for cand in (256, 128, 64, 32, 16, 8):
        if b % cand == 0:
            return cand
    return b                                    # tiny/odd batch: single full-size tile


def run_dual_heads(features_bf16, stacked_params, batch_tile=None):
    """features_bf16: (B, 1024) bf16; stacked_params: (wA, wB, w4, w5, bias), leading dim 2."""
    b = features_bf16.shape[0]
    if batch_tile is None:
        batch_tile = _pick_batch_tile(b)
    assert b % batch_tile == 0
    n_bt = b // batch_tile
    wA, wB, w4, w5, bias = stacked_params

    def head_spec(arr):
        _, d0, d1 = arr.shape
        # Indexed by head only -> constant block across the batch axis (no re-DMA).
        return pl.BlockSpec((None, d0, d1), lambda h, bt: (h, 0, 0))

    in_specs = [
        pl.BlockSpec((batch_tile, FEATURE_DIM), lambda h, bt: (bt, 0)),   # shared features
        head_spec(wA), head_spec(wB), head_spec(w4), head_spec(w5), head_spec(bias),
    ]

    out = pl.pallas_call(
        fused_heads_kernel,
        out_shape=jax.ShapeDtypeStruct((2, b, PADDED_CLASSES), jnp.float32),
        grid=(2, n_bt),                               # head outermost, batch tiles inner
        in_specs=in_specs,
        out_specs=pl.BlockSpec((None, batch_tile, PADDED_CLASSES),
                               lambda h, bt: (h, bt, 0)),
        compiler_params=pltpu.CompilerParams(
            dimension_semantics=("parallel", "arbitrary"),   # heads -> 2 TCs on v7x
            vmem_limit_bytes=24 * 1024 * 1024),              # ~15 MiB actual footprint
    )(features_bf16, wA, wB, w4, w5, bias)
    return out                                                # (2, B, 128)


# --------------------- deterministic parameter construction (glue) -------------------

def _linear_params(key, din, dout, scale=0.02):
    kw, kb = jax.random.split(key)
    w = jax.random.normal(kw, (din, dout), jnp.float32) * scale
    b = jax.random.normal(kb, (1, dout), jnp.float32) * 0.01
    return w, b


def _bn_params(key, d):
    kg, kb, km, kv = jax.random.split(key, 4)
    gamma = 1.0 + 0.1 * jax.random.normal(kg, (1, d), jnp.float32)
    beta = 0.1 * jax.random.normal(kb, (1, d), jnp.float32)
    mean = 0.1 * jax.random.normal(km, (1, d), jnp.float32)
    var = jax.random.uniform(kv, (1, d), jnp.float32, minval=0.5, maxval=1.5)
    return gamma, beta, mean, var


def make_raw_head_params(key, num_classes):
    ks = jax.random.split(key, 11)
    p = {}
    p["w1"], p["b1"] = _linear_params(ks[0], FEATURE_DIM, 1024)
    p["bn1"] = _bn_params(ks[1], 1024)
    p["rw1"], p["rb1"] = _linear_params(ks[2], 1024, 768)
    p["rbn1"] = _bn_params(ks[3], 768)
    p["rw2"], p["rb2"] = _linear_params(ks[4], 768, 768)
    p["rbn2"] = _bn_params(ks[5], 768)
    p["rws"], p["rbs"] = _linear_params(ks[6], 1024, 768)   # ResidualBlock shortcut Linear
    p["w3"], p["b3"] = _linear_params(ks[7], 768, 512)
    p["bn3"] = _bn_params(ks[8], 512)
    p["w4"], p["b4"] = _linear_params(ks[9], 512, 256)
    p["w5"], p["b5"] = _linear_params(ks[10], 256, num_classes)
    p["num_classes"] = num_classes
    return p


def _fold_bn(w, b, bn):
    gamma, beta, mean, var = bn
    scale = gamma / jnp.sqrt(var + BN_EPS)
    return w * scale, b * scale + (beta - mean * scale)


def fold_head_params(p):
    """Fold BN into the preceding Linear; zero-pad the final layer to 128 lanes. f32."""
    w1, b1 = _fold_bn(p["w1"], p["b1"], p["bn1"])
    rw1, rb1 = _fold_bn(p["rw1"], p["rb1"], p["rbn1"])
    rw2, rb2 = _fold_bn(p["rw2"], p["rb2"], p["rbn2"])
    w3, b3 = _fold_bn(p["w3"], p["b3"], p["bn3"])
    nc = p["num_classes"]
    w5 = jnp.zeros((256, PADDED_CLASSES), jnp.float32).at[:, :nc].set(p["w5"])
    b5 = jnp.zeros((1, PADDED_CLASSES), jnp.float32).at[:, :nc].set(p["b5"])
    return (w1, b1, rw1, rb1, rw2, rb2, p["rws"], p["rbs"],
            w3, b3, p["w4"], p["b4"], w5, b5)


def pack_head_params(f):
    """Coalesce per-head arrays into few large, lane-aligned blocks (fewer DMA descriptors)."""
    (w1, b1, rw1, rb1, rw2, rb2, rws, rbs, w3, b3, w4, b4, w5, b5) = f
    wA = jnp.concatenate([w1, rws, rw1], axis=1)                     # (1024, 2560)
    wB = jnp.concatenate([rw2, w3], axis=1)                          # (768, 1280)
    bias = jnp.concatenate([b1, rbs, rb1, rb2, b3, b4, b5], axis=1)  # (1, 4224)
    assert bias.shape[1] == _BIAS_TOTAL
    return wA, wB, w4, w5, bias


def stack_heads(packed_a, packed_b):
    """Stack the two heads along a leading axis of size 2; weights -> bf16, bias stays f32."""
    stacked = []
    for pa, pb in zip(packed_a, packed_b):
        s = jnp.stack([pa, pb], axis=0)
        if pa.shape[0] > 1:                  # weight matrix (din, dout) -> bf16
            s = s.astype(jnp.bfloat16)
        stacked.append(s)                    # bias (1, 4224) stays f32
    return tuple(stacked)


# ------------------------------ pure-JAX references ---------------------------------

def head_reference_folded(x, f):
    (w1, b1, rw1, rb1, rw2, rb2, rws, rbs, w3, b3, w4, b4, w5, b5) = f
    h = jnp.maximum(x @ w1 + b1, 0.0)
    ident = h @ rws + rbs
    r = jnp.maximum(h @ rw1 + rb1, 0.0)
    r = r @ rw2 + rb2
    r = jnp.maximum(r + ident, 0.0)
    h = jnp.maximum(r @ w3 + b3, 0.0)
    h = jnp.maximum(h @ w4 + b4, 0.0)
    return h @ w5 + b5                       # (B, 128)


def head_reference_raw(x, p):
    def bn(h, bnp):
        gamma, beta, mean, var = bnp
        return (h - mean) / jnp.sqrt(var + BN_EPS) * gamma + beta
    h = jnp.maximum(bn(x @ p["w1"] + p["b1"], p["bn1"]), 0.0)
    ident = h @ p["rws"] + p["rbs"]
    r = jnp.maximum(bn(h @ p["rw1"] + p["rb1"], p["rbn1"]), 0.0)
    r = bn(r @ p["rw2"] + p["rb2"], p["rbn2"])
    r = jnp.maximum(r + ident, 0.0)
    h = jnp.maximum(bn(r @ p["w3"] + p["b3"], p["bn3"]), 0.0)
    h = jnp.maximum(h @ p["w4"] + p["b4"], 0.0)
    return h @ p["w5"] + p["b5"]             # (B, num_classes)


# ------------------------------- model forward (glue) --------------------------------

def vit_stub_features(x, w_stub):
    b = x.shape[0]
    flat = x.reshape(b, -1)                  # NCHW flatten
    return flat @ w_stub                     # (B, 1024) f32


def dual_classifier_forward(x, w_stub, stacked_params,
                            num_ingredient_classes, num_vessel_classes):
    features = vit_stub_features(x, w_stub)                        # frozen backbone (no grad)
    out = run_dual_heads(features.astype(jnp.bfloat16), stacked_params)   # (2, B, 128)
    # Padded logit lanes are sliced off here, before any softmax/loss (invariant).
    ingredient_logits = out[0, :, :num_ingredient_classes]
    vessel_logits = out[1, :, :num_vessel_classes]
    return ingredient_logits, vessel_logits


if __name__ == "__main__":
    key = jax.random.PRNGKey(0)
    k_x, k_stub, k_ing, k_ves = jax.random.split(key, 4)

    # Small test shapes; B=16 with batch_tile=8 exercises weight residency across 2 batch
    # tiles (real deployments use B >= 128 per tile to reach the MXU roofline).
    B, C, H, W = 16, 3, 16, 16
    NUM_INGREDIENT_CLASSES = 10
    NUM_VESSEL_CLASSES = 6

    x = jax.random.normal(k_x, (B, C, H, W), jnp.float32)          # NCHW input
    w_stub = jax.random.normal(k_stub, (C * H * W, FEATURE_DIM), jnp.float32) * 0.02

    ing_raw = make_raw_head_params(k_ing, NUM_INGREDIENT_CLASSES)
    ves_raw = make_raw_head_params(k_ves, NUM_VESSEL_CLASSES)
    ing_folded = fold_head_params(ing_raw)
    ves_folded = fold_head_params(ves_raw)
    stacked = stack_heads(pack_head_params(ing_folded), pack_head_params(ves_folded))

    ing_logits, ves_logits = dual_classifier_forward(
        x, w_stub, stacked, NUM_INGREDIENT_CLASSES, NUM_VESSEL_CLASSES)
    jax.block_until_ready((ing_logits, ves_logits))

    assert ing_logits.shape == (B, NUM_INGREDIENT_CLASSES)
    assert ves_logits.shape == (B, NUM_VESSEL_CLASSES)

    feats = vit_stub_features(x, w_stub)
    # (a) folded-vs-raw reference: verifies the offline BN/bias fold (pure f32).
    ing_ref_f = head_reference_folded(feats, ing_folded)[:, :NUM_INGREDIENT_CLASSES]
    ves_ref_f = head_reference_folded(feats, ves_folded)[:, :NUM_VESSEL_CLASSES]
    ing_ref_r = head_reference_raw(feats, ing_raw)
    ves_ref_r = head_reference_raw(feats, ves_raw)
    assert jnp.allclose(ing_ref_f, ing_ref_r, atol=1e-3, rtol=1e-3)
    assert jnp.allclose(ves_ref_f, ves_ref_r, atol=1e-3, rtol=1e-3)

    # (b) kernel-vs-folded-f32 reference: tolerance loosened for bf16 weights/activations.
    assert jnp.allclose(ing_logits, ing_ref_f, atol=3e-2, rtol=3e-2)
    assert jnp.allclose(ves_logits, ves_ref_f, atol=3e-2, rtol=3e-2)

    print("KERNEL_OK")
</pallas_src>

<mosaic_0001>
module attributes {stable_mosaic.version = 11 : i64} {
  func.func @fused_heads_kernel(%arg0: i32, %arg1: i32, %arg2: memref<16x1024xbf16, #tpu.memory_space<vmem>>, %arg3: memref<1x1024x2560xbf16, #tpu.memory_space<vmem>>, %arg4: memref<1x768x1280xbf16, #tpu.memory_space<vmem>>, %arg5: memref<1x512x256xbf16, #tpu.memory_space<vmem>>, %arg6: memref<1x256x128xbf16, #tpu.memory_space<vmem>>, %arg7: memref<1x1x4224xf32, #tpu.memory_space<vmem>>, %arg8: memref<1x16x128xf32, #tpu.memory_space<vmem>>) attributes {dimension_semantics = [#tpu.dimension_semantics<parallel>, #tpu.dimension_semantics<arbitrary>], iteration_bounds = array<i64: 2, 1>, scalar_prefetch = 0 : i64, scratch_operands = 0 : i64, tpu.core_type = #tpu.core_type<tc>, window_params = [{transform_indices = @transform_0, window_bounds = array<i64: 16, 1024>}, {transform_indices = @transform_1, window_bounds = array<i64: 1, 1024, 2560>}, {transform_indices = @transform_2, window_bounds = array<i64: 1, 768, 1280>}, {transform_indices = @transform_3, window_bounds = array<i64: 1, 512, 256>}, {transform_indices = @transform_4, window_bounds = array<i64: 1, 256, 128>}, {transform_indices = @transform_5, window_bounds = array<i64: 1, 1, 4224>}, {transform_indices = @transform_6, window_bounds = array<i64: 1, 16, 128>}]} {
    %c0 = arith.constant 0 : index
    %c0_0 = arith.constant 0 : index
    %0 = vector.load %arg2[%c0, %c0_0] : memref<16x1024xbf16, #tpu.memory_space<vmem>>, vector<16x1024xbf16>
    %c0_1 = arith.constant 0 : index
    %c0_2 = arith.constant 0 : index
    %c0_3 = arith.constant 0 : index
    %1 = vector.load %arg3[%c0_1, %c0_2, %c0_3] : memref<1x1024x2560xbf16, #tpu.memory_space<vmem>>, vector<1x1024x1024xbf16>
    %2 = vector.shape_cast %1 : vector<1x1024x1024xbf16> to vector<1024x1024xbf16>
    %cst = arith.constant dense<0.000000e+00> : vector<16x1024xf32>
    %3 = tpu.matmul %0, %2, %cst {dimension_numbers = #tpu.dot_dimension_numbers<[1], [0], [0], [1], [0, 0, 1, 1], [], []>} : vector<16x1024xbf16>, vector<1024x1024xbf16>, vector<16x1024xf32> -> vector<16x1024xf32>
    %c0_4 = arith.constant 0 : index
    %c0_5 = arith.constant 0 : index
    %c0_6 = arith.constant 0 : index
    %4 = vector.load %arg7[%c0_4, %c0_5, %c0_6] : memref<1x1x4224xf32, #tpu.memory_space<vmem>>, vector<1x1x1024xf32>
    %5 = vector.shape_cast %4 : vector<1x1x1024xf32> to vector<1x1024xf32>
    %6 = vector.broadcast %5 : vector<1x1024xf32> to vector<16x1024xf32>
    %7 = arith.addf %3, %6 : vector<16x1024xf32>
    %cst_7 = arith.constant 0.000000e+00 : f32
    %8 = vector.broadcast %cst_7 : f32 to vector<16x1024xf32>
    %9 = arith.maximumf %7, %8 : vector<16x1024xf32>
    %10 = arith.truncf %9 : vector<16x1024xf32> to vector<16x1024xbf16>
    %c0_8 = arith.constant 0 : index
    %c0_9 = arith.constant 0 : index
    %c1024 = arith.constant 1024 : index
    %11 = vector.load %arg3[%c0_8, %c0_9, %c1024] : memref<1x1024x2560xbf16, #tpu.memory_space<vmem>>, vector<1x1024x768xbf16>
    %12 = vector.shape_cast %11 : vector<1x1024x768xbf16> to vector<1024x768xbf16>
    %cst_10 = arith.constant dense<0.000000e+00> : vector<16x768xf32>
    %13 = tpu.matmul %10, %12, %cst_10 {dimension_numbers = #tpu.dot_dimension_numbers<[1], [0], [0], [1], [0, 0, 1, 1], [], []>} : vector<16x1024xbf16>, vector<1024x768xbf16>, vector<16x768xf32> -> vector<16x768xf32>
    %c0_11 = arith.constant 0 : index
    %c0_12 = arith.constant 0 : index
    %c1024_13 = arith.constant 1024 : index
    %14 = vector.load %arg7[%c0_11, %c0_12, %c1024_13] : memref<1x1x4224xf32, #tpu.memory_space<vmem>>, vector<1x1x768xf32>
    %15 = vector.shape_cast %14 : vector<1x1x768xf32> to vector<1x768xf32>
    %16 = vector.broadcast %15 : vector<1x768xf32> to vector<16x768xf32>
    %17 = arith.addf %13, %16 : vector<16x768xf32>
    %c0_14 = arith.constant 0 : index
    %c0_15 = arith.constant 0 : index
    %c1792 = arith.constant 1792 : index
    %18 = vector.load %arg3[%c0_14, %c0_15, %c1792] : memref<1x1024x2560xbf16, #tpu.memory_space<vmem>>, vector<1x1024x768xbf16>
    %19 = vector.shape_cast %18 : vector<1x1024x768xbf16> to vector<1024x768xbf16>
    %cst_16 = arith.constant dense<0.000000e+00> : vector<16x768xf32>
    %20 = tpu.matmul %10, %19, %cst_16 {dimension_numbers = #tpu.dot_dimension_numbers<[1], [0], [0], [1], [0, 0, 1, 1], [], []>} : vector<16x1024xbf16>, vector<1024x768xbf16>, vector<16x768xf32> -> vector<16x768xf32>
    %c0_17 = arith.constant 0 : index
    %c0_18 = arith.constant 0 : index
    %c1792_19 = arith.constant 1792 : index
    %21 = vector.load %arg7[%c0_17, %c0_18, %c1792_19] : memref<1x1x4224xf32, #tpu.memory_space<vmem>>, vector<1x1x768xf32>
    %22 = vector.shape_cast %21 : vector<1x1x768xf32> to vector<1x768xf32>
    %23 = vector.broadcast %22 : vector<1x768xf32> to vector<16x768xf32>
    %24 = arith.addf %20, %23 : vector<16x768xf32>
    %cst_20 = arith.constant 0.000000e+00 : f32
    %25 = vector.broadcast %cst_20 : f32 to vector<16x768xf32>
    %26 = arith.maximumf %24, %25 : vector<16x768xf32>
    %27 = arith.truncf %26 : vector<16x768xf32> to vector<16x768xbf16>
    %c0_21 = arith.constant 0 : index
    %c0_22 = arith.constant 0 : index
    %c0_23 = arith.constant 0 : index
    %28 = vector.load %arg4[%c0_21, %c0_22, %c0_23] : memref<1x768x1280xbf16, #tpu.memory_space<vmem>>, vector<1x768x768xbf16>
    %29 = vector.shape_cast %28 : vector<1x768x768xbf16> to vector<768x768xbf16>
    %cst_24 = arith.constant dense<0.000000e+00> : vector<16x768xf32>
    %30 = tpu.matmul %27, %29, %cst_24 {dimension_numbers = #tpu.dot_dimension_numbers<[1], [0], [0], [1], [0, 0, 1, 1], [], []>} : vector<16x768xbf16>, vector<768x768xbf16>, vector<16x768xf32> -> vector<16x768xf32>
    %c0_25 = arith.constant 0 : index
    %c0_26 = arith.constant 0 : index
    %c2560 = arith.constant 2560 : index
    %31 = vector.load %arg7[%c0_25, %c0_26, %c2560] : memref<1x1x4224xf32, #tpu.memory_space<vmem>>, vector<1x1x768xf32>
    %32 = vector.shape_cast %31 : vector<1x1x768xf32> to vector<1x768xf32>
    %33 = vector.broadcast %32 : vector<1x768xf32> to vector<16x768xf32>
    %34 = arith.addf %30, %33 : vector<16x768xf32>
    %35 = arith.addf %34, %17 : vector<16x768xf32>
    %cst_27 = arith.constant 0.000000e+00 : f32
    %36 = vector.broadcast %cst_27 : f32 to vector<16x768xf32>
    %37 = arith.maximumf %35, %36 : vector<16x768xf32>
    %38 = arith.truncf %37 : vector<16x768xf32> to vector<16x768xbf16>
    %c0_28 = arith.constant 0 : index
    %c0_29 = arith.constant 0 : index
    %c768 = arith.constant 768 : index
    %39 = vector.load %arg4[%c0_28, %c0_29, %c768] : memref<1x768x1280xbf16, #tpu.memory_space<vmem>>, vector<1x768x512xbf16>
    %40 = vector.shape_cast %39 : vector<1x768x512xbf16> to vector<768x512xbf16>
    %cst_30 = arith.constant dense<0.000000e+00> : vector<16x512xf32>
    %41 = tpu.matmul %38, %40, %cst_30 {dimension_numbers = #tpu.dot_dimension_numbers<[1], [0], [0], [1], [0, 0, 1, 1], [], []>} : vector<16x768xbf16>, vector<768x512xbf16>, vector<16x512xf32> -> vector<16x512xf32>
    %c0_31 = arith.constant 0 : index
    %c0_32 = arith.constant 0 : index
    %c3328 = arith.constant 3328 : index
    %42 = vector.load %arg7[%c0_31, %c0_32, %c3328] : memref<1x1x4224xf32, #tpu.memory_space<vmem>>, vector<1x1x512xf32>
    %43 = vector.shape_cast %42 : vector<1x1x512xf32> to vector<1x512xf32>
    %44 = vector.broadcast %43 : vector<1x512xf32> to vector<16x512xf32>
    %45 = arith.addf %41, %44 : vector<16x512xf32>
    %cst_33 = arith.constant 0.000000e+00 : f32
    %46 = vector.broadcast %cst_33 : f32 to vector<16x512xf32>
    %47 = arith.maximumf %45, %46 : vector<16x512xf32>
    %48 = arith.truncf %47 : vector<16x512xf32> to vector<16x512xbf16>
    %c0_34 = arith.constant 0 : index
    %c0_35 = arith.constant 0 : index
    %c0_36 = arith.constant 0 : index
    %49 = vector.load %arg5[%c0_34, %c0_35, %c0_36] : memref<1x512x256xbf16, #tpu.memory_space<vmem>>, vector<1x512x256xbf16>
    %50 = vector.shape_cast %49 : vector<1x512x256xbf16> to vector<512x256xbf16>
    %cst_37 = arith.constant dense<0.000000e+00> : vector<16x256xf32>
    %51 = tpu.matmul %48, %50, %cst_37 {dimension_numbers = #tpu.dot_dimension_numbers<[1], [0], [0], [1], [0, 0, 1, 1], [], []>} : vector<16x512xbf16>, vector<512x256xbf16>, vector<16x256xf32> -> vector<16x256xf32>
    %c0_38 = arith.constant 0 : index
    %c0_39 = arith.constant 0 : index
    %c3840 = arith.constant 3840 : index
    %52 = vector.load %arg7[%c0_38, %c0_39, %c3840] : memref<1x1x4224xf32, #tpu.memory_space<vmem>>, vector<1x1x256xf32>
    %53 = vector.shape_cast %52 : vector<1x1x256xf32> to vector<1x256xf32>
    %54 = vector.broadcast %53 : vector<1x256xf32> to vector<16x256xf32>
    %55 = arith.addf %51, %54 : vector<16x256xf32>
    %cst_40 = arith.constant 0.000000e+00 : f32
    %56 = vector.broadcast %cst_40 : f32 to vector<16x256xf32>
    %57 = arith.maximumf %55, %56 : vector<16x256xf32>
    %58 = arith.truncf %57 : vector<16x256xf32> to vector<16x256xbf16>
    %c0_41 = arith.constant 0 : index
    %c0_42 = arith.constant 0 : index
    %c0_43 = arith.constant 0 : index
    %59 = vector.load %arg6[%c0_41, %c0_42, %c0_43] : memref<1x256x128xbf16, #tpu.memory_space<vmem>>, vector<1x256x128xbf16>
    %60 = vector.shape_cast %59 : vector<1x256x128xbf16> to vector<256x128xbf16>
    %cst_44 = arith.constant dense<0.000000e+00> : vector<16x128xf32>
    %61 = tpu.matmul %58, %60, %cst_44 {dimension_numbers = #tpu.dot_dimension_numbers<[1], [0], [0], [1], [0, 0, 1, 1], [], []>} : vector<16x256xbf16>, vector<256x128xbf16>, vector<16x128xf32> -> vector<16x128xf32>
    %c0_45 = arith.constant 0 : index
    %c0_46 = arith.constant 0 : index
    %c4096 = arith.constant 4096 : index
    %62 = vector.load %arg7[%c0_45, %c0_46, %c4096] : memref<1x1x4224xf32, #tpu.memory_space<vmem>>, vector<1x1x128xf32>
    %63 = vector.shape_cast %62 : vector<1x1x128xf32> to vector<1x128xf32>
    %64 = vector.broadcast %63 : vector<1x128xf32> to vector<16x128xf32>
    %65 = arith.addf %61, %64 : vector<16x128xf32>
    %c0_47 = arith.constant 0 : index
    %c0_48 = arith.constant 0 : index
    %c0_49 = arith.constant 0 : index
    %66 = vector.load %arg8[%c0_47, %c0_48, %c0_49] : memref<1x16x128xf32, #tpu.memory_space<vmem>>, vector<1x16x128xf32>
    %67 = vector.shape_cast %66 : vector<1x16x128xf32> to vector<16x128xf32>
    %68 = vector.shape_cast %65 : vector<16x128xf32> to vector<1x16x128xf32>
    tpu.vector_store %arg8[%c0_47, %c0_48, %c0_49], %68 {strides = array<i32>} : memref<1x16x128xf32, #tpu.memory_space<vmem>>, vector<1x16x128xf32>,
    return
  }
  func.func @transform_0(%arg0: i32, %arg1: i32) -> (i32, i32) {
    %c0_i32 = arith.constant 0 : i32
    %c0_i32_0 = arith.constant 0 : i32
    return %arg1, %c0_i32 : i32, i32
  }
  func.func @transform_1(%arg0: i32, %arg1: i32) -> (i32, i32, i32) {
    %c0_i32 = arith.constant 0 : i32
    %c0_i32_0 = arith.constant 0 : i32
    %c0_i32_1 = arith.constant 0 : i32
    return %arg0, %c0_i32, %c0_i32_0 : i32, i32, i32
  }
  func.func @transform_2(%arg0: i32, %arg1: i32) -> (i32, i32, i32) {
    %c0_i32 = arith.constant 0 : i32
    %c0_i32_0 = arith.constant 0 : i32
    %c0_i32_1 = arith.constant 0 : i32
    return %arg0, %c0_i32, %c0_i32_0 : i32, i32, i32
  }
  func.func @transform_3(%arg0: i32, %arg1: i32) -> (i32, i32, i32) {
    %c0_i32 = arith.constant 0 : i32
    %c0_i32_0 = arith.constant 0 : i32
    %c0_i32_1 = arith.constant 0 : i32
    return %arg0, %c0_i32, %c0_i32_0 : i32, i32, i32
  }
  func.func @transform_4(%arg0: i32, %arg1: i32) -> (i32, i32, i32) {
    %c0_i32 = arith.constant 0 : i32
    %c0_i32_0 = arith.constant 0 : i32
    %c0_i32_1 = arith.constant 0 : i32
    return %arg0, %c0_i32, %c0_i32_0 : i32, i32, i32
  }
  func.func @transform_5(%arg0: i32, %arg1: i32) -> (i32, i32, i32) {
    %c0_i32 = arith.constant 0 : i32
    %c0_i32_0 = arith.constant 0 : i32
    %c0_i32_1 = arith.constant 0 : i32
    return %arg0, %c0_i32, %c0_i32_0 : i32, i32, i32
  }
  func.func @transform_6(%arg0: i32, %arg1: i32) -> (i32, i32, i32) {
    %c0_i32 = arith.constant 0 : i32
    %c0_i32_0 = arith.constant 0 : i32
    return %arg0, %arg1, %c0_i32 : i32, i32, i32
  }
}

</mosaic_0001>

<bundles_post_ra>
// kernel: tpu_custom_call.1
= control target key start
LH: loop header
LB: loop body
LE: loop exit
PB: predicated region body
PF: predicated region fallthrough
CT: control target
= control target key end

     0   :  { %s22360_s0 = inlined_call_operand.hbm [shape: bf16[16,1024], index: 0, kind: input, shape index: {}]   ;;  %s22361_s1 = inlined_call_operand.hbm [shape: bf16[2,1024,2560], index: 1, kind: input, shape index: {}]   ;;  %s22362_s2 = inlined_call_operand.hbm [shape: bf16[2,768,1280], index: 2, kind: input, shape index: {}]   ;;  %s22363_s3 = inlined_call_operand.hbm [shape: bf16[2,512,256], index: 3, kind: input, shape index: {}]   ;;  %s22364_s4 = inlined_call_operand.hbm [shape: bf16[2,256,128], index: 4, kind: input, shape index: {}]   ;;  %s22365_s5 = inlined_call_operand.hbm [shape: f32[2,1,4224], index: 5, kind: input, shape index: {}]   ;;  %s22366_s6 = inlined_call_operand.hbm [shape: f32[2,16,128], index: 6, kind: output, shape index: {}]  }
   0x1   :  { %22384 = sst [smem:[#allocation25_spill]] %s22361_s1 }
   0x2   :  { %22385 = sst [smem:[#allocation26_spill]] %s22363_s3 }
   0x3   :  { %22386 = sst [smem:[#allocation27_spill]] %s22366_s6 }
   0x4   :  { %11 = vsyncpa [#allocation3], 0 }
   0x5   :  { %12 = vsyncpa [#allocation6], 0 }
   0x6   :  { %14 = vsyncpa [#allocation6 + $0x1], 0 }
   0x7   :  { %15 = vsyncpa [#allocation9], 0 }
   0x8   :  { %17 = vsyncpa [#allocation9 + $0x1], 0 }
   0x9   :  { %18 = vsyncpa [#allocation12], 0 }
   0xa   :  { %20 = vsyncpa [#allocation12 + $0x1], 0 }
   0xb   :  { %21 = vsyncpa [#allocation4], 0 }
   0xc   :  { %23 = vsyncpa [#allocation4 + $0x1], 0  ;;  %s19879_s21 = smov 0   ;;  %s19881_s22 = smov 0  }
   0xd   :  { %s19883_s23 = smov 0   ;;  %s19885_s24 = smov 0  }
   0xe   :  { %s19887_s25 = smov 0   ;;  %s19889_s26 = smov 0  }
   0xf LB: > { %22387 = sst [smem:[#allocation19_spill]] %s19803_s21  ;;  %s41_s27 = sadd.s32 1, %s19819_s25  ;;  %s19823_s26 = sphi %s19889_s26, %s29_s26   ;;  %s19819_s25 = sphi %s19887_s25, %s22423_s25   ;;  %s19815_s24 = sphi %s19885_s24, %s22422_s24   ;;  %s19811_s23 = sphi %s19883_s23, %s22418_s23   ;;  %s19807_s22 = sphi %s19881_s22, %s22421_s22   ;;  %s19803_s21 = sphi %s19879_s21, %s22420_s21  }
  0x10   : > { %22388 = sst [smem:[#allocation20_spill]] %s19811_s23  ;;  %s74_s28 = sadd.s32 1, %s19811_s23 }
  0x11   : > { %22389 = sst [smem:[#allocation21_spill]] %s19823_s26  ;;  %p43_p0 = scmp.ge.s32.totalorder %s41_s27, 2 }
  0x12   : > { %p22367_p1 = scmp.ne.s32.totalorder %s19811_s23, %s19807_s22  ;;  %p82_p2 = scmp.eq.s32.totalorder %s19823_s26, 0 }
  0x13   : > { %s22425_s27 = smov (%p43_p0, %s41_s27), 0  ;;  %p16734_p5 = scmp.lt.s32.totalorder %s19823_s26, 2 }
  0x14   : > { %22390 = sst [smem:[#allocation22_spill]] %s22425_s27  ;;  %p83_p4 = por %p82_p2, %p22367_p1 }
  0x15   : > { %s71_s29 = ssub.s32 %s19819_s25, %s22425_s27  ;;  %s260_s30 = sand.u32 1, %s19823_s26  }
  0x16   : > { %p72_p6 = scmp.eq.s32.totalorder %s71_s29, 0  ;;  %s19925_s7 = sand.u32 1, %s19811_s23  }
  0x17   : > { %s16685_s8 = smul.u32 163840, %s19819_s25  ;;  %s22392_s1 = sld [smem:[#allocation25_spill]] }
  0x18   : > { %s19929_s9 = scalar_select %p72_p6, %s19811_s23, %s74_s28  }
  0x19   : > { %s16684_s10 = smul.u32 10240, %s19925_s7  ;;  %p19937_p7 = pnand %p16734_p5, %p83_p4 }
  0x1a   : > { %22391 = sst [smem:[#allocation23_spill]] %s19929_s9  ;;  %s19945_s17 = scalar_lea.sflag [#allocation6], %s260_s30 }
  0x1b   : > { %s22393_s14 = scalar_select %p19937_p7, 1, 0 }
  0x1c   : > { %s264_s15 = scalar_lea.vmem [#allocation5], %s16684_s10  ;;  %p19951_p9 = pneg %p19937_p7 }
  0x1d   : > { %s19935_s13 = scalar_lea.hbm %s22392_s1, %s16685_s8  ;;  %s271_s16 = sshll.u32 %s264_s15, 4  ;;  %s19941_s16 = int_to_ptr.vmem [resolvable:$true] %s271_s16 }
  0x1e   : > { %s19551_s18 = scalar_lea.hbm %s19935_s13, 163840  ;;  %s19556_s29 = scalar_lea.hbm %s22392_s1, 327680 }
  0x1f   : > { %p19552_p8 = scmp.ne.s32.totalorder %s19935_s13, %s19551_s18  ;;  %p19557_p12 = scmp.lt.u32.totalorder %s19935_s13, %s22392_s1 }
  0x20   : > { %s22394_s19 = scalar_select %p19951_p9, 1, 0 }
  0x21   : > { %p19554_p10 = pnand %p19951_p9, %p19552_p8  ;;  %p19558_p13 = scmp.lt.u32.totalorder %s19556_s29, %s19551_s18 }
  0x22   : > { %p19560_p2 = scmp.lt.u32.totalorder %s19551_s18, %s19935_s13 }
  0x23   : > { %p19555_p11 = pneg %p19554_p10  ;;  %p19559_p0 = por %p19558_p13, %p19557_p12 }
  0x25   : > { %p19561_p4 = por %p19560_p2, %p19559_p0 }
  0x27   : > { %p19562_p5 = pnand %p19561_p4, %p19555_p11 }
  0x29   : > { %19565 = shalt.err (!%p19562_p5)
}
  0x2a   : > { %s19566_s11 = scalar_lea.vmem %s19941_s16, 163840  ;;  %s19825_s12 = smov [#allocation5]  }
  0x2b   : > { %p19567_p6 = scmp.ne.s32.totalorder %s19941_s16, %s19566_s11  ;;  %s19571_s15 = sshll.u32 %s19825_s12, 4  ;;  %s19572_s15 = int_to_ptr.vmem [resolvable:$false] %s19571_s15 }
  0x2c   : > { %s19573_s20 = scalar_lea.vmem %s19572_s15, 327680  ;;  %p19574_p3 = scmp.lt.s32.totalorder %s19941_s16, %s19572_s15 }
  0x2d   : > { %p19569_p8 = pnand %p19567_p6, %p19951_p9  ;;  %p19575_p1 = scmp.lt.s32.totalorder %s19573_s20, %s19566_s11 }
  0x2f   : > { %p19570_p10 = pneg %p19569_p8  ;;  %p19576_p12 = por %p19575_p1, %p19574_p3 }
  0x31   : > { %p19577_p13 = pnand %p19576_p12, %p19570_p10 }
  0x33   : > { %19580 = shalt.err (!%p19577_p13)
}
  0x34   : > { %s19826_s18 = smov 1280   ;;  %s19827_s28 = smov 80  }
  0x35   : > { %16716 = dma.hbm_to_vmem [thread:$0]  (!%p19937_p7), %s19935_s13, 163840, %s19941_s16, %s19945_s17, %s19826_s18, %s19826_s18, %s19827_s28  }
  0x36   : > { %s14553_s29 = sshll.u32 %s19925_s7, 9  ;;  %s16419_s8 = sshll.u32 %s19819_s25, 13 }
  0x37   : > { %s22395_s3 = sld [smem:[#allocation26_spill]]  ;;  %s306_s15 = scalar_lea.vmem [#allocation8], %s14553_s29 }
  0x38   : > { %s313_s20 = sshll.u32 %s306_s15, 4  ;;  %s19986_s1 = scalar_lea.sflag [#allocation9], %s260_s30  ;;  %s19982_s20 = int_to_ptr.vmem [resolvable:$true] %s313_s20 }
  0x3d   : > { %s19980_s11 = scalar_lea.hbm %s22395_s3, %s16419_s8  ;;  %s19586_s18 = scalar_lea.hbm %s22395_s3, 16384 }
  0x3e   : > { %s19581_s27 = scalar_lea.hbm %s19980_s11, 8192  ;;  %p19587_p0 = scmp.lt.u32.totalorder %s19980_s11, %s22395_s3 }
  0x3f   : > { %p19582_p1 = scmp.ne.s32.totalorder %s19980_s11, %s19581_s27  ;;  %p19588_p2 = scmp.lt.u32.totalorder %s19586_s18, %s19581_s27 }
  0x40   : > { %p19590_p5 = scmp.lt.u32.totalorder %s19581_s27, %s19980_s11 }
  0x41   : > { %p19584_p3 = pnand %p19582_p1, %p19951_p9  ;;  %p19589_p4 = por %p19588_p2, %p19587_p0 }
  0x43   : > { %p19585_p11 = pneg %p19584_p3  ;;  %p19591_p6 = por %p19590_p5, %p19589_p4 }
  0x45   : > { %p19592_p8 = pnand %p19591_p6, %p19585_p11 }
  0x47   : > { %19595 = shalt.err (!%p19592_p8)
}
  0x48   : > { %s19596_s30 = scalar_lea.vmem %s19982_s20, 8192  ;;  %s19828_s29 = smov [#allocation8]  }
  0x49   : > { %p19597_p10 = scmp.ne.s32.totalorder %s19982_s20, %s19596_s30  ;;  %s19601_s10 = sshll.u32 %s19828_s29, 4  ;;  %s19602_s10 = int_to_ptr.vmem [resolvable:$false] %s19601_s10 }
  0x4a   : > { %s19603_s12 = scalar_lea.vmem %s19602_s10, 16384  ;;  %p19604_p1 = scmp.lt.s32.totalorder %s19982_s20, %s19602_s10 }
  0x4b   : > { %p19599_p12 = pnand %p19597_p10, %p19951_p9  ;;  %p19605_p3 = scmp.lt.s32.totalorder %s19603_s12, %s19596_s30 }
  0x4d   : > { %p19600_p13 = pneg %p19599_p12  ;;  %p19606_p0 = por %p19605_p3, %p19604_p1 }
  0x4f   : > { %p19607_p2 = pnand %p19606_p0, %p19600_p13 }
  0x51   : > { %19610 = shalt.err (!%p19607_p2)
}
  0x52   : > { %s19829_s27 = smov 128   ;;  %s19830_s15 = smov 8  }
  0x53   : > { %16722 = dma.hbm_to_vmem [thread:$0]  (!%p19937_p7), %s19980_s11, 8192, %s19982_s20, %s19986_s1, %s19829_s27, %s19829_s27, %s19830_s15  }
  0x54   : > { %s20011_s13 = sadd.s32 4294967295, %s19823_s26   ;;  %s14547_s16 = sadd.s32 4294967294, %s19823_s26  }
  0x55   : > { %p87_p11 = scmp.ne.s32.totalorder %s19807_s22, %s19803_s21  ;;  %p22374_p4 = scmp.eq.s32.totalorder %s20011_s13, 0 }
  0x56   : > { %p217_p5 = scmp.eq.s32.totalorder %s20011_s13, 1  ;;  %p223_p6 = scmp.eq.s32.totalorder %s14547_s16, 1 }
  0x57   : > { %p20020_p8 = por %p22374_p4, %p87_p11  ;;  %p14548_p10 = scmp.ge.s32.totalorder %s19823_s26, 1 }
  0x58   : > { %p22397_p12 = scmp.ne.s32.totalorder %s19811_s23, %s19807_s22  ;;  %p20032_p1 = por %p223_p6, %p87_p11 }
  0x59   : > { %s22396_s18 = scalar_select %p20020_p8, 1, 0 }
  0x5a   : > { %p20028_p13 = por %p217_p5, %p22397_p12  ;;  %p230_p3 = scmp.lt.s32.totalorder %s19823_s26, 3 }
  0x5b   : > { %s22399_s20 = scalar_select %p20032_p1, 1, 0 }
  0x5c   : > { %s22398_s11 = scalar_select %p20028_p13, 1, 0 }
  0x5d   : > { %22400 = sst [smem:[#allocation24_spill]] %s22399_s20  ;;  %p20037_p0 = pnand %p14548_p10, %p230_p3 }
  0x5e   : > { %s19831_s8 = smov [#allocation2]   ;;  %s16686_s29 = smul.u32 3840, %s19925_s7 }
  0x5f   : > { %s22401_s28 = scalar_select %p20037_p0, 1, 0 }
  0x60   : > { %s246_s30 = sshll.u32 %s19831_s8, 4  ;;  %p16709_p2 = pneg %p20037_p0  ;;  %s20041_s30 = int_to_ptr.vmem [resolvable:$true] %s246_s30 }
  0x61   : > { %s16687_s10 = smul.u32 61440, %s19819_s25  ;;  %s285_s3 = scalar_lea.vmem [#allocation7], %s16686_s29 }
  0x62   : > { %p20049_p5 = pnand %p16709_p2, %p22374_p4  ;;  %s292_s9 = sshll.u32 %s285_s3, 4  ;;  %s20058_s9 = int_to_ptr.vmem [resolvable:$true] %s292_s9 }
  0x63   : > { %s20056_s16 = scalar_lea.hbm %s22362_s2, %s16687_s10  ;;  %s19611_s26 = scalar_lea.hbm %s22360_s0, 1024 }
  0x64   : > { %p19612_p11 = scmp.ne.s32.totalorder %s22360_s0, %s19611_s26  ;;  %p19613_p6 = pneg %p20049_p5 }
  0x65   : > { %p19618_p3 = scmp.lt.u32.totalorder %s19611_s26, %s22360_s0 }
  0x66   : > { %p19614_p10 = pnand %p19613_p6, %p19612_p11 }
  0x68   : > { %p19615_p12 = pneg %p19614_p10 }
  0x6a   : > { %p19620_p2 = pnand %p19618_p3, %p19615_p12 }
  0x6c   : > { %19623 = shalt.err (!%p19620_p2)
}
  0x6d   : > { %s19624_s3 = scalar_lea.vmem %s20041_s30, 1024  ;;  %p19632_p8 = scmp.lt.s32.totalorder %s20041_s30, %s20041_s30 }
  0x6e   : > { %p19625_p4 = scmp.ne.s32.totalorder %s20041_s30, %s19624_s3  ;;  %p19633_p0 = scmp.lt.s32.totalorder %s19624_s3, %s19624_s3 }
  0x70   : > { %p19627_p1 = pnand %p19625_p4, %p19613_p6  ;;  %p19634_p7 = por %p19633_p0, %p19632_p8 }
  0x72   : > { %p19628_p13 = pneg %p19627_p1 }
  0x74   : > { %p19635_p9 = pnand %p19634_p7, %p19628_p13 }
  0x76   : > { %19638 = shalt.err (!%p19635_p9)
}
  0x77   : > { %s19832_s21 = smov 512   ;;  %s19833_s23 = smov 32  }
  0x78   : > { %16712 = dma.hbm_to_vmem [thread:$0]  (!%p20049_p5), %s22360_s0, 1024, %s20041_s30, [#allocation3], %s19832_s21, %s19832_s21, %s19833_s23  }
  0x79   : > { %s14556_s29 = sshll.u32 %s19925_s7, 7  ;;  %s19639_s10 = scalar_lea.hbm %s20056_s16, 61440 }
  0x7a   : > { %p19640_p4 = scmp.ne.s32.totalorder %s20056_s16, %s19639_s10  ;;  %p22403_p7 = scmp.ne.s32.totalorder %s22394_s19, 0 }
  0x7b   : > { %s19644_s15 = scalar_lea.hbm %s22362_s2, 122880  ;;  %p19645_p13 = scmp.lt.u32.totalorder %s20056_s16, %s22362_s2 }
  0x7c   : > { %p19642_p9 = pnand %p19640_p4, %p22403_p7  ;;  %p19646_p1 = scmp.lt.u32.totalorder %s19644_s15, %s19639_s10 }
  0x7d   : > { %p19648_p11 = scmp.lt.u32.totalorder %s19639_s10, %s20056_s16 }
  0x7e   : > { %p19643_p8 = pneg %p19642_p9  ;;  %p19647_p0 = por %p19646_p1, %p19645_p13 }
  0x80   : > { %p19649_p6 = por %p19648_p11, %p19647_p0 }
  0x82   : > { %p19650_p10 = pnand %p19649_p6, %p19643_p8 }
  0x84   : > { %19653 = shalt.err (!%p19650_p10)
}
  0x85   : > { %s19654_s30 = scalar_lea.vmem %s20058_s9, 61440  ;;  %s19834_s12 = smov [#allocation7]  }
  0x86   : > { %p19655_p5 = scmp.ne.s32.totalorder %s20058_s9, %s19654_s30  ;;  %s19659_s21 = sshll.u32 %s19834_s12, 4  ;;  %s19660_s21 = int_to_ptr.vmem [resolvable:$false] %s19659_s21 }
  0x87   : > { %s19661_s6 = scalar_lea.vmem %s19660_s21, 122880  ;;  %p19662_p2 = scmp.lt.s32.totalorder %s20058_s9, %s19660_s21 }
  0x88   : > { %p19657_p12 = pnand %p19655_p5, %p22403_p7  ;;  %p19663_p4 = scmp.lt.s32.totalorder %s19661_s6, %s19654_s30 }
  0x8a   : > { %p19658_p3 = pneg %p19657_p12  ;;  %p19664_p9 = por %p19663_p4, %p19662_p2 }
  0x8c   : > { %p19665_p13 = pnand %p19664_p9, %p19658_p3 }
  0x8e   : > { %19668 = shalt.err (!%p19665_p13)
}
  0x8f   : > { %s19835_s23 = smov 640   ;;  %s19836_s26 = smov 40  }
  0x90   : > { %p22404_p8 = scmp.ne.s32.totalorder %s22393_s14, 0  ;;  %s16420_s20 = sshll.u32 %s19819_s25, 11 }
  0x91   : > { %s20108_s27 = scalar_lea.hbm %s22364_s4, %s16420_s20  ;;  %s327_s15 = scalar_lea.vmem [#allocation10], %s14556_s29 }
  0x92   : > { %16719 = dma.hbm_to_vmem [thread:$0]  (!%p22404_p8), %s20056_s16, 61440, %s20058_s9, %s19945_s17, %s19835_s23, %s19835_s23, %s19836_s26  }
  0x93   : > { %s334_s3 = sshll.u32 %s327_s15, 4  ;;  %s19669_s30 = scalar_lea.hbm %s20108_s27, 2048  ;;  %s20112_s3 = int_to_ptr.vmem [resolvable:$true] %s334_s3 }
  0x94   : > { %p19670_p1 = scmp.ne.s32.totalorder %s20108_s27, %s19669_s30  ;;  %s19674_s16 = scalar_lea.hbm %s22364_s4, 4096 }
  0x95   : > { %p19675_p6 = scmp.lt.u32.totalorder %s20108_s27, %s22364_s4  ;;  %p19676_p10 = scmp.lt.u32.totalorder %s19674_s16, %s19669_s30 }
  0x96   : > { %p19672_p0 = pnand %p19670_p1, %p22403_p7  ;;  %p19678_p12 = scmp.lt.u32.totalorder %s19669_s30, %s20108_s27 }
  0x97   : > { %p19677_p5 = por %p19676_p10, %p19675_p6 }
  0x98   : > { %p19673_p11 = pneg %p19672_p0 }
  0x99   : > { %p19679_p3 = por %p19678_p12, %p19677_p5 }
  0x9b   : > { %p19680_p2 = pnand %p19679_p3, %p19673_p11 }
  0x9d   : > { %19683 = shalt.err (!%p19680_p2)
}
  0x9e   : > { %s19684_s29 = scalar_lea.vmem %s20112_s3, 2048  ;;  %s19837_s6 = smov [#allocation10]  }
  0x9f   : > { %p19685_p4 = scmp.ne.s32.totalorder %s20112_s3, %s19684_s29  ;;  %s19689_s23 = sshll.u32 %s19837_s6, 4  ;;  %s19690_s23 = int_to_ptr.vmem [resolvable:$false] %s19689_s23 }
  0xa0   : > { %s19691_s26 = scalar_lea.vmem %s19690_s23, 4096  ;;  %p19692_p1 = scmp.lt.s32.totalorder %s20112_s3, %s19690_s23 }
  0xa1   : > { %p19687_p9 = pnand %p19685_p4, %p22403_p7  ;;  %p19693_p0 = scmp.lt.s32.totalorder %s19691_s26, %s19684_s29 }
  0xa3   : > { %p19688_p13 = pneg %p19687_p9  ;;  %p19694_p6 = por %p19693_p0, %p19692_p1 }
  0xa5   : > { %p19695_p10 = pnand %p19694_p6, %p19688_p13 }
  0xa7   : > { %19698 = shalt.err (!%p19695_p10)
}
  0xa8   : > { %s19838_s20 = smov 64   ;;  %s19839_s10 = smov 4  }
  0xa9   : > { %16725 = dma.hbm_to_vmem [thread:$0]  (!%p22404_p8), %s20108_s27, 2048, %s20112_s3, %s19986_s1, %s19838_s20, %s19838_s20, %s19839_s10  }
  0xaa   : > { %s16688_s8 = smul.u32 33, %s19925_s7  ;;  %s345_s21 = scalar_lea.sflag [#allocation12], %s19925_s7 }
  0xab   : > { %s16689_s15 = smul.u32 528, %s19819_s25  ;;  %s19704_s3 = scalar_lea.hbm %s22365_s5, 1056 }
  0xac   : > { %s348_s16 = scalar_lea.vmem [#allocation11], %s16688_s8 }
  0xad   : > { %s20141_s17 = scalar_lea.hbm %s22365_s5, %s16689_s15  ;;  %s356_s12 = sshll.u32 %s348_s16, 4  ;;  %s357_s12 = int_to_ptr.vmem [resolvable:$true] %s356_s12 }
  0xae   : > { %s19699_s29 = scalar_lea.hbm %s20141_s17, 528  ;;  %p19705_p3 = scmp.lt.u32.totalorder %s20141_s17, %s22365_s5 }
  0xaf   : > { %p19700_p11 = scmp.ne.s32.totalorder %s20141_s17, %s19699_s29  ;;  %p19706_p2 = scmp.lt.u32.totalorder %s19704_s3, %s19699_s29 }
  0xb0   : > { %p19708_p9 = scmp.lt.u32.totalorder %s19699_s29, %s20141_s17 }
  0xb1   : > { %p19702_p5 = pnand %p19700_p11, %p22403_p7  ;;  %p19707_p4 = por %p19706_p2, %p19705_p3 }
  0xb3   : > { %p19703_p12 = pneg %p19702_p5  ;;  %p19709_p13 = por %p19708_p9, %p19707_p4 }
  0xb5   : > { %p19710_p1 = pnand %p19709_p13, %p19703_p12 }
  0xb7   : > { %19713 = shalt.err (!%p19710_p1)
}
  0xb8   : > { %s19714_s7 = scalar_lea.vmem %s357_s12, 528  ;;  %s19840_s26 = smov [#allocation11]  }
  0xb9   : > { %p19715_p0 = scmp.ne.s32.totalorder %s357_s12, %s19714_s7  ;;  %s19719_s20 = sshll.u32 %s19840_s26, 4  ;;  %s19720_s20 = int_to_ptr.vmem [resolvable:$false] %s19719_s20 }
  0xba   : > { %s19721_s10 = scalar_lea.vmem %s19720_s20, 1056  ;;  %p19722_p11 = scmp.lt.s32.totalorder %s357_s12, %s19720_s20 }
  0xbb   : > { %p19717_p6 = pnand %p19715_p0, %p22403_p7  ;;  %p19723_p5 = scmp.lt.s32.totalorder %s19721_s10, %s19714_s7 }
  0xbd   : > { %p19718_p10 = pneg %p19717_p6  ;;  %p19724_p8 = por %p19723_p5, %p19722_p11 }
  0xbf   : > { %p19725_p2 = pnand %p19724_p8, %p19718_p10 }
  0xc1   : > { %19728 = shalt.err (!%p19725_p2)
}
  0xc2   : > { %p22405_p3 = scmp.ne.s32.totalorder %s22393_s14, 0  ;;  %p22406_p12 = scmp.ne.s32.totalorder %s22401_s28, 0 }
  0xc3   : > { %p22407_p4 = scmp.eq.s32.totalorder (!%p22406_p12), %s20011_s13, 0 }
  0xc4   : > { %16728 = dma.hbm_to_vmem [thread:$0]  (!%p22405_p3), %s20141_s17, 528, %s357_s12, %s345_s21  }
  0xc5   : > { %365 = sbr.rel (%p22406_p12) target bundleno = 2971 (0xb9b), region = 44 }
  0xcc   : > { %19782 = dma.done.wait (%p22407_p4), [#allocation3], 1024   ;;  %p22408_p7 = pmov %p22407_p4 }
  0xcd   : > { %s371_s19 = sand.u32 1, %s20011_s13   ;;  %s20169_s8 = sand.u32 1, %s19807_s22  }
  0xce   : > { %19784 = vsyncadd (%p22408_p7), [#allocation3], 4294966272  ;;  %s16690_s15 = smul.u32 10240, %s20169_s8  ;;  %s372_s14 = scalar_lea.sflag [#allocation6], %s371_s19 }
  0xcf   : > { %p22409_p8 = scmp.ne.s32.totalorder %s22396_s18, 0 }
  0xd0   : > { %s20172_s30 = scalar_lea.vmem [#allocation5], %s16690_s15 }
  0xd1   : > { %19786 = dma.done.wait (%p22409_p8), %s372_s14, 225280  }
  0xd2   : > { %19788 = vsyncadd (%p22409_p8), %s372_s14, 4294742016  ;;  %s16691_s28 = smul.u32 3840, %s20169_s8  ;;  %s14562_s9 = sshll.u32 %s20169_s8, 9 }
  0xd3   : > { %s390_s13 = scalar_lea.sflag [#allocation9], %s371_s19  ;;  %s20182_s16 = scalar_lea.vmem [#allocation8], %s14562_s9 }
  0xd4   : > { %s20180_s17 = scalar_lea.vmem [#allocation7], %s16691_s28 }
  0xd5   : > { %19790 = dma.done.wait (%p22409_p8), %s390_s13, 10240  }
  0xd6   : > { %19792 = vsyncadd (%p22409_p8), %s390_s13, 4294957056  ;;  %s14563_s12 = sshll.u32 %s20169_s8, 7  ;;  %s16692_s21 = smul.u32 33, %s20169_s8 }
  0xd7   : > { %s20190_s29 = scalar_lea.vmem [#allocation10], %s14563_s12  ;;  %s408_s1 = scalar_lea.sflag [#allocation12], %s20169_s8 }
  0xd8   : > { %s20193_s27 = scalar_lea.vmem [#allocation11], %s16692_s21 }
  0xd9   : > { %19794 = dma.done.wait (%p22409_p8), %s408_s1, 528  }
  0xda   : > { %19796 = vsyncadd (%p22409_p8), %s408_s1, 4294966768  ;;  %v16798_v0 = vld [vmem:[%s20172_s30 + $0x4] ss:$80 sps:$4 sm:$0xff]   ;;  %v16800_v1 = vld [vmem:[%s20172_s30 + $0xc] ss:$80 sps:$4 sm:$0xff]   ;;  %s14564_s18 = sshll.u32 %s20169_s8, 4 }
  0xdb   : > { %3625 = vmatprep.subr.bf16.mxu0 %v16798_v0  ;;  %v16802_v2 = vld [vmem:[%s20172_s30] ss:$80 sps:$4 sm:$0xff]   ;;  %v16803_v3 = vld [vmem:[%s20172_s30 + $0x8] ss:$80 sps:$4 sm:$0xff]   ;;  %3797 = vmatprep.subr.bf16.mxu1 %v16800_v1  ;;  %v16804_v4 = vld [vmem:[%s20172_s30 + $0xa4] ss:$80 sps:$4 sm:$0xff]  }
  0xdc   : > { %3626 = vmatpush1.bf16.msra.mxu0 %v16802_v2  ;;  %3798 = vmatpush1.bf16.msra.mxu1 %v16803_v3  ;;  %v16806_v5 = vld [vmem:[%s20172_s30 + $0xac] ss:$80 sps:$4 sm:$0xff]   ;;  %v16808_v6 = vld [vmem:[%s20172_s30 + $0xa0] ss:$80 sps:$4 sm:$0xff]   ;;  %v16809_v7 = vld [vmem:[%s20172_s30 + $0xa8] ss:$80 sps:$4 sm:$0xff]  }
  0xdd   : > { %3627 = vmatprep.subr.bf16.mxu0 %v16804_v4  ;;  %3799 = vmatprep.subr.bf16.mxu1 %v16806_v5  ;;  %v16810_v8 = vld [vmem:[%s20172_s30 + $0x144] ss:$80 sps:$4 sm:$0xff]   ;;  %v16812_v9 = vld [vmem:[%s20172_s30 + $0x14c] ss:$80 sps:$4 sm:$0xff]   ;;  %v16814_v10 = vld [vmem:[%s20172_s30 + $0x140] ss:$80 sps:$4 sm:$0xff]  }
  0xde   : > { %v16815_v11 = vld [vmem:[%s20172_s30 + $0x148] ss:$80 sps:$4 sm:$0xff]   ;;  %v16816_v12 = vld [vmem:[%s20172_s30 + $0x1e4] ss:$80 sps:$4 sm:$0xff]   ;;  %v16818_v13 = vld [vmem:[%s20172_s30 + $0x1ec] ss:$80 sps:$4 sm:$0xff]  }
  0xdf   : > { %v16820_v14 = vld [vmem:[%s20172_s30 + $0x1e0] ss:$80 sps:$4 sm:$0xff]   ;;  %v16821_v15 = vld [vmem:[%s20172_s30 + $0x1e8] ss:$80 sps:$4 sm:$0xff]   ;;  %v16822_v16 = vld [vmem:[%s20172_s30 + $0x284] ss:$80 sps:$4 sm:$0xff]  }
  0xe0   : > { %3628 = vmatpush1.bf16.msra.mxu0 %v16808_v6  ;;  %3800 = vmatpush1.bf16.msra.mxu1 %v16809_v7  ;;  %v16824_v17 = vld [vmem:[%s20172_s30 + $0x28c] ss:$80 sps:$4 sm:$0xff]   ;;  %v16826_v18 = vld [vmem:[%s20172_s30 + $0x280] ss:$80 sps:$4 sm:$0xff]   ;;  %v16827_v19 = vld [vmem:[%s20172_s30 + $0x288] ss:$80 sps:$4 sm:$0xff]  }
  0xe1   : > { %3629 = vmatprep.subr.bf16.mxu0 %v16810_v8  ;;  %3801 = vmatprep.subr.bf16.mxu1 %v16812_v9  ;;  %v16828_v20 = vld [vmem:[%s20172_s30 + $0x324] ss:$80 sps:$4 sm:$0xff]   ;;  %v16830_v21 = vld [vmem:[%s20172_s30 + $0x32c] ss:$80 sps:$4 sm:$0xff]   ;;  %v16832_v22 = vld [vmem:[%s20172_s30 + $0x320] ss:$80 sps:$4 sm:$0xff]  }
  0xe2   : > { %v16833_v23 = vld [vmem:[%s20172_s30 + $0x328] ss:$80 sps:$4 sm:$0xff]   ;;  %v16834_v24 = vld [vmem:[%s20172_s30 + $0x3c4] ss:$80 sps:$4 sm:$0xff]   ;;  %v16836_v25 = vld [vmem:[%s20172_s30 + $0x3cc] ss:$80 sps:$4 sm:$0xff]  }
  0xe3   : > { %v16838_v26 = vld [vmem:[%s20172_s30 + $0x3c0] ss:$80 sps:$4 sm:$0xff]   ;;  %v16839_v27 = vld [vmem:[%s20172_s30 + $0x3c8] ss:$80 sps:$4 sm:$0xff]   ;;  %v16840_v28 = vld [vmem:[%s20172_s30 + $0x464] ss:$80 sps:$4 sm:$0xff]  }
  0xe4   : > { %3630 = vmatpush1.bf16.msra.mxu0 %v16814_v10  ;;  %3802 = vmatpush1.bf16.msra.mxu1 %v16815_v11  ;;  %v16842_v29 = vld [vmem:[%s20172_s30 + $0x46c] ss:$80 sps:$4 sm:$0xff]   ;;  %v16844_v30 = vld [vmem:[%s20172_s30 + $0x460] ss:$80 sps:$4 sm:$0xff]   ;;  %v16845_v31 = vld [vmem:[%s20172_s30 + $0x468] ss:$80 sps:$4 sm:$0xff]  }
  0xe5   : > { %3631 = vmatprep.subr.bf16.mxu0 %v16816_v12  ;;  %3803 = vmatprep.subr.bf16.mxu1 %v16818_v13  ;;  %v16846_v32 = vld [vmem:[%s20172_s30 + $0x504] ss:$80 sps:$4 sm:$0xff]   ;;  %v16848_v33 = vld [vmem:[%s20172_s30 + $0x50c] ss:$80 sps:$4 sm:$0xff]   ;;  %v16850_v34 = vld [vmem:[%s20172_s30 + $0x500] ss:$80 sps:$4 sm:$0xff]  }
  0xe6   : > { %v16851_v35 = vld [vmem:[%s20172_s30 + $0x508] ss:$80 sps:$4 sm:$0xff]   ;;  %v16852_v36 = vld [vmem:[%s20172_s30 + $0x5a4] ss:$80 sps:$4 sm:$0xff]   ;;  %v16854_v37 = vld [vmem:[%s20172_s30 + $0x5ac] ss:$80 sps:$4 sm:$0xff]  }
  0xe7   : > { %v16856_v38 = vld [vmem:[%s20172_s30 + $0x5a0] ss:$80 sps:$4 sm:$0xff]   ;;  %v16857_v39 = vld [vmem:[%s20172_s30 + $0x5a8] ss:$80 sps:$4 sm:$0xff]   ;;  %v16858_v40 = vld [vmem:[%s20172_s30 + $0x644] ss:$80 sps:$4 sm:$0xff]  }
  0xe8   : > { %3632 = vmatpush1.bf16.msra.mxu0 %v16820_v14  ;;  %3804 = vmatpush1.bf16.msra.mxu1 %v16821_v15  ;;  %v16860_v41 = vld [vmem:[%s20172_s30 + $0x64c] ss:$80 sps:$4 sm:$0xff]   ;;  %v16862_v42 = vld [vmem:[%s20172_s30 + $0x640] ss:$80 sps:$4 sm:$0xff]   ;;  %v16863_v43 = vld [vmem:[%s20172_s30 + $0x648] ss:$80 sps:$4 sm:$0xff]  }
  0xe9   : > { %3633 = vmatprep.subr.bf16.mxu0 %v16822_v16  ;;  %3805 = vmatprep.subr.bf16.mxu1 %v16824_v17  ;;  %v16864_v44 = vld [vmem:[%s20172_s30 + $0x6e4] ss:$80 sps:$4 sm:$0xff]   ;;  %v16866_v45 = vld [vmem:[%s20172_s30 + $0x6ec] ss:$80 sps:$4 sm:$0xff]   ;;  %v16868_v48 = vld [vmem:[%s20172_s30 + $0x6e0] ss:$80 sps:$4 sm:$0xff]  }
  0xea   : > { %v463_v46 = vld [vmem:[#allocation2] sm:$0xff]  ;;  %v16869_v49 = vld [vmem:[%s20172_s30 + $0x6e8] ss:$80 sps:$4 sm:$0xff]   ;;  %v16872_v52 = vld [vmem:[%s20172_s30 + $0x78c] ss:$80 sps:$4 sm:$0xff]   ;;  %s459_s3 = scalar_lea.vmem [#allocation13], %s14564_s18 }
  0xeb   : > { %v467_v47 = vld [vmem:[#allocation2 + $0x20] sm:$0xff]  ;;  %v16875_v54 = vld [vmem:[%s20172_s30 + $0x788] ss:$80 sps:$4 sm:$0xff]   ;;  %v16878_v56 = vld [vmem:[%s20172_s30 + $0x82c] ss:$80 sps:$4 sm:$0xff]   ;;  %s14362_s6 = sshll.u32 %s459_s3, 4  ;;  %s22306_s6 = int_to_ptr.vmem [resolvable:$true] %s14362_s6 }
  0xec   : > { %3634 = vmatpush1.bf16.msra.mxu0 %v16826_v18  ;;  %3806 = vmatpush1.bf16.msra.mxu1 %v16827_v19  ;;  %v20247_v50 = vcombine.high %v463_v46, %v467_v47  ;;  %v16870_v51 = vld [vmem:[%s20172_s30 + $0x784] ss:$80 sps:$4 sm:$0xff]   ;;  %v16874_v53 = vld [vmem:[%s20172_s30 + $0x780] ss:$80 sps:$4 sm:$0xff]   ;;  %v16881_v58 = vld [vmem:[%s20172_s30 + $0x828] ss:$80 sps:$4 sm:$0xff]   ;;  %v20269_v5 = vcombine.low %v463_v46, %v467_v47 }
  0xed   : > { %3635 = vmatprep.subr.bf16.mxu0 %v16828_v20  ;;  %3807 = vmatprep.subr.bf16.mxu1 %v16830_v21  ;;  %v16876_v55 = vld [vmem:[%s20172_s30 + $0x824] ss:$80 sps:$4 sm:$0xff]   ;;  %v16880_v57 = vld [vmem:[%s20172_s30 + $0x820] ss:$80 sps:$4 sm:$0xff]   ;;  %v16884_v60 = vld [vmem:[%s20172_s30 + $0x8cc] ss:$80 sps:$4 sm:$0xff]  }
  0xee   : > { %3657 = vmatprep.mubr.bf16.mxu0 %v20247_v50  ;;  %3829 = vmatprep.mubr.bf16.mxu1 %v20247_v50  ;;  %v16882_v59 = vld [vmem:[%s20172_s30 + $0x8c4] ss:$80 sps:$4 sm:$0xff]   ;;  %v16886_v61 = vld [vmem:[%s20172_s30 + $0x8c0] ss:$80 sps:$4 sm:$0xff]   ;;  %v16887_v62 = vld [vmem:[%s20172_s30 + $0x8c8] ss:$80 sps:$4 sm:$0xff]  }
  0xef   : > { %v16888_v63 = vld [vmem:[%s20172_s30 + $0x964] ss:$80 sps:$4 sm:$0xff]   ;;  %v16890_v0 = vld [vmem:[%s20172_s30 + $0x96c] ss:$80 sps:$4 sm:$0xff]   ;;  %v16892_v1 = vld [vmem:[%s20172_s30 + $0x960] ss:$80 sps:$4 sm:$0xff]  }
  0xf0   : > { %3636 = vmatpush1.bf16.msra.mxu0 %v16832_v22  ;;  %3808 = vmatpush1.bf16.msra.mxu1 %v16833_v23  ;;  %v16893_v2 = vld [vmem:[%s20172_s30 + $0x968] ss:$80 sps:$4 sm:$0xff]   ;;  %v16896_v3 = vld [vmem:[%s20172_s30 + $0xa04] ss:$80 sps:$4 sm:$0xff]   ;;  %v16899_v4 = vld [vmem:[%s20172_s30 + $0xa0c] ss:$80 sps:$4 sm:$0xff]  }
  0xf1   : > { %3637 = vmatprep.subr.bf16.mxu0 %v16834_v24  ;;  %3809 = vmatprep.subr.bf16.mxu1 %v16836_v25  ;;  %v16894_v6 = vld [vmem:[%s20172_s30 + $0xa00] ss:$80 sps:$4 sm:$0xff]   ;;  %v16897_v7 = vld [vmem:[%s20172_s30 + $0xa08] ss:$80 sps:$4 sm:$0xff]   ;;  %v16902_v8 = vld [vmem:[%s20172_s30 + $0xaa4] ss:$80 sps:$4 sm:$0xff]  }
  0xf2   : > { %v16905_v9 = vld [vmem:[%s20172_s30 + $0xaac] ss:$80 sps:$4 sm:$0xff]   ;;  %v16900_v10 = vld [vmem:[%s20172_s30 + $0xaa0] ss:$80 sps:$4 sm:$0xff]   ;;  %v16903_v11 = vld [vmem:[%s20172_s30 + $0xaa8] ss:$80 sps:$4 sm:$0xff]  }
  0xf3   : > { %v16908_v12 = vld [vmem:[%s20172_s30 + $0xb44] ss:$80 sps:$4 sm:$0xff]   ;;  %v16911_v13 = vld [vmem:[%s20172_s30 + $0xb4c] ss:$80 sps:$4 sm:$0xff]   ;;  %v16906_v14 = vld [vmem:[%s20172_s30 + $0xb40] ss:$80 sps:$4 sm:$0xff]  }
  0xf4   : > { %3638 = vmatpush1.bf16.msra.mxu0 %v16838_v26  ;;  %3810 = vmatpush1.bf16.msra.mxu1 %v16839_v27  ;;  %v16909_v15 = vld [vmem:[%s20172_s30 + $0xb48] ss:$80 sps:$4 sm:$0xff]   ;;  %v16914_v16 = vld [vmem:[%s20172_s30 + $0xbe4] ss:$80 sps:$4 sm:$0xff]   ;;  %v16917_v17 = vld [vmem:[%s20172_s30 + $0xbec] ss:$80 sps:$4 sm:$0xff]  }
  0xf5   : > { %3639 = vmatprep.subr.bf16.mxu0 %v16840_v28  ;;  %3811 = vmatprep.subr.bf16.mxu1 %v16842_v29  ;;  %v16912_v18 = vld [vmem:[%s20172_s30 + $0xbe0] ss:$80 sps:$4 sm:$0xff]   ;;  %v16915_v19 = vld [vmem:[%s20172_s30 + $0xbe8] ss:$80 sps:$4 sm:$0xff]   ;;  %v16920_v20 = vld [vmem:[%s20172_s30 + $0xc84] ss:$80 sps:$4 sm:$0xff]  }
  0xf6   : > { %v16923_v21 = vld [vmem:[%s20172_s30 + $0xc8c] ss:$80 sps:$4 sm:$0xff]   ;;  %v16918_v22 = vld [vmem:[%s20172_s30 + $0xc80] ss:$80 sps:$4 sm:$0xff]   ;;  %v16921_v23 = vld [vmem:[%s20172_s30 + $0xc88] ss:$80 sps:$4 sm:$0xff]  }
  0xf7   : > { %v16926_v24 = vld [vmem:[%s20172_s30 + $0xd24] ss:$80 sps:$4 sm:$0xff]   ;;  %v16929_v25 = vld [vmem:[%s20172_s30 + $0xd2c] ss:$80 sps:$4 sm:$0xff]   ;;  %v16924_v26 = vld [vmem:[%s20172_s30 + $0xd20] ss:$80 sps:$4 sm:$0xff]  }
  0xf8   : > { %3640 = vmatpush1.bf16.msra.mxu0 %v16844_v30  ;;  %3812 = vmatpush1.bf16.msra.mxu1 %v16845_v31  ;;  %v16927_v27 = vld [vmem:[%s20172_s30 + $0xd28] ss:$80 sps:$4 sm:$0xff]   ;;  %v16932_v28 = vld [vmem:[%s20172_s30 + $0xdc4] ss:$80 sps:$4 sm:$0xff]   ;;  %v16935_v29 = vld [vmem:[%s20172_s30 + $0xdcc] ss:$80 sps:$4 sm:$0xff]  }
  0xf9   : > { %3641 = vmatprep.subr.bf16.mxu0 %v16846_v32  ;;  %3813 = vmatprep.subr.bf16.mxu1 %v16848_v33  ;;  %v20297_v30 = vld [vmem:[#allocation2 + $0x8] sm:$0xff]  ;;  %v16930_v32 = vld [vmem:[%s20172_s30 + $0xdc0] ss:$80 sps:$4 sm:$0xff]   ;;  %v16956_v47 = vld [vmem:[%s20172_s30 + $0x1044] ss:$80 sps:$4 sm:$0xff]   ;;  %s16421_s23 = sshll.u32 %s19815_s24, 8 }
  0xfa   : > { %v20299_v31 = vld [vmem:[#allocation2 + $0x28] sm:$0xff]  ;;  %s22410_s20 = sld [smem:[#allocation27_spill]]  ;;  %s14347_s19 = scalar_lea.sflag [#allocation4], %s20169_s8 }
  0xfb   : > { %v16933_v33 = vld [vmem:[%s20172_s30 + $0xdc8] ss:$80 sps:$4 sm:$0xff]   ;;  %s19729_s15 = scalar_lea.vmem %s22306_s6, 256  ;;  %p22411_p13 = scmp.ne.s32.totalorder %s22398_s11, 0 }
  0xfc   : > { %3642 = vmatpush1.bf16.msra.mxu0 %v16850_v34  ;;  %3814 = vmatpush1.bf16.msra.mxu1 %v16851_v35  ;;  %v20305_v34 = vcombine.high %v20297_v30, %v20299_v31  ;;  %v16938_v35 = vld [vmem:[%s20172_s30 + $0xe64] ss:$80 sps:$4 sm:$0xff]   ;;  %v16951_v46 = vld [vmem:[%s20172_s30 + $0xfa8] ss:$80 sps:$4 sm:$0xff]   ;;  %p19730_p9 = scmp.ne.s32.totalorder %s22306_s6, %s19729_s15  ;;  %s19841_s24 = smov [#allocation13]  }
  0xfd   : > { %3643 = vmatprep.subr.bf16.mxu0 %v16852_v36  ;;  %3815 = vmatprep.subr.bf16.mxu1 %v16854_v37  ;;  %v16941_v36 = vld [vmem:[%s20172_s30 + $0xe6c] ss:$80 sps:$4 sm:$0xff]   ;;  %v16936_v37 = vld [vmem:[%s20172_s30 + $0xe60] ss:$80 sps:$4 sm:$0xff]   ;;  %s19733_s14 = sshll.u32 %s19841_s24, 4  ;;  %s19734_s14 = int_to_ptr.vmem [resolvable:$false] %s19733_s14 }
  0xfe   : > { %p19731_p1 = pnand %p19730_p9, %p22411_p13  ;;  %p19736_p6 = scmp.lt.s32.totalorder %s22306_s6, %s19734_s14 }
 0x100   : > { %3644 = vmatpush1.bf16.msra.mxu0 %v16856_v38  ;;  %3816 = vmatpush1.bf16.msra.mxu1 %v16857_v39  ;;  %v16939_v38 = vld [vmem:[%s20172_s30 + $0xe68] ss:$80 sps:$4 sm:$0xff]   ;;  %v16944_v39 = vld [vmem:[%s20172_s30 + $0xf04] ss:$80 sps:$4 sm:$0xff]   ;;  %s22311_s10 = scalar_lea.hbm %s22410_s20, %s16421_s23  ;;  %p19732_p0 = pneg %p19731_p1 }
 0x101   : > { %3645 = vmatprep.subr.bf16.mxu0 %v16858_v40  ;;  %3817 = vmatprep.subr.bf16.mxu1 %v16860_v41  ;;  %v16947_v40 = vld [vmem:[%s20172_s30 + $0xf0c] ss:$80 sps:$4 sm:$0xff]   ;;  %v16942_v41 = vld [vmem:[%s20172_s30 + $0xf00] ss:$80 sps:$4 sm:$0xff]  }
 0x104   : > { %3646 = vmatpush1.bf16.msra.mxu0 %v16862_v42  ;;  %3818 = vmatpush1.bf16.msra.mxu1 %v16863_v43  ;;  %v16945_v42 = vld [vmem:[%s20172_s30 + $0xf08] ss:$80 sps:$4 sm:$0xff]   ;;  %v16950_v43 = vld [vmem:[%s20172_s30 + $0xfa4] ss:$80 sps:$4 sm:$0xff]  }
 0x105   : > { %3647 = vmatprep.subr.bf16.mxu0 %v16864_v44  ;;  %3819 = vmatprep.subr.bf16.mxu1 %v16866_v45  ;;  %v16953_v44 = vld [vmem:[%s20172_s30 + $0xfac] ss:$80 sps:$4 sm:$0xff]   ;;  %v16948_v45 = vld [vmem:[%s20172_s30 + $0xfa0] ss:$80 sps:$4 sm:$0xff]  }
 0x108   : > { %3648 = vmatpush1.bf16.msra.mxu0 %v16868_v48  ;;  %3820 = vmatpush1.bf16.msra.mxu1 %v16869_v49  ;;  %v16959_v48 = vld [vmem:[%s20172_s30 + $0x104c] ss:$80 sps:$4 sm:$0xff]   ;;  %v16954_v49 = vld [vmem:[%s20172_s30 + $0x1040] ss:$80 sps:$4 sm:$0xff]  }
 0x109   : > { %3649 = vmatprep.subr.bf16.mxu0 %v16870_v51  ;;  %3821 = vmatprep.subr.bf16.mxu1 %v16872_v52  ;;  %v16957_v51 = vld [vmem:[%s20172_s30 + $0x1048] ss:$80 sps:$4 sm:$0xff]   ;;  %v16962_v52 = vld [vmem:[%s20172_s30 + $0x10e4] ss:$80 sps:$4 sm:$0xff]  }
 0x10c   : > { %3650 = vmatpush1.bf16.msra.mxu0 %v16874_v53  ;;  %3822 = vmatpush1.bf16.msra.mxu1 %v16875_v54  ;;  %v16965_v53 = vld [vmem:[%s20172_s30 + $0x10ec] ss:$80 sps:$4 sm:$0xff]   ;;  %v16960_v54 = vld [vmem:[%s20172_s30 + $0x10e0] ss:$80 sps:$4 sm:$0xff]  }
 0x10d   : > { %3651 = vmatprep.subr.bf16.mxu0 %v16876_v55  ;;  %3823 = vmatprep.subr.bf16.mxu1 %v16878_v56  ;;  %v16963_v55 = vld [vmem:[%s20172_s30 + $0x10e8] ss:$80 sps:$4 sm:$0xff]   ;;  %v16968_v56 = vld [vmem:[%s20172_s30 + $0x1184] ss:$80 sps:$4 sm:$0xff]  }
 0x110   : > { %3652 = vmatpush1.bf16.msra.mxu0 %v16880_v57  ;;  %3824 = vmatpush1.bf16.msra.mxu1 %v16881_v58  ;;  %v16971_v57 = vld [vmem:[%s20172_s30 + $0x118c] ss:$80 sps:$4 sm:$0xff]   ;;  %v16966_v58 = vld [vmem:[%s20172_s30 + $0x1180] ss:$80 sps:$4 sm:$0xff]  }
 0x111   : > { %3653 = vmatprep.subr.bf16.mxu0 %v16882_v59  ;;  %3825 = vmatprep.subr.bf16.mxu1 %v16884_v60  ;;  %v16969_v59 = vld [vmem:[%s20172_s30 + $0x1188] ss:$80 sps:$4 sm:$0xff]   ;;  %v16974_v60 = vld [vmem:[%s20172_s30 + $0x1224] ss:$80 sps:$4 sm:$0xff]  }
 0x114   : > { %3654 = vmatpush1.bf16.msra.mxu0 %v16886_v61  ;;  %3826 = vmatpush1.bf16.msra.mxu1 %v16887_v62  ;;  %v16977_v61 = vld [vmem:[%s20172_s30 + $0x122c] ss:$80 sps:$4 sm:$0xff]   ;;  %v16972_v62 = vld [vmem:[%s20172_s30 + $0x1220] ss:$80 sps:$4 sm:$0xff]  }
 0x115   : > { %3655 = vmatprep.subr.bf16.mxu0 %v16888_v63  ;;  %3827 = vmatprep.subr.bf16.mxu1 %v16890_v0  ;;  %v16975_v63 = vld [vmem:[%s20172_s30 + $0x1228] ss:$80 sps:$4 sm:$0xff]   ;;  %v16980_v0 = vld [vmem:[%s20172_s30 + $0x12c4] ss:$80 sps:$4 sm:$0xff]  }
 0x118   : > { %3656 = vmatpush1.bf16.msra.mxu0 %v16892_v1  ;;  %3828 = vmatpush1.bf16.msra.mxu1 %v16893_v2  ;;  %v16983_v1 = vld [vmem:[%s20172_s30 + $0x12cc] ss:$80 sps:$4 sm:$0xff]   ;;  %v16978_v2 = vld [vmem:[%s20172_s30 + $0x12c0] ss:$80 sps:$4 sm:$0xff]  }
 0x119   : > { %3668 = vmatprep.subr.bf16.mxu0 %v16896_v3  ;;  %3840 = vmatprep.subr.bf16.mxu1 %v16899_v4  ;;  %v16981_v3 = vld [vmem:[%s20172_s30 + $0x12c8] ss:$80 sps:$4 sm:$0xff]   ;;  %v16986_v4 = vld [vmem:[%s20172_s30 + $0x1364] ss:$80 sps:$4 sm:$0xff]  }
 0x11b   : > { %3658 = vmatmul.mubr.bf16.vlgmr.msra.gmra.mrb[0].mxu0 %v20269_v5  ;;  %3830 = vmatmul.mubr.bf16.vlgmr.msra.gmra.mrb[0].mxu1 %v20269_v5 }
 0x11c   : > { %3669 = vmatpush1.bf16.msra.mxu0 %v16894_v6  ;;  %3841 = vmatpush1.bf16.msra.mxu1 %v16897_v7  ;;  %v16989_v6 = vld [vmem:[%s20172_s30 + $0x136c] ss:$80 sps:$4 sm:$0xff]   ;;  %v16984_v7 = vld [vmem:[%s20172_s30 + $0x1360] ss:$80 sps:$4 sm:$0xff]  }
 0x11d   : > { %3670 = vmatprep.subr.bf16.mxu0 %v16902_v8  ;;  %3842 = vmatprep.subr.bf16.mxu1 %v16905_v9  ;;  %v16987_v8 = vld [vmem:[%s20172_s30 + $0x1368] ss:$80 sps:$4 sm:$0xff]   ;;  %v16992_v9 = vld [vmem:[%s20172_s30 + $0x1404] ss:$80 sps:$4 sm:$0xff]  }
 0x11e   : > { %3700 = vmatprep.mubr.bf16.mxu0 %v20305_v34  ;;  %3872 = vmatprep.mubr.bf16.mxu1 %v20305_v34 }
 0x120   : > { %3671 = vmatpush1.bf16.msra.mxu0 %v16900_v10  ;;  %3843 = vmatpush1.bf16.msra.mxu1 %v16903_v11  ;;  %v16995_v10 = vld [vmem:[%s20172_s30 + $0x140c] ss:$80 sps:$4 sm:$0xff]   ;;  %v16990_v11 = vld [vmem:[%s20172_s30 + $0x1400] ss:$80 sps:$4 sm:$0xff]  }
 0x121   : > { %3672 = vmatprep.subr.bf16.mxu0 %v16908_v12  ;;  %3844 = vmatprep.subr.bf16.mxu1 %v16911_v13  ;;  %v16993_v12 = vld [vmem:[%s20172_s30 + $0x1408] ss:$80 sps:$4 sm:$0xff]   ;;  %v20351_v13 = vcombine.low %v20297_v30, %v20299_v31  ;;  %v17019_v30 = vld [vmem:[%s20172_s30 + $0x168c] ss:$80 sps:$4 sm:$0xff]   ;;  %v17014_v31 = vld [vmem:[%s20172_s30 + $0x1680] ss:$80 sps:$4 sm:$0xff]  }
 0x124   : > { %3673 = vmatpush1.bf16.msra.mxu0 %v16906_v14  ;;  %3845 = vmatpush1.bf16.msra.mxu1 %v16909_v15  ;;  %v16998_v14 = vld [vmem:[%s20172_s30 + $0x14a4] ss:$80 sps:$4 sm:$0xff]   ;;  %v17001_v15 = vld [vmem:[%s20172_s30 + $0x14ac] ss:$80 sps:$4 sm:$0xff]  }
 0x125   : > { %3674 = vmatprep.subr.bf16.mxu0 %v16914_v16  ;;  %3846 = vmatprep.subr.bf16.mxu1 %v16917_v17  ;;  %v20355_v16 = vld [vmem:[#allocation2 + $0x10] sm:$0xff] }
 0x126   : > { %v20357_v17 = vld [vmem:[#allocation2 + $0x30] sm:$0xff] }
 0x128   : > { %3675 = vmatpush1.bf16.msra.mxu0 %v16912_v18  ;;  %3847 = vmatpush1.bf16.msra.mxu1 %v16915_v19  ;;  %v20361_v18 = vcombine.high %v20355_v16, %v20357_v17  ;;  %v16996_v19 = vld [vmem:[%s20172_s30 + $0x14a0] ss:$80 sps:$4 sm:$0xff]  }
 0x129   : > { %3676 = vmatprep.subr.bf16.mxu0 %v16920_v20  ;;  %3848 = vmatprep.subr.bf16.mxu1 %v16923_v21  ;;  %v16999_v20 = vld [vmem:[%s20172_s30 + $0x14a8] ss:$80 sps:$4 sm:$0xff]   ;;  %v17004_v21 = vld [vmem:[%s20172_s30 + $0x1544] ss:$80 sps:$4 sm:$0xff]  }
 0x12c   : > { %3677 = vmatpush1.bf16.msra.mxu0 %v16918_v22  ;;  %3849 = vmatpush1.bf16.msra.mxu1 %v16921_v23  ;;  %v17007_v22 = vld [vmem:[%s20172_s30 + $0x154c] ss:$80 sps:$4 sm:$0xff]   ;;  %v17002_v23 = vld [vmem:[%s20172_s30 + $0x1540] ss:$80 sps:$4 sm:$0xff]  }
 0x12d   : > { %3678 = vmatprep.subr.bf16.mxu0 %v16926_v24  ;;  %3850 = vmatprep.subr.bf16.mxu1 %v16929_v25  ;;  %v17005_v24 = vld [vmem:[%s20172_s30 + $0x1548] ss:$80 sps:$4 sm:$0xff]   ;;  %v17010_v25 = vld [vmem:[%s20172_s30 + $0x15e4] ss:$80 sps:$4 sm:$0xff]  }
 0x130   : > { %3679 = vmatpush1.bf16.msra.mxu0 %v16924_v26  ;;  %3851 = vmatpush1.bf16.msra.mxu1 %v16927_v27  ;;  %v17013_v26 = vld [vmem:[%s20172_s30 + $0x15ec] ss:$80 sps:$4 sm:$0xff]   ;;  %v17008_v27 = vld [vmem:[%s20172_s30 + $0x15e0] ss:$80 sps:$4 sm:$0xff]  }
 0x131   : > { %3680 = vmatprep.subr.bf16.mxu0 %v16932_v28  ;;  %3852 = vmatprep.subr.bf16.mxu1 %v16935_v29  ;;  %v17011_v28 = vld [vmem:[%s20172_s30 + $0x15e8] ss:$80 sps:$4 sm:$0xff]   ;;  %v17016_v29 = vld [vmem:[%s20172_s30 + $0x1684] ss:$80 sps:$4 sm:$0xff]  }
 0x134   : > { %3681 = vmatpush1.bf16.msra.mxu0 %v16930_v32  ;;  %3853 = vmatpush1.bf16.msra.mxu1 %v16933_v33  ;;  %v17017_v32 = vld [vmem:[%s20172_s30 + $0x1688] ss:$80 sps:$4 sm:$0xff]   ;;  %v17022_v33 = vld [vmem:[%s20172_s30 + $0x1724] ss:$80 sps:$4 sm:$0xff]  }
 0x135   : > { %3682 = vmatprep.subr.bf16.mxu0 %v16938_v35  ;;  %3854 = vmatprep.subr.bf16.mxu1 %v16941_v36  ;;  %v17025_v35 = vld [vmem:[%s20172_s30 + $0x172c] ss:$80 sps:$4 sm:$0xff]   ;;  %v17020_v36 = vld [vmem:[%s20172_s30 + $0x1720] ss:$80 sps:$4 sm:$0xff]  }
 0x138   : > { %3683 = vmatpush1.bf16.msra.mxu0 %v16936_v37  ;;  %3855 = vmatpush1.bf16.msra.mxu1 %v16939_v38  ;;  %v17023_v37 = vld [vmem:[%s20172_s30 + $0x1728] ss:$80 sps:$4 sm:$0xff]   ;;  %v17028_v38 = vld [vmem:[%s20172_s30 + $0x17c4] ss:$80 sps:$4 sm:$0xff]  }
 0x139   : > { %3684 = vmatprep.subr.bf16.mxu0 %v16944_v39  ;;  %3856 = vmatprep.subr.bf16.mxu1 %v16947_v40  ;;  %v17031_v39 = vld [vmem:[%s20172_s30 + $0x17cc] ss:$80 sps:$4 sm:$0xff]   ;;  %v17026_v40 = vld [vmem:[%s20172_s30 + $0x17c0] ss:$80 sps:$4 sm:$0xff]  }
 0x13c   : > { %3685 = vmatpush1.bf16.msra.mxu0 %v16942_v41  ;;  %3857 = vmatpush1.bf16.msra.mxu1 %v16945_v42  ;;  %v17029_v41 = vld [vmem:[%s20172_s30 + $0x17c8] ss:$80 sps:$4 sm:$0xff]   ;;  %v17034_v42 = vld [vmem:[%s20172_s30 + $0x1864] ss:$80 sps:$4 sm:$0xff]  }
 0x13d   : > { %3686 = vmatprep.subr.bf16.mxu0 %v16950_v43  ;;  %3858 = vmatprep.subr.bf16.mxu1 %v16953_v44  ;;  %v17037_v43 = vld [vmem:[%s20172_s30 + $0x186c] ss:$80 sps:$4 sm:$0xff]   ;;  %v17032_v44 = vld [vmem:[%s20172_s30 + $0x1860] ss:$80 sps:$4 sm:$0xff]  }
 0x140   : > { %3687 = vmatpush1.bf16.msra.mxu0 %v16948_v45  ;;  %3859 = vmatpush1.bf16.msra.mxu1 %v16951_v46  ;;  %v17035_v45 = vld [vmem:[%s20172_s30 + $0x1868] ss:$80 sps:$4 sm:$0xff]   ;;  %v17040_v46 = vld [vmem:[%s20172_s30 + $0x1904] ss:$80 sps:$4 sm:$0xff]  }
 0x141   : > { %3688 = vmatprep.subr.bf16.mxu0 %v16956_v47  ;;  %3860 = vmatprep.subr.bf16.mxu1 %v16959_v48  ;;  %v17043_v47 = vld [vmem:[%s20172_s30 + $0x190c] ss:$80 sps:$4 sm:$0xff]   ;;  %v17038_v48 = vld [vmem:[%s20172_s30 + $0x1900] ss:$80 sps:$4 sm:$0xff]  }
 0x144   : > { %3689 = vmatpush1.bf16.msra.mxu0 %v16954_v49  ;;  %3861 = vmatpush1.bf16.msra.mxu1 %v16957_v51  ;;  %v17041_v49 = vld [vmem:[%s20172_s30 + $0x1908] ss:$80 sps:$4 sm:$0xff]   ;;  %v17046_v51 = vld [vmem:[%s20172_s30 + $0x19a4] ss:$80 sps:$4 sm:$0xff]  }
 0x145   : > { %3690 = vmatprep.subr.bf16.mxu0 %v16962_v52  ;;  %3862 = vmatprep.subr.bf16.mxu1 %v16965_v53  ;;  %v17049_v52 = vld [vmem:[%s20172_s30 + $0x19ac] ss:$80 sps:$4 sm:$0xff]   ;;  %v17044_v53 = vld [vmem:[%s20172_s30 + $0x19a0] ss:$80 sps:$4 sm:$0xff]  }
 0x148   : > { %3691 = vmatpush1.bf16.msra.mxu0 %v16960_v54  ;;  %3863 = vmatpush1.bf16.msra.mxu1 %v16963_v55  ;;  %v17047_v54 = vld [vmem:[%s20172_s30 + $0x19a8] ss:$80 sps:$4 sm:$0xff]   ;;  %v17052_v55 = vld [vmem:[%s20172_s30 + $0x1a44] ss:$80 sps:$4 sm:$0xff]  }
 0x149   : > { %3692 = vmatprep.subr.bf16.mxu0 %v16968_v56  ;;  %3864 = vmatprep.subr.bf16.mxu1 %v16971_v57  ;;  %v17055_v56 = vld [vmem:[%s20172_s30 + $0x1a4c] ss:$80 sps:$4 sm:$0xff]   ;;  %v17050_v57 = vld [vmem:[%s20172_s30 + $0x1a40] ss:$80 sps:$4 sm:$0xff]  }
 0x14c   : > { %3693 = vmatpush1.bf16.msra.mxu0 %v16966_v58  ;;  %3865 = vmatpush1.bf16.msra.mxu1 %v16969_v59  ;;  %v17053_v58 = vld [vmem:[%s20172_s30 + $0x1a48] ss:$80 sps:$4 sm:$0xff]   ;;  %v17058_v59 = vld [vmem:[%s20172_s30 + $0x1ae4] ss:$80 sps:$4 sm:$0xff]  }
 0x14d   : > { %3694 = vmatprep.subr.bf16.mxu0 %v16974_v60  ;;  %3866 = vmatprep.subr.bf16.mxu1 %v16977_v61  ;;  %v17061_v60 = vld [vmem:[%s20172_s30 + $0x1aec] ss:$80 sps:$4 sm:$0xff]   ;;  %v17056_v61 = vld [vmem:[%s20172_s30 + $0x1ae0] ss:$80 sps:$4 sm:$0xff]  }
 0x150   : > { %3695 = vmatpush1.bf16.msra.mxu0 %v16972_v62  ;;  %3867 = vmatpush1.bf16.msra.mxu1 %v16975_v63  ;;  %v17059_v62 = vld [vmem:[%s20172_s30 + $0x1ae8] ss:$80 sps:$4 sm:$0xff]   ;;  %v17064_v63 = vld [vmem:[%s20172_s30 + $0x1b84] ss:$80 sps:$4 sm:$0xff]  }
 0x151   : > { %3696 = vmatprep.subr.bf16.mxu0 %v16980_v0  ;;  %3868 = vmatprep.subr.bf16.mxu1 %v16983_v1  ;;  %v17067_v0 = vld [vmem:[%s20172_s30 + $0x1b8c] ss:$80 sps:$4 sm:$0xff]   ;;  %v17062_v1 = vld [vmem:[%s20172_s30 + $0x1b80] ss:$80 sps:$4 sm:$0xff]  }
 0x154   : > { %3697 = vmatpush1.bf16.msra.mxu0 %v16978_v2  ;;  %3869 = vmatpush1.bf16.msra.mxu1 %v16981_v3  ;;  %v17065_v2 = vld [vmem:[%s20172_s30 + $0x1b88] ss:$80 sps:$4 sm:$0xff]   ;;  %v17070_v3 = vld [vmem:[%s20172_s30 + $0x1c24] ss:$80 sps:$4 sm:$0xff]  }
 0x155   : > { %3698 = vmatprep.subr.bf16.mxu0 %v16986_v4  ;;  %3870 = vmatprep.subr.bf16.mxu1 %v16989_v6  ;;  %v17073_v4 = vld [vmem:[%s20172_s30 + $0x1c2c] ss:$80 sps:$4 sm:$0xff]   ;;  %v17068_v6 = vld [vmem:[%s20172_s30 + $0x1c20] ss:$80 sps:$4 sm:$0xff]  }
 0x158   : > { %3699 = vmatpush1.bf16.msra.mxu0 %v16984_v7  ;;  %3871 = vmatpush1.bf16.msra.mxu1 %v16987_v8  ;;  %v17071_v7 = vld [vmem:[%s20172_s30 + $0x1c28] ss:$80 sps:$4 sm:$0xff]   ;;  %v17076_v8 = vld [vmem:[%s20172_s30 + $0x1cc4] ss:$80 sps:$4 sm:$0xff]  }
 0x159   : > { %3711 = vmatprep.subr.bf16.mxu0 %v16992_v9  ;;  %3883 = vmatprep.subr.bf16.mxu1 %v16995_v10  ;;  %v17079_v9 = vld [vmem:[%s20172_s30 + $0x1ccc] ss:$80 sps:$4 sm:$0xff]   ;;  %v17074_v10 = vld [vmem:[%s20172_s30 + $0x1cc0] ss:$80 sps:$4 sm:$0xff]  }
 0x15b   : > { %3701 = vmatmul.mubr.bf16.vlgmr.msra.gmra.mrb[0].mxu0 %v20351_v13  ;;  %3873 = vmatmul.mubr.bf16.vlgmr.msra.gmra.mrb[0].mxu1 %v20351_v13 }
 0x15c   : > { %3712 = vmatpush1.bf16.msra.mxu0 %v16990_v11  ;;  %3884 = vmatpush1.bf16.msra.mxu1 %v16993_v12  ;;  %v17077_v11 = vld [vmem:[%s20172_s30 + $0x1cc8] ss:$80 sps:$4 sm:$0xff]   ;;  %v17082_v12 = vld [vmem:[%s20172_s30 + $0x1d64] ss:$80 sps:$4 sm:$0xff]  }
 0x15d   : > { %3713 = vmatprep.subr.bf16.mxu0 %v16998_v14  ;;  %3885 = vmatprep.subr.bf16.mxu1 %v17001_v15  ;;  %v17085_v14 = vld [vmem:[%s20172_s30 + $0x1d6c] ss:$80 sps:$4 sm:$0xff]   ;;  %v17080_v15 = vld [vmem:[%s20172_s30 + $0x1d60] ss:$80 sps:$4 sm:$0xff]  }
 0x15e   : > { %3743 = vmatprep.mubr.bf16.mxu0 %v20361_v18  ;;  %3915 = vmatprep.mubr.bf16.mxu1 %v20361_v18 }
 0x160   : > { %3714 = vmatpush1.bf16.msra.mxu0 %v16996_v19  ;;  %3886 = vmatpush1.bf16.msra.mxu1 %v16999_v20  ;;  %v17083_v19 = vld [vmem:[%s20172_s30 + $0x1d68] ss:$80 sps:$4 sm:$0xff]   ;;  %v17088_v20 = vld [vmem:[%s20172_s30 + $0x1e04] ss:$80 sps:$4 sm:$0xff]  }
 0x161   : > { %3715 = vmatprep.subr.bf16.mxu0 %v17004_v21  ;;  %3887 = vmatprep.subr.bf16.mxu1 %v17007_v22  ;;  %v17091_v21 = vld [vmem:[%s20172_s30 + $0x1e0c] ss:$80 sps:$4 sm:$0xff]   ;;  %v17086_v22 = vld [vmem:[%s20172_s30 + $0x1e00] ss:$80 sps:$4 sm:$0xff]  }
 0x164   : > { %3716 = vmatpush1.bf16.msra.mxu0 %v17002_v23  ;;  %3888 = vmatpush1.bf16.msra.mxu1 %v17005_v24  ;;  %v17089_v23 = vld [vmem:[%s20172_s30 + $0x1e08] ss:$80 sps:$4 sm:$0xff]   ;;  %v20431_v24 = vcombine.low %v20355_v16, %v20357_v17  ;;  %v17092_v16 = vld [vmem:[%s20172_s30 + $0x1ea0] ss:$80 sps:$4 sm:$0xff]  }
 0x165   : > { %3717 = vmatprep.subr.bf16.mxu0 %v17010_v25  ;;  %3889 = vmatprep.subr.bf16.mxu1 %v17013_v26  ;;  %v20433_v25 = vld [vmem:[#allocation2 + $0x18] sm:$0xff] }
 0x166   : > { %v20435_v26 = vld [vmem:[#allocation2 + $0x38] sm:$0xff] }
 0x167   : > { %v17095_v17 = vld [vmem:[%s20172_s30 + $0x1ea8] ss:$80 sps:$4 sm:$0xff]  }
 0x168   : > { %3718 = vmatpush1.bf16.msra.mxu0 %v17008_v27  ;;  %3890 = vmatpush1.bf16.msra.mxu1 %v17011_v28  ;;  %v17094_v27 = vld [vmem:[%s20172_s30 + $0x1ea4] ss:$80 sps:$4 sm:$0xff]   ;;  %v17097_v28 = vld [vmem:[%s20172_s30 + $0x1eac] ss:$80 sps:$4 sm:$0xff]  }
 0x169   : > { %3719 = vmatprep.subr.bf16.mxu0 %v17016_v29  ;;  %3891 = vmatprep.subr.bf16.mxu1 %v17019_v30  ;;  %v20441_v29 = vcombine.high %v20433_v25, %v20435_v26  ;;  %v17100_v30 = vld [vmem:[%s20172_s30 + $0x1f44] ss:$80 sps:$4 sm:$0xff]  }
 0x16c   : > { %3720 = vmatpush1.bf16.msra.mxu0 %v17014_v31  ;;  %3892 = vmatpush1.bf16.msra.mxu1 %v17017_v32  ;;  %v17103_v31 = vld [vmem:[%s20172_s30 + $0x1f4c] ss:$80 sps:$4 sm:$0xff]   ;;  %v17098_v32 = vld [vmem:[%s20172_s30 + $0x1f40] ss:$80 sps:$4 sm:$0xff]  }
 0x16d   : > { %3721 = vmatprep.subr.bf16.mxu0 %v17022_v33  ;;  %3893 = vmatprep.subr.bf16.mxu1 %v17025_v35  ;;  %v17101_v33 = vld [vmem:[%s20172_s30 + $0x1f48] ss:$80 sps:$4 sm:$0xff]   ;;  %v17106_v35 = vld [vmem:[%s20172_s30 + $0x1fe4] ss:$80 sps:$4 sm:$0xff]  }
 0x170   : > { %3722 = vmatpush1.bf16.msra.mxu0 %v17020_v36  ;;  %3894 = vmatpush1.bf16.msra.mxu1 %v17023_v37  ;;  %v17109_v36 = vld [vmem:[%s20172_s30 + $0x1fec] ss:$80 sps:$4 sm:$0xff]   ;;  %v17104_v37 = vld [vmem:[%s20172_s30 + $0x1fe0] ss:$80 sps:$4 sm:$0xff]  }
 0x171   : > { %3723 = vmatprep.subr.bf16.mxu0 %v17028_v38  ;;  %3895 = vmatprep.subr.bf16.mxu1 %v17031_v39  ;;  %v17107_v38 = vld [vmem:[%s20172_s30 + $0x1fe8] ss:$80 sps:$4 sm:$0xff]   ;;  %v17112_v39 = vld [vmem:[%s20172_s30 + $0x2084] ss:$80 sps:$4 sm:$0xff]  }
 0x174   : > { %3724 = vmatpush1.bf16.msra.mxu0 %v17026_v40  ;;  %3896 = vmatpush1.bf16.msra.mxu1 %v17029_v41  ;;  %v17115_v40 = vld [vmem:[%s20172_s30 + $0x208c] ss:$80 sps:$4 sm:$0xff]   ;;  %v17110_v41 = vld [vmem:[%s20172_s30 + $0x2080] ss:$80 sps:$4 sm:$0xff]  }
 0x175   : > { %3725 = vmatprep.subr.bf16.mxu0 %v17034_v42  ;;  %3897 = vmatprep.subr.bf16.mxu1 %v17037_v43  ;;  %v17113_v42 = vld [vmem:[%s20172_s30 + $0x2088] ss:$80 sps:$4 sm:$0xff]   ;;  %v17118_v43 = vld [vmem:[%s20172_s30 + $0x2124] ss:$80 sps:$4 sm:$0xff]  }
 0x178   : > { %3726 = vmatpush1.bf16.msra.mxu0 %v17032_v44  ;;  %3898 = vmatpush1.bf16.msra.mxu1 %v17035_v45  ;;  %v17121_v44 = vld [vmem:[%s20172_s30 + $0x212c] ss:$80 sps:$4 sm:$0xff]   ;;  %v17116_v45 = vld [vmem:[%s20172_s30 + $0x2120] ss:$80 sps:$4 sm:$0xff]  }
 0x179   : > { %3727 = vmatprep.subr.bf16.mxu0 %v17040_v46  ;;  %3899 = vmatprep.subr.bf16.mxu1 %v17043_v47  ;;  %v17119_v46 = vld [vmem:[%s20172_s30 + $0x2128] ss:$80 sps:$4 sm:$0xff]   ;;  %v17124_v47 = vld [vmem:[%s20172_s30 + $0x21c4] ss:$80 sps:$4 sm:$0xff]  }
 0x17c   : > { %3728 = vmatpush1.bf16.msra.mxu0 %v17038_v48  ;;  %3900 = vmatpush1.bf16.msra.mxu1 %v17041_v49  ;;  %v17127_v48 = vld [vmem:[%s20172_s30 + $0x21cc] ss:$80 sps:$4 sm:$0xff]   ;;  %v17122_v49 = vld [vmem:[%s20172_s30 + $0x21c0] ss:$80 sps:$4 sm:$0xff]  }
 0x17d   : > { %3729 = vmatprep.subr.bf16.mxu0 %v17046_v51  ;;  %3901 = vmatprep.subr.bf16.mxu1 %v17049_v52  ;;  %v17125_v51 = vld [vmem:[%s20172_s30 + $0x21c8] ss:$80 sps:$4 sm:$0xff]   ;;  %v17130_v52 = vld [vmem:[%s20172_s30 + $0x2264] ss:$80 sps:$4 sm:$0xff]  }
 0x180   : > { %3730 = vmatpush1.bf16.msra.mxu0 %v17044_v53  ;;  %3902 = vmatpush1.bf16.msra.mxu1 %v17047_v54  ;;  %v17133_v53 = vld [vmem:[%s20172_s30 + $0x226c] ss:$80 sps:$4 sm:$0xff]   ;;  %v17128_v54 = vld [vmem:[%s20172_s30 + $0x2260] ss:$80 sps:$4 sm:$0xff]  }
 0x181   : > { %3731 = vmatprep.subr.bf16.mxu0 %v17052_v55  ;;  %3903 = vmatprep.subr.bf16.mxu1 %v17055_v56  ;;  %v17131_v55 = vld [vmem:[%s20172_s30 + $0x2268] ss:$80 sps:$4 sm:$0xff]   ;;  %v17136_v56 = vld [vmem:[%s20172_s30 + $0x2304] ss:$80 sps:$4 sm:$0xff]  }
 0x184   : > { %3732 = vmatpush1.bf16.msra.mxu0 %v17050_v57  ;;  %3904 = vmatpush1.bf16.msra.mxu1 %v17053_v58  ;;  %v17139_v57 = vld [vmem:[%s20172_s30 + $0x230c] ss:$80 sps:$4 sm:$0xff]   ;;  %v17134_v58 = vld [vmem:[%s20172_s30 + $0x2300] ss:$80 sps:$4 sm:$0xff]  }
 0x185   : > { %3733 = vmatprep.subr.bf16.mxu0 %v17058_v59  ;;  %3905 = vmatprep.subr.bf16.mxu1 %v17061_v60  ;;  %v17137_v59 = vld [vmem:[%s20172_s30 + $0x2308] ss:$80 sps:$4 sm:$0xff]   ;;  %v17142_v60 = vld [vmem:[%s20172_s30 + $0x23a4] ss:$80 sps:$4 sm:$0xff]  }
 0x188   : > { %3734 = vmatpush1.bf16.msra.mxu0 %v17056_v61  ;;  %3906 = vmatpush1.bf16.msra.mxu1 %v17059_v62  ;;  %v17145_v61 = vld [vmem:[%s20172_s30 + $0x23ac] ss:$80 sps:$4 sm:$0xff]   ;;  %v17140_v62 = vld [vmem:[%s20172_s30 + $0x23a0] ss:$80 sps:$4 sm:$0xff]  }
 0x189   : > { %3735 = vmatprep.subr.bf16.mxu0 %v17064_v63  ;;  %3907 = vmatprep.subr.bf16.mxu1 %v17067_v0  ;;  %v17143_v63 = vld [vmem:[%s20172_s30 + $0x23a8] ss:$80 sps:$4 sm:$0xff]   ;;  %v17148_v0 = vld [vmem:[%s20172_s30 + $0x2444] ss:$80 sps:$4 sm:$0xff]  }
 0x18c   : > { %3736 = vmatpush1.bf16.msra.mxu0 %v17062_v1  ;;  %3908 = vmatpush1.bf16.msra.mxu1 %v17065_v2  ;;  %v17151_v1 = vld [vmem:[%s20172_s30 + $0x244c] ss:$80 sps:$4 sm:$0xff]   ;;  %v17146_v2 = vld [vmem:[%s20172_s30 + $0x2440] ss:$80 sps:$4 sm:$0xff]  }
 0x18d   : > { %3737 = vmatprep.subr.bf16.mxu0 %v17070_v3  ;;  %3909 = vmatprep.subr.bf16.mxu1 %v17073_v4  ;;  %v17149_v3 = vld [vmem:[%s20172_s30 + $0x2448] ss:$80 sps:$4 sm:$0xff]   ;;  %v17154_v4 = vld [vmem:[%s20172_s30 + $0x24e4] ss:$80 sps:$4 sm:$0xff]  }
 0x190   : > { %3738 = vmatpush1.bf16.msra.mxu0 %v17068_v6  ;;  %3910 = vmatpush1.bf16.msra.mxu1 %v17071_v7  ;;  %v17157_v6 = vld [vmem:[%s20172_s30 + $0x24ec] ss:$80 sps:$4 sm:$0xff]   ;;  %v17152_v7 = vld [vmem:[%s20172_s30 + $0x24e0] ss:$80 sps:$4 sm:$0xff]  }
 0x191   : > { %3739 = vmatprep.subr.bf16.mxu0 %v17076_v8  ;;  %3911 = vmatprep.subr.bf16.mxu1 %v17079_v9  ;;  %v17155_v8 = vld [vmem:[%s20172_s30 + $0x24e8] ss:$80 sps:$4 sm:$0xff]   ;;  %v17160_v9 = vld [vmem:[%s20172_s30 + $0x2584] ss:$80 sps:$4 sm:$0xff]  }
 0x194   : > { %3740 = vmatpush1.bf16.msra.mxu0 %v17074_v10  ;;  %3912 = vmatpush1.bf16.msra.mxu1 %v17077_v11  ;;  %v17163_v10 = vld [vmem:[%s20172_s30 + $0x258c] ss:$80 sps:$4 sm:$0xff]   ;;  %v17158_v11 = vld [vmem:[%s20172_s30 + $0x2580] ss:$80 sps:$4 sm:$0xff]  }
 0x195   : > { %3741 = vmatprep.subr.bf16.mxu0 %v17082_v12  ;;  %3913 = vmatprep.subr.bf16.mxu1 %v17085_v14  ;;  %v17161_v12 = vld [vmem:[%s20172_s30 + $0x2588] ss:$80 sps:$4 sm:$0xff]   ;;  %v17166_v14 = vld [vmem:[%s20172_s30 + $0x2624] ss:$80 sps:$4 sm:$0xff]  }
 0x198   : > { %3742 = vmatpush1.bf16.msra.mxu0 %v17080_v15  ;;  %3914 = vmatpush1.bf16.msra.mxu1 %v17083_v19  ;;  %v17169_v15 = vld [vmem:[%s20172_s30 + $0x262c] ss:$80 sps:$4 sm:$0xff]   ;;  %v17164_v19 = vld [vmem:[%s20172_s30 + $0x2620] ss:$80 sps:$4 sm:$0xff]  }
 0x199   : > { %3754 = vmatprep.subr.bf16.mxu0 %v17088_v20  ;;  %3926 = vmatprep.subr.bf16.mxu1 %v17091_v21  ;;  %v17167_v20 = vld [vmem:[%s20172_s30 + $0x2628] ss:$80 sps:$4 sm:$0xff]   ;;  %v17172_v21 = vld [vmem:[%s20172_s30 + $0x26c4] ss:$80 sps:$4 sm:$0xff]  }
 0x19b   : > { %3744 = vmatmul.mubr.bf16.vlgmr.msra.gmra.mrb[0].mxu0 %v20431_v24  ;;  %3916 = vmatmul.mubr.bf16.vlgmr.msra.gmra.mrb[0].mxu1 %v20431_v24 }
 0x19c   : > { %3755 = vmatpush1.bf16.msra.mxu0 %v17086_v22  ;;  %3927 = vmatpush1.bf16.msra.mxu1 %v17089_v23  ;;  %v17175_v22 = vld [vmem:[%s20172_s30 + $0x26cc] ss:$80 sps:$4 sm:$0xff]   ;;  %v17170_v23 = vld [vmem:[%s20172_s30 + $0x26c0] ss:$80 sps:$4 sm:$0xff]  }
 0x19d   : > { %3756 = vmatprep.subr.bf16.mxu0 %v17094_v27  ;;  %3928 = vmatprep.subr.bf16.mxu1 %v17097_v28  ;;  %v17173_v27 = vld [vmem:[%s20172_s30 + $0x26c8] ss:$80 sps:$4 sm:$0xff]   ;;  %v17178_v28 = vld [vmem:[%s20172_s30 + $0x2764] ss:$80 sps:$4 sm:$0xff]  }
 0x19e   : > { %3786 = vmatprep.mubr.bf16.mxu0 %v20441_v29  ;;  %3958 = vmatprep.mubr.bf16.mxu1 %v20441_v29 }
 0x1a0   : > { %3757 = vmatpush1.bf16.msra.mxu0 %v17092_v16  ;;  %3929 = vmatpush1.bf16.msra.mxu1 %v17095_v17  ;;  %v17181_v16 = vld [vmem:[%s20172_s30 + $0x276c] ss:$80 sps:$4 sm:$0xff]   ;;  %v17176_v17 = vld [vmem:[%s20172_s30 + $0x2760] ss:$80 sps:$4 sm:$0xff]  }
 0x1a1   : > { %3758 = vmatprep.subr.bf16.mxu0 %v17100_v30  ;;  %3930 = vmatprep.subr.bf16.mxu1 %v17103_v31  ;;  %v17179_v30 = vld [vmem:[%s20172_s30 + $0x2768] ss:$80 sps:$4 sm:$0xff]   ;;  %v17184_v31 = vld [vmem:[%s20172_s30 + $0x14] ss:$80 sps:$4 sm:$0xff]  }
 0x1a4   : > { %3759 = vmatpush1.bf16.msra.mxu0 %v17098_v32  ;;  %3931 = vmatpush1.bf16.msra.mxu1 %v17101_v33  ;;  %v17187_v32 = vld [vmem:[%s20172_s30 + $0x1c] ss:$80 sps:$4 sm:$0xff]   ;;  %v20509_v33 = vcombine.low %v20433_v25, %v20435_v26  ;;  %v17196_v25 = vld [vmem:[%s20172_s30 + $0x154] ss:$80 sps:$4 sm:$0xff]  }
 0x1a5   : > { %3760 = vmatprep.subr.bf16.mxu0 %v17106_v35  ;;  %3932 = vmatprep.subr.bf16.mxu1 %v17109_v36  ;;  %v17182_v35 = vld [vmem:[%s20172_s30 + $0x10] ss:$80 sps:$4 sm:$0xff]   ;;  %v17185_v36 = vld [vmem:[%s20172_s30 + $0x18] ss:$80 sps:$4 sm:$0xff]   ;;  %v17199_v26 = vld [vmem:[%s20172_s30 + $0x15c] ss:$80 sps:$4 sm:$0xff]  }
 0x1a8   : > { %3761 = vmatpush1.bf16.msra.mxu0 %v17104_v37  ;;  %3933 = vmatpush1.bf16.msra.mxu1 %v17107_v38  ;;  %v17190_v37 = vld [vmem:[%s20172_s30 + $0xb4] ss:$80 sps:$4 sm:$0xff]   ;;  %v17193_v38 = vld [vmem:[%s20172_s30 + $0xbc] ss:$80 sps:$4 sm:$0xff]  }
 0x1a9   : > { %3762 = vmatprep.subr.bf16.mxu0 %v17112_v39  ;;  %3934 = vmatprep.subr.bf16.mxu1 %v17115_v40  ;;  %v17188_v39 = vld [vmem:[%s20172_s30 + $0xb0] ss:$80 sps:$4 sm:$0xff]   ;;  %v17191_v40 = vld [vmem:[%s20172_s30 + $0xb8] ss:$80 sps:$4 sm:$0xff]  }
 0x1ac   : > { %3763 = vmatpush1.bf16.msra.mxu0 %v17110_v41  ;;  %3935 = vmatpush1.bf16.msra.mxu1 %v17113_v42  ;;  %v17194_v41 = vld [vmem:[%s20172_s30 + $0x150] ss:$80 sps:$4 sm:$0xff]   ;;  %v17197_v42 = vld [vmem:[%s20172_s30 + $0x158] ss:$80 sps:$4 sm:$0xff]  }
 0x1ad   : > { %3764 = vmatprep.subr.bf16.mxu0 %v17118_v43  ;;  %3936 = vmatprep.subr.bf16.mxu1 %v17121_v44  ;;  %v17202_v43 = vld [vmem:[%s20172_s30 + $0x1f4] ss:$80 sps:$4 sm:$0xff]   ;;  %v17205_v44 = vld [vmem:[%s20172_s30 + $0x1fc] ss:$80 sps:$4 sm:$0xff]  }
 0x1b0   : > { %3765 = vmatpush1.bf16.msra.mxu0 %v17116_v45  ;;  %3937 = vmatpush1.bf16.msra.mxu1 %v17119_v46  ;;  %v17200_v45 = vld [vmem:[%s20172_s30 + $0x1f0] ss:$80 sps:$4 sm:$0xff]   ;;  %v17203_v46 = vld [vmem:[%s20172_s30 + $0x1f8] ss:$80 sps:$4 sm:$0xff]  }
 0x1b1   : > { %3766 = vmatprep.subr.bf16.mxu0 %v17124_v47  ;;  %3938 = vmatprep.subr.bf16.mxu1 %v17127_v48  ;;  %v17211_v47 = vld [vmem:[%s20172_s30 + $0x29c] ss:$80 sps:$4 sm:$0xff]   ;;  %v17206_v48 = vld [vmem:[%s20172_s30 + $0x290] ss:$80 sps:$4 sm:$0xff]  }
 0x1b4   : > { %3767 = vmatpush1.bf16.msra.mxu0 %v17122_v49  ;;  %3939 = vmatpush1.bf16.msra.mxu1 %v17125_v51  ;;  %v17209_v49 = vld [vmem:[%s20172_s30 + $0x298] ss:$80 sps:$4 sm:$0xff]   ;;  %v17214_v51 = vld [vmem:[%s20172_s30 + $0x334] ss:$80 sps:$4 sm:$0xff]  }
 0x1b5   : > { %3768 = vmatprep.subr.bf16.mxu0 %v17130_v52  ;;  %3940 = vmatprep.subr.bf16.mxu1 %v17133_v53  ;;  %v17217_v52 = vld [vmem:[%s20172_s30 + $0x33c] ss:$80 sps:$4 sm:$0xff]   ;;  %v17212_v53 = vld [vmem:[%s20172_s30 + $0x330] ss:$80 sps:$4 sm:$0xff]  }
 0x1b8   : > { %3769 = vmatpush1.bf16.msra.mxu0 %v17128_v54  ;;  %3941 = vmatpush1.bf16.msra.mxu1 %v17131_v55  ;;  %v17215_v54 = vld [vmem:[%s20172_s30 + $0x338] ss:$80 sps:$4 sm:$0xff]   ;;  %v17220_v55 = vld [vmem:[%s20172_s30 + $0x3d4] ss:$80 sps:$4 sm:$0xff]  }
 0x1b9   : > { %3770 = vmatprep.subr.bf16.mxu0 %v17136_v56  ;;  %3942 = vmatprep.subr.bf16.mxu1 %v17139_v57  ;;  %v17223_v56 = vld [vmem:[%s20172_s30 + $0x3dc] ss:$80 sps:$4 sm:$0xff]   ;;  %v17218_v57 = vld [vmem:[%s20172_s30 + $0x3d0] ss:$80 sps:$4 sm:$0xff]  }
 0x1bc   : > { %3771 = vmatpush1.bf16.msra.mxu0 %v17134_v58  ;;  %3943 = vmatpush1.bf16.msra.mxu1 %v17137_v59  ;;  %v17221_v58 = vld [vmem:[%s20172_s30 + $0x3d8] ss:$80 sps:$4 sm:$0xff]   ;;  %v17226_v59 = vld [vmem:[%s20172_s30 + $0x474] ss:$80 sps:$4 sm:$0xff]  }
 0x1bd   : > { %3772 = vmatprep.subr.bf16.mxu0 %v17142_v60  ;;  %3944 = vmatprep.subr.bf16.mxu1 %v17145_v61  ;;  %v17229_v60 = vld [vmem:[%s20172_s30 + $0x47c] ss:$80 sps:$4 sm:$0xff]   ;;  %v17224_v61 = vld [vmem:[%s20172_s30 + $0x470] ss:$80 sps:$4 sm:$0xff]  }
 0x1c0   : > { %3773 = vmatpush1.bf16.msra.mxu0 %v17140_v62  ;;  %3945 = vmatpush1.bf16.msra.mxu1 %v17143_v63  ;;  %v17227_v62 = vld [vmem:[%s20172_s30 + $0x478] ss:$80 sps:$4 sm:$0xff]   ;;  %v17232_v63 = vld [vmem:[%s20172_s30 + $0x514] ss:$80 sps:$4 sm:$0xff]  }
 0x1c1   : > { %3774 = vmatprep.subr.bf16.mxu0 %v17148_v0  ;;  %3946 = vmatprep.subr.bf16.mxu1 %v17151_v1  ;;  %v17235_v0 = vld [vmem:[%s20172_s30 + $0x51c] ss:$80 sps:$4 sm:$0xff]   ;;  %v17230_v1 = vld [vmem:[%s20172_s30 + $0x510] ss:$80 sps:$4 sm:$0xff]  }
 0x1c4   : > { %3775 = vmatpush1.bf16.msra.mxu0 %v17146_v2  ;;  %3947 = vmatpush1.bf16.msra.mxu1 %v17149_v3  ;;  %v17233_v2 = vld [vmem:[%s20172_s30 + $0x518] ss:$80 sps:$4 sm:$0xff]   ;;  %v17238_v3 = vld [vmem:[%s20172_s30 + $0x5b4] ss:$80 sps:$4 sm:$0xff]  }
 0x1c5   : > { %3776 = vmatprep.subr.bf16.mxu0 %v17154_v4  ;;  %3948 = vmatprep.subr.bf16.mxu1 %v17157_v6  ;;  %v17241_v4 = vld [vmem:[%s20172_s30 + $0x5bc] ss:$80 sps:$4 sm:$0xff]   ;;  %v17236_v6 = vld [vmem:[%s20172_s30 + $0x5b0] ss:$80 sps:$4 sm:$0xff]  }
 0x1c8   : > { %3777 = vmatpush1.bf16.msra.mxu0 %v17152_v7  ;;  %3949 = vmatpush1.bf16.msra.mxu1 %v17155_v8  ;;  %v17239_v7 = vld [vmem:[%s20172_s30 + $0x5b8] ss:$80 sps:$4 sm:$0xff]   ;;  %v17244_v8 = vld [vmem:[%s20172_s30 + $0x654] ss:$80 sps:$4 sm:$0xff]  }
 0x1c9   : > { %3778 = vmatprep.subr.bf16.mxu0 %v17160_v9  ;;  %3950 = vmatprep.subr.bf16.mxu1 %v17163_v10  ;;  %v17247_v9 = vld [vmem:[%s20172_s30 + $0x65c] ss:$80 sps:$4 sm:$0xff]   ;;  %v17242_v10 = vld [vmem:[%s20172_s30 + $0x650] ss:$80 sps:$4 sm:$0xff]  }
 0x1cc   : > { %3779 = vmatpush1.bf16.msra.mxu0 %v17158_v11  ;;  %3951 = vmatpush1.bf16.msra.mxu1 %v17161_v12  ;;  %v17245_v11 = vld [vmem:[%s20172_s30 + $0x658] ss:$80 sps:$4 sm:$0xff]   ;;  %v17250_v12 = vld [vmem:[%s20172_s30 + $0x6f4] ss:$80 sps:$4 sm:$0xff]  }
 0x1cd   : > { %3780 = vmatprep.subr.bf16.mxu0 %v17166_v14  ;;  %3952 = vmatprep.subr.bf16.mxu1 %v17169_v15  ;;  %v17253_v14 = vld [vmem:[%s20172_s30 + $0x6fc] ss:$80 sps:$4 sm:$0xff]   ;;  %v17248_v15 = vld [vmem:[%s20172_s30 + $0x6f0] ss:$80 sps:$4 sm:$0xff]  }
 0x1d0   : > { %3781 = vmatpush1.bf16.msra.mxu0 %v17164_v19  ;;  %3953 = vmatpush1.bf16.msra.mxu1 %v17167_v20  ;;  %v17251_v19 = vld [vmem:[%s20172_s30 + $0x6f8] ss:$80 sps:$4 sm:$0xff]   ;;  %v17256_v20 = vld [vmem:[%s20172_s30 + $0x794] ss:$80 sps:$4 sm:$0xff]  }
 0x1d1   : > { %3782 = vmatprep.subr.bf16.mxu0 %v17172_v21  ;;  %3954 = vmatprep.subr.bf16.mxu1 %v17175_v22  ;;  %v17259_v21 = vld [vmem:[%s20172_s30 + $0x79c] ss:$80 sps:$4 sm:$0xff]   ;;  %v17254_v22 = vld [vmem:[%s20172_s30 + $0x790] ss:$80 sps:$4 sm:$0xff]  }
 0x1d4   : > { %3783 = vmatpush1.bf16.msra.mxu0 %v17170_v23  ;;  %3955 = vmatpush1.bf16.msra.mxu1 %v17173_v27  ;;  %v17257_v23 = vld [vmem:[%s20172_s30 + $0x798] ss:$80 sps:$4 sm:$0xff]   ;;  %v17262_v27 = vld [vmem:[%s20172_s30 + $0x834] ss:$80 sps:$4 sm:$0xff]  }
 0x1d5   : > { %3784 = vmatprep.subr.bf16.mxu0 %v17178_v28  ;;  %3956 = vmatprep.subr.bf16.mxu1 %v17181_v16  ;;  %v17265_v28 = vld [vmem:[%s20172_s30 + $0x83c] ss:$80 sps:$4 sm:$0xff]   ;;  %v17260_v16 = vld [vmem:[%s20172_s30 + $0x830] ss:$80 sps:$4 sm:$0xff]  }
 0x1d8   : > { %3785 = vmatpush1.bf16.msra.mxu0 %v17176_v17  ;;  %3957 = vmatpush1.bf16.msra.mxu1 %v17179_v30  ;;  %v17263_v17 = vld [vmem:[%s20172_s30 + $0x838] ss:$80 sps:$4 sm:$0xff]   ;;  %v17268_v30 = vld [vmem:[%s20172_s30 + $0x8d4] ss:$80 sps:$4 sm:$0xff]  }
 0x1d9   : > { %3969 = vmatprep.subr.bf16.mxu0 %v17184_v31  ;;  %4141 = vmatprep.subr.bf16.mxu1 %v17187_v32  ;;  %v17271_v31 = vld [vmem:[%s20172_s30 + $0x8dc] ss:$80 sps:$4 sm:$0xff]   ;;  %v17266_v32 = vld [vmem:[%s20172_s30 + $0x8d0] ss:$80 sps:$4 sm:$0xff]  }
 0x1db   : > { %3787 = vmatmul.mubr.bf16.vlgmr.msra.gmra.mrb[0].mxu0 %v20509_v33  ;;  %3959 = vmatmul.mubr.bf16.vlgmr.msra.gmra.mrb[0].mxu1 %v20509_v33 }
 0x1dc   : > { %3970 = vmatpush1.bf16.msra.mxu0 %v17182_v35  ;;  %4142 = vmatpush1.bf16.msra.mxu1 %v17185_v36  ;;  %v17269_v35 = vld [vmem:[%s20172_s30 + $0x8d8] ss:$80 sps:$4 sm:$0xff]   ;;  %v17274_v36 = vld [vmem:[%s20172_s30 + $0x974] ss:$80 sps:$4 sm:$0xff]  }
 0x1dd   : > { %3971 = vmatprep.subr.bf16.mxu0 %v17190_v37  ;;  %4143 = vmatprep.subr.bf16.mxu1 %v17193_v38  ;;  %v17277_v37 = vld [vmem:[%s20172_s30 + $0x97c] ss:$80 sps:$4 sm:$0xff]   ;;  %v17272_v38 = vld [vmem:[%s20172_s30 + $0x970] ss:$80 sps:$4 sm:$0xff]  }
 0x1de   : > { %4001 = vmatprep.mubr.bf16.mxu0 %v20247_v50  ;;  %4173 = vmatprep.mubr.bf16.mxu1 %v20247_v50  ;;  %v17208_v50 = vld [vmem:[%s20172_s30 + $0x294] ss:$80 sps:$4 sm:$0xff]  }
 0x1e0   : > { %3972 = vmatpush1.bf16.msra.mxu0 %v17188_v39  ;;  %4144 = vmatpush1.bf16.msra.mxu1 %v17191_v40  ;;  %v17275_v39 = vld [vmem:[%s20172_s30 + $0x978] ss:$80 sps:$4 sm:$0xff]   ;;  %v17280_v40 = vld [vmem:[%s20172_s30 + $0xa14] ss:$80 sps:$4 sm:$0xff]  }
 0x1e1   : > { %3973 = vmatprep.subr.bf16.mxu0 %v17196_v25  ;;  %4145 = vmatprep.subr.bf16.mxu1 %v17199_v26  ;;  %v17283_v25 = vld [vmem:[%s20172_s30 + $0xa1c] ss:$80 sps:$4 sm:$0xff]   ;;  %v17278_v26 = vld [vmem:[%s20172_s30 + $0xa10] ss:$80 sps:$4 sm:$0xff]  }
 0x1e4   : > { %3974 = vmatpush1.bf16.msra.mxu0 %v17194_v41  ;;  %4146 = vmatpush1.bf16.msra.mxu1 %v17197_v42  ;;  %v17281_v41 = vld [vmem:[%s20172_s30 + $0xa18] ss:$80 sps:$4 sm:$0xff]   ;;  %v17286_v42 = vld [vmem:[%s20172_s30 + $0xab4] ss:$80 sps:$4 sm:$0xff]  }
 0x1e5   : > { %3975 = vmatprep.subr.bf16.mxu0 %v17202_v43  ;;  %4147 = vmatprep.subr.bf16.mxu1 %v17205_v44  ;;  %v17289_v43 = vld [vmem:[%s20172_s30 + $0xabc] ss:$80 sps:$4 sm:$0xff]   ;;  %v17284_v44 = vld [vmem:[%s20172_s30 + $0xab0] ss:$80 sps:$4 sm:$0xff]  }
 0x1e8   : > { %3976 = vmatpush1.bf16.msra.mxu0 %v17200_v45  ;;  %4148 = vmatpush1.bf16.msra.mxu1 %v17203_v46  ;;  %v17287_v45 = vld [vmem:[%s20172_s30 + $0xab8] ss:$80 sps:$4 sm:$0xff]   ;;  %v17292_v46 = vld [vmem:[%s20172_s30 + $0xb54] ss:$80 sps:$4 sm:$0xff]  }
 0x1e9   : > { %3977 = vmatprep.subr.bf16.mxu0 %v17208_v50  ;;  %4149 = vmatprep.subr.bf16.mxu1 %v17211_v47  ;;  %v17295_v50 = vld [vmem:[%s20172_s30 + $0xb5c] ss:$80 sps:$4 sm:$0xff]   ;;  %v17293_v47 = vld [vmem:[%s20172_s30 + $0xb58] ss:$80 sps:$4 sm:$0xff]  }
 0x1ec   : > { %3978 = vmatpush1.bf16.msra.mxu0 %v17206_v48  ;;  %4150 = vmatpush1.bf16.msra.mxu1 %v17209_v49  ;;  %v17298_v48 = vld [vmem:[%s20172_s30 + $0xbf4] ss:$80 sps:$4 sm:$0xff]   ;;  %v17301_v49 = vld [vmem:[%s20172_s30 + $0xbfc] ss:$80 sps:$4 sm:$0xff]  }
 0x1ed   : > { %3979 = vmatprep.subr.bf16.mxu0 %v17214_v51  ;;  %4151 = vmatprep.subr.bf16.mxu1 %v17217_v52  ;;  %v17296_v51 = vld [vmem:[%s20172_s30 + $0xbf0] ss:$80 sps:$4 sm:$0xff]   ;;  %v17299_v52 = vld [vmem:[%s20172_s30 + $0xbf8] ss:$80 sps:$4 sm:$0xff]  }
 0x1f0   : > { %3980 = vmatpush1.bf16.msra.mxu0 %v17212_v53  ;;  %4152 = vmatpush1.bf16.msra.mxu1 %v17215_v54  ;;  %v17307_v53 = vld [vmem:[%s20172_s30 + $0xc9c] ss:$80 sps:$4 sm:$0xff]   ;;  %v17302_v54 = vld [vmem:[%s20172_s30 + $0xc90] ss:$80 sps:$4 sm:$0xff]  }
 0x1f1   : > { %3981 = vmatprep.subr.bf16.mxu0 %v17220_v55  ;;  %4153 = vmatprep.subr.bf16.mxu1 %v17223_v56  ;;  %v17305_v55 = vld [vmem:[%s20172_s30 + $0xc98] ss:$80 sps:$4 sm:$0xff]   ;;  %v17310_v56 = vld [vmem:[%s20172_s30 + $0xd34] ss:$80 sps:$4 sm:$0xff]  }
 0x1f4   : > { %3982 = vmatpush1.bf16.msra.mxu0 %v17218_v57  ;;  %4154 = vmatpush1.bf16.msra.mxu1 %v17221_v58  ;;  %v17313_v57 = vld [vmem:[%s20172_s30 + $0xd3c] ss:$80 sps:$4 sm:$0xff]   ;;  %v17308_v58 = vld [vmem:[%s20172_s30 + $0xd30] ss:$80 sps:$4 sm:$0xff]  }
 0x1f5   : > { %3983 = vmatprep.subr.bf16.mxu0 %v17226_v59  ;;  %4155 = vmatprep.subr.bf16.mxu1 %v17229_v60  ;;  %v17311_v59 = vld [vmem:[%s20172_s30 + $0xd38] ss:$80 sps:$4 sm:$0xff]   ;;  %v17316_v60 = vld [vmem:[%s20172_s30 + $0xdd4] ss:$80 sps:$4 sm:$0xff]  }
 0x1f8   : > { %3984 = vmatpush1.bf16.msra.mxu0 %v17224_v61  ;;  %4156 = vmatpush1.bf16.msra.mxu1 %v17227_v62  ;;  %v17319_v61 = vld [vmem:[%s20172_s30 + $0xddc] ss:$80 sps:$4 sm:$0xff]   ;;  %v17314_v62 = vld [vmem:[%s20172_s30 + $0xdd0] ss:$80 sps:$4 sm:$0xff]  }
 0x1f9   : > { %3985 = vmatprep.subr.bf16.mxu0 %v17232_v63  ;;  %4157 = vmatprep.subr.bf16.mxu1 %v17235_v0  ;;  %v17317_v63 = vld [vmem:[%s20172_s30 + $0xdd8] ss:$80 sps:$4 sm:$0xff]   ;;  %v17322_v0 = vld [vmem:[%s20172_s30 + $0xe74] ss:$80 sps:$4 sm:$0xff]  }
 0x1fc   : > { %3986 = vmatpush1.bf16.msra.mxu0 %v17230_v1  ;;  %4158 = vmatpush1.bf16.msra.mxu1 %v17233_v2  ;;  %v17325_v1 = vld [vmem:[%s20172_s30 + $0xe7c] ss:$80 sps:$4 sm:$0xff]   ;;  %v17320_v2 = vld [vmem:[%s20172_s30 + $0xe70] ss:$80 sps:$4 sm:$0xff]  }
 0x1fd   : > { %3987 = vmatprep.subr.bf16.mxu0 %v17238_v3  ;;  %4159 = vmatprep.subr.bf16.mxu1 %v17241_v4  ;;  %v17323_v3 = vld [vmem:[%s20172_s30 + $0xe78] ss:$80 sps:$4 sm:$0xff]   ;;  %v17328_v4 = vld [vmem:[%s20172_s30 + $0xf14] ss:$80 sps:$4 sm:$0xff]  }
 0x200   : > { %3988 = vmatpush1.bf16.msra.mxu0 %v17236_v6  ;;  %4160 = vmatpush1.bf16.msra.mxu1 %v17239_v7  ;;  %v17331_v6 = vld [vmem:[%s20172_s30 + $0xf1c] ss:$80 sps:$4 sm:$0xff]   ;;  %v17326_v7 = vld [vmem:[%s20172_s30 + $0xf10] ss:$80 sps:$4 sm:$0xff]  }
 0x201   : > { %3989 = vmatprep.subr.bf16.mxu0 %v17244_v8  ;;  %4161 = vmatprep.subr.bf16.mxu1 %v17247_v9  ;;  %v17329_v8 = vld [vmem:[%s20172_s30 + $0xf18] ss:$80 sps:$4 sm:$0xff]   ;;  %v17334_v9 = vld [vmem:[%s20172_s30 + $0xfb4] ss:$80 sps:$4 sm:$0xff]  }
 0x204   : > { %3990 = vmatpush1.bf16.msra.mxu0 %v17242_v10  ;;  %4162 = vmatpush1.bf16.msra.mxu1 %v17245_v11  ;;  %v17337_v10 = vld [vmem:[%s20172_s30 + $0xfbc] ss:$80 sps:$4 sm:$0xff]   ;;  %v17332_v11 = vld [vmem:[%s20172_s30 + $0xfb0] ss:$80 sps:$4 sm:$0xff]  }
 0x205   : > { %3991 = vmatprep.subr.bf16.mxu0 %v17250_v12  ;;  %4163 = vmatprep.subr.bf16.mxu1 %v17253_v14  ;;  %v17335_v12 = vld [vmem:[%s20172_s30 + $0xfb8] ss:$80 sps:$4 sm:$0xff]   ;;  %v17340_v14 = vld [vmem:[%s20172_s30 + $0x1054] ss:$80 sps:$4 sm:$0xff]  }
 0x208   : > { %3992 = vmatpush1.bf16.msra.mxu0 %v17248_v15  ;;  %4164 = vmatpush1.bf16.msra.mxu1 %v17251_v19  ;;  %v17343_v15 = vld [vmem:[%s20172_s30 + $0x105c] ss:$80 sps:$4 sm:$0xff]   ;;  %v17338_v19 = vld [vmem:[%s20172_s30 + $0x1050] ss:$80 sps:$4 sm:$0xff]  }
 0x209   : > { %3993 = vmatprep.subr.bf16.mxu0 %v17256_v20  ;;  %4165 = vmatprep.subr.bf16.mxu1 %v17259_v21  ;;  %v17341_v20 = vld [vmem:[%s20172_s30 + $0x1058] ss:$80 sps:$4 sm:$0xff]   ;;  %v17346_v21 = vld [vmem:[%s20172_s30 + $0x10f4] ss:$80 sps:$4 sm:$0xff]  }
 0x20c   : > { %3994 = vmatpush1.bf16.msra.mxu0 %v17254_v22  ;;  %4166 = vmatpush1.bf16.msra.mxu1 %v17257_v23  ;;  %v17349_v22 = vld [vmem:[%s20172_s30 + $0x10fc] ss:$80 sps:$4 sm:$0xff]   ;;  %v17344_v23 = vld [vmem:[%s20172_s30 + $0x10f0] ss:$80 sps:$4 sm:$0xff]  }
 0x20d   : > { %3995 = vmatprep.subr.bf16.mxu0 %v17262_v27  ;;  %4167 = vmatprep.subr.bf16.mxu1 %v17265_v28  ;;  %v17347_v27 = vld [vmem:[%s20172_s30 + $0x10f8] ss:$80 sps:$4 sm:$0xff]   ;;  %v17352_v28 = vld [vmem:[%s20172_s30 + $0x1194] ss:$80 sps:$4 sm:$0xff]  }
 0x210   : > { %3996 = vmatpush1.bf16.msra.mxu0 %v17260_v16  ;;  %4168 = vmatpush1.bf16.msra.mxu1 %v17263_v17  ;;  %v17355_v16 = vld [vmem:[%s20172_s30 + $0x119c] ss:$80 sps:$4 sm:$0xff]   ;;  %v17350_v17 = vld [vmem:[%s20172_s30 + $0x1190] ss:$80 sps:$4 sm:$0xff]  }
 0x211   : > { %3997 = vmatprep.subr.bf16.mxu0 %v17268_v30  ;;  %4169 = vmatprep.subr.bf16.mxu1 %v17271_v31  ;;  %v17353_v30 = vld [vmem:[%s20172_s30 + $0x1198] ss:$80 sps:$4 sm:$0xff]   ;;  %v17358_v31 = vld [vmem:[%s20172_s30 + $0x1234] ss:$80 sps:$4 sm:$0xff]  }
 0x214   : > { %3998 = vmatpush1.bf16.msra.mxu0 %v17266_v32  ;;  %4170 = vmatpush1.bf16.msra.mxu1 %v17269_v35  ;;  %v17361_v32 = vld [vmem:[%s20172_s30 + $0x123c] ss:$80 sps:$4 sm:$0xff]   ;;  %v17356_v35 = vld [vmem:[%s20172_s30 + $0x1230] ss:$80 sps:$4 sm:$0xff]  }
 0x215   : > { %3999 = vmatprep.subr.bf16.mxu0 %v17274_v36  ;;  %4171 = vmatprep.subr.bf16.mxu1 %v17277_v37  ;;  %v17359_v36 = vld [vmem:[%s20172_s30 + $0x1238] ss:$80 sps:$4 sm:$0xff]   ;;  %v17364_v37 = vld [vmem:[%s20172_s30 + $0x12d4] ss:$80 sps:$4 sm:$0xff]  }
 0x218   : > { %4000 = vmatpush1.bf16.msra.mxu0 %v17272_v38  ;;  %4172 = vmatpush1.bf16.msra.mxu1 %v17275_v39  ;;  %v17367_v38 = vld [vmem:[%s20172_s30 + $0x12dc] ss:$80 sps:$4 sm:$0xff]   ;;  %v17362_v39 = vld [vmem:[%s20172_s30 + $0x12d0] ss:$80 sps:$4 sm:$0xff]  }
 0x219   : > { %4012 = vmatprep.subr.bf16.mxu0 %v17280_v40  ;;  %4184 = vmatprep.subr.bf16.mxu1 %v17283_v25  ;;  %v17365_v40 = vld [vmem:[%s20172_s30 + $0x12d8] ss:$80 sps:$4 sm:$0xff]   ;;  %v17370_v25 = vld [vmem:[%s20172_s30 + $0x1374] ss:$80 sps:$4 sm:$0xff]  }
 0x21b   : > { %4002 = vmatmul.mubr.bf16.vlgmr.msra.gmra.mrb[4].mxu0 %v20269_v5  ;;  %4174 = vmatmul.mubr.bf16.vlgmr.msra.gmra.mrb[4].mxu1 %v20269_v5  ;;  %v17290_v5 = vld [vmem:[%s20172_s30 + $0xb50] ss:$80 sps:$4 sm:$0xff]  }
 0x21c   : > { %4013 = vmatpush1.bf16.msra.mxu0 %v17278_v26  ;;  %4185 = vmatpush1.bf16.msra.mxu1 %v17281_v41  ;;  %v17373_v26 = vld [vmem:[%s20172_s30 + $0x137c] ss:$80 sps:$4 sm:$0xff]   ;;  %v17368_v41 = vld [vmem:[%s20172_s30 + $0x1370] ss:$80 sps:$4 sm:$0xff]  }
 0x21d   : > { %4014 = vmatprep.subr.bf16.mxu0 %v17286_v42  ;;  %4186 = vmatprep.subr.bf16.mxu1 %v17289_v43  ;;  %v17371_v42 = vld [vmem:[%s20172_s30 + $0x1378] ss:$80 sps:$4 sm:$0xff]   ;;  %v17376_v43 = vld [vmem:[%s20172_s30 + $0x1414] ss:$80 sps:$4 sm:$0xff]  }
 0x21e   : > { %4044 = vmatprep.mubr.bf16.mxu0 %v20305_v34  ;;  %4216 = vmatprep.mubr.bf16.mxu1 %v20305_v34  ;;  %v17304_v34 = vld [vmem:[%s20172_s30 + $0xc94] ss:$80 sps:$4 sm:$0xff]  }
 0x220   : > { %4015 = vmatpush1.bf16.msra.mxu0 %v17284_v44  ;;  %4187 = vmatpush1.bf16.msra.mxu1 %v17287_v45  ;;  %v17379_v44 = vld [vmem:[%s20172_s30 + $0x141c] ss:$80 sps:$4 sm:$0xff]   ;;  %v17374_v45 = vld [vmem:[%s20172_s30 + $0x1410] ss:$80 sps:$4 sm:$0xff]  }
 0x221   : > { %4016 = vmatprep.subr.bf16.mxu0 %v17292_v46  ;;  %4188 = vmatprep.subr.bf16.mxu1 %v17295_v50  ;;  %v17377_v46 = vld [vmem:[%s20172_s30 + $0x1418] ss:$80 sps:$4 sm:$0xff]   ;;  %v17382_v50 = vld [vmem:[%s20172_s30 + $0x14b4] ss:$80 sps:$4 sm:$0xff]  }
 0x224   : > { %4017 = vmatpush1.bf16.msra.mxu0 %v17290_v5  ;;  %4189 = vmatpush1.bf16.msra.mxu1 %v17293_v47  ;;  %v17385_v5 = vld [vmem:[%s20172_s30 + $0x14bc] ss:$80 sps:$4 sm:$0xff]   ;;  %v17380_v47 = vld [vmem:[%s20172_s30 + $0x14b0] ss:$80 sps:$4 sm:$0xff]  }
 0x225   : > { %4018 = vmatprep.subr.bf16.mxu0 %v17298_v48  ;;  %4190 = vmatprep.subr.bf16.mxu1 %v17301_v49  ;;  %v17383_v48 = vld [vmem:[%s20172_s30 + $0x14b8] ss:$80 sps:$4 sm:$0xff]   ;;  %v17388_v49 = vld [vmem:[%s20172_s30 + $0x1554] ss:$80 sps:$4 sm:$0xff]  }
 0x228   : > { %4019 = vmatpush1.bf16.msra.mxu0 %v17296_v51  ;;  %4191 = vmatpush1.bf16.msra.mxu1 %v17299_v52  ;;  %v17391_v51 = vld [vmem:[%s20172_s30 + $0x155c] ss:$80 sps:$4 sm:$0xff]   ;;  %v17386_v52 = vld [vmem:[%s20172_s30 + $0x1550] ss:$80 sps:$4 sm:$0xff]  }
 0x229   : > { %4020 = vmatprep.subr.bf16.mxu0 %v17304_v34  ;;  %4192 = vmatprep.subr.bf16.mxu1 %v17307_v53  ;;  %v17389_v34 = vld [vmem:[%s20172_s30 + $0x1558] ss:$80 sps:$4 sm:$0xff]   ;;  %v17397_v53 = vld [vmem:[%s20172_s30 + $0x15fc] ss:$80 sps:$4 sm:$0xff]  }
 0x22c   : > { %4021 = vmatpush1.bf16.msra.mxu0 %v17302_v54  ;;  %4193 = vmatpush1.bf16.msra.mxu1 %v17305_v55  ;;  %v17392_v54 = vld [vmem:[%s20172_s30 + $0x15f0] ss:$80 sps:$4 sm:$0xff]   ;;  %v17395_v55 = vld [vmem:[%s20172_s30 + $0x15f8] ss:$80 sps:$4 sm:$0xff]  }
 0x22d   : > { %4022 = vmatprep.subr.bf16.mxu0 %v17310_v56  ;;  %4194 = vmatprep.subr.bf16.mxu1 %v17313_v57  ;;  %v17400_v56 = vld [vmem:[%s20172_s30 + $0x1694] ss:$80 sps:$4 sm:$0xff]   ;;  %v17398_v57 = vld [vmem:[%s20172_s30 + $0x1690] ss:$80 sps:$4 sm:$0xff]  }
 0x230   : > { %4023 = vmatpush1.bf16.msra.mxu0 %v17308_v58  ;;  %4195 = vmatpush1.bf16.msra.mxu1 %v17311_v59  ;;  %v17401_v58 = vld [vmem:[%s20172_s30 + $0x1698] ss:$80 sps:$4 sm:$0xff]   ;;  %v17406_v59 = vld [vmem:[%s20172_s30 + $0x1734] ss:$80 sps:$4 sm:$0xff]  }
 0x231   : > { %4024 = vmatprep.subr.bf16.mxu0 %v17316_v60  ;;  %4196 = vmatprep.subr.bf16.mxu1 %v17319_v61  ;;  %v17409_v60 = vld [vmem:[%s20172_s30 + $0x173c] ss:$80 sps:$4 sm:$0xff]   ;;  %v17404_v61 = vld [vmem:[%s20172_s30 + $0x1730] ss:$80 sps:$4 sm:$0xff]  }
 0x234   : > { %4025 = vmatpush1.bf16.msra.mxu0 %v17314_v62  ;;  %4197 = vmatpush1.bf16.msra.mxu1 %v17317_v63  ;;  %v17407_v62 = vld [vmem:[%s20172_s30 + $0x1738] ss:$80 sps:$4 sm:$0xff]   ;;  %v17412_v63 = vld [vmem:[%s20172_s30 + $0x17d4] ss:$80 sps:$4 sm:$0xff]  }
 0x235   : > { %4026 = vmatprep.subr.bf16.mxu0 %v17322_v0  ;;  %4198 = vmatprep.subr.bf16.mxu1 %v17325_v1  ;;  %v17415_v0 = vld [vmem:[%s20172_s30 + $0x17dc] ss:$80 sps:$4 sm:$0xff]   ;;  %v17410_v1 = vld [vmem:[%s20172_s30 + $0x17d0] ss:$80 sps:$4 sm:$0xff]  }
 0x238   : > { %4027 = vmatpush1.bf16.msra.mxu0 %v17320_v2  ;;  %4199 = vmatpush1.bf16.msra.mxu1 %v17323_v3  ;;  %v17413_v2 = vld [vmem:[%s20172_s30 + $0x17d8] ss:$80 sps:$4 sm:$0xff]   ;;  %v17418_v3 = vld [vmem:[%s20172_s30 + $0x1874] ss:$80 sps:$4 sm:$0xff]  }
 0x239   : > { %4028 = vmatprep.subr.bf16.mxu0 %v17328_v4  ;;  %4200 = vmatprep.subr.bf16.mxu1 %v17331_v6  ;;  %v17421_v4 = vld [vmem:[%s20172_s30 + $0x187c] ss:$80 sps:$4 sm:$0xff]   ;;  %v17416_v6 = vld [vmem:[%s20172_s30 + $0x1870] ss:$80 sps:$4 sm:$0xff]  }
 0x23c   : > { %4029 = vmatpush1.bf16.msra.mxu0 %v17326_v7  ;;  %4201 = vmatpush1.bf16.msra.mxu1 %v17329_v8  ;;  %v17419_v7 = vld [vmem:[%s20172_s30 + $0x1878] ss:$80 sps:$4 sm:$0xff]   ;;  %v17424_v8 = vld [vmem:[%s20172_s30 + $0x1914] ss:$80 sps:$4 sm:$0xff]  }
 0x23d   : > { %4030 = vmatprep.subr.bf16.mxu0 %v17334_v9  ;;  %4202 = vmatprep.subr.bf16.mxu1 %v17337_v10  ;;  %v17427_v9 = vld [vmem:[%s20172_s30 + $0x191c] ss:$80 sps:$4 sm:$0xff]   ;;  %v17422_v10 = vld [vmem:[%s20172_s30 + $0x1910] ss:$80 sps:$4 sm:$0xff]  }
 0x240   : > { %4031 = vmatpush1.bf16.msra.mxu0 %v17332_v11  ;;  %4203 = vmatpush1.bf16.msra.mxu1 %v17335_v12  ;;  %v17425_v11 = vld [vmem:[%s20172_s30 + $0x1918] ss:$80 sps:$4 sm:$0xff]   ;;  %v17430_v12 = vld [vmem:[%s20172_s30 + $0x19b4] ss:$80 sps:$4 sm:$0xff]  }
 0x241   : > { %4032 = vmatprep.subr.bf16.mxu0 %v17340_v14  ;;  %4204 = vmatprep.subr.bf16.mxu1 %v17343_v15  ;;  %v17433_v14 = vld [vmem:[%s20172_s30 + $0x19bc] ss:$80 sps:$4 sm:$0xff]   ;;  %v17428_v15 = vld [vmem:[%s20172_s30 + $0x19b0] ss:$80 sps:$4 sm:$0xff]  }
 0x244   : > { %4033 = vmatpush1.bf16.msra.mxu0 %v17338_v19  ;;  %4205 = vmatpush1.bf16.msra.mxu1 %v17341_v20  ;;  %v17431_v19 = vld [vmem:[%s20172_s30 + $0x19b8] ss:$80 sps:$4 sm:$0xff]   ;;  %v17436_v20 = vld [vmem:[%s20172_s30 + $0x1a54] ss:$80 sps:$4 sm:$0xff]  }
 0x245   : > { %4034 = vmatprep.subr.bf16.mxu0 %v17346_v21  ;;  %4206 = vmatprep.subr.bf16.mxu1 %v17349_v22  ;;  %v17439_v21 = vld [vmem:[%s20172_s30 + $0x1a5c] ss:$80 sps:$4 sm:$0xff]   ;;  %v17434_v22 = vld [vmem:[%s20172_s30 + $0x1a50] ss:$80 sps:$4 sm:$0xff]  }
 0x248   : > { %4035 = vmatpush1.bf16.msra.mxu0 %v17344_v23  ;;  %4207 = vmatpush1.bf16.msra.mxu1 %v17347_v27  ;;  %v17437_v23 = vld [vmem:[%s20172_s30 + $0x1a58] ss:$80 sps:$4 sm:$0xff]   ;;  %v17442_v27 = vld [vmem:[%s20172_s30 + $0x1af4] ss:$80 sps:$4 sm:$0xff]  }
 0x249   : > { %4036 = vmatprep.subr.bf16.mxu0 %v17352_v28  ;;  %4208 = vmatprep.subr.bf16.mxu1 %v17355_v16  ;;  %v17445_v28 = vld [vmem:[%s20172_s30 + $0x1afc] ss:$80 sps:$4 sm:$0xff]   ;;  %v17440_v16 = vld [vmem:[%s20172_s30 + $0x1af0] ss:$80 sps:$4 sm:$0xff]  }
 0x24c   : > { %4037 = vmatpush1.bf16.msra.mxu0 %v17350_v17  ;;  %4209 = vmatpush1.bf16.msra.mxu1 %v17353_v30  ;;  %v17443_v17 = vld [vmem:[%s20172_s30 + $0x1af8] ss:$80 sps:$4 sm:$0xff]   ;;  %v17448_v30 = vld [vmem:[%s20172_s30 + $0x1b94] ss:$80 sps:$4 sm:$0xff]  }
 0x24d   : > { %4038 = vmatprep.subr.bf16.mxu0 %v17358_v31  ;;  %4210 = vmatprep.subr.bf16.mxu1 %v17361_v32  ;;  %v17451_v31 = vld [vmem:[%s20172_s30 + $0x1b9c] ss:$80 sps:$4 sm:$0xff]   ;;  %v17446_v32 = vld [vmem:[%s20172_s30 + $0x1b90] ss:$80 sps:$4 sm:$0xff]  }
 0x250   : > { %4039 = vmatpush1.bf16.msra.mxu0 %v17356_v35  ;;  %4211 = vmatpush1.bf16.msra.mxu1 %v17359_v36  ;;  %v17449_v35 = vld [vmem:[%s20172_s30 + $0x1b98] ss:$80 sps:$4 sm:$0xff]   ;;  %v17454_v36 = vld [vmem:[%s20172_s30 + $0x1c34] ss:$80 sps:$4 sm:$0xff]  }
 0x251   : > { %4040 = vmatprep.subr.bf16.mxu0 %v17364_v37  ;;  %4212 = vmatprep.subr.bf16.mxu1 %v17367_v38  ;;  %v17457_v37 = vld [vmem:[%s20172_s30 + $0x1c3c] ss:$80 sps:$4 sm:$0xff]   ;;  %v17452_v38 = vld [vmem:[%s20172_s30 + $0x1c30] ss:$80 sps:$4 sm:$0xff]  }
 0x254   : > { %4041 = vmatpush1.bf16.msra.mxu0 %v17362_v39  ;;  %4213 = vmatpush1.bf16.msra.mxu1 %v17365_v40  ;;  %v17455_v39 = vld [vmem:[%s20172_s30 + $0x1c38] ss:$80 sps:$4 sm:$0xff]   ;;  %v17460_v40 = vld [vmem:[%s20172_s30 + $0x1cd4] ss:$80 sps:$4 sm:$0xff]  }
 0x255   : > { %4042 = vmatprep.subr.bf16.mxu0 %v17370_v25  ;;  %4214 = vmatprep.subr.bf16.mxu1 %v17373_v26  ;;  %v17463_v25 = vld [vmem:[%s20172_s30 + $0x1cdc] ss:$80 sps:$4 sm:$0xff]   ;;  %v17458_v26 = vld [vmem:[%s20172_s30 + $0x1cd0] ss:$80 sps:$4 sm:$0xff]  }
 0x258   : > { %4043 = vmatpush1.bf16.msra.mxu0 %v17368_v41  ;;  %4215 = vmatpush1.bf16.msra.mxu1 %v17371_v42  ;;  %v17461_v41 = vld [vmem:[%s20172_s30 + $0x1cd8] ss:$80 sps:$4 sm:$0xff]   ;;  %v17466_v42 = vld [vmem:[%s20172_s30 + $0x1d74] ss:$80 sps:$4 sm:$0xff]  }
 0x259   : > { %4055 = vmatprep.subr.bf16.mxu0 %v17376_v43  ;;  %4227 = vmatprep.subr.bf16.mxu1 %v17379_v44  ;;  %v17469_v43 = vld [vmem:[%s20172_s30 + $0x1d7c] ss:$80 sps:$4 sm:$0xff]   ;;  %v17464_v44 = vld [vmem:[%s20172_s30 + $0x1d70] ss:$80 sps:$4 sm:$0xff]  }
 0x25b   : > { %4045 = vmatmul.mubr.bf16.vlgmr.msra.gmra.mrb[4].mxu0 %v20351_v13  ;;  %4217 = vmatmul.mubr.bf16.vlgmr.msra.gmra.mrb[4].mxu1 %v20351_v13  ;;  %v17394_v13 = vld [vmem:[%s20172_s30 + $0x15f4] ss:$80 sps:$4 sm:$0xff]  }
 0x25c   : > { %4056 = vmatpush1.bf16.msra.mxu0 %v17374_v45  ;;  %4228 = vmatpush1.bf16.msra.mxu1 %v17377_v46  ;;  %v17467_v45 = vld [vmem:[%s20172_s30 + $0x1d78] ss:$80 sps:$4 sm:$0xff]   ;;  %v17472_v46 = vld [vmem:[%s20172_s30 + $0x1e14] ss:$80 sps:$4 sm:$0xff]  }
 0x25d   : > { %4057 = vmatprep.subr.bf16.mxu0 %v17382_v50  ;;  %4229 = vmatprep.subr.bf16.mxu1 %v17385_v5  ;;  %v17475_v50 = vld [vmem:[%s20172_s30 + $0x1e1c] ss:$80 sps:$4 sm:$0xff]   ;;  %v17470_v5 = vld [vmem:[%s20172_s30 + $0x1e10] ss:$80 sps:$4 sm:$0xff]  }
 0x25e   : > { %4087 = vmatprep.mubr.bf16.mxu0 %v20361_v18  ;;  %4259 = vmatprep.mubr.bf16.mxu1 %v20361_v18  ;;  %v17403_v18 = vld [vmem:[%s20172_s30 + $0x169c] ss:$80 sps:$4 sm:$0xff]  }
 0x260   : > { %4058 = vmatpush1.bf16.msra.mxu0 %v17380_v47  ;;  %4230 = vmatpush1.bf16.msra.mxu1 %v17383_v48  ;;  %v17473_v47 = vld [vmem:[%s20172_s30 + $0x1e18] ss:$80 sps:$4 sm:$0xff]   ;;  %v17478_v48 = vld [vmem:[%s20172_s30 + $0x1eb4] ss:$80 sps:$4 sm:$0xff]  }
 0x261   : > { %4059 = vmatprep.subr.bf16.mxu0 %v17388_v49  ;;  %4231 = vmatprep.subr.bf16.mxu1 %v17391_v51  ;;  %v17481_v49 = vld [vmem:[%s20172_s30 + $0x1ebc] ss:$80 sps:$4 sm:$0xff]   ;;  %v17476_v51 = vld [vmem:[%s20172_s30 + $0x1eb0] ss:$80 sps:$4 sm:$0xff]  }
 0x264   : > { %4060 = vmatpush1.bf16.msra.mxu0 %v17386_v52  ;;  %4232 = vmatpush1.bf16.msra.mxu1 %v17389_v34  ;;  %v17479_v52 = vld [vmem:[%s20172_s30 + $0x1eb8] ss:$80 sps:$4 sm:$0xff]   ;;  %v17484_v34 = vld [vmem:[%s20172_s30 + $0x1f54] ss:$80 sps:$4 sm:$0xff]  }
 0x265   : > { %4061 = vmatprep.subr.bf16.mxu0 %v17394_v13  ;;  %4233 = vmatprep.subr.bf16.mxu1 %v17397_v53  ;;  %v17487_v13 = vld [vmem:[%s20172_s30 + $0x1f5c] ss:$80 sps:$4 sm:$0xff]   ;;  %v17482_v53 = vld [vmem:[%s20172_s30 + $0x1f50] ss:$80 sps:$4 sm:$0xff]  }
 0x268   : > { %4062 = vmatpush1.bf16.msra.mxu0 %v17392_v54  ;;  %4234 = vmatpush1.bf16.msra.mxu1 %v17395_v55  ;;  %v17485_v54 = vld [vmem:[%s20172_s30 + $0x1f58] ss:$80 sps:$4 sm:$0xff]   ;;  %v985_v55 = vlaneseq }
 0x269   : > { %4063 = vmatprep.subr.bf16.mxu0 %v17400_v56  ;;  %4235 = vmatprep.subr.bf16.mxu1 %v17403_v18  ;;  %v17493_v56 = vld [vmem:[%s20172_s30 + $0x1ffc] ss:$80 sps:$4 sm:$0xff]   ;;  %v17488_v18 = vld [vmem:[%s20172_s30 + $0x1ff0] ss:$80 sps:$4 sm:$0xff]  }
 0x26c   : > { %4064 = vmatpush1.bf16.msra.mxu0 %v17398_v57  ;;  %4236 = vmatpush1.bf16.msra.mxu1 %v17401_v58  ;;  %v17491_v57 = vld [vmem:[%s20172_s30 + $0x1ff8] ss:$80 sps:$4 sm:$0xff]   ;;  %v20733_v58 = vshrl.u32 %v985_v55, 7  ;;  %v17526_v55 = vld [vmem:[%s20172_s30 + $0x23b4] ss:$80 sps:$4 sm:$0xff]  }
 0x26d   : > { %4065 = vmatprep.subr.bf16.mxu0 %v17406_v59  ;;  %4237 = vmatprep.subr.bf16.mxu1 %v17409_v60  ;;  %v17499_v59 = vld [vmem:[%s20172_s30 + $0x209c] ss:$80 sps:$4 sm:$0xff]   ;;  %v17494_v60 = vld [vmem:[%s20172_s30 + $0x2090] ss:$80 sps:$4 sm:$0xff]  }
 0x270   : > { %4066 = vmatpush1.bf16.msra.mxu0 %v17404_v61  ;;  %4238 = vmatpush1.bf16.msra.mxu1 %v17407_v62  ;;  %v17497_v61 = vld [vmem:[%s20172_s30 + $0x2098] ss:$80 sps:$4 sm:$0xff]  }
 0x271   : > { %4067 = vmatprep.subr.bf16.mxu0 %v17412_v63  ;;  %4239 = vmatprep.subr.bf16.mxu1 %v17415_v0  ;;  %v983_v62 = vld [vmem:[%s20193_s27] sm:$0xff]  ;;  %v20741_v63 = vsub.s32 0, %v20733_v58  ;;  %v20744_v0 = vsub.s32 2, %v20733_v58 }
 0x274   : > { %4068 = vmatpush1.bf16.msra.mxu0 %v17410_v1  ;;  %4240 = vmatpush1.bf16.msra.mxu1 %v17413_v2  ;;  %v20747_v1 = vsub.s32 1, %v20733_v58  ;;  %v20750_v2 = vsub.s32 3, %v20733_v58 }
 0x275   : > { %4069 = vmatprep.subr.bf16.mxu0 %v17418_v3  ;;  %4241 = vmatprep.subr.bf16.mxu1 %v17421_v4  ;;  %v17502_v3 = vld [vmem:[%s20172_s30 + $0x2134] ss:$80 sps:$4 sm:$0xff]   ;;  %v17505_v4 = vld [vmem:[%s20172_s30 + $0x213c] ss:$80 sps:$4 sm:$0xff]  }
 0x278   : > { %4070 = vmatpush1.bf16.msra.mxu0 %v17416_v6  ;;  %4242 = vmatpush1.bf16.msra.mxu1 %v17419_v7  ;;  %v17500_v6 = vld [vmem:[%s20172_s30 + $0x2130] ss:$80 sps:$4 sm:$0xff]   ;;  %v17503_v7 = vld [vmem:[%s20172_s30 + $0x2138] ss:$80 sps:$4 sm:$0xff]  }
 0x279   : > { %4071 = vmatprep.subr.bf16.mxu0 %v17424_v8  ;;  %4243 = vmatprep.subr.bf16.mxu1 %v17427_v9  ;;  %v988_v8 = vrot.slane %v983_v62, %v20741_v63  ;;  %v996_v9 = vrot.slane %v983_v62, %v20744_v0 }
 0x27c   : > { %4072 = vmatpush1.bf16.msra.mxu0 %v17422_v10  ;;  %4244 = vmatpush1.bf16.msra.mxu1 %v17425_v11  ;;  %v992_v10 = vrot.slane %v983_v62, %v20747_v1  ;;  %v1000_v11 = vrot.slane %v983_v62, %v20750_v2  ;;  %v17541_v62 = vld [vmem:[%s20172_s30 + $0x24fc] ss:$80 sps:$4 sm:$0xff]  }
 0x27d   : > { %4073 = vmatprep.subr.bf16.mxu0 %v17430_v12  ;;  %4245 = vmatprep.subr.bf16.mxu1 %v17433_v14  ;;  %v17508_v12 = vld [vmem:[%s20172_s30 + $0x21d4] ss:$80 sps:$4 sm:$0xff]   ;;  %v17511_v14 = vld [vmem:[%s20172_s30 + $0x21dc] ss:$80 sps:$4 sm:$0xff]  }
 0x280   : > { %4074 = vmatpush1.bf16.msra.mxu0 %v17428_v15  ;;  %4246 = vmatpush1.bf16.msra.mxu1 %v17431_v19 }
 0x281   : > { %4075 = vmatprep.subr.bf16.mxu0 %v17436_v20  ;;  %4247 = vmatprep.subr.bf16.mxu1 %v17439_v21  ;;  %v17506_v20 = vld [vmem:[%s20172_s30 + $0x21d0] ss:$80 sps:$4 sm:$0xff]   ;;  %v17509_v21 = vld [vmem:[%s20172_s30 + $0x21d8] ss:$80 sps:$4 sm:$0xff]  }
 0x284   : > { %4076 = vmatpush1.bf16.msra.mxu0 %v17434_v22  ;;  %4248 = vmatpush1.bf16.msra.mxu1 %v17437_v23 }
 0x285   : > { %4077 = vmatprep.subr.bf16.mxu0 %v17442_v27  ;;  %4249 = vmatprep.subr.bf16.mxu1 %v17445_v28 }
 0x288   : > { %4078 = vmatpush1.bf16.msra.mxu0 %v17440_v16  ;;  %4250 = vmatpush1.bf16.msra.mxu1 %v17443_v17 }
 0x289   : > { %4079 = vmatprep.subr.bf16.mxu0 %v17448_v30  ;;  %4251 = vmatprep.subr.bf16.mxu1 %v17451_v31 }
 0x28c   : > { %4080 = vmatpush1.bf16.msra.mxu0 %v17446_v32  ;;  %4252 = vmatpush1.bf16.msra.mxu1 %v17449_v35 }
 0x28d   : > { %4081 = vmatprep.subr.bf16.mxu0 %v17454_v36  ;;  %4253 = vmatprep.subr.bf16.mxu1 %v17457_v37 }
 0x290   : > { %4082 = vmatpush1.bf16.msra.mxu0 %v17452_v38  ;;  %4254 = vmatpush1.bf16.msra.mxu1 %v17455_v39  ;;  %v17514_v38 = vld [vmem:[%s20172_s30 + $0x2274] ss:$80 sps:$4 sm:$0xff]   ;;  %v17517_v39 = vld [vmem:[%s20172_s30 + $0x227c] ss:$80 sps:$4 sm:$0xff]  }
 0x291   : > { %4083 = vmatprep.subr.bf16.mxu0 %v17460_v40  ;;  %4255 = vmatprep.subr.bf16.mxu1 %v17463_v25 }
 0x294   : > { %4084 = vmatpush1.bf16.msra.mxu0 %v17458_v26  ;;  %4256 = vmatpush1.bf16.msra.mxu1 %v17461_v41  ;;  %v17512_v41 = vld [vmem:[%s20172_s30 + $0x2270] ss:$80 sps:$4 sm:$0xff]  }
 0x295   : > { %4085 = vmatprep.subr.bf16.mxu0 %v17466_v42  ;;  %4257 = vmatprep.subr.bf16.mxu1 %v17469_v43  ;;  %v17515_v42 = vld [vmem:[%s20172_s30 + $0x2278] ss:$80 sps:$4 sm:$0xff]  }
 0x298   : > { %4086 = vmatpush1.bf16.msra.mxu0 %v17464_v44  ;;  %4258 = vmatpush1.bf16.msra.mxu1 %v17467_v45 }
 0x299   : > { %4098 = vmatprep.subr.bf16.mxu0 %v17472_v46  ;;  %4270 = vmatprep.subr.bf16.mxu1 %v17475_v50 }
 0x29b   : > { %4088 = vmatmul.mubr.bf16.vlgmr.msra.gmra.mrb[4].mxu0 %v20431_v24  ;;  %4260 = vmatmul.mubr.bf16.vlgmr.msra.gmra.mrb[4].mxu1 %v20431_v24  ;;  %v17490_v24 = vld [vmem:[%s20172_s30 + $0x1ff4] ss:$80 sps:$4 sm:$0xff]  }
 0x29c   : > { %4099 = vmatpush1.bf16.msra.mxu0 %v17470_v5  ;;  %4271 = vmatpush1.bf16.msra.mxu1 %v17473_v47 }
 0x29d   : > { %4100 = vmatprep.subr.bf16.mxu0 %v17478_v48  ;;  %4272 = vmatprep.subr.bf16.mxu1 %v17481_v49 }
 0x29e   : > { %4130 = vmatprep.mubr.bf16.mxu0 %v20441_v29  ;;  %4302 = vmatprep.mubr.bf16.mxu1 %v20441_v29  ;;  %v17496_v29 = vld [vmem:[%s20172_s30 + $0x2094] ss:$80 sps:$4 sm:$0xff]  }
 0x2a0   : > { %4101 = vmatpush1.bf16.msra.mxu0 %v17476_v51  ;;  %4273 = vmatpush1.bf16.msra.mxu1 %v17479_v52  ;;  %v17520_v51 = vld [vmem:[%s20172_s30 + $0x2314] ss:$80 sps:$4 sm:$0xff]   ;;  %v17523_v52 = vld [vmem:[%s20172_s30 + $0x231c] ss:$80 sps:$4 sm:$0xff]  }
 0x2a1   : > { %4102 = vmatprep.subr.bf16.mxu0 %v17484_v34  ;;  %4274 = vmatprep.subr.bf16.mxu1 %v17487_v13 }
 0x2a4   : > { %4103 = vmatpush1.bf16.msra.mxu0 %v17482_v53  ;;  %4275 = vmatpush1.bf16.msra.mxu1 %v17485_v54  ;;  %v17518_v53 = vld [vmem:[%s20172_s30 + $0x2310] ss:$80 sps:$4 sm:$0xff]   ;;  %v17521_v54 = vld [vmem:[%s20172_s30 + $0x2318] ss:$80 sps:$4 sm:$0xff]  }
 0x2a5   : > { %4104 = vmatprep.subr.bf16.mxu0 %v17490_v24  ;;  %4276 = vmatprep.subr.bf16.mxu1 %v17493_v56  ;;  %v17529_v24 = vld [vmem:[%s20172_s30 + $0x23bc] ss:$80 sps:$4 sm:$0xff]   ;;  %v17524_v56 = vld [vmem:[%s20172_s30 + $0x23b0] ss:$80 sps:$4 sm:$0xff]  }
 0x2a8   : > { %4105 = vmatpush1.bf16.msra.mxu0 %v17488_v18  ;;  %4277 = vmatpush1.bf16.msra.mxu1 %v17491_v57  ;;  %v17527_v18 = vld [vmem:[%s20172_s30 + $0x23b8] ss:$80 sps:$4 sm:$0xff]   ;;  %v17532_v57 = vld [vmem:[%s20172_s30 + $0x2454] ss:$80 sps:$4 sm:$0xff]  }
 0x2a9   : > { %4106 = vmatprep.subr.bf16.mxu0 %v17496_v29  ;;  %4278 = vmatprep.subr.bf16.mxu1 %v17499_v59  ;;  %v17535_v29 = vld [vmem:[%s20172_s30 + $0x245c] ss:$80 sps:$4 sm:$0xff]   ;;  %v17530_v59 = vld [vmem:[%s20172_s30 + $0x2450] ss:$80 sps:$4 sm:$0xff]  }
 0x2ac   : > { %4107 = vmatpush1.bf16.msra.mxu0 %v17494_v60  ;;  %4279 = vmatpush1.bf16.msra.mxu1 %v17497_v61  ;;  %v17533_v60 = vld [vmem:[%s20172_s30 + $0x2458] ss:$80 sps:$4 sm:$0xff]   ;;  %v17538_v61 = vld [vmem:[%s20172_s30 + $0x24f4] ss:$80 sps:$4 sm:$0xff]  }
 0x2ad   : > { %4108 = vmatprep.subr.bf16.mxu0 %v17502_v3  ;;  %4280 = vmatprep.subr.bf16.mxu1 %v17505_v4  ;;  %v17536_v3 = vld [vmem:[%s20172_s30 + $0x24f0] ss:$80 sps:$4 sm:$0xff]   ;;  %v17539_v4 = vld [vmem:[%s20172_s30 + $0x24f8] ss:$80 sps:$4 sm:$0xff]  }
 0x2ae   : > { %v3788_v15 = vpop.f32.mrb[0].mxu0  ;;  %v3960_v19 = vpop.f32.mrb[0].mxu1 }
 0x2af   : > { %v16444_v22 = vadd.f32 %v3788_v15, %v988_v8  ;;  %v16448_v23 = vadd.f32 %v3960_v19, %v996_v9  ;;  %v3790_v27 = vpop.f32.mrb[1].mxu0  ;;  %v3962_v28 = vpop.f32.mrb[1].mxu1  ;;  %v17556_v15 = vld [vmem:[%s20172_s30 + $0x26d4] ss:$80 sps:$4 sm:$0xff]   ;;  %v17559_v19 = vld [vmem:[%s20172_s30 + $0x26dc] ss:$80 sps:$4 sm:$0xff]  }
 0x2b0   : > { %v16445_v16 = vadd.f32 %v3790_v27, %v992_v10  ;;  %v16449_v17 = vadd.f32 %v3962_v28, %v1000_v11  ;;  %v3792_v30 = vpop.f32.mrb[2].mxu0  ;;  %v3964_v31 = vpop.f32.mrb[2].mxu1  ;;  %4109 = vmatpush1.bf16.msra.mxu0 %v17500_v6  ;;  %4281 = vmatpush1.bf16.msra.mxu1 %v17503_v7  ;;  %v17544_v6 = vld [vmem:[%s20172_s30 + $0x2594] ss:$80 sps:$4 sm:$0xff]   ;;  %v17547_v7 = vld [vmem:[%s20172_s30 + $0x259c] ss:$80 sps:$4 sm:$0xff]  }
 0x2b1   : > { %v16446_v32 = vadd.f32 %v3792_v30, %v988_v8  ;;  %v16450_v35 = vadd.f32 %v3964_v31, %v996_v9  ;;  %v3794_v36 = vpop.f32.mrb[3].mxu0  ;;  %v3966_v37 = vpop.f32.mrb[3].mxu1  ;;  %4110 = vmatprep.subr.bf16.mxu0 %v17508_v12  ;;  %4282 = vmatprep.subr.bf16.mxu1 %v17511_v14  ;;  %v4313_v40 = vmax.f32 %v16444_v22, 0.0  ;;  %v4315_v43 = vmax.f32 %v16448_v23, 0.0  ;;  %v17542_v8 = vld [vmem:[%s20172_s30 + $0x2590] ss:$80 sps:$4 sm:$0xff]  }
 0x2b2   : > { %v16447_v25 = vadd.f32 %v3794_v36, %v992_v10  ;;  %v16451_v26 = vadd.f32 %v3966_v37, %v1000_v11  ;;  %v4314_v44 = vmax.f32 %v16445_v16, 0.0  ;;  %v4316_v50 = vmax.f32 %v16449_v17, 0.0  ;;  %v17545_v9 = vld [vmem:[%s20172_s30 + $0x2598] ss:$80 sps:$4 sm:$0xff]   ;;  %v17550_v10 = vld [vmem:[%s20172_s30 + $0x2634] ss:$80 sps:$4 sm:$0xff]  }
 0x2b3   : > { %v4321_v45 = vmax.f32 %v16446_v32, 0.0  ;;  %v4323_v46 = vmax.f32 %v16450_v35, 0.0  ;;  %v17553_v11 = vld [vmem:[%s20172_s30 + $0x263c] ss:$80 sps:$4 sm:$0xff]   ;;  %v17548_v12 = vld [vmem:[%s20172_s30 + $0x2630] ss:$80 sps:$4 sm:$0xff]  }
 0x2b4   : > { %v4322_v5 = vmax.f32 %v16447_v25, 0.0  ;;  %v4324_v47 = vmax.f32 %v16451_v26, 0.0  ;;  %4111 = vmatpush1.bf16.msra.mxu0 %v17506_v20  ;;  %4283 = vmatpush1.bf16.msra.mxu1 %v17509_v21  ;;  %v17551_v14 = vld [vmem:[%s20172_s30 + $0x2638] ss:$80 sps:$4 sm:$0xff]   ;;  %v17554_v20 = vld [vmem:[%s20172_s30 + $0x26d0] ss:$80 sps:$4 sm:$0xff]  }
 0x2b5   : > { %v20768_v48 = vpack.c.bf16 %v4321_v45, %v4313_v40  ;;  %v20770_v49 = vpack.c.bf16 %v4323_v46, %v4315_v43  ;;  %4112 = vmatprep.subr.bf16.mxu0 %v17514_v38  ;;  %4284 = vmatprep.subr.bf16.mxu1 %v17517_v39  ;;  %v17557_v21 = vld [vmem:[%s20172_s30 + $0x26d8] ss:$80 sps:$4 sm:$0xff]   ;;  %v17562_v22 = vld [vmem:[%s20172_s30 + $0x2774] ss:$80 sps:$4 sm:$0xff]   ;;  %v17565_v23 = vld [vmem:[%s20172_s30 + $0x277c] ss:$80 sps:$4 sm:$0xff]  }
 0x2b6   : > { %v20774_v34 = vpack.c.bf16 %v4322_v5, %v4314_v44  ;;  %v20776_v13 = vpack.c.bf16 %v4324_v47, %v4316_v50  ;;  %v17560_v27 = vld [vmem:[%s20172_s30 + $0x2770] ss:$80 sps:$4 sm:$0xff]   ;;  %v17563_v28 = vld [vmem:[%s20172_s30 + $0x2778] ss:$80 sps:$4 sm:$0xff]   ;;  %v17568_v16 = vld [vmem:[%s20172_s30 + $0x24] ss:$80 sps:$4 sm:$0xff]  }
 0x2b7   : > { %v17571_v17 = vld [vmem:[%s20172_s30 + $0x2c] ss:$80 sps:$4 sm:$0xff]   ;;  %v17566_v30 = vld [vmem:[%s20172_s30 + $0x20] ss:$80 sps:$4 sm:$0xff]   ;;  %v17569_v31 = vld [vmem:[%s20172_s30 + $0x28] ss:$80 sps:$4 sm:$0xff]  }
 0x2b8   : > { %4113 = vmatpush1.bf16.msra.mxu0 %v17512_v41  ;;  %4285 = vmatpush1.bf16.msra.mxu1 %v17515_v42  ;;  %v17574_v32 = vld [vmem:[%s20172_s30 + $0xc4] ss:$80 sps:$4 sm:$0xff]   ;;  %v17577_v35 = vld [vmem:[%s20172_s30 + $0xcc] ss:$80 sps:$4 sm:$0xff]   ;;  %v17572_v36 = vld [vmem:[%s20172_s30 + $0xc0] ss:$80 sps:$4 sm:$0xff]  }
 0x2b9   : > { %4114 = vmatprep.subr.bf16.mxu0 %v17520_v51  ;;  %4286 = vmatprep.subr.bf16.mxu1 %v17523_v52  ;;  %v17575_v37 = vld [vmem:[%s20172_s30 + $0xc8] ss:$80 sps:$4 sm:$0xff]   ;;  %v17580_v38 = vld [vmem:[%s20172_s30 + $0x164] ss:$80 sps:$4 sm:$0xff]   ;;  %v17578_v39 = vld [vmem:[%s20172_s30 + $0x160] ss:$80 sps:$4 sm:$0xff]  }
 0x2ba   : > { %v17583_v40 = vld [vmem:[%s20172_s30 + $0x16c] ss:$80 sps:$4 sm:$0xff]   ;;  %v17586_v25 = vld [vmem:[%s20172_s30 + $0x204] ss:$80 sps:$4 sm:$0xff]   ;;  %v17584_v26 = vld [vmem:[%s20172_s30 + $0x200] ss:$80 sps:$4 sm:$0xff]  }
 0x2bb   : > { %v17589_v41 = vld [vmem:[%s20172_s30 + $0x20c] ss:$80 sps:$4 sm:$0xff]   ;;  %v17587_v42 = vld [vmem:[%s20172_s30 + $0x208] ss:$80 sps:$4 sm:$0xff]   ;;  %v17592_v43 = vld [vmem:[%s20172_s30 + $0x2a4] ss:$80 sps:$4 sm:$0xff]  }
 0x2bc   : > { %4115 = vmatpush1.bf16.msra.mxu0 %v17518_v53  ;;  %4287 = vmatpush1.bf16.msra.mxu1 %v17521_v54  ;;  %v17590_v44 = vld [vmem:[%s20172_s30 + $0x2a0] ss:$80 sps:$4 sm:$0xff]   ;;  %v17595_v45 = vld [vmem:[%s20172_s30 + $0x2ac] ss:$80 sps:$4 sm:$0xff]   ;;  %v17593_v46 = vld [vmem:[%s20172_s30 + $0x2a8] ss:$80 sps:$4 sm:$0xff]  }
 0x2bd   : > { %4116 = vmatprep.subr.bf16.mxu0 %v17526_v55  ;;  %4288 = vmatprep.subr.bf16.mxu1 %v17529_v24  ;;  %v17598_v50 = vld [vmem:[%s20172_s30 + $0x344] ss:$80 sps:$4 sm:$0xff]   ;;  %v17596_v5 = vld [vmem:[%s20172_s30 + $0x340] ss:$80 sps:$4 sm:$0xff]   ;;  %v17601_v47 = vld [vmem:[%s20172_s30 + $0x34c] ss:$80 sps:$4 sm:$0xff]  }
 0x2be   : > { %v17599_v51 = vld [vmem:[%s20172_s30 + $0x348] ss:$80 sps:$4 sm:$0xff]   ;;  %v17604_v52 = vld [vmem:[%s20172_s30 + $0x3e4] ss:$80 sps:$4 sm:$0xff]   ;;  %v17602_v53 = vld [vmem:[%s20172_s30 + $0x3e0] ss:$80 sps:$4 sm:$0xff]  }
 0x2bf   : > { %v17607_v54 = vld [vmem:[%s20172_s30 + $0x3ec] ss:$80 sps:$4 sm:$0xff]   ;;  %v17605_v55 = vld [vmem:[%s20172_s30 + $0x3e8] ss:$80 sps:$4 sm:$0xff]   ;;  %v17610_v24 = vld [vmem:[%s20172_s30 + $0x484] ss:$80 sps:$4 sm:$0xff]  }
 0x2c0   : > { %4117 = vmatpush1.bf16.msra.mxu0 %v17524_v56  ;;  %4289 = vmatpush1.bf16.msra.mxu1 %v17527_v18  ;;  %v17608_v56 = vld [vmem:[%s20172_s30 + $0x480] ss:$80 sps:$4 sm:$0xff]   ;;  %v17613_v18 = vld [vmem:[%s20172_s30 + $0x48c] ss:$80 sps:$4 sm:$0xff]  }
 0x2c1   : > { %4118 = vmatprep.subr.bf16.mxu0 %v17532_v57  ;;  %4290 = vmatprep.subr.bf16.mxu1 %v17535_v29  ;;  %v17611_v57 = vld [vmem:[%s20172_s30 + $0x488] ss:$80 sps:$4 sm:$0xff]   ;;  %v17616_v29 = vld [vmem:[%s20172_s30 + $0x524] ss:$80 sps:$4 sm:$0xff]  }
 0x2c4   : > { %4119 = vmatpush1.bf16.msra.mxu0 %v17530_v59  ;;  %4291 = vmatpush1.bf16.msra.mxu1 %v17533_v60  ;;  %v17614_v59 = vld [vmem:[%s20172_s30 + $0x520] ss:$80 sps:$4 sm:$0xff]   ;;  %v17619_v60 = vld [vmem:[%s20172_s30 + $0x52c] ss:$80 sps:$4 sm:$0xff]  }
 0x2c5   : > { %4120 = vmatprep.subr.bf16.mxu0 %v17538_v61  ;;  %4292 = vmatprep.subr.bf16.mxu1 %v17541_v62  ;;  %v17617_v61 = vld [vmem:[%s20172_s30 + $0x528] ss:$80 sps:$4 sm:$0xff]   ;;  %v17622_v62 = vld [vmem:[%s20172_s30 + $0x5c4] ss:$80 sps:$4 sm:$0xff]  }
 0x2c8   : > { %4121 = vmatpush1.bf16.msra.mxu0 %v17536_v3  ;;  %4293 = vmatpush1.bf16.msra.mxu1 %v17539_v4  ;;  %v17620_v3 = vld [vmem:[%s20172_s30 + $0x5c0] ss:$80 sps:$4 sm:$0xff]   ;;  %v17625_v4 = vld [vmem:[%s20172_s30 + $0x5cc] ss:$80 sps:$4 sm:$0xff]  }
 0x2c9   : > { %4122 = vmatprep.subr.bf16.mxu0 %v17544_v6  ;;  %4294 = vmatprep.subr.bf16.mxu1 %v17547_v7  ;;  %v17623_v6 = vld [vmem:[%s20172_s30 + $0x5c8] ss:$80 sps:$4 sm:$0xff]   ;;  %v17628_v7 = vld [vmem:[%s20172_s30 + $0x664] ss:$80 sps:$4 sm:$0xff]  }
 0x2cc   : > { %4123 = vmatpush1.bf16.msra.mxu0 %v17542_v8  ;;  %4295 = vmatpush1.bf16.msra.mxu1 %v17545_v9  ;;  %v17626_v8 = vld [vmem:[%s20172_s30 + $0x660] ss:$80 sps:$4 sm:$0xff]   ;;  %v17631_v9 = vld [vmem:[%s20172_s30 + $0x66c] ss:$80 sps:$4 sm:$0xff]  }
 0x2cd   : > { %4124 = vmatprep.subr.bf16.mxu0 %v17550_v10  ;;  %4296 = vmatprep.subr.bf16.mxu1 %v17553_v11  ;;  %v17629_v10 = vld [vmem:[%s20172_s30 + $0x668] ss:$80 sps:$4 sm:$0xff]   ;;  %v17634_v11 = vld [vmem:[%s20172_s30 + $0x704] ss:$80 sps:$4 sm:$0xff]  }
 0x2d0   : > { %4125 = vmatpush1.bf16.msra.mxu0 %v17548_v12  ;;  %4297 = vmatpush1.bf16.msra.mxu1 %v17551_v14  ;;  %v17632_v12 = vld [vmem:[%s20172_s30 + $0x700] ss:$80 sps:$4 sm:$0xff]   ;;  %v17637_v14 = vld [vmem:[%s20172_s30 + $0x70c] ss:$80 sps:$4 sm:$0xff]  }
 0x2d1   : > { %4126 = vmatprep.subr.bf16.mxu0 %v17556_v15  ;;  %4298 = vmatprep.subr.bf16.mxu1 %v17559_v19  ;;  %v17635_v15 = vld [vmem:[%s20172_s30 + $0x708] ss:$80 sps:$4 sm:$0xff]   ;;  %v17640_v19 = vld [vmem:[%s20172_s30 + $0x7a4] ss:$80 sps:$4 sm:$0xff]  }
 0x2d4   : > { %4127 = vmatpush1.bf16.msra.mxu0 %v17554_v20  ;;  %4299 = vmatpush1.bf16.msra.mxu1 %v17557_v21  ;;  %v17638_v20 = vld [vmem:[%s20172_s30 + $0x7a0] ss:$80 sps:$4 sm:$0xff]   ;;  %v17643_v21 = vld [vmem:[%s20172_s30 + $0x7ac] ss:$80 sps:$4 sm:$0xff]  }
 0x2d5   : > { %4128 = vmatprep.subr.bf16.mxu0 %v17562_v22  ;;  %4300 = vmatprep.subr.bf16.mxu1 %v17565_v23  ;;  %v17641_v22 = vld [vmem:[%s20172_s30 + $0x7a8] ss:$80 sps:$4 sm:$0xff]   ;;  %v17646_v23 = vld [vmem:[%s20172_s30 + $0x844] ss:$80 sps:$4 sm:$0xff]  }
 0x2d8   : > { %4129 = vmatpush1.bf16.msra.mxu0 %v17560_v27  ;;  %4301 = vmatpush1.bf16.msra.mxu1 %v17563_v28  ;;  %v17644_v27 = vld [vmem:[%s20172_s30 + $0x840] ss:$80 sps:$4 sm:$0xff]   ;;  %v17649_v28 = vld [vmem:[%s20172_s30 + $0x84c] ss:$80 sps:$4 sm:$0xff]  }
 0x2d9   : > { %6673 = vmatprep.subr.bf16.mxu0 %v17568_v16  ;;  %6845 = vmatprep.subr.bf16.mxu1 %v17571_v17  ;;  %v17647_v16 = vld [vmem:[%s20172_s30 + $0x848] ss:$80 sps:$4 sm:$0xff]   ;;  %v17652_v17 = vld [vmem:[%s20172_s30 + $0x8e4] ss:$80 sps:$4 sm:$0xff]  }
 0x2db   : > { %4131 = vmatmul.mubr.bf16.vlgmr.msra.gmra.mrb[4].mxu0 %v20509_v33  ;;  %4303 = vmatmul.mubr.bf16.vlgmr.msra.gmra.mrb[4].mxu1 %v20509_v33  ;;  %v17581_v33 = vld [vmem:[%s20172_s30 + $0x168] ss:$80 sps:$4 sm:$0xff]  }
 0x2dc   : > { %6674 = vmatpush1.bf16.msra.mxu0 %v17566_v30  ;;  %6705 = vmatprep.mubr.bf16.mxu0 %v20774_v34  ;;  %v17650_v30 = vld [vmem:[%s20172_s30 + $0x8e0] ss:$80 sps:$4 sm:$0xff]  }
 0x2dd   : > { %6846 = vmatpush1.bf16.msra.mxu1 %v17569_v31  ;;  %6877 = vmatprep.mubr.bf16.mxu1 %v20774_v34  ;;  %v17655_v31 = vld [vmem:[%s20172_s30 + $0x8ec] ss:$80 sps:$4 sm:$0xff]  }
 0x2de   : > { %6675 = vmatprep.subr.bf16.mxu0 %v17574_v32  ;;  %6847 = vmatprep.subr.bf16.mxu1 %v17577_v35  ;;  %v17653_v32 = vld [vmem:[%s20172_s30 + $0x8e8] ss:$80 sps:$4 sm:$0xff]   ;;  %v17658_v35 = vld [vmem:[%s20172_s30 + $0x984] ss:$80 sps:$4 sm:$0xff]  }
 0x2e0   : > { %6676 = vmatpush1.bf16.msra.mxu0 %v17572_v36  ;;  %v17661_v36 = vld [vmem:[%s20172_s30 + $0x98c] ss:$80 sps:$4 sm:$0xff]  }
 0x2e1   : > { %6848 = vmatpush1.bf16.msra.mxu1 %v17575_v37  ;;  %6677 = vmatprep.subr.bf16.mxu0 %v17580_v38  ;;  %v17656_v37 = vld [vmem:[%s20172_s30 + $0x980] ss:$80 sps:$4 sm:$0xff]   ;;  %v17659_v38 = vld [vmem:[%s20172_s30 + $0x988] ss:$80 sps:$4 sm:$0xff]  }
 0x2e2   : > { %6849 = vmatprep.subr.bf16.mxu1 %v17583_v40  ;;  %v17667_v40 = vld [vmem:[%s20172_s30 + $0xa2c] ss:$80 sps:$4 sm:$0xff]  }
 0x2e4   : > { %6678 = vmatpush1.bf16.msra.mxu0 %v17578_v39  ;;  %v17664_v39 = vld [vmem:[%s20172_s30 + $0xa24] ss:$80 sps:$4 sm:$0xff]  }
 0x2e5   : > { %6850 = vmatpush1.bf16.msra.mxu1 %v17581_v33  ;;  %6679 = vmatprep.subr.bf16.mxu0 %v17586_v25  ;;  %v17662_v33 = vld [vmem:[%s20172_s30 + $0xa20] ss:$80 sps:$4 sm:$0xff]   ;;  %v17665_v25 = vld [vmem:[%s20172_s30 + $0xa28] ss:$80 sps:$4 sm:$0xff]  }
 0x2e6   : > { %6851 = vmatprep.subr.bf16.mxu1 %v17589_v41  ;;  %v17673_v41 = vld [vmem:[%s20172_s30 + $0xacc] ss:$80 sps:$4 sm:$0xff]  }
 0x2e8   : > { %6680 = vmatpush1.bf16.msra.mxu0 %v17584_v26  ;;  %v17670_v26 = vld [vmem:[%s20172_s30 + $0xac4] ss:$80 sps:$4 sm:$0xff]  }
 0x2e9   : > { %6852 = vmatpush1.bf16.msra.mxu1 %v17587_v42  ;;  %6681 = vmatprep.subr.bf16.mxu0 %v17592_v43  ;;  %v17668_v42 = vld [vmem:[%s20172_s30 + $0xac0] ss:$80 sps:$4 sm:$0xff]   ;;  %v17671_v43 = vld [vmem:[%s20172_s30 + $0xac8] ss:$80 sps:$4 sm:$0xff]  }
 0x2ea   : > { %6853 = vmatprep.subr.bf16.mxu1 %v17595_v45  ;;  %v17679_v45 = vld [vmem:[%s20172_s30 + $0xb6c] ss:$80 sps:$4 sm:$0xff]  }
 0x2ec   : > { %6682 = vmatpush1.bf16.msra.mxu0 %v17590_v44  ;;  %v17676_v44 = vld [vmem:[%s20172_s30 + $0xb64] ss:$80 sps:$4 sm:$0xff]  }
 0x2ed   : > { %6854 = vmatpush1.bf16.msra.mxu1 %v17593_v46  ;;  %6683 = vmatprep.subr.bf16.mxu0 %v17598_v50  ;;  %v17674_v46 = vld [vmem:[%s20172_s30 + $0xb60] ss:$80 sps:$4 sm:$0xff]   ;;  %v17677_v50 = vld [vmem:[%s20172_s30 + $0xb68] ss:$80 sps:$4 sm:$0xff]  }
 0x2ee   : > { %6855 = vmatprep.subr.bf16.mxu1 %v17601_v47  ;;  %v17685_v47 = vld [vmem:[%s20172_s30 + $0xc0c] ss:$80 sps:$4 sm:$0xff]  }
 0x2f0   : > { %6684 = vmatpush1.bf16.msra.mxu0 %v17596_v5  ;;  %v17682_v5 = vld [vmem:[%s20172_s30 + $0xc04] ss:$80 sps:$4 sm:$0xff]  }
 0x2f1   : > { %6856 = vmatpush1.bf16.msra.mxu1 %v17599_v51  ;;  %6685 = vmatprep.subr.bf16.mxu0 %v17604_v52  ;;  %v17680_v51 = vld [vmem:[%s20172_s30 + $0xc00] ss:$80 sps:$4 sm:$0xff]   ;;  %v17683_v52 = vld [vmem:[%s20172_s30 + $0xc08] ss:$80 sps:$4 sm:$0xff]  }
 0x2f2   : > { %6857 = vmatprep.subr.bf16.mxu1 %v17607_v54  ;;  %v17691_v54 = vld [vmem:[%s20172_s30 + $0xcac] ss:$80 sps:$4 sm:$0xff]  }
 0x2f4   : > { %6686 = vmatpush1.bf16.msra.mxu0 %v17602_v53  ;;  %v17688_v53 = vld [vmem:[%s20172_s30 + $0xca4] ss:$80 sps:$4 sm:$0xff]  }
 0x2f5   : > { %6858 = vmatpush1.bf16.msra.mxu1 %v17605_v55  ;;  %6687 = vmatprep.subr.bf16.mxu0 %v17610_v24  ;;  %v17686_v55 = vld [vmem:[%s20172_s30 + $0xca0] ss:$80 sps:$4 sm:$0xff]   ;;  %v17689_v24 = vld [vmem:[%s20172_s30 + $0xca8] ss:$80 sps:$4 sm:$0xff]  }
 0x2f6   : > { %6859 = vmatprep.subr.bf16.mxu1 %v17613_v18  ;;  %v17697_v18 = vld [vmem:[%s20172_s30 + $0xd4c] ss:$80 sps:$4 sm:$0xff]  }
 0x2f8   : > { %6688 = vmatpush1.bf16.msra.mxu0 %v17608_v56  ;;  %v17694_v56 = vld [vmem:[%s20172_s30 + $0xd44] ss:$80 sps:$4 sm:$0xff]  }
 0x2f9   : > { %6860 = vmatpush1.bf16.msra.mxu1 %v17611_v57  ;;  %6689 = vmatprep.subr.bf16.mxu0 %v17616_v29  ;;  %v17692_v57 = vld [vmem:[%s20172_s30 + $0xd40] ss:$80 sps:$4 sm:$0xff]   ;;  %v17695_v29 = vld [vmem:[%s20172_s30 + $0xd48] ss:$80 sps:$4 sm:$0xff]  }
 0x2fa   : > { %6861 = vmatprep.subr.bf16.mxu1 %v17619_v60  ;;  %v17703_v60 = vld [vmem:[%s20172_s30 + $0xdec] ss:$80 sps:$4 sm:$0xff]  }
 0x2fc   : > { %6690 = vmatpush1.bf16.msra.mxu0 %v17614_v59  ;;  %v17700_v59 = vld [vmem:[%s20172_s30 + $0xde4] ss:$80 sps:$4 sm:$0xff]  }
 0x2fd   : > { %6862 = vmatpush1.bf16.msra.mxu1 %v17617_v61  ;;  %6691 = vmatprep.subr.bf16.mxu0 %v17622_v62  ;;  %v17698_v61 = vld [vmem:[%s20172_s30 + $0xde0] ss:$80 sps:$4 sm:$0xff]   ;;  %v17701_v62 = vld [vmem:[%s20172_s30 + $0xde8] ss:$80 sps:$4 sm:$0xff]  }
 0x2fe   : > { %6863 = vmatprep.subr.bf16.mxu1 %v17625_v4  ;;  %v17709_v4 = vld [vmem:[%s20172_s30 + $0xe8c] ss:$80 sps:$4 sm:$0xff]  }
 0x300   : > { %6692 = vmatpush1.bf16.msra.mxu0 %v17620_v3  ;;  %v17706_v3 = vld [vmem:[%s20172_s30 + $0xe84] ss:$80 sps:$4 sm:$0xff]  }
 0x301   : > { %6864 = vmatpush1.bf16.msra.mxu1 %v17623_v6  ;;  %6693 = vmatprep.subr.bf16.mxu0 %v17628_v7  ;;  %v17704_v6 = vld [vmem:[%s20172_s30 + $0xe80] ss:$80 sps:$4 sm:$0xff]   ;;  %v17707_v7 = vld [vmem:[%s20172_s30 + $0xe88] ss:$80 sps:$4 sm:$0xff]  }
 0x302   : > { %6865 = vmatprep.subr.bf16.mxu1 %v17631_v9  ;;  %v17715_v9 = vld [vmem:[%s20172_s30 + $0xf2c] ss:$80 sps:$4 sm:$0xff]  }
 0x304   : > { %6694 = vmatpush1.bf16.msra.mxu0 %v17626_v8  ;;  %v17712_v8 = vld [vmem:[%s20172_s30 + $0xf24] ss:$80 sps:$4 sm:$0xff]  }
 0x305   : > { %6866 = vmatpush1.bf16.msra.mxu1 %v17629_v10  ;;  %6695 = vmatprep.subr.bf16.mxu0 %v17634_v11  ;;  %v17710_v10 = vld [vmem:[%s20172_s30 + $0xf20] ss:$80 sps:$4 sm:$0xff]   ;;  %v17713_v11 = vld [vmem:[%s20172_s30 + $0xf28] ss:$80 sps:$4 sm:$0xff]  }
 0x306   : > { %6867 = vmatprep.subr.bf16.mxu1 %v17637_v14  ;;  %v17721_v14 = vld [vmem:[%s20172_s30 + $0xfcc] ss:$80 sps:$4 sm:$0xff]  }
 0x308   : > { %6696 = vmatpush1.bf16.msra.mxu0 %v17632_v12  ;;  %v17718_v12 = vld [vmem:[%s20172_s30 + $0xfc4] ss:$80 sps:$4 sm:$0xff]  }
 0x309   : > { %6868 = vmatpush1.bf16.msra.mxu1 %v17635_v15  ;;  %6697 = vmatprep.subr.bf16.mxu0 %v17640_v19  ;;  %v17716_v15 = vld [vmem:[%s20172_s30 + $0xfc0] ss:$80 sps:$4 sm:$0xff]   ;;  %v17719_v19 = vld [vmem:[%s20172_s30 + $0xfc8] ss:$80 sps:$4 sm:$0xff]  }
 0x30a   : > { %6869 = vmatprep.subr.bf16.mxu1 %v17643_v21  ;;  %v17722_v21 = vld [vmem:[%s20172_s30 + $0x1060] ss:$80 sps:$4 sm:$0xff]  }
 0x30c   : > { %6698 = vmatpush1.bf16.msra.mxu0 %v17638_v20  ;;  %v17724_v20 = vld [vmem:[%s20172_s30 + $0x1064] ss:$80 sps:$4 sm:$0xff]  }
 0x30d   : > { %6870 = vmatpush1.bf16.msra.mxu1 %v17641_v22  ;;  %6699 = vmatprep.subr.bf16.mxu0 %v17646_v23  ;;  %v17727_v22 = vld [vmem:[%s20172_s30 + $0x106c] ss:$80 sps:$4 sm:$0xff]   ;;  %v17725_v23 = vld [vmem:[%s20172_s30 + $0x1068] ss:$80 sps:$4 sm:$0xff]  }
 0x30e   : > { %6871 = vmatprep.subr.bf16.mxu1 %v17649_v28  ;;  %v17728_v28 = vld [vmem:[%s20172_s30 + $0x1100] ss:$80 sps:$4 sm:$0xff]  }
 0x310   : > { %6700 = vmatpush1.bf16.msra.mxu0 %v17644_v27  ;;  %v17730_v27 = vld [vmem:[%s20172_s30 + $0x1104] ss:$80 sps:$4 sm:$0xff]  }
 0x311   : > { %6872 = vmatpush1.bf16.msra.mxu1 %v17647_v16  ;;  %6701 = vmatprep.subr.bf16.mxu0 %v17652_v17  ;;  %v17733_v16 = vld [vmem:[%s20172_s30 + $0x110c] ss:$80 sps:$4 sm:$0xff]   ;;  %v17731_v17 = vld [vmem:[%s20172_s30 + $0x1108] ss:$80 sps:$4 sm:$0xff]  }
 0x312   : > { %6873 = vmatprep.subr.bf16.mxu1 %v17655_v31  ;;  %v17734_v31 = vld [vmem:[%s20172_s30 + $0x11a0] ss:$80 sps:$4 sm:$0xff]  }
 0x314   : > { %6702 = vmatpush1.bf16.msra.mxu0 %v17650_v30  ;;  %v17736_v30 = vld [vmem:[%s20172_s30 + $0x11a4] ss:$80 sps:$4 sm:$0xff]  }
 0x315   : > { %6874 = vmatpush1.bf16.msra.mxu1 %v17653_v32  ;;  %6703 = vmatprep.subr.bf16.mxu0 %v17658_v35  ;;  %v17739_v32 = vld [vmem:[%s20172_s30 + $0x11ac] ss:$80 sps:$4 sm:$0xff]   ;;  %v17737_v35 = vld [vmem:[%s20172_s30 + $0x11a8] ss:$80 sps:$4 sm:$0xff]  }
 0x316   : > { %6875 = vmatprep.subr.bf16.mxu1 %v17661_v36  ;;  %v17742_v36 = vld [vmem:[%s20172_s30 + $0x1244] ss:$80 sps:$4 sm:$0xff]  }
 0x318   : > { %6704 = vmatpush1.bf16.msra.mxu0 %v17656_v37  ;;  %v17740_v37 = vld [vmem:[%s20172_s30 + $0x1240] ss:$80 sps:$4 sm:$0xff]  }
 0x319   : > { %6876 = vmatpush1.bf16.msra.mxu1 %v17659_v38  ;;  %6716 = vmatprep.subr.bf16.mxu0 %v17664_v39  ;;  %v17745_v38 = vld [vmem:[%s20172_s30 + $0x124c] ss:$80 sps:$4 sm:$0xff]   ;;  %v17743_v39 = vld [vmem:[%s20172_s30 + $0x1248] ss:$80 sps:$4 sm:$0xff]  }
 0x31a   : > { %6888 = vmatprep.subr.bf16.mxu1 %v17667_v40  ;;  %v17748_v40 = vld [vmem:[%s20172_s30 + $0x12e4] ss:$80 sps:$4 sm:$0xff]  }
 0x31b   : > { %6706 = vmatmul.mubr.bf16.vlgmr.msra.gmra.mrb[8].mxu0 %v20768_v48 }
 0x31c   : > { %6878 = vmatmul.mubr.bf16.vlgmr.msra.gmra.mrb[8].mxu1 %v20768_v48  ;;  %6717 = vmatpush1.bf16.msra.mxu0 %v17662_v33  ;;  %v17746_v33 = vld [vmem:[%s20172_s30 + $0x12e0] ss:$80 sps:$4 sm:$0xff]  }
 0x31d   : > { %6748 = vmatprep.mubr.bf16.mxu0 %v20776_v13  ;;  %6889 = vmatpush1.bf16.msra.mxu1 %v17665_v25  ;;  %v17751_v25 = vld [vmem:[%s20172_s30 + $0x12ec] ss:$80 sps:$4 sm:$0xff]  }
 0x31e   : > { %6920 = vmatprep.mubr.bf16.mxu1 %v20776_v13  ;;  %6718 = vmatprep.subr.bf16.mxu0 %v17670_v26  ;;  %v17749_v26 = vld [vmem:[%s20172_s30 + $0x12e8] ss:$80 sps:$4 sm:$0xff]  }
 0x31f   : > { %6890 = vmatprep.subr.bf16.mxu1 %v17673_v41  ;;  %v17754_v41 = vld [vmem:[%s20172_s30 + $0x1384] ss:$80 sps:$4 sm:$0xff]  }
 0x320   : > { %6719 = vmatpush1.bf16.msra.mxu0 %v17668_v42  ;;  %v17752_v42 = vld [vmem:[%s20172_s30 + $0x1380] ss:$80 sps:$4 sm:$0xff]  }
 0x321   : > { %6891 = vmatpush1.bf16.msra.mxu1 %v17671_v43  ;;  %6720 = vmatprep.subr.bf16.mxu0 %v17676_v44  ;;  %v17757_v43 = vld [vmem:[%s20172_s30 + $0x138c] ss:$80 sps:$4 sm:$0xff]   ;;  %v17755_v44 = vld [vmem:[%s20172_s30 + $0x1388] ss:$80 sps:$4 sm:$0xff]  }
 0x322   : > { %6892 = vmatprep.subr.bf16.mxu1 %v17679_v45  ;;  %v17760_v45 = vld [vmem:[%s20172_s30 + $0x1424] ss:$80 sps:$4 sm:$0xff]  }
 0x324   : > { %6721 = vmatpush1.bf16.msra.mxu0 %v17674_v46  ;;  %v17758_v46 = vld [vmem:[%s20172_s30 + $0x1420] ss:$80 sps:$4 sm:$0xff]  }
 0x325   : > { %6893 = vmatpush1.bf16.msra.mxu1 %v17677_v50  ;;  %6722 = vmatprep.subr.bf16.mxu0 %v17682_v5  ;;  %v17763_v50 = vld [vmem:[%s20172_s30 + $0x142c] ss:$80 sps:$4 sm:$0xff]   ;;  %v17761_v5 = vld [vmem:[%s20172_s30 + $0x1428] ss:$80 sps:$4 sm:$0xff]  }
 0x326   : > { %6894 = vmatprep.subr.bf16.mxu1 %v17685_v47  ;;  %v17766_v47 = vld [vmem:[%s20172_s30 + $0x14c4] ss:$80 sps:$4 sm:$0xff]  }
 0x328   : > { %6723 = vmatpush1.bf16.msra.mxu0 %v17680_v51  ;;  %v17764_v51 = vld [vmem:[%s20172_s30 + $0x14c0] ss:$80 sps:$4 sm:$0xff]  }
 0x329   : > { %6895 = vmatpush1.bf16.msra.mxu1 %v17683_v52  ;;  %6724 = vmatprep.subr.bf16.mxu0 %v17688_v53  ;;  %v17769_v52 = vld [vmem:[%s20172_s30 + $0x14cc] ss:$80 sps:$4 sm:$0xff]   ;;  %v17767_v53 = vld [vmem:[%s20172_s30 + $0x14c8] ss:$80 sps:$4 sm:$0xff]  }
 0x32a   : > { %6896 = vmatprep.subr.bf16.mxu1 %v17691_v54  ;;  %v17772_v54 = vld [vmem:[%s20172_s30 + $0x1564] ss:$80 sps:$4 sm:$0xff]  }
 0x32c   : > { %6725 = vmatpush1.bf16.msra.mxu0 %v17686_v55  ;;  %v17770_v55 = vld [vmem:[%s20172_s30 + $0x1560] ss:$80 sps:$4 sm:$0xff]  }
 0x32d   : > { %6897 = vmatpush1.bf16.msra.mxu1 %v17689_v24  ;;  %6726 = vmatprep.subr.bf16.mxu0 %v17694_v56  ;;  %v17775_v24 = vld [vmem:[%s20172_s30 + $0x156c] ss:$80 sps:$4 sm:$0xff]   ;;  %v17773_v56 = vld [vmem:[%s20172_s30 + $0x1568] ss:$80 sps:$4 sm:$0xff]  }
 0x32e   : > { %6898 = vmatprep.subr.bf16.mxu1 %v17697_v18  ;;  %v17778_v18 = vld [vmem:[%s20172_s30 + $0x1604] ss:$80 sps:$4 sm:$0xff]  }
 0x330   : > { %6727 = vmatpush1.bf16.msra.mxu0 %v17692_v57  ;;  %v17776_v57 = vld [vmem:[%s20172_s30 + $0x1600] ss:$80 sps:$4 sm:$0xff]  }
 0x331   : > { %6899 = vmatpush1.bf16.msra.mxu1 %v17695_v29  ;;  %6728 = vmatprep.subr.bf16.mxu0 %v17700_v59  ;;  %v17781_v29 = vld [vmem:[%s20172_s30 + $0x160c] ss:$80 sps:$4 sm:$0xff]   ;;  %v17779_v59 = vld [vmem:[%s20172_s30 + $0x1608] ss:$80 sps:$4 sm:$0xff]  }
 0x332   : > { %6900 = vmatprep.subr.bf16.mxu1 %v17703_v60  ;;  %v17784_v60 = vld [vmem:[%s20172_s30 + $0x16a4] ss:$80 sps:$4 sm:$0xff]  }
 0x334   : > { %6729 = vmatpush1.bf16.msra.mxu0 %v17698_v61  ;;  %v17782_v61 = vld [vmem:[%s20172_s30 + $0x16a0] ss:$80 sps:$4 sm:$0xff]  }
 0x335   : > { %6901 = vmatpush1.bf16.msra.mxu1 %v17701_v62  ;;  %6730 = vmatprep.subr.bf16.mxu0 %v17706_v3  ;;  %v17787_v62 = vld [vmem:[%s20172_s30 + $0x16ac] ss:$80 sps:$4 sm:$0xff]   ;;  %v17785_v3 = vld [vmem:[%s20172_s30 + $0x16a8] ss:$80 sps:$4 sm:$0xff]  }
 0x336   : > { %6902 = vmatprep.subr.bf16.mxu1 %v17709_v4  ;;  %v17790_v4 = vld [vmem:[%s20172_s30 + $0x1744] ss:$80 sps:$4 sm:$0xff]  }
 0x338   : > { %6731 = vmatpush1.bf16.msra.mxu0 %v17704_v6  ;;  %v17788_v6 = vld [vmem:[%s20172_s30 + $0x1740] ss:$80 sps:$4 sm:$0xff]  }
 0x339   : > { %6903 = vmatpush1.bf16.msra.mxu1 %v17707_v7  ;;  %6732 = vmatprep.subr.bf16.mxu0 %v17712_v8  ;;  %v17793_v7 = vld [vmem:[%s20172_s30 + $0x174c] ss:$80 sps:$4 sm:$0xff]   ;;  %v17791_v8 = vld [vmem:[%s20172_s30 + $0x1748] ss:$80 sps:$4 sm:$0xff]  }
 0x33a   : > { %6904 = vmatprep.subr.bf16.mxu1 %v17715_v9  ;;  %v17796_v9 = vld [vmem:[%s20172_s30 + $0x17e4] ss:$80 sps:$4 sm:$0xff]  }
 0x33c   : > { %6733 = vmatpush1.bf16.msra.mxu0 %v17710_v10  ;;  %v17794_v10 = vld [vmem:[%s20172_s30 + $0x17e0] ss:$80 sps:$4 sm:$0xff]  }
 0x33d   : > { %6905 = vmatpush1.bf16.msra.mxu1 %v17713_v11  ;;  %6734 = vmatprep.subr.bf16.mxu0 %v17718_v12  ;;  %v17799_v11 = vld [vmem:[%s20172_s30 + $0x17ec] ss:$80 sps:$4 sm:$0xff]   ;;  %v17797_v12 = vld [vmem:[%s20172_s30 + $0x17e8] ss:$80 sps:$4 sm:$0xff]  }
 0x33e   : > { %6906 = vmatprep.subr.bf16.mxu1 %v17721_v14  ;;  %v17802_v14 = vld [vmem:[%s20172_s30 + $0x1884] ss:$80 sps:$4 sm:$0xff]  }
 0x340   : > { %6735 = vmatpush1.bf16.msra.mxu0 %v17716_v15  ;;  %v17800_v15 = vld [vmem:[%s20172_s30 + $0x1880] ss:$80 sps:$4 sm:$0xff]  }
 0x341   : > { %6907 = vmatpush1.bf16.msra.mxu1 %v17719_v19  ;;  %6736 = vmatprep.subr.bf16.mxu0 %v17724_v20  ;;  %v17805_v19 = vld [vmem:[%s20172_s30 + $0x188c] ss:$80 sps:$4 sm:$0xff]   ;;  %v17803_v20 = vld [vmem:[%s20172_s30 + $0x1888] ss:$80 sps:$4 sm:$0xff]  }
 0x342   : > { %6908 = vmatprep.subr.bf16.mxu1 %v17727_v22  ;;  %v17811_v22 = vld [vmem:[%s20172_s30 + $0x192c] ss:$80 sps:$4 sm:$0xff]  }
 0x344   : > { %6737 = vmatpush1.bf16.msra.mxu0 %v17722_v21  ;;  %v17808_v21 = vld [vmem:[%s20172_s30 + $0x1924] ss:$80 sps:$4 sm:$0xff]  }
 0x345   : > { %6909 = vmatpush1.bf16.msra.mxu1 %v17725_v23  ;;  %6738 = vmatprep.subr.bf16.mxu0 %v17730_v27  ;;  %v17806_v23 = vld [vmem:[%s20172_s30 + $0x1920] ss:$80 sps:$4 sm:$0xff]   ;;  %v17809_v27 = vld [vmem:[%s20172_s30 + $0x1928] ss:$80 sps:$4 sm:$0xff]  }
 0x346   : > { %6910 = vmatprep.subr.bf16.mxu1 %v17733_v16  ;;  %v17817_v16 = vld [vmem:[%s20172_s30 + $0x19cc] ss:$80 sps:$4 sm:$0xff]  }
 0x348   : > { %6739 = vmatpush1.bf16.msra.mxu0 %v17728_v28  ;;  %v17814_v28 = vld [vmem:[%s20172_s30 + $0x19c4] ss:$80 sps:$4 sm:$0xff]  }
 0x349   : > { %6911 = vmatpush1.bf16.msra.mxu1 %v17731_v17  ;;  %6740 = vmatprep.subr.bf16.mxu0 %v17736_v30  ;;  %v17812_v17 = vld [vmem:[%s20172_s30 + $0x19c0] ss:$80 sps:$4 sm:$0xff]   ;;  %v17815_v30 = vld [vmem:[%s20172_s30 + $0x19c8] ss:$80 sps:$4 sm:$0xff]  }
 0x34a   : > { %6912 = vmatprep.subr.bf16.mxu1 %v17739_v32  ;;  %v17823_v32 = vld [vmem:[%s20172_s30 + $0x1a6c] ss:$80 sps:$4 sm:$0xff]  }
 0x34c   : > { %6741 = vmatpush1.bf16.msra.mxu0 %v17734_v31  ;;  %v17820_v31 = vld [vmem:[%s20172_s30 + $0x1a64] ss:$80 sps:$4 sm:$0xff]  }
 0x34d   : > { %6913 = vmatpush1.bf16.msra.mxu1 %v17737_v35  ;;  %6742 = vmatprep.subr.bf16.mxu0 %v17742_v36  ;;  %v17818_v35 = vld [vmem:[%s20172_s30 + $0x1a60] ss:$80 sps:$4 sm:$0xff]   ;;  %v17821_v36 = vld [vmem:[%s20172_s30 + $0x1a68] ss:$80 sps:$4 sm:$0xff]  }
 0x34e   : > { %6914 = vmatprep.subr.bf16.mxu1 %v17745_v38  ;;  %v17829_v38 = vld [vmem:[%s20172_s30 + $0x1b0c] ss:$80 sps:$4 sm:$0xff]  }
 0x350   : > { %6743 = vmatpush1.bf16.msra.mxu0 %v17740_v37  ;;  %v17826_v37 = vld [vmem:[%s20172_s30 + $0x1b04] ss:$80 sps:$4 sm:$0xff]  }
 0x351   : > { %6915 = vmatpush1.bf16.msra.mxu1 %v17743_v39  ;;  %6744 = vmatprep.subr.bf16.mxu0 %v17748_v40  ;;  %v17824_v39 = vld [vmem:[%s20172_s30 + $0x1b00] ss:$80 sps:$4 sm:$0xff]   ;;  %v17827_v40 = vld [vmem:[%s20172_s30 + $0x1b08] ss:$80 sps:$4 sm:$0xff]  }
 0x352   : > { %6916 = vmatprep.subr.bf16.mxu1 %v17751_v25  ;;  %v17835_v25 = vld [vmem:[%s20172_s30 + $0x1bac] ss:$80 sps:$4 sm:$0xff]  }
 0x354   : > { %6745 = vmatpush1.bf16.msra.mxu0 %v17746_v33  ;;  %v17832_v33 = vld [vmem:[%s20172_s30 + $0x1ba4] ss:$80 sps:$4 sm:$0xff]  }
 0x355   : > { %6917 = vmatpush1.bf16.msra.mxu1 %v17749_v26  ;;  %6746 = vmatprep.subr.bf16.mxu0 %v17754_v41  ;;  %v17830_v26 = vld [vmem:[%s20172_s30 + $0x1ba0] ss:$80 sps:$4 sm:$0xff]   ;;  %v17833_v41 = vld [vmem:[%s20172_s30 + $0x1ba8] ss:$80 sps:$4 sm:$0xff]  }
 0x356   : > { %6918 = vmatprep.subr.bf16.mxu1 %v17757_v43  ;;  %v17841_v43 = vld [vmem:[%s20172_s30 + $0x1c4c] ss:$80 sps:$4 sm:$0xff]  }
 0x358   : > { %6747 = vmatpush1.bf16.msra.mxu0 %v17752_v42  ;;  %v17838_v42 = vld [vmem:[%s20172_s30 + $0x1c44] ss:$80 sps:$4 sm:$0xff]  }
 0x359   : > { %6919 = vmatpush1.bf16.msra.mxu1 %v17755_v44  ;;  %6759 = vmatprep.subr.bf16.mxu0 %v17760_v45  ;;  %v17836_v44 = vld [vmem:[%s20172_s30 + $0x1c40] ss:$80 sps:$4 sm:$0xff]   ;;  %v17839_v45 = vld [vmem:[%s20172_s30 + $0x1c48] ss:$80 sps:$4 sm:$0xff]  }
 0x35a   : > { %6931 = vmatprep.subr.bf16.mxu1 %v17763_v50  ;;  %v17847_v50 = vld [vmem:[%s20172_s30 + $0x1cec] ss:$80 sps:$4 sm:$0xff]  }
 0x35b   : > { %6749 = vmatmul.mubr.bf16.vlgmr.msra.gmra.mrb[8].mxu0 %v20770_v49 }
 0x35c   : > { %6921 = vmatmul.mubr.bf16.vlgmr.msra.gmra.mrb[8].mxu1 %v20770_v49  ;;  %6760 = vmatpush1.bf16.msra.mxu0 %v17758_v46  ;;  %v17844_v46 = vld [vmem:[%s20172_s30 + $0x1ce4] ss:$80 sps:$4 sm:$0xff]  }
 0x35d   : > { %6932 = vmatpush1.bf16.msra.mxu1 %v17761_v5  ;;  %6761 = vmatprep.subr.bf16.mxu0 %v17766_v47  ;;  %v17842_v5 = vld [vmem:[%s20172_s30 + $0x1ce0] ss:$80 sps:$4 sm:$0xff]   ;;  %v17845_v47 = vld [vmem:[%s20172_s30 + $0x1ce8] ss:$80 sps:$4 sm:$0xff]  }
 0x35e   : > { %6933 = vmatprep.subr.bf16.mxu1 %v17769_v52  ;;  %v17853_v52 = vld [vmem:[%s20172_s30 + $0x1d8c] ss:$80 sps:$4 sm:$0xff]  }
 0x360   : > { %6762 = vmatpush1.bf16.msra.mxu0 %v17764_v51  ;;  %v17850_v51 = vld [vmem:[%s20172_s30 + $0x1d84] ss:$80 sps:$4 sm:$0xff]  }
 0x361   : > { %6934 = vmatpush1.bf16.msra.mxu1 %v17767_v53  ;;  %6763 = vmatprep.subr.bf16.mxu0 %v17772_v54  ;;  %v17848_v53 = vld [vmem:[%s20172_s30 + $0x1d80] ss:$80 sps:$4 sm:$0xff]   ;;  %v17851_v54 = vld [vmem:[%s20172_s30 + $0x1d88] ss:$80 sps:$4 sm:$0xff]  }
 0x362   : > { %6935 = vmatprep.subr.bf16.mxu1 %v17775_v24  ;;  %v17859_v24 = vld [vmem:[%s20172_s30 + $0x1e2c] ss:$80 sps:$4 sm:$0xff]  }
 0x364   : > { %6764 = vmatpush1.bf16.msra.mxu0 %v17770_v55  ;;  %v17856_v55 = vld [vmem:[%s20172_s30 + $0x1e24] ss:$80 sps:$4 sm:$0xff]  }
 0x365   : > { %6936 = vmatpush1.bf16.msra.mxu1 %v17773_v56  ;;  %6765 = vmatprep.subr.bf16.mxu0 %v17778_v18  ;;  %v21013_v56 = vsub.s32 4, %v20733_v58  ;;  %v1011_v18 = vsub.s32 6, %v20733_v58 }
 0x366   : > { %6937 = vmatprep.subr.bf16.mxu1 %v17781_v29  ;;  %v1015_v29 = vsub.s32 7, %v20733_v58 }
 0x368   : > { %6766 = vmatpush1.bf16.msra.mxu0 %v17776_v57  ;;  %v21017_v57 = vsub.s32 5, %v20733_v58 }
 0x369   : > { %6938 = vmatpush1.bf16.msra.mxu1 %v17779_v59  ;;  %6767 = vmatprep.subr.bf16.mxu0 %v17784_v60  ;;  %v19550_v59 = vld [vmem:[%s20193_s27] sm:$0xff] }
 0x36a   : > { %6939 = vmatprep.subr.bf16.mxu1 %v17787_v62  ;;  %v1004_v60 = vrot.slane %v19550_v59, %v21013_v56  ;;  %v1008_v62 = vrot.slane %v19550_v59, %v21017_v57 }
 0x36c   : > { %6768 = vmatpush1.bf16.msra.mxu0 %v17782_v61  ;;  %v1012_v61 = vrot.slane %v19550_v59, %v1011_v18  ;;  %v17889_v18 = vld [vmem:[%s20172_s30 + $0x214c] ss:$80 sps:$4 sm:$0xff]  }
 0x36d   : > { %6940 = vmatpush1.bf16.msra.mxu1 %v17785_v3  ;;  %6769 = vmatprep.subr.bf16.mxu0 %v17790_v4  ;;  %v1016_v3 = vrot.slane %v19550_v59, %v1015_v29  ;;  %v17884_v29 = vld [vmem:[%s20172_s30 + $0x2140] ss:$80 sps:$4 sm:$0xff]   ;;  %v17887_v59 = vld [vmem:[%s20172_s30 + $0x2148] ss:$80 sps:$4 sm:$0xff]  }
 0x36e   : > { %6941 = vmatprep.subr.bf16.mxu1 %v17793_v7 }
 0x370   : > { %6770 = vmatpush1.bf16.msra.mxu0 %v17788_v6 }
 0x371   : > { %6942 = vmatpush1.bf16.msra.mxu1 %v17791_v8  ;;  %6771 = vmatprep.subr.bf16.mxu0 %v17796_v9 }
 0x372   : > { %6943 = vmatprep.subr.bf16.mxu1 %v17799_v11 }
 0x374   : > { %6772 = vmatpush1.bf16.msra.mxu0 %v17794_v10 }
 0x375   : > { %6944 = vmatpush1.bf16.msra.mxu1 %v17797_v12  ;;  %6773 = vmatprep.subr.bf16.mxu0 %v17802_v14 }
 0x376   : > { %6945 = vmatprep.subr.bf16.mxu1 %v17805_v19 }
 0x378   : > { %6774 = vmatpush1.bf16.msra.mxu0 %v17800_v15 }
 0x379   : > { %6946 = vmatpush1.bf16.msra.mxu1 %v17803_v20  ;;  %6775 = vmatprep.subr.bf16.mxu0 %v17808_v21 }
 0x37a   : > { %6947 = vmatprep.subr.bf16.mxu1 %v17811_v22 }
 0x37c   : > { %6776 = vmatpush1.bf16.msra.mxu0 %v17806_v23 }
 0x37d   : > { %6948 = vmatpush1.bf16.msra.mxu1 %v17809_v27  ;;  %6777 = vmatprep.subr.bf16.mxu0 %v17814_v28 }
 0x37e   : > { %6949 = vmatprep.subr.bf16.mxu1 %v17817_v16 }
 0x380   : > { %6778 = vmatpush1.bf16.msra.mxu0 %v17812_v17 }
 0x381   : > { %6950 = vmatpush1.bf16.msra.mxu1 %v17815_v30  ;;  %6779 = vmatprep.subr.bf16.mxu0 %v17820_v31 }
 0x382   : > { %6951 = vmatprep.subr.bf16.mxu1 %v17823_v32 }
 0x384   : > { %6780 = vmatpush1.bf16.msra.mxu0 %v17818_v35 }
 0x385   : > { %6952 = vmatpush1.bf16.msra.mxu1 %v17821_v36  ;;  %6781 = vmatprep.subr.bf16.mxu0 %v17826_v37  ;;  %v17854_v36 = vld [vmem:[%s20172_s30 + $0x1e20] ss:$80 sps:$4 sm:$0xff]   ;;  %v17857_v37 = vld [vmem:[%s20172_s30 + $0x1e28] ss:$80 sps:$4 sm:$0xff]  }
 0x386   : > { %6953 = vmatprep.subr.bf16.mxu1 %v17829_v38 }
 0x388   : > { %6782 = vmatpush1.bf16.msra.mxu0 %v17824_v39 }
 0x389   : > { %6954 = vmatpush1.bf16.msra.mxu1 %v17827_v40  ;;  %6783 = vmatprep.subr.bf16.mxu0 %v17832_v33 }
 0x38a   : > { %6955 = vmatprep.subr.bf16.mxu1 %v17835_v25  ;;  %v17862_v25 = vld [vmem:[%s20172_s30 + $0x1ec4] ss:$80 sps:$4 sm:$0xff]  }
 0x38c   : > { %6784 = vmatpush1.bf16.msra.mxu0 %v17830_v26  ;;  %v17860_v26 = vld [vmem:[%s20172_s30 + $0x1ec0] ss:$80 sps:$4 sm:$0xff]  }
 0x38d   : > { %6956 = vmatpush1.bf16.msra.mxu1 %v17833_v41  ;;  %6785 = vmatprep.subr.bf16.mxu0 %v17838_v42  ;;  %v17863_v41 = vld [vmem:[%s20172_s30 + $0x1ec8] ss:$80 sps:$4 sm:$0xff]   ;;  %v17865_v42 = vld [vmem:[%s20172_s30 + $0x1ecc] ss:$80 sps:$4 sm:$0xff]  }
 0x38e   : > { %6957 = vmatprep.subr.bf16.mxu1 %v17841_v43  ;;  %v17868_v43 = vld [vmem:[%s20172_s30 + $0x1f64] ss:$80 sps:$4 sm:$0xff]  }
 0x390   : > { %6786 = vmatpush1.bf16.msra.mxu0 %v17836_v44  ;;  %v17871_v44 = vld [vmem:[%s20172_s30 + $0x1f6c] ss:$80 sps:$4 sm:$0xff]  }
 0x391   : > { %6958 = vmatpush1.bf16.msra.mxu1 %v17839_v45  ;;  %6787 = vmatprep.subr.bf16.mxu0 %v17844_v46  ;;  %v17866_v45 = vld [vmem:[%s20172_s30 + $0x1f60] ss:$80 sps:$4 sm:$0xff]   ;;  %v17869_v46 = vld [vmem:[%s20172_s30 + $0x1f68] ss:$80 sps:$4 sm:$0xff]  }
 0x392   : > { %6959 = vmatprep.subr.bf16.mxu1 %v17847_v50  ;;  %v17874_v50 = vld [vmem:[%s20172_s30 + $0x2004] ss:$80 sps:$4 sm:$0xff]  }
 0x394   : > { %6788 = vmatpush1.bf16.msra.mxu0 %v17842_v5  ;;  %v17877_v5 = vld [vmem:[%s20172_s30 + $0x200c] ss:$80 sps:$4 sm:$0xff]  }
 0x395   : > { %6960 = vmatpush1.bf16.msra.mxu1 %v17845_v47  ;;  %6789 = vmatprep.subr.bf16.mxu0 %v17850_v51  ;;  %v17872_v47 = vld [vmem:[%s20172_s30 + $0x2000] ss:$80 sps:$4 sm:$0xff]   ;;  %v17875_v51 = vld [vmem:[%s20172_s30 + $0x2008] ss:$80 sps:$4 sm:$0xff]  }
 0x396   : > { %6961 = vmatprep.subr.bf16.mxu1 %v17853_v52  ;;  %v17880_v52 = vld [vmem:[%s20172_s30 + $0x20a4] ss:$80 sps:$4 sm:$0xff]  }
 0x398   : > { %6790 = vmatpush1.bf16.msra.mxu0 %v17848_v53  ;;  %v17883_v53 = vld [vmem:[%s20172_s30 + $0x20ac] ss:$80 sps:$4 sm:$0xff]  }
 0x399   : > { %6962 = vmatpush1.bf16.msra.mxu1 %v17851_v54  ;;  %6802 = vmatprep.subr.bf16.mxu0 %v17856_v55  ;;  %v17878_v54 = vld [vmem:[%s20172_s30 + $0x20a0] ss:$80 sps:$4 sm:$0xff]   ;;  %v17881_v55 = vld [vmem:[%s20172_s30 + $0x20a8] ss:$80 sps:$4 sm:$0xff]  }
 0x39a   : > { %6974 = vmatprep.subr.bf16.mxu1 %v17859_v24  ;;  %v17886_v24 = vld [vmem:[%s20172_s30 + $0x2144] ss:$80 sps:$4 sm:$0xff]  }
 0x3ae   : > { %v4132_v4 = vpop.f32.mrb[4].mxu0  ;;  %v4304_v6 = vpop.f32.mrb[4].mxu1 }
 0x3af   : > { %v16452_v7 = vadd.f32 %v4132_v4, %v1004_v60  ;;  %v16456_v8 = vadd.f32 %v4304_v6, %v1012_v61  ;;  %v4134_v9 = vpop.f32.mrb[5].mxu0  ;;  %v4306_v10 = vpop.f32.mrb[5].mxu1  ;;  %v17898_v4 = vld [vmem:[%s20172_s30 + $0x2284] ss:$80 sps:$4 sm:$0xff]   ;;  %v17901_v6 = vld [vmem:[%s20172_s30 + $0x228c] ss:$80 sps:$4 sm:$0xff]  }
 0x3b0   : > { %v16453_v11 = vadd.f32 %v4134_v9, %v1008_v62  ;;  %v16457_v12 = vadd.f32 %v4306_v10, %v1016_v3  ;;  %v4136_v14 = vpop.f32.mrb[6].mxu0  ;;  %v4308_v15 = vpop.f32.mrb[6].mxu1  ;;  %v17904_v9 = vld [vmem:[%s20172_s30 + $0x2324] ss:$80 sps:$4 sm:$0xff]   ;;  %v17907_v10 = vld [vmem:[%s20172_s30 + $0x232c] ss:$80 sps:$4 sm:$0xff]  }
 0x3b1   : > { %v16454_v58 = vadd.f32 %v4136_v14, %v1004_v60  ;;  %v16458_v19 = vadd.f32 %v4308_v15, %v1012_v61  ;;  %v4138_v20 = vpop.f32.mrb[7].mxu0  ;;  %v4310_v21 = vpop.f32.mrb[7].mxu1  ;;  %v4317_v27 = vmax.f32 %v16452_v7, 0.0  ;;  %v4319_v28 = vmax.f32 %v16456_v8, 0.0  ;;  %v17892_v60 = vld [vmem:[%s20172_s30 + $0x21e4] ss:$80 sps:$4 sm:$0xff]  }
 0x3b2   : > { %v16455_v22 = vadd.f32 %v4138_v20, %v1008_v62  ;;  %v16459_v23 = vadd.f32 %v4310_v21, %v1016_v3  ;;  %v4318_v30 = vmax.f32 %v16453_v11, 0.0  ;;  %v4320_v31 = vmax.f32 %v16457_v12, 0.0  ;;  %v17895_v61 = vld [vmem:[%s20172_s30 + $0x21ec] ss:$80 sps:$4 sm:$0xff]   ;;  %v17890_v62 = vld [vmem:[%s20172_s30 + $0x21e0] ss:$80 sps:$4 sm:$0xff]  }
 0x3b3   : > { %v4325_v16 = vmax.f32 %v16454_v58, 0.0  ;;  %v4327_v17 = vmax.f32 %v16458_v19, 0.0  ;;  %v17893_v3 = vld [vmem:[%s20172_s30 + $0x21e8] ss:$80 sps:$4 sm:$0xff]   ;;  %v17896_v7 = vld [vmem:[%s20172_s30 + $0x2280] ss:$80 sps:$4 sm:$0xff]  }
 0x3b4   : > { %v4326_v32 = vmax.f32 %v16455_v22, 0.0  ;;  %v4328_v35 = vmax.f32 %v16459_v23, 0.0  ;;  %v17899_v8 = vld [vmem:[%s20172_s30 + $0x2288] ss:$80 sps:$4 sm:$0xff]   ;;  %v17902_v11 = vld [vmem:[%s20172_s30 + $0x2320] ss:$80 sps:$4 sm:$0xff]  }
 0x3b5   : > { %v21025_v38 = vpack.c.bf16 %v4325_v16, %v4317_v27  ;;  %v21027_v39 = vpack.c.bf16 %v4327_v17, %v4319_v28  ;;  %v17905_v12 = vld [vmem:[%s20172_s30 + $0x2328] ss:$80 sps:$4 sm:$0xff]   ;;  %v17910_v14 = vld [vmem:[%s20172_s30 + $0x23c4] ss:$80 sps:$4 sm:$0xff]   ;;  %v17913_v15 = vld [vmem:[%s20172_s30 + $0x23cc] ss:$80 sps:$4 sm:$0xff]  }
 0x3b6   : > { %v21029_v40 = vpack.c.bf16 %v4326_v32, %v4318_v30  ;;  %v21031_v33 = vpack.c.bf16 %v4328_v35, %v4320_v31  ;;  %v17908_v58 = vld [vmem:[%s20172_s30 + $0x23c0] ss:$80 sps:$4 sm:$0xff]   ;;  %v17911_v19 = vld [vmem:[%s20172_s30 + $0x23c8] ss:$80 sps:$4 sm:$0xff]   ;;  %v17916_v20 = vld [vmem:[%s20172_s30 + $0x2464] ss:$80 sps:$4 sm:$0xff]  }
 0x3b7   : > { %v17919_v21 = vld [vmem:[%s20172_s30 + $0x246c] ss:$80 sps:$4 sm:$0xff]   ;;  %v17914_v22 = vld [vmem:[%s20172_s30 + $0x2460] ss:$80 sps:$4 sm:$0xff]   ;;  %v17917_v23 = vld [vmem:[%s20172_s30 + $0x2468] ss:$80 sps:$4 sm:$0xff]  }
 0x3b8   : > { %6791 = vmatprep.mubr.bf16.mxu0 %v21029_v40  ;;  %6963 = vmatprep.mubr.bf16.mxu1 %v21029_v40  ;;  %v17922_v27 = vld [vmem:[%s20172_s30 + $0x2504] ss:$80 sps:$4 sm:$0xff]   ;;  %v17925_v28 = vld [vmem:[%s20172_s30 + $0x250c] ss:$80 sps:$4 sm:$0xff]   ;;  %v17920_v16 = vld [vmem:[%s20172_s30 + $0x2500] ss:$80 sps:$4 sm:$0xff]  }
 0x3b9   : > { %6792 = vmatmul.mubr.bf16.vlgmr.msra.gmra.mrb[8].mxu0 %v21025_v38  ;;  %6964 = vmatmul.mubr.bf16.vlgmr.msra.gmra.mrb[8].mxu1 %v21025_v38  ;;  %v17923_v17 = vld [vmem:[%s20172_s30 + $0x2508] ss:$80 sps:$4 sm:$0xff]   ;;  %v17928_v30 = vld [vmem:[%s20172_s30 + $0x25a4] ss:$80 sps:$4 sm:$0xff]   ;;  %v17931_v31 = vld [vmem:[%s20172_s30 + $0x25ac] ss:$80 sps:$4 sm:$0xff]  }
 0x3ba   : > { %6803 = vmatpush1.bf16.msra.mxu0 %v17854_v36  ;;  %6975 = vmatpush1.bf16.msra.mxu1 %v17857_v37  ;;  %v17926_v32 = vld [vmem:[%s20172_s30 + $0x25a0] ss:$80 sps:$4 sm:$0xff]   ;;  %v17929_v35 = vld [vmem:[%s20172_s30 + $0x25a8] ss:$80 sps:$4 sm:$0xff]   ;;  %v17934_v36 = vld [vmem:[%s20172_s30 + $0x2644] ss:$80 sps:$4 sm:$0xff]  }
 0x3bb   : > { %6834 = vmatprep.mubr.bf16.mxu0 %v21031_v33  ;;  %7006 = vmatprep.mubr.bf16.mxu1 %v21031_v33  ;;  %v17937_v37 = vld [vmem:[%s20172_s30 + $0x264c] ss:$80 sps:$4 sm:$0xff]  }
 0x3bc   : > { %6804 = vmatprep.subr.bf16.mxu0 %v17862_v25  ;;  %6976 = vmatprep.subr.bf16.mxu1 %v17865_v42  ;;  %v17932_v25 = vld [vmem:[%s20172_s30 + $0x2640] ss:$80 sps:$4 sm:$0xff]   ;;  %v17943_v42 = vld [vmem:[%s20172_s30 + $0x26ec] ss:$80 sps:$4 sm:$0xff]  }
 0x3be   : > { %6805 = vmatpush1.bf16.msra.mxu0 %v17860_v26  ;;  %6977 = vmatpush1.bf16.msra.mxu1 %v17863_v41  ;;  %v17935_v26 = vld [vmem:[%s20172_s30 + $0x2648] ss:$80 sps:$4 sm:$0xff]   ;;  %v17940_v41 = vld [vmem:[%s20172_s30 + $0x26e4] ss:$80 sps:$4 sm:$0xff]  }
 0x3bf   : > { %6806 = vmatprep.subr.bf16.mxu0 %v17868_v43  ;;  %6978 = vmatprep.subr.bf16.mxu1 %v17871_v44  ;;  %v17938_v43 = vld [vmem:[%s20172_s30 + $0x26e0] ss:$80 sps:$4 sm:$0xff]   ;;  %v17941_v44 = vld [vmem:[%s20172_s30 + $0x26e8] ss:$80 sps:$4 sm:$0xff]  }
 0x3c2   : > { %6807 = vmatpush1.bf16.msra.mxu0 %v17866_v45  ;;  %6979 = vmatpush1.bf16.msra.mxu1 %v17869_v46  ;;  %v17946_v45 = vld [vmem:[%s20172_s30 + $0x2784] ss:$80 sps:$4 sm:$0xff]   ;;  %v17949_v46 = vld [vmem:[%s20172_s30 + $0x278c] ss:$80 sps:$4 sm:$0xff]  }
 0x3c3   : > { %6808 = vmatprep.subr.bf16.mxu0 %v17874_v50  ;;  %6980 = vmatprep.subr.bf16.mxu1 %v17877_v5  ;;  %v17944_v50 = vld [vmem:[%s20172_s30 + $0x2780] ss:$80 sps:$4 sm:$0xff]   ;;  %v17947_v5 = vld [vmem:[%s20172_s30 + $0x2788] ss:$80 sps:$4 sm:$0xff]  }
 0x3c6   : > { %6809 = vmatpush1.bf16.msra.mxu0 %v17872_v47  ;;  %6981 = vmatpush1.bf16.msra.mxu1 %v17875_v51  ;;  %v17952_v47 = vld [vmem:[%s20172_s30 + $0x34] ss:$80 sps:$4 sm:$0xff]   ;;  %v17955_v51 = vld [vmem:[%s20172_s30 + $0x3c] ss:$80 sps:$4 sm:$0xff]  }
 0x3c7   : > { %6810 = vmatprep.subr.bf16.mxu0 %v17880_v52  ;;  %6982 = vmatprep.subr.bf16.mxu1 %v17883_v53  ;;  %v17950_v52 = vld [vmem:[%s20172_s30 + $0x30] ss:$80 sps:$4 sm:$0xff]   ;;  %v17953_v53 = vld [vmem:[%s20172_s30 + $0x38] ss:$80 sps:$4 sm:$0xff]  }
 0x3ca   : > { %6811 = vmatpush1.bf16.msra.mxu0 %v17878_v54  ;;  %6983 = vmatpush1.bf16.msra.mxu1 %v17881_v55  ;;  %v17958_v54 = vld [vmem:[%s20172_s30 + $0xd4] ss:$80 sps:$4 sm:$0xff]   ;;  %v17961_v55 = vld [vmem:[%s20172_s30 + $0xdc] ss:$80 sps:$4 sm:$0xff]  }
 0x3cb   : > { %6812 = vmatprep.subr.bf16.mxu0 %v17886_v24  ;;  %6984 = vmatprep.subr.bf16.mxu1 %v17889_v18  ;;  %v17956_v24 = vld [vmem:[%s20172_s30 + $0xd0] ss:$80 sps:$4 sm:$0xff]   ;;  %v17959_v18 = vld [vmem:[%s20172_s30 + $0xd8] ss:$80 sps:$4 sm:$0xff]  }
 0x3ce   : > { %6813 = vmatpush1.bf16.msra.mxu0 %v17884_v29  ;;  %6985 = vmatpush1.bf16.msra.mxu1 %v17887_v59  ;;  %v17964_v29 = vld [vmem:[%s20172_s30 + $0x174] ss:$80 sps:$4 sm:$0xff]   ;;  %v17967_v59 = vld [vmem:[%s20172_s30 + $0x17c] ss:$80 sps:$4 sm:$0xff]  }
 0x3cf   : > { %6814 = vmatprep.subr.bf16.mxu0 %v17892_v60  ;;  %6986 = vmatprep.subr.bf16.mxu1 %v17895_v61  ;;  %v17962_v60 = vld [vmem:[%s20172_s30 + $0x170] ss:$80 sps:$4 sm:$0xff]   ;;  %v17965_v61 = vld [vmem:[%s20172_s30 + $0x178] ss:$80 sps:$4 sm:$0xff]  }
 0x3d2   : > { %6815 = vmatpush1.bf16.msra.mxu0 %v17890_v62  ;;  %6987 = vmatpush1.bf16.msra.mxu1 %v17893_v3  ;;  %v17970_v62 = vld [vmem:[%s20172_s30 + $0x214] ss:$80 sps:$4 sm:$0xff]   ;;  %v17968_v3 = vld [vmem:[%s20172_s30 + $0x210] ss:$80 sps:$4 sm:$0xff]  }
 0x3d3   : > { %6816 = vmatprep.subr.bf16.mxu0 %v17898_v4  ;;  %6988 = vmatprep.subr.bf16.mxu1 %v17901_v6  ;;  %v17973_v4 = vld [vmem:[%s20172_s30 + $0x21c] ss:$80 sps:$4 sm:$0xff]   ;;  %v17971_v6 = vld [vmem:[%s20172_s30 + $0x218] ss:$80 sps:$4 sm:$0xff]  }
 0x3d6   : > { %6817 = vmatpush1.bf16.msra.mxu0 %v17896_v7  ;;  %6989 = vmatpush1.bf16.msra.mxu1 %v17899_v8  ;;  %v17976_v7 = vld [vmem:[%s20172_s30 + $0x2b4] ss:$80 sps:$4 sm:$0xff]   ;;  %v17974_v8 = vld [vmem:[%s20172_s30 + $0x2b0] ss:$80 sps:$4 sm:$0xff]  }
 0x3d7   : > { %6818 = vmatprep.subr.bf16.mxu0 %v17904_v9  ;;  %6990 = vmatprep.subr.bf16.mxu1 %v17907_v10  ;;  %v17979_v9 = vld [vmem:[%s20172_s30 + $0x2bc] ss:$80 sps:$4 sm:$0xff]   ;;  %v17977_v10 = vld [vmem:[%s20172_s30 + $0x2b8] ss:$80 sps:$4 sm:$0xff]  }
 0x3da   : > { %6819 = vmatpush1.bf16.msra.mxu0 %v17902_v11  ;;  %6991 = vmatpush1.bf16.msra.mxu1 %v17905_v12  ;;  %v17982_v11 = vld [vmem:[%s20172_s30 + $0x354] ss:$80 sps:$4 sm:$0xff]   ;;  %v17980_v12 = vld [vmem:[%s20172_s30 + $0x350] ss:$80 sps:$4 sm:$0xff]  }
 0x3db   : > { %6820 = vmatprep.subr.bf16.mxu0 %v17910_v14  ;;  %6992 = vmatprep.subr.bf16.mxu1 %v17913_v15  ;;  %v17985_v14 = vld [vmem:[%s20172_s30 + $0x35c] ss:$80 sps:$4 sm:$0xff]   ;;  %v17983_v15 = vld [vmem:[%s20172_s30 + $0x358] ss:$80 sps:$4 sm:$0xff]  }
 0x3de   : > { %6821 = vmatpush1.bf16.msra.mxu0 %v17908_v58  ;;  %6993 = vmatpush1.bf16.msra.mxu1 %v17911_v19  ;;  %v17988_v58 = vld [vmem:[%s20172_s30 + $0x3f4] ss:$80 sps:$4 sm:$0xff]   ;;  %v17986_v19 = vld [vmem:[%s20172_s30 + $0x3f0] ss:$80 sps:$4 sm:$0xff]  }
 0x3df   : > { %6822 = vmatprep.subr.bf16.mxu0 %v17916_v20  ;;  %6994 = vmatprep.subr.bf16.mxu1 %v17919_v21  ;;  %v17991_v20 = vld [vmem:[%s20172_s30 + $0x3fc] ss:$80 sps:$4 sm:$0xff]   ;;  %v17989_v21 = vld [vmem:[%s20172_s30 + $0x3f8] ss:$80 sps:$4 sm:$0xff]  }
 0x3e2   : > { %6823 = vmatpush1.bf16.msra.mxu0 %v17914_v22  ;;  %6995 = vmatpush1.bf16.msra.mxu1 %v17917_v23  ;;  %v17994_v22 = vld [vmem:[%s20172_s30 + $0x494] ss:$80 sps:$4 sm:$0xff]   ;;  %v17992_v23 = vld [vmem:[%s20172_s30 + $0x490] ss:$80 sps:$4 sm:$0xff]  }
 0x3e3   : > { %6824 = vmatprep.subr.bf16.mxu0 %v17922_v27  ;;  %6996 = vmatprep.subr.bf16.mxu1 %v17925_v28  ;;  %v17997_v27 = vld [vmem:[%s20172_s30 + $0x49c] ss:$80 sps:$4 sm:$0xff]   ;;  %v17995_v28 = vld [vmem:[%s20172_s30 + $0x498] ss:$80 sps:$4 sm:$0xff]  }
 0x3e6   : > { %6825 = vmatpush1.bf16.msra.mxu0 %v17920_v16  ;;  %6997 = vmatpush1.bf16.msra.mxu1 %v17923_v17  ;;  %v18000_v16 = vld [vmem:[%s20172_s30 + $0x534] ss:$80 sps:$4 sm:$0xff]   ;;  %v17998_v17 = vld [vmem:[%s20172_s30 + $0x530] ss:$80 sps:$4 sm:$0xff]  }
 0x3e7   : > { %6826 = vmatprep.subr.bf16.mxu0 %v17928_v30  ;;  %6998 = vmatprep.subr.bf16.mxu1 %v17931_v31  ;;  %v18003_v30 = vld [vmem:[%s20172_s30 + $0x53c] ss:$80 sps:$4 sm:$0xff]   ;;  %v18001_v31 = vld [vmem:[%s20172_s30 + $0x538] ss:$80 sps:$4 sm:$0xff]  }
 0x3ea   : > { %6827 = vmatpush1.bf16.msra.mxu0 %v17926_v32  ;;  %6999 = vmatpush1.bf16.msra.mxu1 %v17929_v35  ;;  %v18006_v32 = vld [vmem:[%s20172_s30 + $0x5d4] ss:$80 sps:$4 sm:$0xff]   ;;  %v18004_v35 = vld [vmem:[%s20172_s30 + $0x5d0] ss:$80 sps:$4 sm:$0xff]  }
 0x3eb   : > { %6828 = vmatprep.subr.bf16.mxu0 %v17934_v36  ;;  %7000 = vmatprep.subr.bf16.mxu1 %v17937_v37  ;;  %v18009_v36 = vld [vmem:[%s20172_s30 + $0x5dc] ss:$80 sps:$4 sm:$0xff]   ;;  %v18007_v37 = vld [vmem:[%s20172_s30 + $0x5d8] ss:$80 sps:$4 sm:$0xff]  }
 0x3ee   : > { %6829 = vmatpush1.bf16.msra.mxu0 %v17932_v25  ;;  %7001 = vmatpush1.bf16.msra.mxu1 %v17935_v26  ;;  %v18012_v25 = vld [vmem:[%s20172_s30 + $0x674] ss:$80 sps:$4 sm:$0xff]   ;;  %v18010_v26 = vld [vmem:[%s20172_s30 + $0x670] ss:$80 sps:$4 sm:$0xff]  }
 0x3ef   : > { %6830 = vmatprep.subr.bf16.mxu0 %v17940_v41  ;;  %7002 = vmatprep.subr.bf16.mxu1 %v17943_v42  ;;  %v18015_v41 = vld [vmem:[%s20172_s30 + $0x67c] ss:$80 sps:$4 sm:$0xff]   ;;  %v18013_v42 = vld [vmem:[%s20172_s30 + $0x678] ss:$80 sps:$4 sm:$0xff]  }
 0x3f2   : > { %6831 = vmatpush1.bf16.msra.mxu0 %v17938_v43  ;;  %7003 = vmatpush1.bf16.msra.mxu1 %v17941_v44  ;;  %v18018_v43 = vld [vmem:[%s20172_s30 + $0x714] ss:$80 sps:$4 sm:$0xff]   ;;  %v18016_v44 = vld [vmem:[%s20172_s30 + $0x710] ss:$80 sps:$4 sm:$0xff]  }
 0x3f3   : > { %6832 = vmatprep.subr.bf16.mxu0 %v17946_v45  ;;  %7004 = vmatprep.subr.bf16.mxu1 %v17949_v46  ;;  %v18021_v45 = vld [vmem:[%s20172_s30 + $0x71c] ss:$80 sps:$4 sm:$0xff]   ;;  %v18019_v46 = vld [vmem:[%s20172_s30 + $0x718] ss:$80 sps:$4 sm:$0xff]  }
 0x3f6   : > { %6833 = vmatpush1.bf16.msra.mxu0 %v17944_v50  ;;  %7005 = vmatpush1.bf16.msra.mxu1 %v17947_v5  ;;  %v18024_v50 = vld [vmem:[%s20172_s30 + $0x7b4] ss:$80 sps:$4 sm:$0xff]   ;;  %v18022_v5 = vld [vmem:[%s20172_s30 + $0x7b0] ss:$80 sps:$4 sm:$0xff]  }
 0x3f7   : > { %7017 = vmatprep.subr.bf16.mxu0 %v17952_v47  ;;  %9525 = vmatprep.subr.bf16.mxu1 %v17955_v51  ;;  %v18027_v47 = vld [vmem:[%s20172_s30 + $0x7bc] ss:$80 sps:$4 sm:$0xff]   ;;  %v18025_v51 = vld [vmem:[%s20172_s30 + $0x7b8] ss:$80 sps:$4 sm:$0xff]  }
 0x3f9   : > { %6835 = vmatmul.mubr.bf16.vlgmr.msra.gmra.mrb[8].mxu0 %v21027_v39  ;;  %7007 = vmatmul.mubr.bf16.vlgmr.msra.gmra.mrb[8].mxu1 %v21027_v39 }
 0x3fa   : > { %7018 = vmatpush1.bf16.msra.mxu0 %v17950_v52  ;;  %7049 = vmatprep.mubr.bf16.mxu0 %v20774_v34  ;;  %v18030_v52 = vld [vmem:[%s20172_s30 + $0x854] ss:$80 sps:$4 sm:$0xff]  }
 0x3fb   : > { %9526 = vmatpush1.bf16.msra.mxu1 %v17953_v53  ;;  %9557 = vmatprep.mubr.bf16.mxu1 %v20774_v34  ;;  %v18028_v53 = vld [vmem:[%s20172_s30 + $0x850] ss:$80 sps:$4 sm:$0xff]  }
 0x3fc   : > { %7019 = vmatprep.subr.bf16.mxu0 %v17958_v54  ;;  %9527 = vmatprep.subr.bf16.mxu1 %v17961_v55  ;;  %v18033_v54 = vld [vmem:[%s20172_s30 + $0x85c] ss:$80 sps:$4 sm:$0xff]   ;;  %v18031_v55 = vld [vmem:[%s20172_s30 + $0x858] ss:$80 sps:$4 sm:$0xff]  }
 0x3fe   : > { %7020 = vmatpush1.bf16.msra.mxu0 %v17956_v24  ;;  %v18036_v24 = vld [vmem:[%s20172_s30 + $0x8f4] ss:$80 sps:$4 sm:$0xff]  }
 0x3ff   : > { %9528 = vmatpush1.bf16.msra.mxu1 %v17959_v18  ;;  %7021 = vmatprep.subr.bf16.mxu0 %v17964_v29  ;;  %v18034_v18 = vld [vmem:[%s20172_s30 + $0x8f0] ss:$80 sps:$4 sm:$0xff]   ;;  %v18039_v29 = vld [vmem:[%s20172_s30 + $0x8fc] ss:$80 sps:$4 sm:$0xff]  }
 0x400   : > { %9529 = vmatprep.subr.bf16.mxu1 %v17967_v59  ;;  %v18037_v59 = vld [vmem:[%s20172_s30 + $0x8f8] ss:$80 sps:$4 sm:$0xff]  }
 0x402   : > { %7022 = vmatpush1.bf16.msra.mxu0 %v17962_v60  ;;  %v18042_v60 = vld [vmem:[%s20172_s30 + $0x994] ss:$80 sps:$4 sm:$0xff]  }
 0x403   : > { %9530 = vmatpush1.bf16.msra.mxu1 %v17965_v61  ;;  %7023 = vmatprep.subr.bf16.mxu0 %v17970_v62  ;;  %v18040_v61 = vld [vmem:[%s20172_s30 + $0x990] ss:$80 sps:$4 sm:$0xff]   ;;  %v18045_v62 = vld [vmem:[%s20172_s30 + $0x99c] ss:$80 sps:$4 sm:$0xff]  }
 0x404   : > { %9531 = vmatprep.subr.bf16.mxu1 %v17973_v4  ;;  %v18048_v4 = vld [vmem:[%s20172_s30 + $0xa34] ss:$80 sps:$4 sm:$0xff]  }
 0x406   : > { %7024 = vmatpush1.bf16.msra.mxu0 %v17968_v3  ;;  %v18043_v3 = vld [vmem:[%s20172_s30 + $0x998] ss:$80 sps:$4 sm:$0xff]  }
 0x407   : > { %9532 = vmatpush1.bf16.msra.mxu1 %v17971_v6  ;;  %7025 = vmatprep.subr.bf16.mxu0 %v17976_v7  ;;  %v18051_v6 = vld [vmem:[%s20172_s30 + $0xa3c] ss:$80 sps:$4 sm:$0xff]   ;;  %v18046_v7 = vld [vmem:[%s20172_s30 + $0xa30] ss:$80 sps:$4 sm:$0xff]  }
 0x408   : > { %9533 = vmatprep.subr.bf16.mxu1 %v17979_v9  ;;  %v18054_v9 = vld [vmem:[%s20172_s30 + $0xad4] ss:$80 sps:$4 sm:$0xff]  }
 0x40a   : > { %7026 = vmatpush1.bf16.msra.mxu0 %v17974_v8  ;;  %v18049_v8 = vld [vmem:[%s20172_s30 + $0xa38] ss:$80 sps:$4 sm:$0xff]  }
 0x40b   : > { %9534 = vmatpush1.bf16.msra.mxu1 %v17977_v10  ;;  %7027 = vmatprep.subr.bf16.mxu0 %v17982_v11  ;;  %v18052_v10 = vld [vmem:[%s20172_s30 + $0xad0] ss:$80 sps:$4 sm:$0xff]   ;;  %v18055_v11 = vld [vmem:[%s20172_s30 + $0xad8] ss:$80 sps:$4 sm:$0xff]  }
 0x40c   : > { %9535 = vmatprep.subr.bf16.mxu1 %v17985_v14  ;;  %v18060_v14 = vld [vmem:[%s20172_s30 + $0xb74] ss:$80 sps:$4 sm:$0xff]  }
 0x40e   : > { %7028 = vmatpush1.bf16.msra.mxu0 %v17980_v12  ;;  %v18057_v12 = vld [vmem:[%s20172_s30 + $0xadc] ss:$80 sps:$4 sm:$0xff]  }
 0x40f   : > { %9536 = vmatpush1.bf16.msra.mxu1 %v17983_v15  ;;  %7029 = vmatprep.subr.bf16.mxu0 %v17988_v58  ;;  %v18063_v15 = vld [vmem:[%s20172_s30 + $0xb7c] ss:$80 sps:$4 sm:$0xff]   ;;  %v18058_v58 = vld [vmem:[%s20172_s30 + $0xb70] ss:$80 sps:$4 sm:$0xff]  }
 0x410   : > { %9537 = vmatprep.subr.bf16.mxu1 %v17991_v20  ;;  %v18066_v20 = vld [vmem:[%s20172_s30 + $0xc14] ss:$80 sps:$4 sm:$0xff]  }
 0x412   : > { %7030 = vmatpush1.bf16.msra.mxu0 %v17986_v19  ;;  %v18061_v19 = vld [vmem:[%s20172_s30 + $0xb78] ss:$80 sps:$4 sm:$0xff]  }
 0x413   : > { %9538 = vmatpush1.bf16.msra.mxu1 %v17989_v21  ;;  %7031 = vmatprep.subr.bf16.mxu0 %v17994_v22  ;;  %v18064_v21 = vld [vmem:[%s20172_s30 + $0xc10] ss:$80 sps:$4 sm:$0xff]   ;;  %v18069_v22 = vld [vmem:[%s20172_s30 + $0xc1c] ss:$80 sps:$4 sm:$0xff]  }
 0x414   : > { %9539 = vmatprep.subr.bf16.mxu1 %v17997_v27  ;;  %v18072_v27 = vld [vmem:[%s20172_s30 + $0xcb4] ss:$80 sps:$4 sm:$0xff]  }
 0x416   : > { %7032 = vmatpush1.bf16.msra.mxu0 %v17992_v23  ;;  %v18067_v23 = vld [vmem:[%s20172_s30 + $0xc18] ss:$80 sps:$4 sm:$0xff]  }
 0x417   : > { %9540 = vmatpush1.bf16.msra.mxu1 %v17995_v28  ;;  %7033 = vmatprep.subr.bf16.mxu0 %v18000_v16  ;;  %v18070_v28 = vld [vmem:[%s20172_s30 + $0xcb0] ss:$80 sps:$4 sm:$0xff]   ;;  %v18075_v16 = vld [vmem:[%s20172_s30 + $0xcbc] ss:$80 sps:$4 sm:$0xff]  }
 0x418   : > { %9541 = vmatprep.subr.bf16.mxu1 %v18003_v30  ;;  %v18078_v30 = vld [vmem:[%s20172_s30 + $0xd54] ss:$80 sps:$4 sm:$0xff]  }
 0x41a   : > { %7034 = vmatpush1.bf16.msra.mxu0 %v17998_v17  ;;  %v18073_v17 = vld [vmem:[%s20172_s30 + $0xcb8] ss:$80 sps:$4 sm:$0xff]  }
 0x41b   : > { %9542 = vmatpush1.bf16.msra.mxu1 %v18001_v31  ;;  %7035 = vmatprep.subr.bf16.mxu0 %v18006_v32  ;;  %v18076_v31 = vld [vmem:[%s20172_s30 + $0xd50] ss:$80 sps:$4 sm:$0xff]   ;;  %v18081_v32 = vld [vmem:[%s20172_s30 + $0xd5c] ss:$80 sps:$4 sm:$0xff]  }
 0x41c   : > { %9543 = vmatprep.subr.bf16.mxu1 %v18009_v36  ;;  %v18084_v36 = vld [vmem:[%s20172_s30 + $0xdf4] ss:$80 sps:$4 sm:$0xff]  }
 0x41e   : > { %7036 = vmatpush1.bf16.msra.mxu0 %v18004_v35  ;;  %v18079_v35 = vld [vmem:[%s20172_s30 + $0xd58] ss:$80 sps:$4 sm:$0xff]  }
 0x41f   : > { %9544 = vmatpush1.bf16.msra.mxu1 %v18007_v37  ;;  %7037 = vmatprep.subr.bf16.mxu0 %v18012_v25  ;;  %v18082_v37 = vld [vmem:[%s20172_s30 + $0xdf0] ss:$80 sps:$4 sm:$0xff]   ;;  %v18087_v25 = vld [vmem:[%s20172_s30 + $0xdfc] ss:$80 sps:$4 sm:$0xff]  }
 0x420   : > { %9545 = vmatprep.subr.bf16.mxu1 %v18015_v41  ;;  %v18090_v41 = vld [vmem:[%s20172_s30 + $0xe94] ss:$80 sps:$4 sm:$0xff]  }
 0x422   : > { %7038 = vmatpush1.bf16.msra.mxu0 %v18010_v26  ;;  %v18085_v26 = vld [vmem:[%s20172_s30 + $0xdf8] ss:$80 sps:$4 sm:$0xff]  }
 0x423   : > { %9546 = vmatpush1.bf16.msra.mxu1 %v18013_v42  ;;  %7039 = vmatprep.subr.bf16.mxu0 %v18018_v43  ;;  %v18088_v42 = vld [vmem:[%s20172_s30 + $0xe90] ss:$80 sps:$4 sm:$0xff]   ;;  %v18093_v43 = vld [vmem:[%s20172_s30 + $0xe9c] ss:$80 sps:$4 sm:$0xff]  }
 0x424   : > { %9547 = vmatprep.subr.bf16.mxu1 %v18021_v45  ;;  %v18096_v45 = vld [vmem:[%s20172_s30 + $0xf34] ss:$80 sps:$4 sm:$0xff]  }
 0x426   : > { %7040 = vmatpush1.bf16.msra.mxu0 %v18016_v44  ;;  %v18091_v44 = vld [vmem:[%s20172_s30 + $0xe98] ss:$80 sps:$4 sm:$0xff]  }
 0x427   : > { %9548 = vmatpush1.bf16.msra.mxu1 %v18019_v46  ;;  %7041 = vmatprep.subr.bf16.mxu0 %v18024_v50  ;;  %v18094_v46 = vld [vmem:[%s20172_s30 + $0xf30] ss:$80 sps:$4 sm:$0xff]   ;;  %v18099_v50 = vld [vmem:[%s20172_s30 + $0xf3c] ss:$80 sps:$4 sm:$0xff]  }
 0x428   : > { %9549 = vmatprep.subr.bf16.mxu1 %v18027_v47  ;;  %v18102_v47 = vld [vmem:[%s20172_s30 + $0xfd4] ss:$80 sps:$4 sm:$0xff]  }
 0x42a   : > { %7042 = vmatpush1.bf16.msra.mxu0 %v18022_v5  ;;  %v18097_v5 = vld [vmem:[%s20172_s30 + $0xf38] ss:$80 sps:$4 sm:$0xff]  }
 0x42b   : > { %9550 = vmatpush1.bf16.msra.mxu1 %v18025_v51  ;;  %7043 = vmatprep.subr.bf16.mxu0 %v18030_v52  ;;  %v18100_v51 = vld [vmem:[%s20172_s30 + $0xfd0] ss:$80 sps:$4 sm:$0xff]   ;;  %v18105_v52 = vld [vmem:[%s20172_s30 + $0xfdc] ss:$80 sps:$4 sm:$0xff]  }
 0x42c   : > { %9551 = vmatprep.subr.bf16.mxu1 %v18033_v54  ;;  %v18108_v54 = vld [vmem:[%s20172_s30 + $0x1074] ss:$80 sps:$4 sm:$0xff]  }
 0x42e   : > { %7044 = vmatpush1.bf16.msra.mxu0 %v18028_v53  ;;  %v18103_v53 = vld [vmem:[%s20172_s30 + $0xfd8] ss:$80 sps:$4 sm:$0xff]  }
 0x42f   : > { %9552 = vmatpush1.bf16.msra.mxu1 %v18031_v55  ;;  %7045 = vmatprep.subr.bf16.mxu0 %v18036_v24  ;;  %v18106_v55 = vld [vmem:[%s20172_s30 + $0x1070] ss:$80 sps:$4 sm:$0xff]   ;;  %v18111_v24 = vld [vmem:[%s20172_s30 + $0x107c] ss:$80 sps:$4 sm:$0xff]  }
 0x430   : > { %9553 = vmatprep.subr.bf16.mxu1 %v18039_v29  ;;  %v18114_v29 = vld [vmem:[%s20172_s30 + $0x1114] ss:$80 sps:$4 sm:$0xff]  }
 0x432   : > { %7046 = vmatpush1.bf16.msra.mxu0 %v18034_v18  ;;  %v18109_v18 = vld [vmem:[%s20172_s30 + $0x1078] ss:$80 sps:$4 sm:$0xff]  }
 0x433   : > { %9554 = vmatpush1.bf16.msra.mxu1 %v18037_v59  ;;  %7047 = vmatprep.subr.bf16.mxu0 %v18042_v60  ;;  %v18112_v59 = vld [vmem:[%s20172_s30 + $0x1110] ss:$80 sps:$4 sm:$0xff]   ;;  %v18117_v60 = vld [vmem:[%s20172_s30 + $0x111c] ss:$80 sps:$4 sm:$0xff]  }
 0x434   : > { %9555 = vmatprep.subr.bf16.mxu1 %v18045_v62  ;;  %v18120_v62 = vld [vmem:[%s20172_s30 + $0x11b4] ss:$80 sps:$4 sm:$0xff]  }
 0x436   : > { %7048 = vmatpush1.bf16.msra.mxu0 %v18040_v61  ;;  %v18115_v61 = vld [vmem:[%s20172_s30 + $0x1118] ss:$80 sps:$4 sm:$0xff]  }
 0x437   : > { %9556 = vmatpush1.bf16.msra.mxu1 %v18043_v3  ;;  %7060 = vmatprep.subr.bf16.mxu0 %v18048_v4  ;;  %v18118_v3 = vld [vmem:[%s20172_s30 + $0x11b0] ss:$80 sps:$4 sm:$0xff]   ;;  %v18123_v4 = vld [vmem:[%s20172_s30 + $0x11bc] ss:$80 sps:$4 sm:$0xff]  }
 0x438   : > { %9568 = vmatprep.subr.bf16.mxu1 %v18051_v6  ;;  %v18121_v6 = vld [vmem:[%s20172_s30 + $0x11b8] ss:$80 sps:$4 sm:$0xff]  }
 0x439   : > { %7050 = vmatmul.mubr.bf16.vlgmr.msra.gmra.mrb[12].mxu0 %v20768_v48 }
 0x43a   : > { %9558 = vmatmul.mubr.bf16.vlgmr.msra.gmra.mrb[12].mxu1 %v20768_v48  ;;  %7061 = vmatpush1.bf16.msra.mxu0 %v18046_v7  ;;  %v18126_v7 = vld [vmem:[%s20172_s30 + $0x1254] ss:$80 sps:$4 sm:$0xff]  }
 0x43b   : > { %7092 = vmatprep.mubr.bf16.mxu0 %v20776_v13  ;;  %9569 = vmatpush1.bf16.msra.mxu1 %v18049_v8  ;;  %v18124_v8 = vld [vmem:[%s20172_s30 + $0x1250] ss:$80 sps:$4 sm:$0xff]  }
 0x43c   : > { %9600 = vmatprep.mubr.bf16.mxu1 %v20776_v13  ;;  %7062 = vmatprep.subr.bf16.mxu0 %v18054_v9  ;;  %v18129_v9 = vld [vmem:[%s20172_s30 + $0x125c] ss:$80 sps:$4 sm:$0xff]  }
 0x43d   : > { %9570 = vmatprep.subr.bf16.mxu1 %v18057_v12  ;;  %v18130_v12 = vld [vmem:[%s20172_s30 + $0x12f0] ss:$80 sps:$4 sm:$0xff]  }
 0x43e   : > { %7063 = vmatpush1.bf16.msra.mxu0 %v18052_v10  ;;  %v18127_v10 = vld [vmem:[%s20172_s30 + $0x1258] ss:$80 sps:$4 sm:$0xff]  }
 0x43f   : > { %9571 = vmatpush1.bf16.msra.mxu1 %v18055_v11  ;;  %7064 = vmatprep.subr.bf16.mxu0 %v18060_v14  ;;  %v18132_v11 = vld [vmem:[%s20172_s30 + $0x12f4] ss:$80 sps:$4 sm:$0xff]   ;;  %v18135_v14 = vld [vmem:[%s20172_s30 + $0x12fc] ss:$80 sps:$4 sm:$0xff]  }
 0x440   : > { %9572 = vmatprep.subr.bf16.mxu1 %v18063_v15  ;;  %v18133_v15 = vld [vmem:[%s20172_s30 + $0x12f8] ss:$80 sps:$4 sm:$0xff]  }
 0x442   : > { %7065 = vmatpush1.bf16.msra.mxu0 %v18058_v58  ;;  %v18138_v58 = vld [vmem:[%s20172_s30 + $0x1394] ss:$80 sps:$4 sm:$0xff]  }
 0x443   : > { %9573 = vmatpush1.bf16.msra.mxu1 %v18061_v19  ;;  %7066 = vmatprep.subr.bf16.mxu0 %v18066_v20  ;;  %v18136_v19 = vld [vmem:[%s20172_s30 + $0x1390] ss:$80 sps:$4 sm:$0xff]   ;;  %v18141_v20 = vld [vmem:[%s20172_s30 + $0x139c] ss:$80 sps:$4 sm:$0xff]  }
 0x444   : > { %9574 = vmatprep.subr.bf16.mxu1 %v18069_v22  ;;  %v18144_v22 = vld [vmem:[%s20172_s30 + $0x1434] ss:$80 sps:$4 sm:$0xff]  }
 0x446   : > { %7067 = vmatpush1.bf16.msra.mxu0 %v18064_v21  ;;  %v18139_v21 = vld [vmem:[%s20172_s30 + $0x1398] ss:$80 sps:$4 sm:$0xff]  }
 0x447   : > { %9575 = vmatpush1.bf16.msra.mxu1 %v18067_v23  ;;  %7068 = vmatprep.subr.bf16.mxu0 %v18072_v27  ;;  %v18142_v23 = vld [vmem:[%s20172_s30 + $0x1430] ss:$80 sps:$4 sm:$0xff]   ;;  %v18147_v27 = vld [vmem:[%s20172_s30 + $0x143c] ss:$80 sps:$4 sm:$0xff]  }
 0x448   : > { %9576 = vmatprep.subr.bf16.mxu1 %v18075_v16  ;;  %v18150_v16 = vld [vmem:[%s20172_s30 + $0x14d4] ss:$80 sps:$4 sm:$0xff]  }
 0x44a   : > { %7069 = vmatpush1.bf16.msra.mxu0 %v18070_v28  ;;  %v18145_v28 = vld [vmem:[%s20172_s30 + $0x1438] ss:$80 sps:$4 sm:$0xff]  }
 0x44b   : > { %9577 = vmatpush1.bf16.msra.mxu1 %v18073_v17  ;;  %7070 = vmatprep.subr.bf16.mxu0 %v18078_v30  ;;  %v18148_v17 = vld [vmem:[%s20172_s30 + $0x14d0] ss:$80 sps:$4 sm:$0xff]   ;;  %v18153_v30 = vld [vmem:[%s20172_s30 + $0x14dc] ss:$80 sps:$4 sm:$0xff]  }
 0x44c   : > { %9578 = vmatprep.subr.bf16.mxu1 %v18081_v32  ;;  %v18156_v32 = vld [vmem:[%s20172_s30 + $0x1574] ss:$80 sps:$4 sm:$0xff]  }
 0x44e   : > { %7071 = vmatpush1.bf16.msra.mxu0 %v18076_v31  ;;  %v18151_v31 = vld [vmem:[%s20172_s30 + $0x14d8] ss:$80 sps:$4 sm:$0xff]  }
 0x44f   : > { %9579 = vmatpush1.bf16.msra.mxu1 %v18079_v35  ;;  %7072 = vmatprep.subr.bf16.mxu0 %v18084_v36  ;;  %v18159_v35 = vld [vmem:[%s20172_s30 + $0x157c] ss:$80 sps:$4 sm:$0xff]   ;;  %v18154_v36 = vld [vmem:[%s20172_s30 + $0x1570] ss:$80 sps:$4 sm:$0xff]  }
 0x450   : > { %9580 = vmatprep.subr.bf16.mxu1 %v18087_v25  ;;  %v18162_v25 = vld [vmem:[%s20172_s30 + $0x1614] ss:$80 sps:$4 sm:$0xff]  }
 0x452   : > { %7073 = vmatpush1.bf16.msra.mxu0 %v18082_v37  ;;  %v18157_v37 = vld [vmem:[%s20172_s30 + $0x1578] ss:$80 sps:$4 sm:$0xff]  }
 0x453   : > { %9581 = vmatpush1.bf16.msra.mxu1 %v18085_v26  ;;  %7074 = vmatprep.subr.bf16.mxu0 %v18090_v41  ;;  %v18160_v26 = vld [vmem:[%s20172_s30 + $0x1610] ss:$80 sps:$4 sm:$0xff]   ;;  %v18165_v41 = vld [vmem:[%s20172_s30 + $0x161c] ss:$80 sps:$4 sm:$0xff]  }
 0x454   : > { %9582 = vmatprep.subr.bf16.mxu1 %v18093_v43  ;;  %v18168_v43 = vld [vmem:[%s20172_s30 + $0x16b4] ss:$80 sps:$4 sm:$0xff]  }
 0x456   : > { %7075 = vmatpush1.bf16.msra.mxu0 %v18088_v42  ;;  %v18163_v42 = vld [vmem:[%s20172_s30 + $0x1618] ss:$80 sps:$4 sm:$0xff]  }
 0x457   : > { %9583 = vmatpush1.bf16.msra.mxu1 %v18091_v44  ;;  %7076 = vmatprep.subr.bf16.mxu0 %v18096_v45  ;;  %v18166_v44 = vld [vmem:[%s20172_s30 + $0x16b0] ss:$80 sps:$4 sm:$0xff]   ;;  %v18171_v45 = vld [vmem:[%s20172_s30 + $0x16bc] ss:$80 sps:$4 sm:$0xff]  }
 0x458   : > { %9584 = vmatprep.subr.bf16.mxu1 %v18099_v50  ;;  %v18174_v50 = vld [vmem:[%s20172_s30 + $0x1754] ss:$80 sps:$4 sm:$0xff]  }
 0x45a   : > { %7077 = vmatpush1.bf16.msra.mxu0 %v18094_v46  ;;  %v18169_v46 = vld [vmem:[%s20172_s30 + $0x16b8] ss:$80 sps:$4 sm:$0xff]  }
 0x45b   : > { %9585 = vmatpush1.bf16.msra.mxu1 %v18097_v5  ;;  %7078 = vmatprep.subr.bf16.mxu0 %v18102_v47  ;;  %v18172_v5 = vld [vmem:[%s20172_s30 + $0x1750] ss:$80 sps:$4 sm:$0xff]   ;;  %v18177_v47 = vld [vmem:[%s20172_s30 + $0x175c] ss:$80 sps:$4 sm:$0xff]  }
 0x45c   : > { %9586 = vmatprep.subr.bf16.mxu1 %v18105_v52  ;;  %v18180_v52 = vld [vmem:[%s20172_s30 + $0x17f4] ss:$80 sps:$4 sm:$0xff]  }
 0x45e   : > { %7079 = vmatpush1.bf16.msra.mxu0 %v18100_v51  ;;  %v18175_v51 = vld [vmem:[%s20172_s30 + $0x1758] ss:$80 sps:$4 sm:$0xff]  }
 0x45f   : > { %9587 = vmatpush1.bf16.msra.mxu1 %v18103_v53  ;;  %7080 = vmatprep.subr.bf16.mxu0 %v18108_v54  ;;  %v18178_v53 = vld [vmem:[%s20172_s30 + $0x17f0] ss:$80 sps:$4 sm:$0xff]   ;;  %v18183_v54 = vld [vmem:[%s20172_s30 + $0x17fc] ss:$80 sps:$4 sm:$0xff]  }
 0x460   : > { %9588 = vmatprep.subr.bf16.mxu1 %v18111_v24  ;;  %v18186_v24 = vld [vmem:[%s20172_s30 + $0x1894] ss:$80 sps:$4 sm:$0xff]  }
 0x462   : > { %7081 = vmatpush1.bf16.msra.mxu0 %v18106_v55  ;;  %v18181_v55 = vld [vmem:[%s20172_s30 + $0x17f8] ss:$80 sps:$4 sm:$0xff]  }
 0x463   : > { %9589 = vmatpush1.bf16.msra.mxu1 %v18109_v18  ;;  %7082 = vmatprep.subr.bf16.mxu0 %v18114_v29  ;;  %v18184_v18 = vld [vmem:[%s20172_s30 + $0x1890] ss:$80 sps:$4 sm:$0xff]   ;;  %v18189_v29 = vld [vmem:[%s20172_s30 + $0x189c] ss:$80 sps:$4 sm:$0xff]  }
 0x464   : > { %9590 = vmatprep.subr.bf16.mxu1 %v18117_v60  ;;  %v18192_v60 = vld [vmem:[%s20172_s30 + $0x1934] ss:$80 sps:$4 sm:$0xff]  }
 0x466   : > { %7083 = vmatpush1.bf16.msra.mxu0 %v18112_v59  ;;  %v18187_v59 = vld [vmem:[%s20172_s30 + $0x1898] ss:$80 sps:$4 sm:$0xff]  }
 0x467   : > { %9591 = vmatpush1.bf16.msra.mxu1 %v18115_v61  ;;  %7084 = vmatprep.subr.bf16.mxu0 %v18120_v62  ;;  %v18190_v61 = vld [vmem:[%s20172_s30 + $0x1930] ss:$80 sps:$4 sm:$0xff]   ;;  %v18195_v62 = vld [vmem:[%s20172_s30 + $0x193c] ss:$80 sps:$4 sm:$0xff]  }
 0x468   : > { %9592 = vmatprep.subr.bf16.mxu1 %v18123_v4  ;;  %v18198_v4 = vld [vmem:[%s20172_s30 + $0x19d4] ss:$80 sps:$4 sm:$0xff]  }
 0x46a   : > { %7085 = vmatpush1.bf16.msra.mxu0 %v18118_v3  ;;  %v18193_v3 = vld [vmem:[%s20172_s30 + $0x1938] ss:$80 sps:$4 sm:$0xff]  }
 0x46b   : > { %9593 = vmatpush1.bf16.msra.mxu1 %v18121_v6  ;;  %7086 = vmatprep.subr.bf16.mxu0 %v18126_v7  ;;  %v18196_v6 = vld [vmem:[%s20172_s30 + $0x19d0] ss:$80 sps:$4 sm:$0xff]   ;;  %v18201_v7 = vld [vmem:[%s20172_s30 + $0x19dc] ss:$80 sps:$4 sm:$0xff]  }
 0x46c   : > { %9594 = vmatprep.subr.bf16.mxu1 %v18129_v9  ;;  %v18204_v9 = vld [vmem:[%s20172_s30 + $0x1a74] ss:$80 sps:$4 sm:$0xff]  }
 0x46e   : > { %7087 = vmatpush1.bf16.msra.mxu0 %v18124_v8  ;;  %v18199_v8 = vld [vmem:[%s20172_s30 + $0x19d8] ss:$80 sps:$4 sm:$0xff]  }
 0x46f   : > { %9595 = vmatpush1.bf16.msra.mxu1 %v18127_v10  ;;  %7088 = vmatprep.subr.bf16.mxu0 %v18132_v11  ;;  %v18202_v10 = vld [vmem:[%s20172_s30 + $0x1a70] ss:$80 sps:$4 sm:$0xff]   ;;  %v18207_v11 = vld [vmem:[%s20172_s30 + $0x1a7c] ss:$80 sps:$4 sm:$0xff]  }
 0x470   : > { %9596 = vmatprep.subr.bf16.mxu1 %v18135_v14  ;;  %v18210_v14 = vld [vmem:[%s20172_s30 + $0x1b14] ss:$80 sps:$4 sm:$0xff]  }
 0x472   : > { %7089 = vmatpush1.bf16.msra.mxu0 %v18130_v12  ;;  %v18205_v12 = vld [vmem:[%s20172_s30 + $0x1a78] ss:$80 sps:$4 sm:$0xff]  }
 0x473   : > { %9597 = vmatpush1.bf16.msra.mxu1 %v18133_v15  ;;  %7090 = vmatprep.subr.bf16.mxu0 %v18138_v58  ;;  %v18208_v15 = vld [vmem:[%s20172_s30 + $0x1b10] ss:$80 sps:$4 sm:$0xff]   ;;  %v18213_v58 = vld [vmem:[%s20172_s30 + $0x1b1c] ss:$80 sps:$4 sm:$0xff]  }
 0x474   : > { %9598 = vmatprep.subr.bf16.mxu1 %v18141_v20  ;;  %v18216_v20 = vld [vmem:[%s20172_s30 + $0x1bb4] ss:$80 sps:$4 sm:$0xff]  }
 0x476   : > { %7091 = vmatpush1.bf16.msra.mxu0 %v18136_v19  ;;  %v18211_v19 = vld [vmem:[%s20172_s30 + $0x1b18] ss:$80 sps:$4 sm:$0xff]  }
 0x477   : > { %9599 = vmatpush1.bf16.msra.mxu1 %v18139_v21  ;;  %7103 = vmatprep.subr.bf16.mxu0 %v18144_v22  ;;  %v18214_v21 = vld [vmem:[%s20172_s30 + $0x1bb0] ss:$80 sps:$4 sm:$0xff]   ;;  %v18219_v22 = vld [vmem:[%s20172_s30 + $0x1bbc] ss:$80 sps:$4 sm:$0xff]  }
 0x478   : > { %9611 = vmatprep.subr.bf16.mxu1 %v18147_v27  ;;  %v18222_v27 = vld [vmem:[%s20172_s30 + $0x1c54] ss:$80 sps:$4 sm:$0xff]  }
 0x479   : > { %7093 = vmatmul.mubr.bf16.vlgmr.msra.gmra.mrb[12].mxu0 %v20770_v49 }
 0x47a   : > { %9601 = vmatmul.mubr.bf16.vlgmr.msra.gmra.mrb[12].mxu1 %v20770_v49  ;;  %7104 = vmatpush1.bf16.msra.mxu0 %v18142_v23  ;;  %v18217_v23 = vld [vmem:[%s20172_s30 + $0x1bb8] ss:$80 sps:$4 sm:$0xff]  }
 0x47b   : > { %7135 = vmatprep.mubr.bf16.mxu0 %v21029_v40  ;;  %9612 = vmatpush1.bf16.msra.mxu1 %v18145_v28  ;;  %v18220_v28 = vld [vmem:[%s20172_s30 + $0x1c50] ss:$80 sps:$4 sm:$0xff]  }
 0x47c   : > { %9643 = vmatprep.mubr.bf16.mxu1 %v21029_v40  ;;  %7105 = vmatprep.subr.bf16.mxu0 %v18150_v16  ;;  %v18225_v16 = vld [vmem:[%s20172_s30 + $0x1c5c] ss:$80 sps:$4 sm:$0xff]  }
 0x47d   : > { %9613 = vmatprep.subr.bf16.mxu1 %v18153_v30  ;;  %v18228_v30 = vld [vmem:[%s20172_s30 + $0x1cf4] ss:$80 sps:$4 sm:$0xff]  }
 0x47e   : > { %7106 = vmatpush1.bf16.msra.mxu0 %v18148_v17  ;;  %v18223_v17 = vld [vmem:[%s20172_s30 + $0x1c58] ss:$80 sps:$4 sm:$0xff]  }
 0x47f   : > { %9614 = vmatpush1.bf16.msra.mxu1 %v18151_v31  ;;  %7107 = vmatprep.subr.bf16.mxu0 %v18156_v32  ;;  %v18226_v31 = vld [vmem:[%s20172_s30 + $0x1cf0] ss:$80 sps:$4 sm:$0xff]   ;;  %v18231_v32 = vld [vmem:[%s20172_s30 + $0x1cfc] ss:$80 sps:$4 sm:$0xff]  }
 0x480   : > { %9615 = vmatprep.subr.bf16.mxu1 %v18159_v35  ;;  %v18229_v35 = vld [vmem:[%s20172_s30 + $0x1cf8] ss:$80 sps:$4 sm:$0xff]  }
 0x482   : > { %7108 = vmatpush1.bf16.msra.mxu0 %v18154_v36  ;;  %v18234_v36 = vld [vmem:[%s20172_s30 + $0x1d94] ss:$80 sps:$4 sm:$0xff]  }
 0x483   : > { %9616 = vmatpush1.bf16.msra.mxu1 %v18157_v37  ;;  %7109 = vmatprep.subr.bf16.mxu0 %v18162_v25  ;;  %v18237_v37 = vld [vmem:[%s20172_s30 + $0x1d9c] ss:$80 sps:$4 sm:$0xff]   ;;  %v18232_v25 = vld [vmem:[%s20172_s30 + $0x1d90] ss:$80 sps:$4 sm:$0xff]  }
 0x484   : > { %9617 = vmatprep.subr.bf16.mxu1 %v18165_v41  ;;  %v18240_v41 = vld [vmem:[%s20172_s30 + $0x1e34] ss:$80 sps:$4 sm:$0xff]  }
 0x486   : > { %7110 = vmatpush1.bf16.msra.mxu0 %v18160_v26  ;;  %v18235_v26 = vld [vmem:[%s20172_s30 + $0x1d98] ss:$80 sps:$4 sm:$0xff]  }
 0x487   : > { %9618 = vmatpush1.bf16.msra.mxu1 %v18163_v42  ;;  %7111 = vmatprep.subr.bf16.mxu0 %v18168_v43  ;;  %v18243_v42 = vld [vmem:[%s20172_s30 + $0x1e3c] ss:$80 sps:$4 sm:$0xff]   ;;  %v18238_v43 = vld [vmem:[%s20172_s30 + $0x1e30] ss:$80 sps:$4 sm:$0xff]  }
 0x488   : > { %9619 = vmatprep.subr.bf16.mxu1 %v18171_v45  ;;  %v18246_v45 = vld [vmem:[%s20172_s30 + $0x1ed4] ss:$80 sps:$4 sm:$0xff]  }
 0x48a   : > { %7112 = vmatpush1.bf16.msra.mxu0 %v18166_v44  ;;  %v18241_v44 = vld [vmem:[%s20172_s30 + $0x1e38] ss:$80 sps:$4 sm:$0xff]  }
 0x48b   : > { %9620 = vmatpush1.bf16.msra.mxu1 %v18169_v46  ;;  %7113 = vmatprep.subr.bf16.mxu0 %v18174_v50  ;;  %v18249_v46 = vld [vmem:[%s20172_s30 + $0x1edc] ss:$80 sps:$4 sm:$0xff]   ;;  %v18244_v50 = vld [vmem:[%s20172_s30 + $0x1ed0] ss:$80 sps:$4 sm:$0xff]  }
 0x48c   : > { %9621 = vmatprep.subr.bf16.mxu1 %v18177_v47  ;;  %v18252_v47 = vld [vmem:[%s20172_s30 + $0x1f74] ss:$80 sps:$4 sm:$0xff]  }
 0x48e   : > { %7114 = vmatpush1.bf16.msra.mxu0 %v18172_v5  ;;  %v18247_v5 = vld [vmem:[%s20172_s30 + $0x1ed8] ss:$80 sps:$4 sm:$0xff]  }
 0x48f   : > { %9622 = vmatpush1.bf16.msra.mxu1 %v18175_v51  ;;  %7115 = vmatprep.subr.bf16.mxu0 %v18180_v52  ;;  %v18255_v51 = vld [vmem:[%s20172_s30 + $0x1f7c] ss:$80 sps:$4 sm:$0xff]   ;;  %v18250_v52 = vld [vmem:[%s20172_s30 + $0x1f70] ss:$80 sps:$4 sm:$0xff]  }
 0x490   : > { %9623 = vmatprep.subr.bf16.mxu1 %v18183_v54  ;;  %v18258_v54 = vld [vmem:[%s20172_s30 + $0x2014] ss:$80 sps:$4 sm:$0xff]  }
 0x492   : > { %7116 = vmatpush1.bf16.msra.mxu0 %v18178_v53  ;;  %v18253_v53 = vld [vmem:[%s20172_s30 + $0x1f78] ss:$80 sps:$4 sm:$0xff]  }
 0x493   : > { %9624 = vmatpush1.bf16.msra.mxu1 %v18181_v55  ;;  %7117 = vmatprep.subr.bf16.mxu0 %v18186_v24  ;;  %v18261_v55 = vld [vmem:[%s20172_s30 + $0x201c] ss:$80 sps:$4 sm:$0xff]   ;;  %v18256_v24 = vld [vmem:[%s20172_s30 + $0x2010] ss:$80 sps:$4 sm:$0xff]  }
 0x494   : > { %9625 = vmatprep.subr.bf16.mxu1 %v18189_v29  ;;  %v18264_v29 = vld [vmem:[%s20172_s30 + $0x20b4] ss:$80 sps:$4 sm:$0xff]  }
 0x496   : > { %7118 = vmatpush1.bf16.msra.mxu0 %v18184_v18  ;;  %v18259_v18 = vld [vmem:[%s20172_s30 + $0x2018] ss:$80 sps:$4 sm:$0xff]  }
 0x497   : > { %9626 = vmatpush1.bf16.msra.mxu1 %v18187_v59  ;;  %7119 = vmatprep.subr.bf16.mxu0 %v18192_v60  ;;  %v18267_v59 = vld [vmem:[%s20172_s30 + $0x20bc] ss:$80 sps:$4 sm:$0xff]   ;;  %v18262_v60 = vld [vmem:[%s20172_s30 + $0x20b0] ss:$80 sps:$4 sm:$0xff]  }
 0x498   : > { %9627 = vmatprep.subr.bf16.mxu1 %v18195_v62  ;;  %v18270_v62 = vld [vmem:[%s20172_s30 + $0x2154] ss:$80 sps:$4 sm:$0xff]  }
 0x49a   : > { %7120 = vmatpush1.bf16.msra.mxu0 %v18190_v61  ;;  %v18265_v61 = vld [vmem:[%s20172_s30 + $0x20b8] ss:$80 sps:$4 sm:$0xff]  }
 0x49b   : > { %9628 = vmatpush1.bf16.msra.mxu1 %v18193_v3  ;;  %7121 = vmatprep.subr.bf16.mxu0 %v18198_v4  ;;  %v18273_v3 = vld [vmem:[%s20172_s30 + $0x215c] ss:$80 sps:$4 sm:$0xff]   ;;  %v18268_v4 = vld [vmem:[%s20172_s30 + $0x2150] ss:$80 sps:$4 sm:$0xff]  }
 0x49c   : > { %9629 = vmatprep.subr.bf16.mxu1 %v18201_v7  ;;  %v18276_v7 = vld [vmem:[%s20172_s30 + $0x21f4] ss:$80 sps:$4 sm:$0xff]  }
 0x49e   : > { %7122 = vmatpush1.bf16.msra.mxu0 %v18196_v6  ;;  %v18271_v6 = vld [vmem:[%s20172_s30 + $0x2158] ss:$80 sps:$4 sm:$0xff]  }
 0x49f   : > { %9630 = vmatpush1.bf16.msra.mxu1 %v18199_v8  ;;  %7123 = vmatprep.subr.bf16.mxu0 %v18204_v9  ;;  %v18279_v8 = vld [vmem:[%s20172_s30 + $0x21fc] ss:$80 sps:$4 sm:$0xff]   ;;  %v18274_v9 = vld [vmem:[%s20172_s30 + $0x21f0] ss:$80 sps:$4 sm:$0xff]  }
 0x4a0   : > { %9631 = vmatprep.subr.bf16.mxu1 %v18207_v11  ;;  %v18282_v11 = vld [vmem:[%s20172_s30 + $0x2294] ss:$80 sps:$4 sm:$0xff]  }
 0x4a2   : > { %7124 = vmatpush1.bf16.msra.mxu0 %v18202_v10  ;;  %v18277_v10 = vld [vmem:[%s20172_s30 + $0x21f8] ss:$80 sps:$4 sm:$0xff]  }
 0x4a3   : > { %9632 = vmatpush1.bf16.msra.mxu1 %v18205_v12  ;;  %7125 = vmatprep.subr.bf16.mxu0 %v18210_v14  ;;  %v18285_v12 = vld [vmem:[%s20172_s30 + $0x229c] ss:$80 sps:$4 sm:$0xff]   ;;  %v18280_v14 = vld [vmem:[%s20172_s30 + $0x2290] ss:$80 sps:$4 sm:$0xff]  }
 0x4a4   : > { %9633 = vmatprep.subr.bf16.mxu1 %v18213_v58  ;;  %v18288_v58 = vld [vmem:[%s20172_s30 + $0x2334] ss:$80 sps:$4 sm:$0xff]  }
 0x4a6   : > { %7126 = vmatpush1.bf16.msra.mxu0 %v18208_v15  ;;  %v18283_v15 = vld [vmem:[%s20172_s30 + $0x2298] ss:$80 sps:$4 sm:$0xff]  }
 0x4a7   : > { %9634 = vmatpush1.bf16.msra.mxu1 %v18211_v19  ;;  %7127 = vmatprep.subr.bf16.mxu0 %v18216_v20  ;;  %v18291_v19 = vld [vmem:[%s20172_s30 + $0x233c] ss:$80 sps:$4 sm:$0xff]   ;;  %v18286_v20 = vld [vmem:[%s20172_s30 + $0x2330] ss:$80 sps:$4 sm:$0xff]  }
 0x4a8   : > { %9635 = vmatprep.subr.bf16.mxu1 %v18219_v22  ;;  %v18294_v22 = vld [vmem:[%s20172_s30 + $0x23d4] ss:$80 sps:$4 sm:$0xff]  }
 0x4aa   : > { %7128 = vmatpush1.bf16.msra.mxu0 %v18214_v21  ;;  %v18289_v21 = vld [vmem:[%s20172_s30 + $0x2338] ss:$80 sps:$4 sm:$0xff]  }
 0x4ab   : > { %9636 = vmatpush1.bf16.msra.mxu1 %v18217_v23  ;;  %7129 = vmatprep.subr.bf16.mxu0 %v18222_v27  ;;  %v18297_v23 = vld [vmem:[%s20172_s30 + $0x23dc] ss:$80 sps:$4 sm:$0xff]   ;;  %v18292_v27 = vld [vmem:[%s20172_s30 + $0x23d0] ss:$80 sps:$4 sm:$0xff]  }
 0x4ac   : > { %9637 = vmatprep.subr.bf16.mxu1 %v18225_v16  ;;  %v18300_v16 = vld [vmem:[%s20172_s30 + $0x2474] ss:$80 sps:$4 sm:$0xff]  }
 0x4ae   : > { %7130 = vmatpush1.bf16.msra.mxu0 %v18220_v28  ;;  %v18295_v28 = vld [vmem:[%s20172_s30 + $0x23d8] ss:$80 sps:$4 sm:$0xff]  }
 0x4af   : > { %9638 = vmatpush1.bf16.msra.mxu1 %v18223_v17  ;;  %7131 = vmatprep.subr.bf16.mxu0 %v18228_v30  ;;  %v18303_v17 = vld [vmem:[%s20172_s30 + $0x247c] ss:$80 sps:$4 sm:$0xff]   ;;  %v18298_v30 = vld [vmem:[%s20172_s30 + $0x2470] ss:$80 sps:$4 sm:$0xff]  }
 0x4b0   : > { %9639 = vmatprep.subr.bf16.mxu1 %v18231_v32  ;;  %v18306_v32 = vld [vmem:[%s20172_s30 + $0x2514] ss:$80 sps:$4 sm:$0xff]  }
 0x4b2   : > { %7132 = vmatpush1.bf16.msra.mxu0 %v18226_v31  ;;  %v18301_v31 = vld [vmem:[%s20172_s30 + $0x2478] ss:$80 sps:$4 sm:$0xff]  }
 0x4b3   : > { %9640 = vmatpush1.bf16.msra.mxu1 %v18229_v35  ;;  %7133 = vmatprep.subr.bf16.mxu0 %v18234_v36  ;;  %v18309_v35 = vld [vmem:[%s20172_s30 + $0x251c] ss:$80 sps:$4 sm:$0xff]   ;;  %v18304_v36 = vld [vmem:[%s20172_s30 + $0x2510] ss:$80 sps:$4 sm:$0xff]  }
 0x4b4   : > { %9641 = vmatprep.subr.bf16.mxu1 %v18237_v37  ;;  %v18307_v37 = vld [vmem:[%s20172_s30 + $0x2518] ss:$80 sps:$4 sm:$0xff]  }
 0x4b6   : > { %7134 = vmatpush1.bf16.msra.mxu0 %v18232_v25  ;;  %v18312_v25 = vld [vmem:[%s20172_s30 + $0x25b4] ss:$80 sps:$4 sm:$0xff]  }
 0x4b7   : > { %9642 = vmatpush1.bf16.msra.mxu1 %v18235_v26  ;;  %7146 = vmatprep.subr.bf16.mxu0 %v18240_v41  ;;  %v18315_v26 = vld [vmem:[%s20172_s30 + $0x25bc] ss:$80 sps:$4 sm:$0xff]   ;;  %v18310_v41 = vld [vmem:[%s20172_s30 + $0x25b0] ss:$80 sps:$4 sm:$0xff]  }
 0x4b8   : > { %9654 = vmatprep.subr.bf16.mxu1 %v18243_v42  ;;  %v18313_v42 = vld [vmem:[%s20172_s30 + $0x25b8] ss:$80 sps:$4 sm:$0xff]  }
 0x4b9   : > { %7136 = vmatmul.mubr.bf16.vlgmr.msra.gmra.mrb[12].mxu0 %v21025_v38 }
 0x4ba   : > { %9644 = vmatmul.mubr.bf16.vlgmr.msra.gmra.mrb[12].mxu1 %v21025_v38  ;;  %7147 = vmatpush1.bf16.msra.mxu0 %v18238_v43  ;;  %v18318_v43 = vld [vmem:[%s20172_s30 + $0x2654] ss:$80 sps:$4 sm:$0xff]  }
 0x4bb   : > { %7178 = vmatprep.mubr.bf16.mxu0 %v21031_v33  ;;  %9655 = vmatpush1.bf16.msra.mxu1 %v18241_v44  ;;  %v18321_v44 = vld [vmem:[%s20172_s30 + $0x265c] ss:$80 sps:$4 sm:$0xff]  }
 0x4bc   : > { %9686 = vmatprep.mubr.bf16.mxu1 %v21031_v33  ;;  %7148 = vmatprep.subr.bf16.mxu0 %v18246_v45  ;;  %v18316_v45 = vld [vmem:[%s20172_s30 + $0x2650] ss:$80 sps:$4 sm:$0xff]  }
 0x4bd   : > { %9656 = vmatprep.subr.bf16.mxu1 %v18249_v46  ;;  %v18319_v46 = vld [vmem:[%s20172_s30 + $0x2658] ss:$80 sps:$4 sm:$0xff]  }
 0x4be   : > { %7149 = vmatpush1.bf16.msra.mxu0 %v18244_v50  ;;  %v18324_v50 = vld [vmem:[%s20172_s30 + $0x26f4] ss:$80 sps:$4 sm:$0xff]  }
 0x4bf   : > { %9657 = vmatpush1.bf16.msra.mxu1 %v18247_v5  ;;  %7150 = vmatprep.subr.bf16.mxu0 %v18252_v47  ;;  %v18327_v5 = vld [vmem:[%s20172_s30 + $0x26fc] ss:$80 sps:$4 sm:$0xff]   ;;  %v18322_v47 = vld [vmem:[%s20172_s30 + $0x26f0] ss:$80 sps:$4 sm:$0xff]  }
 0x4c0   : > { %9658 = vmatprep.subr.bf16.mxu1 %v18255_v51  ;;  %v18325_v51 = vld [vmem:[%s20172_s30 + $0x26f8] ss:$80 sps:$4 sm:$0xff]  }
 0x4c2   : > { %7151 = vmatpush1.bf16.msra.mxu0 %v18250_v52  ;;  %v18330_v52 = vld [vmem:[%s20172_s30 + $0x2794] ss:$80 sps:$4 sm:$0xff]  }
 0x4c3   : > { %9659 = vmatpush1.bf16.msra.mxu1 %v18253_v53  ;;  %7152 = vmatprep.subr.bf16.mxu0 %v18258_v54  ;;  %v18333_v53 = vld [vmem:[%s20172_s30 + $0x279c] ss:$80 sps:$4 sm:$0xff]   ;;  %v18328_v54 = vld [vmem:[%s20172_s30 + $0x2790] ss:$80 sps:$4 sm:$0xff]  }
 0x4c4   : > { %9660 = vmatprep.subr.bf16.mxu1 %v18261_v55  ;;  %v18331_v55 = vld [vmem:[%s20172_s30 + $0x2798] ss:$80 sps:$4 sm:$0xff]  }
 0x4c6   : > { %7153 = vmatpush1.bf16.msra.mxu0 %v18256_v24  ;;  %v18336_v24 = vld [vmem:[%s20172_s30 + $0x44] ss:$80 sps:$4 sm:$0xff]  }
 0x4c7   : > { %9661 = vmatpush1.bf16.msra.mxu1 %v18259_v18  ;;  %7154 = vmatprep.subr.bf16.mxu0 %v18264_v29  ;;  %v18339_v18 = vld [vmem:[%s20172_s30 + $0x4c] ss:$80 sps:$4 sm:$0xff]   ;;  %v18334_v29 = vld [vmem:[%s20172_s30 + $0x40] ss:$80 sps:$4 sm:$0xff]  }
 0x4c8   : > { %9662 = vmatprep.subr.bf16.mxu1 %v18267_v59  ;;  %v18337_v59 = vld [vmem:[%s20172_s30 + $0x48] ss:$80 sps:$4 sm:$0xff]  }
 0x4ca   : > { %7155 = vmatpush1.bf16.msra.mxu0 %v18262_v60  ;;  %v18342_v60 = vld [vmem:[%s20172_s30 + $0xe4] ss:$80 sps:$4 sm:$0xff]  }
 0x4cb   : > { %9663 = vmatpush1.bf16.msra.mxu1 %v18265_v61  ;;  %7156 = vmatprep.subr.bf16.mxu0 %v18270_v62  ;;  %v18345_v61 = vld [vmem:[%s20172_s30 + $0xec] ss:$80 sps:$4 sm:$0xff]   ;;  %v18340_v62 = vld [vmem:[%s20172_s30 + $0xe0] ss:$80 sps:$4 sm:$0xff]  }
 0x4cc   : > { %9664 = vmatprep.subr.bf16.mxu1 %v18273_v3  ;;  %v18343_v3 = vld [vmem:[%s20172_s30 + $0xe8] ss:$80 sps:$4 sm:$0xff]  }
 0x4ce   : > { %7157 = vmatpush1.bf16.msra.mxu0 %v18268_v4  ;;  %v18348_v4 = vld [vmem:[%s20172_s30 + $0x184] ss:$80 sps:$4 sm:$0xff]  }
 0x4cf   : > { %9665 = vmatpush1.bf16.msra.mxu1 %v18271_v6  ;;  %7158 = vmatprep.subr.bf16.mxu0 %v18276_v7  ;;  %v18351_v6 = vld [vmem:[%s20172_s30 + $0x18c] ss:$80 sps:$4 sm:$0xff]   ;;  %v18346_v7 = vld [vmem:[%s20172_s30 + $0x180] ss:$80 sps:$4 sm:$0xff]  }
 0x4d0   : > { %9666 = vmatprep.subr.bf16.mxu1 %v18279_v8  ;;  %v18349_v8 = vld [vmem:[%s20172_s30 + $0x188] ss:$80 sps:$4 sm:$0xff]  }
 0x4d2   : > { %7159 = vmatpush1.bf16.msra.mxu0 %v18274_v9  ;;  %v18354_v9 = vld [vmem:[%s20172_s30 + $0x224] ss:$80 sps:$4 sm:$0xff]  }
 0x4d3   : > { %9667 = vmatpush1.bf16.msra.mxu1 %v18277_v10  ;;  %7160 = vmatprep.subr.bf16.mxu0 %v18282_v11  ;;  %v18357_v10 = vld [vmem:[%s20172_s30 + $0x22c] ss:$80 sps:$4 sm:$0xff]   ;;  %v18355_v11 = vld [vmem:[%s20172_s30 + $0x228] ss:$80 sps:$4 sm:$0xff]  }
 0x4d4   : > { %9668 = vmatprep.subr.bf16.mxu1 %v18285_v12  ;;  %v18360_v12 = vld [vmem:[%s20172_s30 + $0x2c4] ss:$80 sps:$4 sm:$0xff]  }
 0x4d6   : > { %7161 = vmatpush1.bf16.msra.mxu0 %v18280_v14  ;;  %v18363_v14 = vld [vmem:[%s20172_s30 + $0x2cc] ss:$80 sps:$4 sm:$0xff]  }
 0x4d7   : > { %9669 = vmatpush1.bf16.msra.mxu1 %v18283_v15  ;;  %7162 = vmatprep.subr.bf16.mxu0 %v18288_v58  ;;  %v18358_v15 = vld [vmem:[%s20172_s30 + $0x2c0] ss:$80 sps:$4 sm:$0xff]   ;;  %v18361_v58 = vld [vmem:[%s20172_s30 + $0x2c8] ss:$80 sps:$4 sm:$0xff]  }
 0x4d8   : > { %9670 = vmatprep.subr.bf16.mxu1 %v18291_v19  ;;  %v18366_v19 = vld [vmem:[%s20172_s30 + $0x364] ss:$80 sps:$4 sm:$0xff]  }
 0x4da   : > { %7163 = vmatpush1.bf16.msra.mxu0 %v18286_v20  ;;  %v18369_v20 = vld [vmem:[%s20172_s30 + $0x36c] ss:$80 sps:$4 sm:$0xff]  }
 0x4db   : > { %9671 = vmatpush1.bf16.msra.mxu1 %v18289_v21  ;;  %7164 = vmatprep.subr.bf16.mxu0 %v18294_v22  ;;  %v18364_v21 = vld [vmem:[%s20172_s30 + $0x360] ss:$80 sps:$4 sm:$0xff]   ;;  %v18367_v22 = vld [vmem:[%s20172_s30 + $0x368] ss:$80 sps:$4 sm:$0xff]  }
 0x4dc   : > { %9672 = vmatprep.subr.bf16.mxu1 %v18297_v23  ;;  %v18372_v23 = vld [vmem:[%s20172_s30 + $0x404] ss:$80 sps:$4 sm:$0xff]  }
 0x4de   : > { %7165 = vmatpush1.bf16.msra.mxu0 %v18292_v27  ;;  %v18375_v27 = vld [vmem:[%s20172_s30 + $0x40c] ss:$80 sps:$4 sm:$0xff]  }
 0x4df   : > { %9673 = vmatpush1.bf16.msra.mxu1 %v18295_v28  ;;  %7166 = vmatprep.subr.bf16.mxu0 %v18300_v16  ;;  %v18370_v28 = vld [vmem:[%s20172_s30 + $0x400] ss:$80 sps:$4 sm:$0xff]   ;;  %v18373_v16 = vld [vmem:[%s20172_s30 + $0x408] ss:$80 sps:$4 sm:$0xff]  }
 0x4e0   : > { %9674 = vmatprep.subr.bf16.mxu1 %v18303_v17  ;;  %v18378_v17 = vld [vmem:[%s20172_s30 + $0x4a4] ss:$80 sps:$4 sm:$0xff]  }
 0x4e2   : > { %7167 = vmatpush1.bf16.msra.mxu0 %v18298_v30  ;;  %v18381_v30 = vld [vmem:[%s20172_s30 + $0x4ac] ss:$80 sps:$4 sm:$0xff]  }
 0x4e3   : > { %9675 = vmatpush1.bf16.msra.mxu1 %v18301_v31  ;;  %7168 = vmatprep.subr.bf16.mxu0 %v18306_v32  ;;  %v18376_v31 = vld [vmem:[%s20172_s30 + $0x4a0] ss:$80 sps:$4 sm:$0xff]   ;;  %v18379_v32 = vld [vmem:[%s20172_s30 + $0x4a8] ss:$80 sps:$4 sm:$0xff]  }
 0x4e4   : > { %9676 = vmatprep.subr.bf16.mxu1 %v18309_v35  ;;  %v18384_v35 = vld [vmem:[%s20172_s30 + $0x544] ss:$80 sps:$4 sm:$0xff]  }
 0x4e6   : > { %7169 = vmatpush1.bf16.msra.mxu0 %v18304_v36  ;;  %v18387_v36 = vld [vmem:[%s20172_s30 + $0x54c] ss:$80 sps:$4 sm:$0xff]  }
 0x4e7   : > { %9677 = vmatpush1.bf16.msra.mxu1 %v18307_v37  ;;  %7170 = vmatprep.subr.bf16.mxu0 %v18312_v25  ;;  %v18382_v37 = vld [vmem:[%s20172_s30 + $0x540] ss:$80 sps:$4 sm:$0xff]   ;;  %v18385_v25 = vld [vmem:[%s20172_s30 + $0x548] ss:$80 sps:$4 sm:$0xff]  }
 0x4e8   : > { %9678 = vmatprep.subr.bf16.mxu1 %v18315_v26  ;;  %v18390_v26 = vld [vmem:[%s20172_s30 + $0x5e4] ss:$80 sps:$4 sm:$0xff]  }
 0x4ea   : > { %7171 = vmatpush1.bf16.msra.mxu0 %v18310_v41  ;;  %v18393_v41 = vld [vmem:[%s20172_s30 + $0x5ec] ss:$80 sps:$4 sm:$0xff]  }
 0x4eb   : > { %9679 = vmatpush1.bf16.msra.mxu1 %v18313_v42  ;;  %7172 = vmatprep.subr.bf16.mxu0 %v18318_v43  ;;  %v18388_v42 = vld [vmem:[%s20172_s30 + $0x5e0] ss:$80 sps:$4 sm:$0xff]   ;;  %v18391_v43 = vld [vmem:[%s20172_s30 + $0x5e8] ss:$80 sps:$4 sm:$0xff]  }
 0x4ec   : > { %9680 = vmatprep.subr.bf16.mxu1 %v18321_v44  ;;  %v18396_v44 = vld [vmem:[%s20172_s30 + $0x684] ss:$80 sps:$4 sm:$0xff]  }
 0x4ee   : > { %7173 = vmatpush1.bf16.msra.mxu0 %v18316_v45  ;;  %v18399_v45 = vld [vmem:[%s20172_s30 + $0x68c] ss:$80 sps:$4 sm:$0xff]  }
 0x4ef   : > { %9681 = vmatpush1.bf16.msra.mxu1 %v18319_v46  ;;  %7174 = vmatprep.subr.bf16.mxu0 %v18324_v50  ;;  %v18394_v46 = vld [vmem:[%s20172_s30 + $0x680] ss:$80 sps:$4 sm:$0xff]   ;;  %v18397_v50 = vld [vmem:[%s20172_s30 + $0x688] ss:$80 sps:$4 sm:$0xff]  }
 0x4f0   : > { %9682 = vmatprep.subr.bf16.mxu1 %v18327_v5  ;;  %v18402_v5 = vld [vmem:[%s20172_s30 + $0x724] ss:$80 sps:$4 sm:$0xff]  }
 0x4f2   : > { %7175 = vmatpush1.bf16.msra.mxu0 %v18322_v47  ;;  %v18405_v47 = vld [vmem:[%s20172_s30 + $0x72c] ss:$80 sps:$4 sm:$0xff]  }
 0x4f3   : > { %9683 = vmatpush1.bf16.msra.mxu1 %v18325_v51  ;;  %7176 = vmatprep.subr.bf16.mxu0 %v18330_v52  ;;  %v18400_v51 = vld [vmem:[%s20172_s30 + $0x720] ss:$80 sps:$4 sm:$0xff]   ;;  %v18403_v52 = vld [vmem:[%s20172_s30 + $0x728] ss:$80 sps:$4 sm:$0xff]  }
 0x4f4   : > { %9684 = vmatprep.subr.bf16.mxu1 %v18333_v53  ;;  %v18408_v53 = vld [vmem:[%s20172_s30 + $0x7c4] ss:$80 sps:$4 sm:$0xff]  }
 0x4f6   : > { %7177 = vmatpush1.bf16.msra.mxu0 %v18328_v54  ;;  %v18411_v54 = vld [vmem:[%s20172_s30 + $0x7cc] ss:$80 sps:$4 sm:$0xff]  }
 0x4f7   : > { %9685 = vmatpush1.bf16.msra.mxu1 %v18331_v55  ;;  %9697 = vmatprep.subr.bf16.mxu0 %v18336_v24  ;;  %v18406_v55 = vld [vmem:[%s20172_s30 + $0x7c0] ss:$80 sps:$4 sm:$0xff]   ;;  %v18409_v24 = vld [vmem:[%s20172_s30 + $0x7c8] ss:$80 sps:$4 sm:$0xff]  }
 0x4f8   : > { %9869 = vmatprep.subr.bf16.mxu1 %v18339_v18  ;;  %v18414_v18 = vld [vmem:[%s20172_s30 + $0x864] ss:$80 sps:$4 sm:$0xff]  }
 0x4f9   : > { %7179 = vmatmul.mubr.bf16.vlgmr.msra.gmra.mrb[12].mxu0 %v21027_v39 }
 0x4fa   : > { %9687 = vmatmul.mubr.bf16.vlgmr.msra.gmra.mrb[12].mxu1 %v21027_v39  ;;  %9698 = vmatpush1.bf16.msra.mxu0 %v18334_v29  ;;  %v18417_v29 = vld [vmem:[%s20172_s30 + $0x86c] ss:$80 sps:$4 sm:$0xff]  }
 0x4fb   : > { %9729 = vmatprep.mubr.bf16.mxu0 %v20774_v34  ;;  %9870 = vmatpush1.bf16.msra.mxu1 %v18337_v59  ;;  %v18412_v59 = vld [vmem:[%s20172_s30 + $0x860] ss:$80 sps:$4 sm:$0xff]  }
 0x4fc   : > { %9901 = vmatprep.mubr.bf16.mxu1 %v20774_v34  ;;  %9699 = vmatprep.subr.bf16.mxu0 %v18342_v60  ;;  %v18352_v34 = vld [vmem:[%s20172_s30 + $0x220] ss:$80 sps:$4 sm:$0xff]   ;;  %v18415_v60 = vld [vmem:[%s20172_s30 + $0x868] ss:$80 sps:$4 sm:$0xff]  }
 0x4fd   : > { %9871 = vmatprep.subr.bf16.mxu1 %v18345_v61  ;;  %v18420_v61 = vld [vmem:[%s20172_s30 + $0x904] ss:$80 sps:$4 sm:$0xff]  }
 0x4fe   : > { %9700 = vmatpush1.bf16.msra.mxu0 %v18340_v62  ;;  %v18423_v62 = vld [vmem:[%s20172_s30 + $0x90c] ss:$80 sps:$4 sm:$0xff]  }
 0x4ff   : > { %9872 = vmatpush1.bf16.msra.mxu1 %v18343_v3  ;;  %9701 = vmatprep.subr.bf16.mxu0 %v18348_v4  ;;  %v18418_v3 = vld [vmem:[%s20172_s30 + $0x900] ss:$80 sps:$4 sm:$0xff]   ;;  %v18421_v4 = vld [vmem:[%s20172_s30 + $0x908] ss:$80 sps:$4 sm:$0xff]  }
 0x500   : > { %9873 = vmatprep.subr.bf16.mxu1 %v18351_v6  ;;  %v18426_v6 = vld [vmem:[%s20172_s30 + $0x9a4] ss:$80 sps:$4 sm:$0xff]  }
 0x502   : > { %9702 = vmatpush1.bf16.msra.mxu0 %v18346_v7  ;;  %v18429_v7 = vld [vmem:[%s20172_s30 + $0x9ac] ss:$80 sps:$4 sm:$0xff]  }
 0x503   : > { %9874 = vmatpush1.bf16.msra.mxu1 %v18349_v8  ;;  %9703 = vmatprep.subr.bf16.mxu0 %v18354_v9  ;;  %v18424_v8 = vld [vmem:[%s20172_s30 + $0x9a0] ss:$80 sps:$4 sm:$0xff]   ;;  %v18427_v9 = vld [vmem:[%s20172_s30 + $0x9a8] ss:$80 sps:$4 sm:$0xff]  }
 0x504   : > { %9875 = vmatprep.subr.bf16.mxu1 %v18357_v10  ;;  %v18432_v10 = vld [vmem:[%s20172_s30 + $0xa44] ss:$80 sps:$4 sm:$0xff]  }
 0x506   : > { %9704 = vmatpush1.bf16.msra.mxu0 %v18352_v34  ;;  %v18435_v34 = vld [vmem:[%s20172_s30 + $0xa4c] ss:$80 sps:$4 sm:$0xff]  }
 0x507   : > { %9876 = vmatpush1.bf16.msra.mxu1 %v18355_v11  ;;  %9705 = vmatprep.subr.bf16.mxu0 %v18360_v12  ;;  %v18430_v11 = vld [vmem:[%s20172_s30 + $0xa40] ss:$80 sps:$4 sm:$0xff]   ;;  %v18433_v12 = vld [vmem:[%s20172_s30 + $0xa48] ss:$80 sps:$4 sm:$0xff]  }
 0x508   : > { %9877 = vmatprep.subr.bf16.mxu1 %v18363_v14  ;;  %v18438_v14 = vld [vmem:[%s20172_s30 + $0xae4] ss:$80 sps:$4 sm:$0xff]  }
 0x50a   : > { %9706 = vmatpush1.bf16.msra.mxu0 %v18358_v15  ;;  %v18441_v15 = vld [vmem:[%s20172_s30 + $0xaec] ss:$80 sps:$4 sm:$0xff]  }
 0x50b   : > { %9878 = vmatpush1.bf16.msra.mxu1 %v18361_v58  ;;  %9707 = vmatprep.subr.bf16.mxu0 %v18366_v19  ;;  %v18436_v58 = vld [vmem:[%s20172_s30 + $0xae0] ss:$80 sps:$4 sm:$0xff]   ;;  %v18439_v19 = vld [vmem:[%s20172_s30 + $0xae8] ss:$80 sps:$4 sm:$0xff]  }
 0x50c   : > { %9879 = vmatprep.subr.bf16.mxu1 %v18369_v20  ;;  %v18444_v20 = vld [vmem:[%s20172_s30 + $0xb84] ss:$80 sps:$4 sm:$0xff]  }
 0x50e   : > { %9708 = vmatpush1.bf16.msra.mxu0 %v18364_v21  ;;  %v18447_v21 = vld [vmem:[%s20172_s30 + $0xb8c] ss:$80 sps:$4 sm:$0xff]  }
 0x50f   : > { %9880 = vmatpush1.bf16.msra.mxu1 %v18367_v22  ;;  %9709 = vmatprep.subr.bf16.mxu0 %v18372_v23  ;;  %v18445_v22 = vld [vmem:[%s20172_s30 + $0xb88] ss:$80 sps:$4 sm:$0xff]   ;;  %v18450_v23 = vld [vmem:[%s20172_s30 + $0xc24] ss:$80 sps:$4 sm:$0xff]  }
 0x510   : > { %9881 = vmatprep.subr.bf16.mxu1 %v18375_v27  ;;  %v18453_v27 = vld [vmem:[%s20172_s30 + $0xc2c] ss:$80 sps:$4 sm:$0xff]  }
 0x512   : > { %9710 = vmatpush1.bf16.msra.mxu0 %v18370_v28  ;;  %v18451_v28 = vld [vmem:[%s20172_s30 + $0xc28] ss:$80 sps:$4 sm:$0xff]  }
 0x513   : > { %9882 = vmatpush1.bf16.msra.mxu1 %v18373_v16  ;;  %9711 = vmatprep.subr.bf16.mxu0 %v18378_v17  ;;  %v18456_v16 = vld [vmem:[%s20172_s30 + $0xcc4] ss:$80 sps:$4 sm:$0xff]   ;;  %v18459_v17 = vld [vmem:[%s20172_s30 + $0xccc] ss:$80 sps:$4 sm:$0xff]  }
 0x514   : > { %9883 = vmatprep.subr.bf16.mxu1 %v18381_v30  ;;  %v18454_v30 = vld [vmem:[%s20172_s30 + $0xcc0] ss:$80 sps:$4 sm:$0xff]  }
 0x516   : > { %9712 = vmatpush1.bf16.msra.mxu0 %v18376_v31  ;;  %v18457_v31 = vld [vmem:[%s20172_s30 + $0xcc8] ss:$80 sps:$4 sm:$0xff]  }
 0x517   : > { %9884 = vmatpush1.bf16.msra.mxu1 %v18379_v32  ;;  %9713 = vmatprep.subr.bf16.mxu0 %v18384_v35  ;;  %v18462_v32 = vld [vmem:[%s20172_s30 + $0xd64] ss:$80 sps:$4 sm:$0xff]   ;;  %v18465_v35 = vld [vmem:[%s20172_s30 + $0xd6c] ss:$80 sps:$4 sm:$0xff]  }
 0x518   : > { %9885 = vmatprep.subr.bf16.mxu1 %v18387_v36  ;;  %v18460_v36 = vld [vmem:[%s20172_s30 + $0xd60] ss:$80 sps:$4 sm:$0xff]  }
 0x51a   : > { %9714 = vmatpush1.bf16.msra.mxu0 %v18382_v37  ;;  %v18463_v37 = vld [vmem:[%s20172_s30 + $0xd68] ss:$80 sps:$4 sm:$0xff]  }
 0x51b   : > { %9886 = vmatpush1.bf16.msra.mxu1 %v18385_v25  ;;  %9715 = vmatprep.subr.bf16.mxu0 %v18390_v26  ;;  %v18468_v25 = vld [vmem:[%s20172_s30 + $0xe04] ss:$80 sps:$4 sm:$0xff]   ;;  %v18471_v26 = vld [vmem:[%s20172_s30 + $0xe0c] ss:$80 sps:$4 sm:$0xff]  }
 0x51c   : > { %9887 = vmatprep.subr.bf16.mxu1 %v18393_v41  ;;  %v18466_v41 = vld [vmem:[%s20172_s30 + $0xe00] ss:$80 sps:$4 sm:$0xff]  }
 0x51e   : > { %9716 = vmatpush1.bf16.msra.mxu0 %v18388_v42  ;;  %v18469_v42 = vld [vmem:[%s20172_s30 + $0xe08] ss:$80 sps:$4 sm:$0xff]  }
 0x51f   : > { %9888 = vmatpush1.bf16.msra.mxu1 %v18391_v43  ;;  %9717 = vmatprep.subr.bf16.mxu0 %v18396_v44  ;;  %v18474_v43 = vld [vmem:[%s20172_s30 + $0xea4] ss:$80 sps:$4 sm:$0xff]   ;;  %v18477_v44 = vld [vmem:[%s20172_s30 + $0xeac] ss:$80 sps:$4 sm:$0xff]  }
 0x520   : > { %9889 = vmatprep.subr.bf16.mxu1 %v18399_v45  ;;  %v18472_v45 = vld [vmem:[%s20172_s30 + $0xea0] ss:$80 sps:$4 sm:$0xff]  }
 0x522   : > { %9718 = vmatpush1.bf16.msra.mxu0 %v18394_v46  ;;  %v18475_v46 = vld [vmem:[%s20172_s30 + $0xea8] ss:$80 sps:$4 sm:$0xff]  }
 0x523   : > { %9890 = vmatpush1.bf16.msra.mxu1 %v18397_v50  ;;  %9719 = vmatprep.subr.bf16.mxu0 %v18402_v5  ;;  %v18480_v50 = vld [vmem:[%s20172_s30 + $0xf44] ss:$80 sps:$4 sm:$0xff]   ;;  %v18483_v5 = vld [vmem:[%s20172_s30 + $0xf4c] ss:$80 sps:$4 sm:$0xff]  }
 0x524   : > { %9891 = vmatprep.subr.bf16.mxu1 %v18405_v47  ;;  %v18478_v47 = vld [vmem:[%s20172_s30 + $0xf40] ss:$80 sps:$4 sm:$0xff]  }
 0x526   : > { %9720 = vmatpush1.bf16.msra.mxu0 %v18400_v51  ;;  %v18481_v51 = vld [vmem:[%s20172_s30 + $0xf48] ss:$80 sps:$4 sm:$0xff]  }
 0x527   : > { %9892 = vmatpush1.bf16.msra.mxu1 %v18403_v52  ;;  %9721 = vmatprep.subr.bf16.mxu0 %v18408_v53  ;;  %v18486_v52 = vld [vmem:[%s20172_s30 + $0xfe4] ss:$80 sps:$4 sm:$0xff]   ;;  %v18489_v53 = vld [vmem:[%s20172_s30 + $0xfec] ss:$80 sps:$4 sm:$0xff]  }
 0x528   : > { %9893 = vmatprep.subr.bf16.mxu1 %v18411_v54  ;;  %v18484_v54 = vld [vmem:[%s20172_s30 + $0xfe0] ss:$80 sps:$4 sm:$0xff]  }
 0x52a   : > { %9722 = vmatpush1.bf16.msra.mxu0 %v18406_v55  ;;  %v18487_v55 = vld [vmem:[%s20172_s30 + $0xfe8] ss:$80 sps:$4 sm:$0xff]  }
 0x52b   : > { %9894 = vmatpush1.bf16.msra.mxu1 %v18409_v24  ;;  %9723 = vmatprep.subr.bf16.mxu0 %v18414_v18  ;;  %v18492_v24 = vld [vmem:[%s20172_s30 + $0x1084] ss:$80 sps:$4 sm:$0xff]   ;;  %v18495_v18 = vld [vmem:[%s20172_s30 + $0x108c] ss:$80 sps:$4 sm:$0xff]  }
 0x52c   : > { %9895 = vmatprep.subr.bf16.mxu1 %v18417_v29  ;;  %v18490_v29 = vld [vmem:[%s20172_s30 + $0x1080] ss:$80 sps:$4 sm:$0xff]  }
 0x52e   : > { %9724 = vmatpush1.bf16.msra.mxu0 %v18412_v59  ;;  %v18493_v59 = vld [vmem:[%s20172_s30 + $0x1088] ss:$80 sps:$4 sm:$0xff]  }
 0x52f   : > { %9896 = vmatpush1.bf16.msra.mxu1 %v18415_v60  ;;  %9725 = vmatprep.subr.bf16.mxu0 %v18420_v61  ;;  %v18498_v60 = vld [vmem:[%s20172_s30 + $0x1124] ss:$80 sps:$4 sm:$0xff]   ;;  %v18501_v61 = vld [vmem:[%s20172_s30 + $0x112c] ss:$80 sps:$4 sm:$0xff]  }
 0x530   : > { %9897 = vmatprep.subr.bf16.mxu1 %v18423_v62  ;;  %v18496_v62 = vld [vmem:[%s20172_s30 + $0x1120] ss:$80 sps:$4 sm:$0xff]  }
 0x532   : > { %9726 = vmatpush1.bf16.msra.mxu0 %v18418_v3  ;;  %v18499_v3 = vld [vmem:[%s20172_s30 + $0x1128] ss:$80 sps:$4 sm:$0xff]  }
 0x533   : > { %9898 = vmatpush1.bf16.msra.mxu1 %v18421_v4  ;;  %9727 = vmatprep.subr.bf16.mxu0 %v18426_v6  ;;  %v18504_v4 = vld [vmem:[%s20172_s30 + $0x11c4] ss:$80 sps:$4 sm:$0xff]   ;;  %v18507_v6 = vld [vmem:[%s20172_s30 + $0x11cc] ss:$80 sps:$4 sm:$0xff]  }
 0x534   : > { %9899 = vmatprep.subr.bf16.mxu1 %v18429_v7  ;;  %v18502_v7 = vld [vmem:[%s20172_s30 + $0x11c0] ss:$80 sps:$4 sm:$0xff]  }
 0x536   : > { %9728 = vmatpush1.bf16.msra.mxu0 %v18424_v8  ;;  %v18505_v8 = vld [vmem:[%s20172_s30 + $0x11c8] ss:$80 sps:$4 sm:$0xff]  }
 0x537   : > { %9900 = vmatpush1.bf16.msra.mxu1 %v18427_v9  ;;  %9740 = vmatprep.subr.bf16.mxu0 %v18432_v10  ;;  %v18510_v9 = vld [vmem:[%s20172_s30 + $0x1264] ss:$80 sps:$4 sm:$0xff]   ;;  %v18513_v10 = vld [vmem:[%s20172_s30 + $0x126c] ss:$80 sps:$4 sm:$0xff]  }
 0x538   : > { %9912 = vmatprep.subr.bf16.mxu1 %v18435_v34  ;;  %v18508_v34 = vld [vmem:[%s20172_s30 + $0x1260] ss:$80 sps:$4 sm:$0xff]  }
 0x539   : > { %9730 = vmatmul.mubr.bf16.vlgmr.msra.gmra.mrb[16].mxu0 %v20768_v48 }
 0x53a   : > { %9902 = vmatmul.mubr.bf16.vlgmr.msra.gmra.mrb[16].mxu1 %v20768_v48  ;;  %9741 = vmatpush1.bf16.msra.mxu0 %v18430_v11  ;;  %v18442_v48 = vld [vmem:[%s20172_s30 + $0xb80] ss:$80 sps:$4 sm:$0xff]   ;;  %v18511_v11 = vld [vmem:[%s20172_s30 + $0x1268] ss:$80 sps:$4 sm:$0xff]  }
 0x53b   : > { %9772 = vmatprep.mubr.bf16.mxu0 %v20776_v13  ;;  %9913 = vmatpush1.bf16.msra.mxu1 %v18433_v12  ;;  %v18516_v12 = vld [vmem:[%s20172_s30 + $0x1304] ss:$80 sps:$4 sm:$0xff]  }
 0x53c   : > { %9944 = vmatprep.mubr.bf16.mxu1 %v20776_v13  ;;  %9742 = vmatprep.subr.bf16.mxu0 %v18438_v14  ;;  %v18448_v13 = vld [vmem:[%s20172_s30 + $0xc20] ss:$80 sps:$4 sm:$0xff]   ;;  %v18519_v14 = vld [vmem:[%s20172_s30 + $0x130c] ss:$80 sps:$4 sm:$0xff]  }
 0x53d   : > { %9914 = vmatprep.subr.bf16.mxu1 %v18441_v15  ;;  %v18514_v15 = vld [vmem:[%s20172_s30 + $0x1300] ss:$80 sps:$4 sm:$0xff]  }
 0x53e   : > { %9743 = vmatpush1.bf16.msra.mxu0 %v18436_v58  ;;  %v18517_v58 = vld [vmem:[%s20172_s30 + $0x1308] ss:$80 sps:$4 sm:$0xff]  }
 0x53f   : > { %9915 = vmatpush1.bf16.msra.mxu1 %v18439_v19  ;;  %9744 = vmatprep.subr.bf16.mxu0 %v18444_v20  ;;  %v18522_v19 = vld [vmem:[%s20172_s30 + $0x13a4] ss:$80 sps:$4 sm:$0xff]   ;;  %v18525_v20 = vld [vmem:[%s20172_s30 + $0x13ac] ss:$80 sps:$4 sm:$0xff]  }
 0x540   : > { %9916 = vmatprep.subr.bf16.mxu1 %v18447_v21  ;;  %v18520_v21 = vld [vmem:[%s20172_s30 + $0x13a0] ss:$80 sps:$4 sm:$0xff]  }
 0x542   : > { %9745 = vmatpush1.bf16.msra.mxu0 %v18442_v48  ;;  %v18523_v48 = vld [vmem:[%s20172_s30 + $0x13a8] ss:$80 sps:$4 sm:$0xff]  }
 0x543   : > { %9917 = vmatpush1.bf16.msra.mxu1 %v18445_v22  ;;  %9746 = vmatprep.subr.bf16.mxu0 %v18450_v23  ;;  %v18528_v22 = vld [vmem:[%s20172_s30 + $0x1444] ss:$80 sps:$4 sm:$0xff]   ;;  %v18531_v23 = vld [vmem:[%s20172_s30 + $0x144c] ss:$80 sps:$4 sm:$0xff]  }
 0x544   : > { %9918 = vmatprep.subr.bf16.mxu1 %v18453_v27  ;;  %v18526_v27 = vld [vmem:[%s20172_s30 + $0x1440] ss:$80 sps:$4 sm:$0xff]  }
 0x546   : > { %9747 = vmatpush1.bf16.msra.mxu0 %v18448_v13  ;;  %v18529_v13 = vld [vmem:[%s20172_s30 + $0x1448] ss:$80 sps:$4 sm:$0xff]  }
 0x547   : > { %9919 = vmatpush1.bf16.msra.mxu1 %v18451_v28  ;;  %9748 = vmatprep.subr.bf16.mxu0 %v18456_v16  ;;  %v18534_v28 = vld [vmem:[%s20172_s30 + $0x14e4] ss:$80 sps:$4 sm:$0xff]   ;;  %v18537_v16 = vld [vmem:[%s20172_s30 + $0x14ec] ss:$80 sps:$4 sm:$0xff]  }
 0x548   : > { %9920 = vmatprep.subr.bf16.mxu1 %v18459_v17  ;;  %v18532_v17 = vld [vmem:[%s20172_s30 + $0x14e0] ss:$80 sps:$4 sm:$0xff]  }
 0x54a   : > { %9749 = vmatpush1.bf16.msra.mxu0 %v18454_v30  ;;  %v18535_v30 = vld [vmem:[%s20172_s30 + $0x14e8] ss:$80 sps:$4 sm:$0xff]  }
 0x54b   : > { %9921 = vmatpush1.bf16.msra.mxu1 %v18457_v31  ;;  %9750 = vmatprep.subr.bf16.mxu0 %v18462_v32  ;;  %v18540_v31 = vld [vmem:[%s20172_s30 + $0x1584] ss:$80 sps:$4 sm:$0xff]   ;;  %v18543_v32 = vld [vmem:[%s20172_s30 + $0x158c] ss:$80 sps:$4 sm:$0xff]  }
 0x54c   : > { %9922 = vmatprep.subr.bf16.mxu1 %v18465_v35  ;;  %v18541_v35 = vld [vmem:[%s20172_s30 + $0x1588] ss:$80 sps:$4 sm:$0xff]  }
 0x54e   : > { %9751 = vmatpush1.bf16.msra.mxu0 %v18460_v36  ;;  %v18546_v36 = vld [vmem:[%s20172_s30 + $0x1624] ss:$80 sps:$4 sm:$0xff]  }
 0x54f   : > { %9923 = vmatpush1.bf16.msra.mxu1 %v18463_v37  ;;  %9752 = vmatprep.subr.bf16.mxu0 %v18468_v25  ;;  %v18549_v37 = vld [vmem:[%s20172_s30 + $0x162c] ss:$80 sps:$4 sm:$0xff]   ;;  %v18547_v25 = vld [vmem:[%s20172_s30 + $0x1628] ss:$80 sps:$4 sm:$0xff]  }
 0x550   : > { %9924 = vmatprep.subr.bf16.mxu1 %v18471_v26  ;;  %v18552_v26 = vld [vmem:[%s20172_s30 + $0x16c4] ss:$80 sps:$4 sm:$0xff]  }
 0x552   : > { %9753 = vmatpush1.bf16.msra.mxu0 %v18466_v41  ;;  %v18555_v41 = vld [vmem:[%s20172_s30 + $0x16cc] ss:$80 sps:$4 sm:$0xff]  }
 0x553   : > { %9925 = vmatpush1.bf16.msra.mxu1 %v18469_v42  ;;  %9754 = vmatprep.subr.bf16.mxu0 %v18474_v43  ;;  %v18550_v42 = vld [vmem:[%s20172_s30 + $0x16c0] ss:$80 sps:$4 sm:$0xff]   ;;  %v18553_v43 = vld [vmem:[%s20172_s30 + $0x16c8] ss:$80 sps:$4 sm:$0xff]  }
 0x554   : > { %9926 = vmatprep.subr.bf16.mxu1 %v18477_v44  ;;  %v18558_v44 = vld [vmem:[%s20172_s30 + $0x1764] ss:$80 sps:$4 sm:$0xff]  }
 0x556   : > { %9755 = vmatpush1.bf16.msra.mxu0 %v18472_v45  ;;  %v18561_v45 = vld [vmem:[%s20172_s30 + $0x176c] ss:$80 sps:$4 sm:$0xff]  }
 0x557   : > { %9927 = vmatpush1.bf16.msra.mxu1 %v18475_v46  ;;  %9756 = vmatprep.subr.bf16.mxu0 %v18480_v50  ;;  %v18556_v46 = vld [vmem:[%s20172_s30 + $0x1760] ss:$80 sps:$4 sm:$0xff]   ;;  %v18559_v50 = vld [vmem:[%s20172_s30 + $0x1768] ss:$80 sps:$4 sm:$0xff]  }
 0x558   : > { %9928 = vmatprep.subr.bf16.mxu1 %v18483_v5  ;;  %v18564_v5 = vld [vmem:[%s20172_s30 + $0x1804] ss:$80 sps:$4 sm:$0xff]  }
 0x55a   : > { %9757 = vmatpush1.bf16.msra.mxu0 %v18478_v47  ;;  %v18567_v47 = vld [vmem:[%s20172_s30 + $0x180c] ss:$80 sps:$4 sm:$0xff]  }
 0x55b   : > { %9929 = vmatpush1.bf16.msra.mxu1 %v18481_v51  ;;  %9758 = vmatprep.subr.bf16.mxu0 %v18486_v52  ;;  %v18562_v51 = vld [vmem:[%s20172_s30 + $0x1800] ss:$80 sps:$4 sm:$0xff]   ;;  %v18565_v52 = vld [vmem:[%s20172_s30 + $0x1808] ss:$80 sps:$4 sm:$0xff]  }
 0x55c   : > { %9930 = vmatprep.subr.bf16.mxu1 %v18489_v53  ;;  %v18570_v53 = vld [vmem:[%s20172_s30 + $0x18a4] ss:$80 sps:$4 sm:$0xff]  }
 0x55e   : > { %9759 = vmatpush1.bf16.msra.mxu0 %v18484_v54  ;;  %v18573_v54 = vld [vmem:[%s20172_s30 + $0x18ac] ss:$80 sps:$4 sm:$0xff]  }
 0x55f   : > { %9931 = vmatpush1.bf16.msra.mxu1 %v18487_v55  ;;  %9760 = vmatprep.subr.bf16.mxu0 %v18492_v24  ;;  %v18568_v55 = vld [vmem:[%s20172_s30 + $0x18a0] ss:$80 sps:$4 sm:$0xff]   ;;  %v18571_v24 = vld [vmem:[%s20172_s30 + $0x18a8] ss:$80 sps:$4 sm:$0xff]  }
 0x560   : > { %9932 = vmatprep.subr.bf16.mxu1 %v18495_v18  ;;  %v18576_v18 = vld [vmem:[%s20172_s30 + $0x1944] ss:$80 sps:$4 sm:$0xff]  }
 0x562   : > { %9761 = vmatpush1.bf16.msra.mxu0 %v18490_v29  ;;  %v18579_v29 = vld [vmem:[%s20172_s30 + $0x194c] ss:$80 sps:$4 sm:$0xff]  }
 0x563   : > { %9933 = vmatpush1.bf16.msra.mxu1 %v18493_v59  ;;  %9762 = vmatprep.subr.bf16.mxu0 %v18498_v60  ;;  %v18574_v59 = vld [vmem:[%s20172_s30 + $0x1940] ss:$80 sps:$4 sm:$0xff]   ;;  %v18577_v60 = vld [vmem:[%s20172_s30 + $0x1948] ss:$80 sps:$4 sm:$0xff]  }
 0x564   : > { %9934 = vmatprep.subr.bf16.mxu1 %v18501_v61  ;;  %v18582_v61 = vld [vmem:[%s20172_s30 + $0x19e4] ss:$80 sps:$4 sm:$0xff]  }
 0x566   : > { %9763 = vmatpush1.bf16.msra.mxu0 %v18496_v62  ;;  %v18585_v62 = vld [vmem:[%s20172_s30 + $0x19ec] ss:$80 sps:$4 sm:$0xff]  }
 0x567   : > { %9935 = vmatpush1.bf16.msra.mxu1 %v18499_v3  ;;  %9764 = vmatprep.subr.bf16.mxu0 %v18504_v4  ;;  %v18580_v3 = vld [vmem:[%s20172_s30 + $0x19e0] ss:$80 sps:$4 sm:$0xff]   ;;  %v18583_v4 = vld [vmem:[%s20172_s30 + $0x19e8] ss:$80 sps:$4 sm:$0xff]  }
 0x568   : > { %9936 = vmatprep.subr.bf16.mxu1 %v18507_v6  ;;  %v18588_v6 = vld [vmem:[%s20172_s30 + $0x1a84] ss:$80 sps:$4 sm:$0xff]  }
 0x56a   : > { %9765 = vmatpush1.bf16.msra.mxu0 %v18502_v7  ;;  %v18591_v7 = vld [vmem:[%s20172_s30 + $0x1a8c] ss:$80 sps:$4 sm:$0xff]  }
 0x56b   : > { %9937 = vmatpush1.bf16.msra.mxu1 %v18505_v8  ;;  %9766 = vmatprep.subr.bf16.mxu0 %v18510_v9  ;;  %v18586_v8 = vld [vmem:[%s20172_s30 + $0x1a80] ss:$80 sps:$4 sm:$0xff]   ;;  %v18589_v9 = vld [vmem:[%s20172_s30 + $0x1a88] ss:$80 sps:$4 sm:$0xff]  }
 0x56c   : > { %9938 = vmatprep.subr.bf16.mxu1 %v18513_v10  ;;  %v18594_v10 = vld [vmem:[%s20172_s30 + $0x1b24] ss:$80 sps:$4 sm:$0xff]  }
 0x56e   : > { %9767 = vmatpush1.bf16.msra.mxu0 %v18508_v34  ;;  %v18597_v34 = vld [vmem:[%s20172_s30 + $0x1b2c] ss:$80 sps:$4 sm:$0xff]  }
 0x56f   : > { %9939 = vmatpush1.bf16.msra.mxu1 %v18511_v11  ;;  %9768 = vmatprep.subr.bf16.mxu0 %v18516_v12  ;;  %v18592_v11 = vld [vmem:[%s20172_s30 + $0x1b20] ss:$80 sps:$4 sm:$0xff]   ;;  %v18595_v12 = vld [vmem:[%s20172_s30 + $0x1b28] ss:$80 sps:$4 sm:$0xff]  }
 0x570   : > { %9940 = vmatprep.subr.bf16.mxu1 %v18519_v14  ;;  %v18600_v14 = vld [vmem:[%s20172_s30 + $0x1bc4] ss:$80 sps:$4 sm:$0xff]  }
 0x572   : > { %9769 = vmatpush1.bf16.msra.mxu0 %v18514_v15  ;;  %v18603_v15 = vld [vmem:[%s20172_s30 + $0x1bcc] ss:$80 sps:$4 sm:$0xff]  }
 0x573   : > { %9941 = vmatpush1.bf16.msra.mxu1 %v18517_v58  ;;  %9770 = vmatprep.subr.bf16.mxu0 %v18522_v19  ;;  %v18598_v58 = vld [vmem:[%s20172_s30 + $0x1bc0] ss:$80 sps:$4 sm:$0xff]   ;;  %v18601_v19 = vld [vmem:[%s20172_s30 + $0x1bc8] ss:$80 sps:$4 sm:$0xff]  }
 0x574   : > { %9942 = vmatprep.subr.bf16.mxu1 %v18525_v20  ;;  %v18606_v20 = vld [vmem:[%s20172_s30 + $0x1c64] ss:$80 sps:$4 sm:$0xff]  }
 0x576   : > { %9771 = vmatpush1.bf16.msra.mxu0 %v18520_v21  ;;  %v18609_v21 = vld [vmem:[%s20172_s30 + $0x1c6c] ss:$80 sps:$4 sm:$0xff]  }
 0x577   : > { %9943 = vmatpush1.bf16.msra.mxu1 %v18523_v48  ;;  %9783 = vmatprep.subr.bf16.mxu0 %v18528_v22  ;;  %v18604_v48 = vld [vmem:[%s20172_s30 + $0x1c60] ss:$80 sps:$4 sm:$0xff]   ;;  %v18607_v22 = vld [vmem:[%s20172_s30 + $0x1c68] ss:$80 sps:$4 sm:$0xff]  }
 0x578   : > { %9955 = vmatprep.subr.bf16.mxu1 %v18531_v23  ;;  %v18612_v23 = vld [vmem:[%s20172_s30 + $0x1d04] ss:$80 sps:$4 sm:$0xff]  }
 0x579   : > { %9773 = vmatmul.mubr.bf16.vlgmr.msra.gmra.mrb[16].mxu0 %v20770_v49 }
 0x57a   : > { %9945 = vmatmul.mubr.bf16.vlgmr.msra.gmra.mrb[16].mxu1 %v20770_v49  ;;  %9784 = vmatpush1.bf16.msra.mxu0 %v18526_v27  ;;  %v18538_v49 = vld [vmem:[%s20172_s30 + $0x1580] ss:$80 sps:$4 sm:$0xff]   ;;  %v18615_v27 = vld [vmem:[%s20172_s30 + $0x1d0c] ss:$80 sps:$4 sm:$0xff]  }
 0x57b   : > { %9815 = vmatprep.mubr.bf16.mxu0 %v21029_v40  ;;  %9956 = vmatpush1.bf16.msra.mxu1 %v18529_v13  ;;  %v18610_v13 = vld [vmem:[%s20172_s30 + $0x1d00] ss:$80 sps:$4 sm:$0xff]  }
 0x57c   : > { %9987 = vmatprep.mubr.bf16.mxu1 %v21029_v40  ;;  %9785 = vmatprep.subr.bf16.mxu0 %v18534_v28  ;;  %v18544_v40 = vld [vmem:[%s20172_s30 + $0x1620] ss:$80 sps:$4 sm:$0xff]   ;;  %v18613_v28 = vld [vmem:[%s20172_s30 + $0x1d08] ss:$80 sps:$4 sm:$0xff]  }
 0x57d   : > { %9957 = vmatprep.subr.bf16.mxu1 %v18537_v16  ;;  %v18618_v16 = vld [vmem:[%s20172_s30 + $0x1da4] ss:$80 sps:$4 sm:$0xff]  }
 0x57e   : > { %9786 = vmatpush1.bf16.msra.mxu0 %v18532_v17  ;;  %v18621_v17 = vld [vmem:[%s20172_s30 + $0x1dac] ss:$80 sps:$4 sm:$0xff]  }
 0x57f   : > { %9958 = vmatpush1.bf16.msra.mxu1 %v18535_v30  ;;  %9787 = vmatprep.subr.bf16.mxu0 %v18540_v31  ;;  %v18616_v30 = vld [vmem:[%s20172_s30 + $0x1da0] ss:$80 sps:$4 sm:$0xff]   ;;  %v18619_v31 = vld [vmem:[%s20172_s30 + $0x1da8] ss:$80 sps:$4 sm:$0xff]  }
 0x580   : > { %9959 = vmatprep.subr.bf16.mxu1 %v18543_v32  ;;  %v18624_v32 = vld [vmem:[%s20172_s30 + $0x1e44] ss:$80 sps:$4 sm:$0xff]  }
 0x582   : > { %9788 = vmatpush1.bf16.msra.mxu0 %v18538_v49  ;;  %v18627_v49 = vld [vmem:[%s20172_s30 + $0x1e4c] ss:$80 sps:$4 sm:$0xff]  }
 0x583   : > { %9960 = vmatpush1.bf16.msra.mxu1 %v18541_v35  ;;  %9789 = vmatprep.subr.bf16.mxu0 %v18546_v36  ;;  %v18622_v35 = vld [vmem:[%s20172_s30 + $0x1e40] ss:$80 sps:$4 sm:$0xff]   ;;  %v18625_v36 = vld [vmem:[%s20172_s30 + $0x1e48] ss:$80 sps:$4 sm:$0xff]  }
 0x584   : > { %9961 = vmatprep.subr.bf16.mxu1 %v18549_v37  ;;  %v18630_v37 = vld [vmem:[%s20172_s30 + $0x1ee4] ss:$80 sps:$4 sm:$0xff]  }
 0x586   : > { %9790 = vmatpush1.bf16.msra.mxu0 %v18544_v40  ;;  %v18633_v40 = vld [vmem:[%s20172_s30 + $0x1eec] ss:$80 sps:$4 sm:$0xff]  }
 0x587   : > { %9962 = vmatpush1.bf16.msra.mxu1 %v18547_v25  ;;  %9791 = vmatprep.subr.bf16.mxu0 %v18552_v26  ;;  %v18628_v25 = vld [vmem:[%s20172_s30 + $0x1ee0] ss:$80 sps:$4 sm:$0xff]   ;;  %v18631_v26 = vld [vmem:[%s20172_s30 + $0x1ee8] ss:$80 sps:$4 sm:$0xff]  }
 0x588   : > { %9963 = vmatprep.subr.bf16.mxu1 %v18555_v41  ;;  %v18636_v41 = vld [vmem:[%s20172_s30 + $0x1f84] ss:$80 sps:$4 sm:$0xff]  }
 0x58a   : > { %9792 = vmatpush1.bf16.msra.mxu0 %v18550_v42  ;;  %v18639_v42 = vld [vmem:[%s20172_s30 + $0x1f8c] ss:$80 sps:$4 sm:$0xff]  }
 0x58b   : > { %9964 = vmatpush1.bf16.msra.mxu1 %v18553_v43  ;;  %9793 = vmatprep.subr.bf16.mxu0 %v18558_v44  ;;  %v18637_v43 = vld [vmem:[%s20172_s30 + $0x1f88] ss:$80 sps:$4 sm:$0xff]   ;;  %v18642_v44 = vld [vmem:[%s20172_s30 + $0x2024] ss:$80 sps:$4 sm:$0xff]  }
 0x58c   : > { %9965 = vmatprep.subr.bf16.mxu1 %v18561_v45  ;;  %v18645_v45 = vld [vmem:[%s20172_s30 + $0x202c] ss:$80 sps:$4 sm:$0xff]  }
 0x58e   : > { %9794 = vmatpush1.bf16.msra.mxu0 %v18556_v46  ;;  %v18643_v46 = vld [vmem:[%s20172_s30 + $0x2028] ss:$80 sps:$4 sm:$0xff]  }
 0x58f   : > { %9966 = vmatpush1.bf16.msra.mxu1 %v18559_v50  ;;  %9795 = vmatprep.subr.bf16.mxu0 %v18564_v5  ;;  %v18648_v50 = vld [vmem:[%s20172_s30 + $0x20c4] ss:$80 sps:$4 sm:$0xff]   ;;  %v18651_v5 = vld [vmem:[%s20172_s30 + $0x20cc] ss:$80 sps:$4 sm:$0xff]  }
 0x590   : > { %9967 = vmatprep.subr.bf16.mxu1 %v18567_v47  ;;  %v18646_v47 = vld [vmem:[%s20172_s30 + $0x20c0] ss:$80 sps:$4 sm:$0xff]  }
 0x592   : > { %9796 = vmatpush1.bf16.msra.mxu0 %v18562_v51  ;;  %v18649_v51 = vld [vmem:[%s20172_s30 + $0x20c8] ss:$80 sps:$4 sm:$0xff]  }
 0x593   : > { %9968 = vmatpush1.bf16.msra.mxu1 %v18565_v52  ;;  %9797 = vmatprep.subr.bf16.mxu0 %v18570_v53  ;;  %v21600_v52 = vld [vmem:[%s20193_s27 + $0xe] sm:$0x3f] }
 0x594   : > { %9969 = vmatprep.subr.bf16.mxu1 %v18573_v54  ;;  %v18654_v53 = vld [vmem:[%s20172_s30 + $0x2164] ss:$80 sps:$4 sm:$0xff]   ;;  %v18657_v54 = vld [vmem:[%s20172_s30 + $0x216c] ss:$80 sps:$4 sm:$0xff]  }
 0x596   : > { %9798 = vmatpush1.bf16.msra.mxu0 %v18568_v55  ;;  %v7578_v55 = vrot.slane %v21600_v52, %v20741_v63 }
 0x597   : > { %9970 = vmatpush1.bf16.msra.mxu1 %v18571_v24  ;;  %9799 = vmatprep.subr.bf16.mxu0 %v18576_v18  ;;  %v18652_v24 = vld [vmem:[%s20172_s30 + $0x2160] ss:$80 sps:$4 sm:$0xff]   ;;  %v7582_v18 = vrot.slane %v21600_v52, %v20747_v1 }
 0x598   : > { %9971 = vmatprep.subr.bf16.mxu1 %v18579_v29  ;;  %v18655_v29 = vld [vmem:[%s20172_s30 + $0x2168] ss:$80 sps:$4 sm:$0xff]  }
 0x59a   : > { %9800 = vmatpush1.bf16.msra.mxu0 %v18574_v59  ;;  %v18660_v59 = vld [vmem:[%s20172_s30 + $0x2204] ss:$80 sps:$4 sm:$0xff]  }
 0x59b   : > { %9972 = vmatpush1.bf16.msra.mxu1 %v18577_v60  ;;  %9801 = vmatprep.subr.bf16.mxu0 %v18582_v61  ;;  %v18663_v60 = vld [vmem:[%s20172_s30 + $0x220c] ss:$80 sps:$4 sm:$0xff]  }
 0x59c   : > { %9973 = vmatprep.subr.bf16.mxu1 %v18585_v62 }
 0x59e   : > { %9802 = vmatpush1.bf16.msra.mxu0 %v18580_v3 }
 0x59f   : > { %9974 = vmatpush1.bf16.msra.mxu1 %v18583_v4  ;;  %9803 = vmatprep.subr.bf16.mxu0 %v18588_v6  ;;  %v18658_v4 = vld [vmem:[%s20172_s30 + $0x2200] ss:$80 sps:$4 sm:$0xff]  }
 0x5a0   : > { %9975 = vmatprep.subr.bf16.mxu1 %v18591_v7 }
 0x5a2   : > { %9804 = vmatpush1.bf16.msra.mxu0 %v18586_v8  ;;  %v18661_v8 = vld [vmem:[%s20172_s30 + $0x2208] ss:$80 sps:$4 sm:$0xff]  }
 0x5a3   : > { %9976 = vmatpush1.bf16.msra.mxu1 %v18589_v9  ;;  %9805 = vmatprep.subr.bf16.mxu0 %v18594_v10  ;;  %v18666_v9 = vld [vmem:[%s20172_s30 + $0x22a4] ss:$80 sps:$4 sm:$0xff]  }
 0x5a4   : > { %9977 = vmatprep.subr.bf16.mxu1 %v18597_v34 }
 0x5a6   : > { %9806 = vmatpush1.bf16.msra.mxu0 %v18592_v11  ;;  %v18669_v11 = vld [vmem:[%s20172_s30 + $0x22ac] ss:$80 sps:$4 sm:$0xff]  }
 0x5a7   : > { %9978 = vmatpush1.bf16.msra.mxu1 %v18595_v12  ;;  %9807 = vmatprep.subr.bf16.mxu0 %v18600_v14 }
 0x5a8   : > { %9979 = vmatprep.subr.bf16.mxu1 %v18603_v15 }
 0x5aa   : > { %9808 = vmatpush1.bf16.msra.mxu0 %v18598_v58  ;;  %v18664_v58 = vld [vmem:[%s20172_s30 + $0x22a0] ss:$80 sps:$4 sm:$0xff]  }
 0x5ab   : > { %9980 = vmatpush1.bf16.msra.mxu1 %v18601_v19  ;;  %9809 = vmatprep.subr.bf16.mxu0 %v18606_v20 }
 0x5ac   : > { %9981 = vmatprep.subr.bf16.mxu1 %v18609_v21  ;;  %v18667_v21 = vld [vmem:[%s20172_s30 + $0x22a8] ss:$80 sps:$4 sm:$0xff]  }
 0x5ae   : > { %9810 = vmatpush1.bf16.msra.mxu0 %v18604_v48  ;;  %v18672_v48 = vld [vmem:[%s20172_s30 + $0x2344] ss:$80 sps:$4 sm:$0xff]  }
 0x5af   : > { %9982 = vmatpush1.bf16.msra.mxu1 %v18607_v22  ;;  %9811 = vmatprep.subr.bf16.mxu0 %v18612_v23  ;;  %v18675_v23 = vld [vmem:[%s20172_s30 + $0x234c] ss:$80 sps:$4 sm:$0xff]  }
 0x5b0   : > { %9983 = vmatprep.subr.bf16.mxu1 %v18615_v27 }
 0x5b2   : > { %9812 = vmatpush1.bf16.msra.mxu0 %v18610_v13  ;;  %v18670_v13 = vld [vmem:[%s20172_s30 + $0x2340] ss:$80 sps:$4 sm:$0xff]  }
 0x5b3   : > { %9984 = vmatpush1.bf16.msra.mxu1 %v18613_v28  ;;  %9813 = vmatprep.subr.bf16.mxu0 %v18618_v16  ;;  %v18673_v28 = vld [vmem:[%s20172_s30 + $0x2348] ss:$80 sps:$4 sm:$0xff]   ;;  %v18678_v16 = vld [vmem:[%s20172_s30 + $0x23e4] ss:$80 sps:$4 sm:$0xff]  }
 0x5b4   : > { %9985 = vmatprep.subr.bf16.mxu1 %v18621_v17  ;;  %v18681_v17 = vld [vmem:[%s20172_s30 + $0x23ec] ss:$80 sps:$4 sm:$0xff]  }
 0x5b6   : > { %9814 = vmatpush1.bf16.msra.mxu0 %v18616_v30  ;;  %v18676_v30 = vld [vmem:[%s20172_s30 + $0x23e0] ss:$80 sps:$4 sm:$0xff]  }
 0x5b7   : > { %9986 = vmatpush1.bf16.msra.mxu1 %v18619_v31  ;;  %9826 = vmatprep.subr.bf16.mxu0 %v18624_v32  ;;  %v18679_v31 = vld [vmem:[%s20172_s30 + $0x23e8] ss:$80 sps:$4 sm:$0xff]   ;;  %v18684_v32 = vld [vmem:[%s20172_s30 + $0x2484] ss:$80 sps:$4 sm:$0xff]  }
 0x5b8   : > { %9998 = vmatprep.subr.bf16.mxu1 %v18627_v49  ;;  %v18687_v49 = vld [vmem:[%s20172_s30 + $0x248c] ss:$80 sps:$4 sm:$0xff]  }
 0x5b9   : > { %9816 = vmatmul.mubr.bf16.vlgmr.msra.gmra.mrb[16].mxu0 %v21025_v38 }
 0x5ba   : > { %9988 = vmatmul.mubr.bf16.vlgmr.msra.gmra.mrb[16].mxu1 %v21025_v38  ;;  %9827 = vmatpush1.bf16.msra.mxu0 %v18622_v35  ;;  %v18634_v38 = vld [vmem:[%s20172_s30 + $0x1f80] ss:$80 sps:$4 sm:$0xff]  }
 0x5bb   : > { %9858 = vmatprep.mubr.bf16.mxu0 %v21031_v33  ;;  %9999 = vmatpush1.bf16.msra.mxu1 %v18625_v36  ;;  %v18682_v35 = vld [vmem:[%s20172_s30 + $0x2480] ss:$80 sps:$4 sm:$0xff]   ;;  %v18685_v36 = vld [vmem:[%s20172_s30 + $0x2488] ss:$80 sps:$4 sm:$0xff]  }
 0x5bc   : > { %10030 = vmatprep.mubr.bf16.mxu1 %v21031_v33  ;;  %9828 = vmatprep.subr.bf16.mxu0 %v18630_v37  ;;  %v18640_v33 = vld [vmem:[%s20172_s30 + $0x2020] ss:$80 sps:$4 sm:$0xff]   ;;  %v18690_v37 = vld [vmem:[%s20172_s30 + $0x2524] ss:$80 sps:$4 sm:$0xff]  }
 0x5bd   : > { %10000 = vmatprep.subr.bf16.mxu1 %v18633_v40  ;;  %v18693_v40 = vld [vmem:[%s20172_s30 + $0x252c] ss:$80 sps:$4 sm:$0xff]  }
 0x5be   : > { %9829 = vmatpush1.bf16.msra.mxu0 %v18628_v25  ;;  %v18688_v25 = vld [vmem:[%s20172_s30 + $0x2520] ss:$80 sps:$4 sm:$0xff]  }
 0x5bf   : > { %10001 = vmatpush1.bf16.msra.mxu1 %v18631_v26  ;;  %9830 = vmatprep.subr.bf16.mxu0 %v18636_v41  ;;  %v18691_v26 = vld [vmem:[%s20172_s30 + $0x2528] ss:$80 sps:$4 sm:$0xff]   ;;  %v18696_v41 = vld [vmem:[%s20172_s30 + $0x25c4] ss:$80 sps:$4 sm:$0xff]  }
 0x5c0   : > { %10002 = vmatprep.subr.bf16.mxu1 %v18639_v42  ;;  %v18699_v42 = vld [vmem:[%s20172_s30 + $0x25cc] ss:$80 sps:$4 sm:$0xff]  }
 0x5c2   : > { %9831 = vmatpush1.bf16.msra.mxu0 %v18634_v38  ;;  %v18694_v38 = vld [vmem:[%s20172_s30 + $0x25c0] ss:$80 sps:$4 sm:$0xff]  }
 0x5c3   : > { %10003 = vmatpush1.bf16.msra.mxu1 %v18637_v43  ;;  %9832 = vmatprep.subr.bf16.mxu0 %v18642_v44  ;;  %v18697_v43 = vld [vmem:[%s20172_s30 + $0x25c8] ss:$80 sps:$4 sm:$0xff]   ;;  %v18702_v44 = vld [vmem:[%s20172_s30 + $0x2664] ss:$80 sps:$4 sm:$0xff]  }
 0x5c4   : > { %10004 = vmatprep.subr.bf16.mxu1 %v18645_v45  ;;  %v18705_v45 = vld [vmem:[%s20172_s30 + $0x266c] ss:$80 sps:$4 sm:$0xff]  }
 0x5c6   : > { %9833 = vmatpush1.bf16.msra.mxu0 %v18640_v33  ;;  %v18700_v33 = vld [vmem:[%s20172_s30 + $0x2660] ss:$80 sps:$4 sm:$0xff]  }
 0x5c7   : > { %10005 = vmatpush1.bf16.msra.mxu1 %v18643_v46  ;;  %9834 = vmatprep.subr.bf16.mxu0 %v18648_v50  ;;  %v18703_v46 = vld [vmem:[%s20172_s30 + $0x2668] ss:$80 sps:$4 sm:$0xff]   ;;  %v18708_v50 = vld [vmem:[%s20172_s30 + $0x2704] ss:$80 sps:$4 sm:$0xff]  }
 0x5c8   : > { %10006 = vmatprep.subr.bf16.mxu1 %v18651_v5  ;;  %v18711_v5 = vld [vmem:[%s20172_s30 + $0x270c] ss:$80 sps:$4 sm:$0xff]  }
 0x5ca   : > { %9835 = vmatpush1.bf16.msra.mxu0 %v18646_v47  ;;  %v18706_v47 = vld [vmem:[%s20172_s30 + $0x2700] ss:$80 sps:$4 sm:$0xff]  }
 0x5cb   : > { %10007 = vmatpush1.bf16.msra.mxu1 %v18649_v51  ;;  %9836 = vmatprep.subr.bf16.mxu0 %v18654_v53  ;;  %v18709_v51 = vld [vmem:[%s20172_s30 + $0x2708] ss:$80 sps:$4 sm:$0xff]   ;;  %v18714_v53 = vld [vmem:[%s20172_s30 + $0x27a4] ss:$80 sps:$4 sm:$0xff]  }
 0x5cc   : > { %10008 = vmatprep.subr.bf16.mxu1 %v18657_v54  ;;  %v18717_v54 = vld [vmem:[%s20172_s30 + $0x27ac] ss:$80 sps:$4 sm:$0xff]  }
 0x5cd   : > { %v9688_v61 = vpop.f32.mrb[12].mxu1 }
 0x5ce   : > { %v16484_v62 = vadd.f32 %v9688_v61, %v7578_v55  ;;  %v9690_v3 = vpop.f32.mrb[13].mxu1  ;;  %9837 = vmatpush1.bf16.msra.mxu0 %v18652_v24  ;;  %v18715_v24 = vld [vmem:[%s20172_s30 + $0x27a8] ss:$80 sps:$4 sm:$0xff]   ;;  %v18726_v61 = vld [vmem:[%s20180_s17 + $0x54] ss:$40 sps:$4 sm:$0xff]  }
 0x5cf   : > { %v16485_v6 = vadd.f32 %v9690_v3, %v7582_v18  ;;  %v9692_v7 = vpop.f32.mrb[14].mxu1  ;;  %10009 = vmatpush1.bf16.msra.mxu1 %v18655_v29  ;;  %9838 = vmatprep.subr.bf16.mxu0 %v18660_v59  ;;  %v18723_v29 = vld [vmem:[%s20180_s17 + $0xc] ss:$40 sps:$4 sm:$0xff]   ;;  %v18718_v59 = vld [vmem:[%s20180_s17] ss:$40 sps:$4 sm:$0xff]  }
 0x5d0   : > { %v16486_v10 = vadd.f32 %v9692_v7, %v7578_v55  ;;  %v9694_v34 = vpop.f32.mrb[15].mxu1  ;;  %10010 = vmatprep.subr.bf16.mxu1 %v18663_v60  ;;  %v10041_v14 = vmax.f32 %v16484_v62, 0.0  ;;  %v18712_v55 = vld [vmem:[%s20172_s30 + $0x27a0] ss:$80 sps:$4 sm:$0xff]   ;;  %v18729_v62 = vld [vmem:[%s20180_s17 + $0x5c] ss:$40 sps:$4 sm:$0xff]  }
 0x5d1   : > { %v16487_v12 = vadd.f32 %v9694_v34, %v7582_v18  ;;  %v10042_v19 = vmax.f32 %v16485_v6, 0.0  ;;  %v18720_v18 = vld [vmem:[%s20180_s17 + $0x4] ss:$40 sps:$4 sm:$0xff]   ;;  %v18721_v60 = vld [vmem:[%s20180_s17 + $0x8] ss:$40 sps:$4 sm:$0xff]   ;;  %s19735_s30 = scalar_lea.vmem %s19734_s14, 512 }
 0x5d2   : > { %v10047_v15 = vmax.f32 %v16486_v10, 0.0  ;;  %9839 = vmatpush1.bf16.msra.mxu0 %v18658_v4  ;;  %v18724_v3 = vld [vmem:[%s20180_s17 + $0x50] ss:$40 sps:$4 sm:$0xff]   ;;  %v18732_v6 = vld [vmem:[%s20180_s17 + $0xa4] ss:$40 sps:$4 sm:$0xff]   ;;  %p19737_p10 = scmp.lt.s32.totalorder %s19735_s30, %s19729_s15 }
 0x5d3   : > { %v10048_v20 = vmax.f32 %v16487_v12, 0.0  ;;  %10011 = vmatpush1.bf16.msra.mxu1 %v18661_v8  ;;  %9840 = vmatprep.subr.bf16.mxu0 %v18666_v9  ;;  %v18727_v4 = vld [vmem:[%s20180_s17 + $0x58] ss:$40 sps:$4 sm:$0xff]   ;;  %v18735_v7 = vld [vmem:[%s20180_s17 + $0xac] ss:$40 sps:$4 sm:$0xff]  }
 0x5d4   : > { %v21619_v22 = vpack.c.bf16 %v10047_v15, %v10041_v14  ;;  %10012 = vmatprep.subr.bf16.mxu1 %v18669_v11  ;;  %v18733_v8 = vld [vmem:[%s20180_s17 + $0xa8] ss:$40 sps:$4 sm:$0xff]   ;;  %v18738_v9 = vld [vmem:[%s20180_s17 + $0xf4] ss:$40 sps:$4 sm:$0xff]   ;;  %v18739_v11 = vld [vmem:[%s20180_s17 + $0xf8] ss:$40 sps:$4 sm:$0xff]   ;;  %p19738_p11 = por %p19737_p10, %p19736_p6 }
 0x5d5   : > { %v21622_v27 = vpack.c.bf16 %v10048_v20, %v10042_v19  ;;  %v18741_v10 = vld [vmem:[%s20180_s17 + $0xfc] ss:$40 sps:$4 sm:$0xff]   ;;  %v18736_v34 = vld [vmem:[%s20180_s17 + $0xf0] ss:$40 sps:$4 sm:$0xff]   ;;  %v18747_v14 = vld [vmem:[%s20180_s17 + $0x14c] ss:$40 sps:$4 sm:$0xff]  }
 0x5d6   : > { %9841 = vmatpush1.bf16.msra.mxu0 %v18664_v58  ;;  %v18744_v12 = vld [vmem:[%s20180_s17 + $0x144] ss:$40 sps:$4 sm:$0xff]   ;;  %v18742_v15 = vld [vmem:[%s20180_s17 + $0x140] ss:$40 sps:$4 sm:$0xff]   ;;  %v18750_v19 = vld [vmem:[%s20180_s17 + $0x194] ss:$40 sps:$4 sm:$0xff]   ;;  %p19739_p5 = pnand %p19738_p11, %p19732_p0 }
 0x5d7   : > { %10013 = vmatpush1.bf16.msra.mxu1 %v18667_v21  ;;  %9842 = vmatprep.subr.bf16.mxu0 %v18672_v48  ;;  %v18745_v58 = vld [vmem:[%s20180_s17 + $0x148] ss:$40 sps:$4 sm:$0xff]   ;;  %v18753_v20 = vld [vmem:[%s20180_s17 + $0x19c] ss:$40 sps:$4 sm:$0xff]   ;;  %v18751_v48 = vld [vmem:[%s20180_s17 + $0x198] ss:$40 sps:$4 sm:$0xff]  }
 0x5d8   : > { %10014 = vmatprep.subr.bf16.mxu1 %v18675_v23  ;;  %v18748_v21 = vld [vmem:[%s20180_s17 + $0x190] ss:$40 sps:$4 sm:$0xff]   ;;  %v18756_v23 = vld [vmem:[%s20180_s17 + $0x1e4] ss:$40 sps:$4 sm:$0xff]  }
 0x5da   : > { %9843 = vmatpush1.bf16.msra.mxu0 %v18670_v13  ;;  %v18759_v13 = vld [vmem:[%s20180_s17 + $0x1ec] ss:$40 sps:$4 sm:$0xff]  }
 0x5db   : > { %10015 = vmatpush1.bf16.msra.mxu1 %v18673_v28  ;;  %9844 = vmatprep.subr.bf16.mxu0 %v18678_v16  ;;  %v18754_v28 = vld [vmem:[%s20180_s17 + $0x1e0] ss:$40 sps:$4 sm:$0xff]  }
 0x5dc   : > { %10016 = vmatprep.subr.bf16.mxu1 %v18681_v17  ;;  %v18757_v16 = vld [vmem:[%s20180_s17 + $0x1e8] ss:$40 sps:$4 sm:$0xff]   ;;  %v18762_v17 = vld [vmem:[%s20180_s17 + $0x234] ss:$40 sps:$4 sm:$0xff]  }
 0x5de   : > { %9845 = vmatpush1.bf16.msra.mxu0 %v18676_v30  ;;  %v18765_v30 = vld [vmem:[%s20180_s17 + $0x23c] ss:$40 sps:$4 sm:$0xff]  }
 0x5df   : > { %10017 = vmatpush1.bf16.msra.mxu1 %v18679_v31  ;;  %9846 = vmatprep.subr.bf16.mxu0 %v18684_v32  ;;  %v18760_v31 = vld [vmem:[%s20180_s17 + $0x230] ss:$40 sps:$4 sm:$0xff]  }
 0x5e0   : > { %10018 = vmatprep.subr.bf16.mxu1 %v18687_v49  ;;  %v18763_v32 = vld [vmem:[%s20180_s17 + $0x238] ss:$40 sps:$4 sm:$0xff]   ;;  %v18768_v49 = vld [vmem:[%s20180_s17 + $0x284] ss:$40 sps:$4 sm:$0xff]  }
 0x5e2   : > { %9847 = vmatpush1.bf16.msra.mxu0 %v18682_v35  ;;  %v18771_v35 = vld [vmem:[%s20180_s17 + $0x28c] ss:$40 sps:$4 sm:$0xff]  }
 0x5e3   : > { %10019 = vmatpush1.bf16.msra.mxu1 %v18685_v36  ;;  %9848 = vmatprep.subr.bf16.mxu0 %v18690_v37  ;;  %v18766_v36 = vld [vmem:[%s20180_s17 + $0x280] ss:$40 sps:$4 sm:$0xff]  }
 0x5e4   : > { %10020 = vmatprep.subr.bf16.mxu1 %v18693_v40  ;;  %v18769_v37 = vld [vmem:[%s20180_s17 + $0x288] ss:$40 sps:$4 sm:$0xff]   ;;  %v18774_v40 = vld [vmem:[%s20180_s17 + $0x2d4] ss:$40 sps:$4 sm:$0xff]  }
 0x5e6   : > { %9849 = vmatpush1.bf16.msra.mxu0 %v18688_v25  ;;  %v18777_v25 = vld [vmem:[%s20180_s17 + $0x2dc] ss:$40 sps:$4 sm:$0xff]  }
 0x5e7   : > { %10021 = vmatpush1.bf16.msra.mxu1 %v18691_v26  ;;  %9850 = vmatprep.subr.bf16.mxu0 %v18696_v41  ;;  %v18772_v26 = vld [vmem:[%s20180_s17 + $0x2d0] ss:$40 sps:$4 sm:$0xff]  }
 0x5e8   : > { %10022 = vmatprep.subr.bf16.mxu1 %v18699_v42  ;;  %v18775_v41 = vld [vmem:[%s20180_s17 + $0x2d8] ss:$40 sps:$4 sm:$0xff]   ;;  %v18780_v42 = vld [vmem:[%s20180_s17 + $0x324] ss:$40 sps:$4 sm:$0xff]  }
 0x5ea   : > { %9851 = vmatpush1.bf16.msra.mxu0 %v18694_v38  ;;  %v18783_v38 = vld [vmem:[%s20180_s17 + $0x32c] ss:$40 sps:$4 sm:$0xff]  }
 0x5eb   : > { %10023 = vmatpush1.bf16.msra.mxu1 %v18697_v43  ;;  %9852 = vmatprep.subr.bf16.mxu0 %v18702_v44  ;;  %v18778_v43 = vld [vmem:[%s20180_s17 + $0x320] ss:$40 sps:$4 sm:$0xff]  }
 0x5ec   : > { %10024 = vmatprep.subr.bf16.mxu1 %v18705_v45  ;;  %v18781_v44 = vld [vmem:[%s20180_s17 + $0x328] ss:$40 sps:$4 sm:$0xff]   ;;  %v18786_v45 = vld [vmem:[%s20180_s17 + $0x374] ss:$40 sps:$4 sm:$0xff]  }
 0x5ee   : > { %9853 = vmatpush1.bf16.msra.mxu0 %v18700_v33  ;;  %v18789_v33 = vld [vmem:[%s20180_s17 + $0x37c] ss:$40 sps:$4 sm:$0xff]  }
 0x5ef   : > { %10025 = vmatpush1.bf16.msra.mxu1 %v18703_v46  ;;  %9854 = vmatprep.subr.bf16.mxu0 %v18708_v50  ;;  %v18784_v46 = vld [vmem:[%s20180_s17 + $0x370] ss:$40 sps:$4 sm:$0xff]  }
 0x5f0   : > { %10026 = vmatprep.subr.bf16.mxu1 %v18711_v5  ;;  %v18787_v50 = vld [vmem:[%s20180_s17 + $0x378] ss:$40 sps:$4 sm:$0xff]   ;;  %v18792_v5 = vld [vmem:[%s20180_s17 + $0x3c4] ss:$40 sps:$4 sm:$0xff]  }
 0x5f2   : > { %9855 = vmatpush1.bf16.msra.mxu0 %v18706_v47  ;;  %v18795_v47 = vld [vmem:[%s20180_s17 + $0x3cc] ss:$40 sps:$4 sm:$0xff]  }
 0x5f3   : > { %10027 = vmatpush1.bf16.msra.mxu1 %v18709_v51  ;;  %9856 = vmatprep.subr.bf16.mxu0 %v18714_v53  ;;  %v18790_v51 = vld [vmem:[%s20180_s17 + $0x3c0] ss:$40 sps:$4 sm:$0xff]  }
 0x5f4   : > { %10028 = vmatprep.subr.bf16.mxu1 %v18717_v54  ;;  %v18793_v53 = vld [vmem:[%s20180_s17 + $0x3c8] ss:$40 sps:$4 sm:$0xff]   ;;  %v18798_v54 = vld [vmem:[%s20180_s17 + $0x414] ss:$40 sps:$4 sm:$0xff]  }
 0x5f6   : > { %9857 = vmatpush1.bf16.msra.mxu0 %v18712_v55  ;;  %v18801_v55 = vld [vmem:[%s20180_s17 + $0x41c] ss:$40 sps:$4 sm:$0xff]  }
 0x5f7   : > { %10029 = vmatpush1.bf16.msra.mxu1 %v18715_v24  ;;  %11819 = vmatprep.subr.bf16.mxu0 %v18720_v18  ;;  %v18796_v24 = vld [vmem:[%s20180_s17 + $0x410] ss:$40 sps:$4 sm:$0xff]  }
 0x5f8   : > { %11948 = vmatprep.subr.bf16.mxu1 %v18723_v29  ;;  %v18799_v18 = vld [vmem:[%s20180_s17 + $0x418] ss:$40 sps:$4 sm:$0xff]   ;;  %v18804_v29 = vld [vmem:[%s20180_s17 + $0x464] ss:$40 sps:$4 sm:$0xff]  }
 0x5f9   : > { %9859 = vmatmul.mubr.bf16.vlgmr.msra.gmra.mrb[16].mxu0 %v21027_v39 }
 0x5fa   : > { %10031 = vmatmul.mubr.bf16.vlgmr.msra.gmra.mrb[16].mxu1 %v21027_v39  ;;  %11820 = vmatpush1.bf16.msra.mxu0 %v18718_v59  ;;  %v18730_v39 = vld [vmem:[%s20180_s17 + $0xa0] ss:$40 sps:$4 sm:$0xff]   ;;  %v18807_v59 = vld [vmem:[%s20180_s17 + $0x46c] ss:$40 sps:$4 sm:$0xff]  }
 0x5fb   : > { %11851 = vmatprep.mubr.bf16.mxu0 %v21622_v27  ;;  %11949 = vmatpush1.bf16.msra.mxu1 %v18721_v60  ;;  %v18802_v60 = vld [vmem:[%s20180_s17 + $0x460] ss:$40 sps:$4 sm:$0xff]  }
 0x5fc   : > { %11980 = vmatprep.mubr.bf16.mxu1 %v21622_v27  ;;  %11821 = vmatprep.subr.bf16.mxu0 %v18726_v61  ;;  %v18805_v61 = vld [vmem:[%s20180_s17 + $0x468] ss:$40 sps:$4 sm:$0xff]  }
 0x5fd   : > { %11950 = vmatprep.subr.bf16.mxu1 %v18729_v62  ;;  %v18810_v62 = vld [vmem:[%s20180_s17 + $0x4b4] ss:$40 sps:$4 sm:$0xff]  }
 0x5fe   : > { %11822 = vmatpush1.bf16.msra.mxu0 %v18724_v3  ;;  %v18813_v3 = vld [vmem:[%s20180_s17 + $0x4bc] ss:$40 sps:$4 sm:$0xff]  }
 0x5ff   : > { %11951 = vmatpush1.bf16.msra.mxu1 %v18727_v4  ;;  %11823 = vmatprep.subr.bf16.mxu0 %v18732_v6  ;;  %v18808_v4 = vld [vmem:[%s20180_s17 + $0x4b0] ss:$40 sps:$4 sm:$0xff]  }
 0x600   : > { %11952 = vmatprep.subr.bf16.mxu1 %v18735_v7  ;;  %v18811_v6 = vld [vmem:[%s20180_s17 + $0x4b8] ss:$40 sps:$4 sm:$0xff]   ;;  %v18816_v7 = vld [vmem:[%s20180_s17 + $0x504] ss:$40 sps:$4 sm:$0xff]  }
 0x602   : > { %11824 = vmatpush1.bf16.msra.mxu0 %v18730_v39  ;;  %v18819_v39 = vld [vmem:[%s20180_s17 + $0x50c] ss:$40 sps:$4 sm:$0xff]  }
 0x603   : > { %11953 = vmatpush1.bf16.msra.mxu1 %v18733_v8  ;;  %11825 = vmatprep.subr.bf16.mxu0 %v18738_v9  ;;  %v18814_v8 = vld [vmem:[%s20180_s17 + $0x500] ss:$40 sps:$4 sm:$0xff]  }
 0x604   : > { %11954 = vmatprep.subr.bf16.mxu1 %v18741_v10  ;;  %v18817_v9 = vld [vmem:[%s20180_s17 + $0x508] ss:$40 sps:$4 sm:$0xff]   ;;  %v18822_v10 = vld [vmem:[%s20180_s17 + $0x554] ss:$40 sps:$4 sm:$0xff]  }
 0x606   : > { %11826 = vmatpush1.bf16.msra.mxu0 %v18736_v34  ;;  %v18825_v34 = vld [vmem:[%s20180_s17 + $0x55c] ss:$40 sps:$4 sm:$0xff]  }
 0x607   : > { %11955 = vmatpush1.bf16.msra.mxu1 %v18739_v11  ;;  %11827 = vmatprep.subr.bf16.mxu0 %v18744_v12  ;;  %v18820_v11 = vld [vmem:[%s20180_s17 + $0x550] ss:$40 sps:$4 sm:$0xff]  }
 0x608   : > { %11956 = vmatprep.subr.bf16.mxu1 %v18747_v14  ;;  %v18823_v12 = vld [vmem:[%s20180_s17 + $0x558] ss:$40 sps:$4 sm:$0xff]   ;;  %v18828_v14 = vld [vmem:[%s20180_s17 + $0x5a4] ss:$40 sps:$4 sm:$0xff]  }
 0x60a   : > { %11828 = vmatpush1.bf16.msra.mxu0 %v18742_v15  ;;  %v18831_v15 = vld [vmem:[%s20180_s17 + $0x5ac] ss:$40 sps:$4 sm:$0xff]  }
 0x60b   : > { %11957 = vmatpush1.bf16.msra.mxu1 %v18745_v58  ;;  %11829 = vmatprep.subr.bf16.mxu0 %v18750_v19  ;;  %v18826_v58 = vld [vmem:[%s20180_s17 + $0x5a0] ss:$40 sps:$4 sm:$0xff]  }
 0x60c   : > { %11958 = vmatprep.subr.bf16.mxu1 %v18753_v20  ;;  %v18829_v19 = vld [vmem:[%s20180_s17 + $0x5a8] ss:$40 sps:$4 sm:$0xff]   ;;  %v18834_v20 = vld [vmem:[%s20180_s17 + $0x5f4] ss:$40 sps:$4 sm:$0xff]  }
 0x60e   : > { %11830 = vmatpush1.bf16.msra.mxu0 %v18748_v21  ;;  %v18837_v21 = vld [vmem:[%s20180_s17 + $0x5fc] ss:$40 sps:$4 sm:$0xff]  }
 0x60f   : > { %11959 = vmatpush1.bf16.msra.mxu1 %v18751_v48  ;;  %11831 = vmatprep.subr.bf16.mxu0 %v18756_v23  ;;  %v18832_v48 = vld [vmem:[%s20180_s17 + $0x5f0] ss:$40 sps:$4 sm:$0xff]  }
 0x610   : > { %11960 = vmatprep.subr.bf16.mxu1 %v18759_v13  ;;  %v18835_v23 = vld [vmem:[%s20180_s17 + $0x5f8] ss:$40 sps:$4 sm:$0xff]   ;;  %v18840_v13 = vld [vmem:[%s20180_s17 + $0x644] ss:$40 sps:$4 sm:$0xff]  }
 0x612   : > { %11832 = vmatpush1.bf16.msra.mxu0 %v18754_v28  ;;  %v18843_v28 = vld [vmem:[%s20180_s17 + $0x64c] ss:$40 sps:$4 sm:$0xff]  }
 0x613   : > { %11961 = vmatpush1.bf16.msra.mxu1 %v18757_v16  ;;  %11833 = vmatprep.subr.bf16.mxu0 %v18762_v17  ;;  %v18838_v16 = vld [vmem:[%s20180_s17 + $0x640] ss:$40 sps:$4 sm:$0xff]  }
 0x614   : > { %11962 = vmatprep.subr.bf16.mxu1 %v18765_v30  ;;  %v18841_v17 = vld [vmem:[%s20180_s17 + $0x648] ss:$40 sps:$4 sm:$0xff]   ;;  %v18846_v30 = vld [vmem:[%s20180_s17 + $0x694] ss:$40 sps:$4 sm:$0xff]  }
 0x616   : > { %11834 = vmatpush1.bf16.msra.mxu0 %v18760_v31  ;;  %v18849_v31 = vld [vmem:[%s20180_s17 + $0x69c] ss:$40 sps:$4 sm:$0xff]  }
 0x617   : > { %11963 = vmatpush1.bf16.msra.mxu1 %v18763_v32  ;;  %11835 = vmatprep.subr.bf16.mxu0 %v18768_v49  ;;  %v18844_v32 = vld [vmem:[%s20180_s17 + $0x690] ss:$40 sps:$4 sm:$0xff]  }
 0x618   : > { %11964 = vmatprep.subr.bf16.mxu1 %v18771_v35  ;;  %v18847_v49 = vld [vmem:[%s20180_s17 + $0x698] ss:$40 sps:$4 sm:$0xff]   ;;  %v18852_v35 = vld [vmem:[%s20180_s17 + $0x6e4] ss:$40 sps:$4 sm:$0xff]  }
 0x61a   : > { %11836 = vmatpush1.bf16.msra.mxu0 %v18766_v36  ;;  %v18855_v36 = vld [vmem:[%s20180_s17 + $0x6ec] ss:$40 sps:$4 sm:$0xff]  }
 0x61b   : > { %11965 = vmatpush1.bf16.msra.mxu1 %v18769_v37  ;;  %11837 = vmatprep.subr.bf16.mxu0 %v18774_v40  ;;  %v18850_v37 = vld [vmem:[%s20180_s17 + $0x6e0] ss:$40 sps:$4 sm:$0xff]  }
 0x61c   : > { %11966 = vmatprep.subr.bf16.mxu1 %v18777_v25  ;;  %v18853_v40 = vld [vmem:[%s20180_s17 + $0x6e8] ss:$40 sps:$4 sm:$0xff]   ;;  %v18858_v25 = vld [vmem:[%s20180_s17 + $0x734] ss:$40 sps:$4 sm:$0xff]  }
 0x61e   : > { %11838 = vmatpush1.bf16.msra.mxu0 %v18772_v26  ;;  %v18861_v26 = vld [vmem:[%s20180_s17 + $0x73c] ss:$40 sps:$4 sm:$0xff]  }
 0x61f   : > { %11967 = vmatpush1.bf16.msra.mxu1 %v18775_v41  ;;  %11839 = vmatprep.subr.bf16.mxu0 %v18780_v42  ;;  %v18856_v41 = vld [vmem:[%s20180_s17 + $0x730] ss:$40 sps:$4 sm:$0xff]  }
 0x620   : > { %11968 = vmatprep.subr.bf16.mxu1 %v18783_v38  ;;  %v18859_v42 = vld [vmem:[%s20180_s17 + $0x738] ss:$40 sps:$4 sm:$0xff]   ;;  %v18864_v38 = vld [vmem:[%s20180_s17 + $0x784] ss:$40 sps:$4 sm:$0xff]  }
 0x622   : > { %11840 = vmatpush1.bf16.msra.mxu0 %v18778_v43  ;;  %v18867_v43 = vld [vmem:[%s20180_s17 + $0x78c] ss:$40 sps:$4 sm:$0xff]  }
 0x623   : > { %11969 = vmatpush1.bf16.msra.mxu1 %v18781_v44  ;;  %11841 = vmatprep.subr.bf16.mxu0 %v18786_v45  ;;  %v18862_v44 = vld [vmem:[%s20180_s17 + $0x780] ss:$40 sps:$4 sm:$0xff]  }
 0x624   : > { %11970 = vmatprep.subr.bf16.mxu1 %v18789_v33  ;;  %v18865_v45 = vld [vmem:[%s20180_s17 + $0x788] ss:$40 sps:$4 sm:$0xff]   ;;  %v18870_v33 = vld [vmem:[%s20180_s17 + $0x7d4] ss:$40 sps:$4 sm:$0xff]  }
 0x626   : > { %11842 = vmatpush1.bf16.msra.mxu0 %v18784_v46  ;;  %v18873_v46 = vld [vmem:[%s20180_s17 + $0x7dc] ss:$40 sps:$4 sm:$0xff]  }
 0x627   : > { %11971 = vmatpush1.bf16.msra.mxu1 %v18787_v50  ;;  %11843 = vmatprep.subr.bf16.mxu0 %v18792_v5  ;;  %v18868_v50 = vld [vmem:[%s20180_s17 + $0x7d0] ss:$40 sps:$4 sm:$0xff]  }
 0x628   : > { %11972 = vmatprep.subr.bf16.mxu1 %v18795_v47  ;;  %v18871_v5 = vld [vmem:[%s20180_s17 + $0x7d8] ss:$40 sps:$4 sm:$0xff]   ;;  %v18876_v47 = vld [vmem:[%s20180_s17 + $0x824] ss:$40 sps:$4 sm:$0xff]  }
 0x62a   : > { %11844 = vmatpush1.bf16.msra.mxu0 %v18790_v51  ;;  %v18879_v51 = vld [vmem:[%s20180_s17 + $0x82c] ss:$40 sps:$4 sm:$0xff]  }
 0x62b   : > { %11973 = vmatpush1.bf16.msra.mxu1 %v18793_v53  ;;  %11845 = vmatprep.subr.bf16.mxu0 %v18798_v54  ;;  %v18874_v53 = vld [vmem:[%s20180_s17 + $0x820] ss:$40 sps:$4 sm:$0xff]  }
 0x62c   : > { %11974 = vmatprep.subr.bf16.mxu1 %v18801_v55  ;;  %v18877_v54 = vld [vmem:[%s20180_s17 + $0x828] ss:$40 sps:$4 sm:$0xff]   ;;  %v18882_v55 = vld [vmem:[%s20180_s17 + $0x874] ss:$40 sps:$4 sm:$0xff]  }
 0x62e   : > { %11846 = vmatpush1.bf16.msra.mxu0 %v18796_v24  ;;  %v18885_v24 = vld [vmem:[%s20180_s17 + $0x87c] ss:$40 sps:$4 sm:$0xff]  }
 0x62f   : > { %11975 = vmatpush1.bf16.msra.mxu1 %v18799_v18  ;;  %11847 = vmatprep.subr.bf16.mxu0 %v18804_v29  ;;  %v18880_v18 = vld [vmem:[%s20180_s17 + $0x870] ss:$40 sps:$4 sm:$0xff]  }
 0x630   : > { %11976 = vmatprep.subr.bf16.mxu1 %v18807_v59  ;;  %v18883_v29 = vld [vmem:[%s20180_s17 + $0x878] ss:$40 sps:$4 sm:$0xff]   ;;  %v18888_v59 = vld [vmem:[%s20180_s17 + $0x8c4] ss:$40 sps:$4 sm:$0xff]  }
 0x632   : > { %11848 = vmatpush1.bf16.msra.mxu0 %v18802_v60  ;;  %v18891_v60 = vld [vmem:[%s20180_s17 + $0x8cc] ss:$40 sps:$4 sm:$0xff]  }
 0x633   : > { %11977 = vmatpush1.bf16.msra.mxu1 %v18805_v61  ;;  %11849 = vmatprep.subr.bf16.mxu0 %v18810_v62  ;;  %v18886_v61 = vld [vmem:[%s20180_s17 + $0x8c0] ss:$40 sps:$4 sm:$0xff]  }
 0x634   : > { %11978 = vmatprep.subr.bf16.mxu1 %v18813_v3  ;;  %v18889_v62 = vld [vmem:[%s20180_s17 + $0x8c8] ss:$40 sps:$4 sm:$0xff]   ;;  %v18894_v3 = vld [vmem:[%s20180_s17 + $0x914] ss:$40 sps:$4 sm:$0xff]  }
 0x636   : > { %11850 = vmatpush1.bf16.msra.mxu0 %v18808_v4  ;;  %v18897_v4 = vld [vmem:[%s20180_s17 + $0x91c] ss:$40 sps:$4 sm:$0xff]  }
 0x637   : > { %11979 = vmatpush1.bf16.msra.mxu1 %v18811_v6  ;;  %11862 = vmatprep.subr.bf16.mxu0 %v18816_v7  ;;  %v18892_v6 = vld [vmem:[%s20180_s17 + $0x910] ss:$40 sps:$4 sm:$0xff]  }
 0x638   : > { %11991 = vmatprep.subr.bf16.mxu1 %v18819_v39  ;;  %v18895_v7 = vld [vmem:[%s20180_s17 + $0x918] ss:$40 sps:$4 sm:$0xff]   ;;  %v18900_v39 = vld [vmem:[%s20180_s17 + $0x964] ss:$40 sps:$4 sm:$0xff]  }
 0x639   : > { %11852 = vmatmul.mubr.bf16.vlgmr.msra.gmra.mrb[8].mxu0 %v21619_v22 }
 0x63a   : > { %11981 = vmatmul.mubr.bf16.vlgmr.msra.gmra.mrb[8].mxu1 %v21619_v22  ;;  %11863 = vmatpush1.bf16.msra.mxu0 %v18814_v8  ;;  %v18903_v8 = vld [vmem:[%s20180_s17 + $0x96c] ss:$40 sps:$4 sm:$0xff]  }
 0x63b   : > { %11992 = vmatpush1.bf16.msra.mxu1 %v18817_v9  ;;  %11864 = vmatprep.subr.bf16.mxu0 %v18822_v10  ;;  %v18898_v9 = vld [vmem:[%s20180_s17 + $0x960] ss:$40 sps:$4 sm:$0xff]  }
 0x63c   : > { %11993 = vmatprep.subr.bf16.mxu1 %v18825_v34  ;;  %v18901_v10 = vld [vmem:[%s20180_s17 + $0x968] ss:$40 sps:$4 sm:$0xff]   ;;  %v18906_v34 = vld [vmem:[%s20180_s17 + $0x9b4] ss:$40 sps:$4 sm:$0xff]  }
 0x63e   : > { %11865 = vmatpush1.bf16.msra.mxu0 %v18820_v11  ;;  %v18909_v11 = vld [vmem:[%s20180_s17 + $0x9bc] ss:$40 sps:$4 sm:$0xff]  }
 0x63f   : > { %11994 = vmatpush1.bf16.msra.mxu1 %v18823_v12  ;;  %11866 = vmatprep.subr.bf16.mxu0 %v18828_v14  ;;  %v18904_v12 = vld [vmem:[%s20180_s17 + $0x9b0] ss:$40 sps:$4 sm:$0xff]  }
 0x640   : > { %11995 = vmatprep.subr.bf16.mxu1 %v18831_v15  ;;  %v18907_v14 = vld [vmem:[%s20180_s17 + $0x9b8] ss:$40 sps:$4 sm:$0xff]   ;;  %v18912_v15 = vld [vmem:[%s20180_s17 + $0xa04] ss:$40 sps:$4 sm:$0xff]  }
 0x642   : > { %11867 = vmatpush1.bf16.msra.mxu0 %v18826_v58  ;;  %v18915_v58 = vld [vmem:[%s20180_s17 + $0xa0c] ss:$40 sps:$4 sm:$0xff]  }
 0x643   : > { %11996 = vmatpush1.bf16.msra.mxu1 %v18829_v19  ;;  %11868 = vmatprep.subr.bf16.mxu0 %v18834_v20  ;;  %v7586_v19 = vrot.slane %v21600_v52, %v20744_v0  ;;  %v7594_v20 = vrot.slane %v21600_v52, %v21013_v56 }
 0x644   : > { %11997 = vmatprep.subr.bf16.mxu1 %v18837_v21  ;;  %v7590_v21 = vrot.slane %v21600_v52, %v20750_v2 }
 0x646   : > { %11869 = vmatpush1.bf16.msra.mxu0 %v18832_v48  ;;  %v7598_v48 = vrot.slane %v21600_v52, %v21017_v57 }
 0x647   : > { %11998 = vmatpush1.bf16.msra.mxu1 %v18835_v23  ;;  %11870 = vmatprep.subr.bf16.mxu0 %v18840_v13 }
 0x648   : > { %11999 = vmatprep.subr.bf16.mxu1 %v18843_v28 }
 0x64a   : > { %11871 = vmatpush1.bf16.msra.mxu0 %v18838_v16 }
 0x64b   : > { %12000 = vmatpush1.bf16.msra.mxu1 %v18841_v17  ;;  %11872 = vmatprep.subr.bf16.mxu0 %v18846_v30 }
 0x64c   : > { %12001 = vmatprep.subr.bf16.mxu1 %v18849_v31 }
 0x64e   : > { %11873 = vmatpush1.bf16.msra.mxu0 %v18844_v32 }
 0x64f   : > { %12002 = vmatpush1.bf16.msra.mxu1 %v18847_v49  ;;  %11874 = vmatprep.subr.bf16.mxu0 %v18852_v35 }
 0x650   : > { %12003 = vmatprep.subr.bf16.mxu1 %v18855_v36 }
 0x652   : > { %11875 = vmatpush1.bf16.msra.mxu0 %v18850_v37 }
 0x653   : > { %12004 = vmatpush1.bf16.msra.mxu1 %v18853_v40  ;;  %11876 = vmatprep.subr.bf16.mxu0 %v18858_v25 }
 0x654   : > { %12005 = vmatprep.subr.bf16.mxu1 %v18861_v26 }
 0x656   : > { %11877 = vmatpush1.bf16.msra.mxu0 %v18856_v41 }
 0x657   : > { %12006 = vmatpush1.bf16.msra.mxu1 %v18859_v42  ;;  %11878 = vmatprep.subr.bf16.mxu0 %v18864_v38 }
 0x658   : > { %12007 = vmatprep.subr.bf16.mxu1 %v18867_v43 }
 0x65a   : > { %11879 = vmatpush1.bf16.msra.mxu0 %v18862_v44 }
 0x65b   : > { %12008 = vmatpush1.bf16.msra.mxu1 %v18865_v45  ;;  %11880 = vmatprep.subr.bf16.mxu0 %v18870_v33 }
 0x65c   : > { %12009 = vmatprep.subr.bf16.mxu1 %v18873_v46 }
 0x65e   : > { %11881 = vmatpush1.bf16.msra.mxu0 %v18868_v50 }
 0x65f   : > { %12010 = vmatpush1.bf16.msra.mxu1 %v18871_v5  ;;  %11882 = vmatprep.subr.bf16.mxu0 %v18876_v47 }
 0x660   : > { %12011 = vmatprep.subr.bf16.mxu1 %v18879_v51  ;;  %v18910_v51 = vld [vmem:[%s20180_s17 + $0xa00] ss:$40 sps:$4 sm:$0xff]  }
 0x662   : > { %11883 = vmatpush1.bf16.msra.mxu0 %v18874_v53  ;;  %v18913_v53 = vld [vmem:[%s20180_s17 + $0xa08] ss:$40 sps:$4 sm:$0xff]  }
 0x663   : > { %12012 = vmatpush1.bf16.msra.mxu1 %v18877_v54  ;;  %11884 = vmatprep.subr.bf16.mxu0 %v18882_v55  ;;  %v18918_v55 = vld [vmem:[%s20180_s17 + $0xa54] ss:$40 sps:$4 sm:$0xff]  }
 0x664   : > { %12013 = vmatprep.subr.bf16.mxu1 %v18885_v24  ;;  %v18921_v24 = vld [vmem:[%s20180_s17 + $0xa5c] ss:$40 sps:$4 sm:$0xff]  }
 0x666   : > { %11885 = vmatpush1.bf16.msra.mxu0 %v18880_v18  ;;  %v18916_v18 = vld [vmem:[%s20180_s17 + $0xa50] ss:$40 sps:$4 sm:$0xff]  }
 0x667   : > { %12014 = vmatpush1.bf16.msra.mxu1 %v18883_v29  ;;  %11886 = vmatprep.subr.bf16.mxu0 %v18888_v59  ;;  %v18919_v29 = vld [vmem:[%s20180_s17 + $0xa58] ss:$40 sps:$4 sm:$0xff]   ;;  %v18924_v59 = vld [vmem:[%s20180_s17 + $0xaa4] ss:$40 sps:$4 sm:$0xff]  }
 0x668   : > { %12015 = vmatprep.subr.bf16.mxu1 %v18891_v60  ;;  %v18927_v60 = vld [vmem:[%s20180_s17 + $0xaac] ss:$40 sps:$4 sm:$0xff]  }
 0x66a   : > { %11887 = vmatpush1.bf16.msra.mxu0 %v18886_v61  ;;  %v18922_v61 = vld [vmem:[%s20180_s17 + $0xaa0] ss:$40 sps:$4 sm:$0xff]  }
 0x66b   : > { %12016 = vmatpush1.bf16.msra.mxu1 %v18889_v62  ;;  %11888 = vmatprep.subr.bf16.mxu0 %v18894_v3  ;;  %v18925_v62 = vld [vmem:[%s20180_s17 + $0xaa8] ss:$40 sps:$4 sm:$0xff]   ;;  %v18930_v3 = vld [vmem:[%s20180_s17 + $0xaf4] ss:$40 sps:$4 sm:$0xff]  }
 0x66c   : > { %12017 = vmatprep.subr.bf16.mxu1 %v18897_v4  ;;  %v18933_v4 = vld [vmem:[%s20180_s17 + $0xafc] ss:$40 sps:$4 sm:$0xff]  }
 0x66e   : > { %11889 = vmatpush1.bf16.msra.mxu0 %v18892_v6  ;;  %v18928_v6 = vld [vmem:[%s20180_s17 + $0xaf0] ss:$40 sps:$4 sm:$0xff]  }
 0x66f   : > { %12018 = vmatpush1.bf16.msra.mxu1 %v18895_v7  ;;  %11890 = vmatprep.subr.bf16.mxu0 %v18900_v39  ;;  %v18931_v7 = vld [vmem:[%s20180_s17 + $0xaf8] ss:$40 sps:$4 sm:$0xff]   ;;  %v18936_v39 = vld [vmem:[%s20180_s17 + $0xb44] ss:$40 sps:$4 sm:$0xff]  }
 0x670   : > { %12019 = vmatprep.subr.bf16.mxu1 %v18903_v8  ;;  %v18939_v8 = vld [vmem:[%s20180_s17 + $0xb4c] ss:$40 sps:$4 sm:$0xff]  }
 0x672   : > { %11891 = vmatpush1.bf16.msra.mxu0 %v18898_v9  ;;  %v18934_v9 = vld [vmem:[%s20180_s17 + $0xb40] ss:$40 sps:$4 sm:$0xff]  }
 0x673   : > { %12020 = vmatpush1.bf16.msra.mxu1 %v18901_v10  ;;  %11892 = vmatprep.subr.bf16.mxu0 %v18906_v34  ;;  %v18937_v10 = vld [vmem:[%s20180_s17 + $0xb48] ss:$40 sps:$4 sm:$0xff]   ;;  %v18942_v34 = vld [vmem:[%s20180_s17 + $0xb94] ss:$40 sps:$4 sm:$0xff]  }
 0x674   : > { %12021 = vmatprep.subr.bf16.mxu1 %v18909_v11  ;;  %v18945_v11 = vld [vmem:[%s20180_s17 + $0xb9c] ss:$40 sps:$4 sm:$0xff]  }
 0x676   : > { %11893 = vmatpush1.bf16.msra.mxu0 %v18904_v12  ;;  %v18940_v12 = vld [vmem:[%s20180_s17 + $0xb90] ss:$40 sps:$4 sm:$0xff]  }
 0x677   : > { %12022 = vmatpush1.bf16.msra.mxu1 %v18907_v14  ;;  %11905 = vmatprep.subr.bf16.mxu0 %v18912_v15  ;;  %v18943_v14 = vld [vmem:[%s20180_s17 + $0xb98] ss:$40 sps:$4 sm:$0xff]   ;;  %v18948_v15 = vld [vmem:[%s20180_s17 + $0xbe4] ss:$40 sps:$4 sm:$0xff]  }
 0x678   : > { %12034 = vmatprep.subr.bf16.mxu1 %v18915_v58  ;;  %v18951_v58 = vld [vmem:[%s20180_s17 + $0xbec] ss:$40 sps:$4 sm:$0xff]  }
 0x6cc   : > { %v9860_v23 = vpop.f32.mrb[16].mxu0 }
 0x6cd   : > { %v16488_v13 = vadd.f32 %v9860_v23, %v7586_v19  ;;  %v10032_v28 = vpop.f32.mrb[16].mxu1  ;;  %v9862_v16 = vpop.f32.mrb[17].mxu0  ;;  %v18952_v23 = vld [vmem:[%s20180_s17 + $0xc30] ss:$40 sps:$4 sm:$0xff]  }
 0x6ce   : > { %v16492_v17 = vadd.f32 %v10032_v28, %v7594_v20  ;;  %v16489_v30 = vadd.f32 %v9862_v16, %v7590_v21  ;;  %v10034_v31 = vpop.f32.mrb[17].mxu1  ;;  %v9864_v32 = vpop.f32.mrb[18].mxu0  ;;  %v18960_v28 = vld [vmem:[%s20180_s17 + $0xc84] ss:$40 sps:$4 sm:$0xff]  }
 0x6cf   : > { %v16493_v49 = vadd.f32 %v10034_v31, %v7598_v48  ;;  %v16490_v35 = vadd.f32 %v9864_v32, %v7586_v19  ;;  %v10036_v36 = vpop.f32.mrb[18].mxu1  ;;  %v9866_v37 = vpop.f32.mrb[19].mxu0  ;;  %v10043_v41 = vmax.f32 %v16488_v13, 0.0  ;;  %v18946_v19 = vld [vmem:[%s20180_s17 + $0xbe0] ss:$40 sps:$4 sm:$0xff]  }
 0x6d0   : > { %v16494_v40 = vadd.f32 %v10036_v36, %v7594_v20  ;;  %v16491_v25 = vadd.f32 %v9866_v37, %v7590_v21  ;;  %v10038_v26 = vpop.f32.mrb[19].mxu1  ;;  %v10045_v38 = vmax.f32 %v16492_v17, 0.0  ;;  %v10044_v43 = vmax.f32 %v16489_v30, 0.0  ;;  %v18949_v20 = vld [vmem:[%s20180_s17 + $0xbe8] ss:$40 sps:$4 sm:$0xff]  }
 0x6d1   : > { %v10049_v42 = vmax.f32 %v16490_v35, 0.0  ;;  %v16495_v52 = vadd.f32 %v10038_v26, %v7598_v48  ;;  %v10046_v33 = vmax.f32 %v16493_v49, 0.0  ;;  %v18954_v21 = vld [vmem:[%s20180_s17 + $0xc34] ss:$40 sps:$4 sm:$0xff]   ;;  %v18955_v13 = vld [vmem:[%s20180_s17 + $0xc38] ss:$40 sps:$4 sm:$0xff]  }
 0x6d2   : > { %v10051_v44 = vmax.f32 %v16494_v40, 0.0  ;;  %v10050_v45 = vmax.f32 %v16491_v25, 0.0  ;;  %v18957_v48 = vld [vmem:[%s20180_s17 + $0xc3c] ss:$40 sps:$4 sm:$0xff]   ;;  %v18963_v16 = vld [vmem:[%s20180_s17 + $0xc8c] ss:$40 sps:$4 sm:$0xff]  }
 0x6d3   : > { %v21798_v46 = vpack.c.bf16 %v10049_v42, %v10043_v41  ;;  %v10052_v50 = vmax.f32 %v16495_v52, 0.0  ;;  %v18958_v17 = vld [vmem:[%s20180_s17 + $0xc80] ss:$40 sps:$4 sm:$0xff]   ;;  %v18966_v31 = vld [vmem:[%s20180_s17 + $0xcd4] ss:$40 sps:$4 sm:$0xff]  }
 0x6d4   : > { %v21800_v5 = vpack.c.bf16 %v10051_v44, %v10045_v38  ;;  %v21802_v47 = vpack.c.bf16 %v10050_v45, %v10044_v43  ;;  %v18961_v30 = vld [vmem:[%s20180_s17 + $0xc88] ss:$40 sps:$4 sm:$0xff]   ;;  %v18969_v32 = vld [vmem:[%s20180_s17 + $0xcdc] ss:$40 sps:$4 sm:$0xff]   ;;  %v18967_v35 = vld [vmem:[%s20180_s17 + $0xcd8] ss:$40 sps:$4 sm:$0xff]  }
 0x6d5   : > { %v21806_v54 = vpack.c.bf16 %v10052_v50, %v10046_v33  ;;  %v18964_v49 = vld [vmem:[%s20180_s17 + $0xcd0] ss:$40 sps:$4 sm:$0xff]   ;;  %v18972_v36 = vld [vmem:[%s20180_s17 + $0xd24] ss:$40 sps:$4 sm:$0xff]   ;;  %v18970_v40 = vld [vmem:[%s20180_s17 + $0xd20] ss:$40 sps:$4 sm:$0xff]  }
 0x6d6   : > { %11894 = vmatprep.mubr.bf16.mxu0 %v21802_v47  ;;  %12023 = vmatprep.mubr.bf16.mxu1 %v21802_v47  ;;  %v18975_v37 = vld [vmem:[%s20180_s17 + $0xd2c] ss:$40 sps:$4 sm:$0xff]   ;;  %v18973_v25 = vld [vmem:[%s20180_s17 + $0xd28] ss:$40 sps:$4 sm:$0xff]   ;;  %v18981_v41 = vld [vmem:[%s20180_s17 + $0xd7c] ss:$40 sps:$4 sm:$0xff]  }
 0x6d7   : > { %11895 = vmatmul.mubr.bf16.vlgmr.msra.gmra.mrb[8].mxu0 %v21798_v46  ;;  %12024 = vmatmul.mubr.bf16.vlgmr.msra.gmra.mrb[8].mxu1 %v21798_v46  ;;  %v18978_v26 = vld [vmem:[%s20180_s17 + $0xd74] ss:$40 sps:$4 sm:$0xff]   ;;  %v18976_v42 = vld [vmem:[%s20180_s17 + $0xd70] ss:$40 sps:$4 sm:$0xff]   ;;  %v18984_v38 = vld [vmem:[%s20180_s17 + $0xdc4] ss:$40 sps:$4 sm:$0xff]  }
 0x6d8   : > { %11906 = vmatpush1.bf16.msra.mxu0 %v18910_v51  ;;  %12035 = vmatpush1.bf16.msra.mxu1 %v18913_v53  ;;  %v18979_v52 = vld [vmem:[%s20180_s17 + $0xd78] ss:$40 sps:$4 sm:$0xff]   ;;  %v18987_v43 = vld [vmem:[%s20180_s17 + $0xdcc] ss:$40 sps:$4 sm:$0xff]   ;;  %v18985_v45 = vld [vmem:[%s20180_s17 + $0xdc8] ss:$40 sps:$4 sm:$0xff]  }
 0x6d9   : > { %11937 = vmatprep.mubr.bf16.mxu0 %v21806_v54  ;;  %12066 = vmatprep.mubr.bf16.mxu1 %v21806_v54  ;;  %v18982_v44 = vld [vmem:[%s20180_s17 + $0xdc0] ss:$40 sps:$4 sm:$0xff]   ;;  %v18990_v33 = vld [vmem:[%s20180_s17 + $0xe14] ss:$40 sps:$4 sm:$0xff]   ;;  %v18988_v51 = vld [vmem:[%s20180_s17 + $0xe10] ss:$40 sps:$4 sm:$0xff]  }
 0x6da   : > { %11907 = vmatprep.subr.bf16.mxu0 %v18918_v55  ;;  %12036 = vmatprep.subr.bf16.mxu1 %v18921_v24  ;;  %v18993_v50 = vld [vmem:[%s20180_s17 + $0xe1c] ss:$40 sps:$4 sm:$0xff]   ;;  %v18991_v53 = vld [vmem:[%s20180_s17 + $0xe18] ss:$40 sps:$4 sm:$0xff]   ;;  %v18999_v24 = vld [vmem:[%s20180_s17 + $0xe6c] ss:$40 sps:$4 sm:$0xff]  }
 0x6db   : > { %v18996_v55 = vld [vmem:[%s20180_s17 + $0xe64] ss:$40 sps:$4 sm:$0xff]  }
 0x6dc   : > { %11908 = vmatpush1.bf16.msra.mxu0 %v18916_v18  ;;  %12037 = vmatpush1.bf16.msra.mxu1 %v18919_v29  ;;  %v18994_v18 = vld [vmem:[%s20180_s17 + $0xe60] ss:$40 sps:$4 sm:$0xff]  }
 0x6dd   : > { %11909 = vmatprep.subr.bf16.mxu0 %v18924_v59  ;;  %12038 = vmatprep.subr.bf16.mxu1 %v18927_v60  ;;  %v18997_v29 = vld [vmem:[%s20180_s17 + $0xe68] ss:$40 sps:$4 sm:$0xff]   ;;  %v19002_v59 = vld [vmem:[%s20180_s17 + $0xeb4] ss:$40 sps:$4 sm:$0xff]  }
 0x6de   : > { %v19005_v60 = vld [vmem:[%s20180_s17 + $0xebc] ss:$40 sps:$4 sm:$0xff]  }
 0x6e0   : > { %11910 = vmatpush1.bf16.msra.mxu0 %v18922_v61  ;;  %12039 = vmatpush1.bf16.msra.mxu1 %v18925_v62  ;;  %v19000_v61 = vld [vmem:[%s20180_s17 + $0xeb0] ss:$40 sps:$4 sm:$0xff]  }
 0x6e1   : > { %11911 = vmatprep.subr.bf16.mxu0 %v18930_v3  ;;  %12040 = vmatprep.subr.bf16.mxu1 %v18933_v4  ;;  %v19003_v62 = vld [vmem:[%s20180_s17 + $0xeb8] ss:$40 sps:$4 sm:$0xff]   ;;  %v19008_v3 = vld [vmem:[%s20180_s17 + $0x14] ss:$40 sps:$4 sm:$0xff]  }
 0x6e2   : > { %v19006_v4 = vld [vmem:[%s20180_s17 + $0x10] ss:$40 sps:$4 sm:$0xff]  }
 0x6e4   : > { %11912 = vmatpush1.bf16.msra.mxu0 %v18928_v6  ;;  %12041 = vmatpush1.bf16.msra.mxu1 %v18931_v7  ;;  %v19011_v6 = vld [vmem:[%s20180_s17 + $0x64] ss:$40 sps:$4 sm:$0xff]   ;;  %v19009_v7 = vld [vmem:[%s20180_s17 + $0x60] ss:$40 sps:$4 sm:$0xff]  }
 0x6e5   : > { %11913 = vmatprep.subr.bf16.mxu0 %v18936_v39  ;;  %12042 = vmatprep.subr.bf16.mxu1 %v18939_v8  ;;  %v19014_v39 = vld [vmem:[%s20180_s17 + $0xb4] ss:$40 sps:$4 sm:$0xff]   ;;  %v19012_v8 = vld [vmem:[%s20180_s17 + $0xb0] ss:$40 sps:$4 sm:$0xff]  }
 0x6e8   : > { %11914 = vmatpush1.bf16.msra.mxu0 %v18934_v9  ;;  %12043 = vmatpush1.bf16.msra.mxu1 %v18937_v10  ;;  %v19017_v9 = vld [vmem:[%s20180_s17 + $0x104] ss:$40 sps:$4 sm:$0xff]   ;;  %v19015_v10 = vld [vmem:[%s20180_s17 + $0x100] ss:$40 sps:$4 sm:$0xff]  }
 0x6e9   : > { %11915 = vmatprep.subr.bf16.mxu0 %v18942_v34  ;;  %12044 = vmatprep.subr.bf16.mxu1 %v18945_v11  ;;  %v19020_v34 = vld [vmem:[%s20180_s17 + $0x154] ss:$40 sps:$4 sm:$0xff]   ;;  %v19023_v11 = vld [vmem:[%s20180_s17 + $0x1a4] ss:$40 sps:$4 sm:$0xff]  }
 0x6ec   : > { %11916 = vmatpush1.bf16.msra.mxu0 %v18940_v12  ;;  %12045 = vmatpush1.bf16.msra.mxu1 %v18943_v14  ;;  %v19021_v12 = vld [vmem:[%s20180_s17 + $0x1a0] ss:$40 sps:$4 sm:$0xff]   ;;  %v19026_v14 = vld [vmem:[%s20180_s17 + $0x1f4] ss:$40 sps:$4 sm:$0xff]  }
 0x6ed   : > { %11917 = vmatprep.subr.bf16.mxu0 %v18948_v15  ;;  %12046 = vmatprep.subr.bf16.mxu1 %v18951_v58  ;;  %v19024_v15 = vld [vmem:[%s20180_s17 + $0x1f0] ss:$40 sps:$4 sm:$0xff]   ;;  %v19029_v58 = vld [vmem:[%s20180_s17 + $0x244] ss:$40 sps:$4 sm:$0xff]  }
 0x6f0   : > { %11918 = vmatpush1.bf16.msra.mxu0 %v18946_v19  ;;  %12047 = vmatpush1.bf16.msra.mxu1 %v18949_v20  ;;  %v19027_v19 = vld [vmem:[%s20180_s17 + $0x240] ss:$40 sps:$4 sm:$0xff]   ;;  %v19032_v20 = vld [vmem:[%s20180_s17 + $0x294] ss:$40 sps:$4 sm:$0xff]  }
 0x6f1   : > { %11919 = vmatprep.subr.bf16.mxu0 %v18954_v21  ;;  %12048 = vmatprep.subr.bf16.mxu1 %v18957_v48  ;;  %v19128_v21 = vld [vmem:[%s20180_s17 + $0x1c] ss:$40 sps:$4 sm:$0xff]   ;;  %v19030_v48 = vld [vmem:[%s20180_s17 + $0x290] ss:$40 sps:$4 sm:$0xff]  }
 0x6f4   : > { %11920 = vmatpush1.bf16.msra.mxu0 %v18952_v23  ;;  %12049 = vmatpush1.bf16.msra.mxu1 %v18955_v13  ;;  %v19126_v23 = vld [vmem:[%s20180_s17 + $0x18] ss:$40 sps:$4 sm:$0xff]   ;;  %v19035_v13 = vld [vmem:[%s20180_s17 + $0x2e4] ss:$40 sps:$4 sm:$0xff]  }
 0x6f5   : > { %11921 = vmatprep.subr.bf16.mxu0 %v18960_v28  ;;  %12050 = vmatprep.subr.bf16.mxu1 %v18963_v16  ;;  %v19134_v28 = vld [vmem:[%s20180_s17 + $0x6c] ss:$40 sps:$4 sm:$0xff]   ;;  %v19033_v16 = vld [vmem:[%s20180_s17 + $0x2e0] ss:$40 sps:$4 sm:$0xff]  }
 0x6f8   : > { %11922 = vmatpush1.bf16.msra.mxu0 %v18958_v17  ;;  %12051 = vmatpush1.bf16.msra.mxu1 %v18961_v30  ;;  %v19132_v17 = vld [vmem:[%s20180_s17 + $0x68] ss:$40 sps:$4 sm:$0xff]   ;;  %v19038_v30 = vld [vmem:[%s20180_s17 + $0x334] ss:$40 sps:$4 sm:$0xff]  }
 0x6f9   : > { %11923 = vmatprep.subr.bf16.mxu0 %v18966_v31  ;;  %12052 = vmatprep.subr.bf16.mxu1 %v18969_v32  ;;  %v19140_v31 = vld [vmem:[%s20180_s17 + $0xbc] ss:$40 sps:$4 sm:$0xff]   ;;  %v19036_v32 = vld [vmem:[%s20180_s17 + $0x330] ss:$40 sps:$4 sm:$0xff]  }
 0x6fc   : > { %11924 = vmatpush1.bf16.msra.mxu0 %v18964_v49  ;;  %12053 = vmatpush1.bf16.msra.mxu1 %v18967_v35  ;;  %v19138_v49 = vld [vmem:[%s20180_s17 + $0xb8] ss:$40 sps:$4 sm:$0xff]   ;;  %v19041_v35 = vld [vmem:[%s20180_s17 + $0x384] ss:$40 sps:$4 sm:$0xff]  }
 0x6fd   : > { %11925 = vmatprep.subr.bf16.mxu0 %v18972_v36  ;;  %12054 = vmatprep.subr.bf16.mxu1 %v18975_v37  ;;  %v19146_v36 = vld [vmem:[%s20180_s17 + $0x10c] ss:$40 sps:$4 sm:$0xff]   ;;  %v19039_v37 = vld [vmem:[%s20180_s17 + $0x380] ss:$40 sps:$4 sm:$0xff]  }
 0x700   : > { %11926 = vmatpush1.bf16.msra.mxu0 %v18970_v40  ;;  %12055 = vmatpush1.bf16.msra.mxu1 %v18973_v25  ;;  %v19144_v40 = vld [vmem:[%s20180_s17 + $0x108] ss:$40 sps:$4 sm:$0xff]   ;;  %v19044_v25 = vld [vmem:[%s20180_s17 + $0x3d4] ss:$40 sps:$4 sm:$0xff]  }
 0x701   : > { %11927 = vmatprep.subr.bf16.mxu0 %v18978_v26  ;;  %12056 = vmatprep.subr.bf16.mxu1 %v18981_v41  ;;  %v19152_v26 = vld [vmem:[%s20180_s17 + $0x15c] ss:$40 sps:$4 sm:$0xff]   ;;  %v19042_v41 = vld [vmem:[%s20180_s17 + $0x3d0] ss:$40 sps:$4 sm:$0xff]  }
 0x704   : > { %11928 = vmatpush1.bf16.msra.mxu0 %v18976_v42  ;;  %12057 = vmatpush1.bf16.msra.mxu1 %v18979_v52  ;;  %v19150_v42 = vld [vmem:[%s20180_s17 + $0x158] ss:$40 sps:$4 sm:$0xff]   ;;  %v19047_v52 = vld [vmem:[%s20180_s17 + $0x424] ss:$40 sps:$4 sm:$0xff]  }
 0x705   : > { %11929 = vmatprep.subr.bf16.mxu0 %v18984_v38  ;;  %12058 = vmatprep.subr.bf16.mxu1 %v18987_v43  ;;  %v19158_v38 = vld [vmem:[%s20180_s17 + $0x1ac] ss:$40 sps:$4 sm:$0xff]   ;;  %v19045_v43 = vld [vmem:[%s20180_s17 + $0x420] ss:$40 sps:$4 sm:$0xff]  }
 0x708   : > { %11930 = vmatpush1.bf16.msra.mxu0 %v18982_v44  ;;  %12059 = vmatpush1.bf16.msra.mxu1 %v18985_v45  ;;  %v19156_v44 = vld [vmem:[%s20180_s17 + $0x1a8] ss:$40 sps:$4 sm:$0xff]   ;;  %v19050_v45 = vld [vmem:[%s20180_s17 + $0x474] ss:$40 sps:$4 sm:$0xff]  }
 0x709   : > { %11931 = vmatprep.subr.bf16.mxu0 %v18990_v33  ;;  %12060 = vmatprep.subr.bf16.mxu1 %v18993_v50  ;;  %v19164_v33 = vld [vmem:[%s20180_s17 + $0x1fc] ss:$40 sps:$4 sm:$0xff]   ;;  %v19048_v50 = vld [vmem:[%s20180_s17 + $0x470] ss:$40 sps:$4 sm:$0xff]  }
 0x70c   : > { %11932 = vmatpush1.bf16.msra.mxu0 %v18988_v51  ;;  %12061 = vmatpush1.bf16.msra.mxu1 %v18991_v53  ;;  %v19162_v51 = vld [vmem:[%s20180_s17 + $0x1f8] ss:$40 sps:$4 sm:$0xff]   ;;  %v19053_v53 = vld [vmem:[%s20180_s17 + $0x4c4] ss:$40 sps:$4 sm:$0xff]  }
 0x70d   : > { %11933 = vmatprep.subr.bf16.mxu0 %v18996_v55  ;;  %12062 = vmatprep.subr.bf16.mxu1 %v18999_v24  ;;  %v19170_v55 = vld [vmem:[%s20180_s17 + $0x24c] ss:$40 sps:$4 sm:$0xff]   ;;  %v19051_v24 = vld [vmem:[%s20180_s17 + $0x4c0] ss:$40 sps:$4 sm:$0xff]  }
 0x710   : > { %11934 = vmatpush1.bf16.msra.mxu0 %v18994_v18  ;;  %12063 = vmatpush1.bf16.msra.mxu1 %v18997_v29  ;;  %v19168_v18 = vld [vmem:[%s20180_s17 + $0x248] ss:$40 sps:$4 sm:$0xff]   ;;  %v19056_v29 = vld [vmem:[%s20180_s17 + $0x514] ss:$40 sps:$4 sm:$0xff]  }
 0x711   : > { %11935 = vmatprep.subr.bf16.mxu0 %v19002_v59  ;;  %12064 = vmatprep.subr.bf16.mxu1 %v19005_v60  ;;  %v19176_v59 = vld [vmem:[%s20180_s17 + $0x29c] ss:$40 sps:$4 sm:$0xff]   ;;  %v19054_v60 = vld [vmem:[%s20180_s17 + $0x510] ss:$40 sps:$4 sm:$0xff]  }
 0x714   : > { %11936 = vmatpush1.bf16.msra.mxu0 %v19000_v61  ;;  %12065 = vmatpush1.bf16.msra.mxu1 %v19003_v62  ;;  %v19174_v61 = vld [vmem:[%s20180_s17 + $0x298] ss:$40 sps:$4 sm:$0xff]   ;;  %v19059_v62 = vld [vmem:[%s20180_s17 + $0x564] ss:$40 sps:$4 sm:$0xff]  }
 0x715   : > { %12077 = vmatprep.subr.bf16.mxu0 %v19008_v3  ;;  %13410 = vmatprep.subr.bf16.mxu1 %v19128_v21  ;;  %v19180_v3 = vld [vmem:[%s20180_s17 + $0x2e8] ss:$40 sps:$4 sm:$0xff]   ;;  %v19074_v21 = vld [vmem:[%s20180_s17 + $0x6f4] ss:$40 sps:$4 sm:$0xff]  }
 0x717   : > { %11938 = vmatmul.mubr.bf16.vlgmr.msra.gmra.mrb[8].mxu0 %v21800_v5  ;;  %12067 = vmatmul.mubr.bf16.vlgmr.msra.gmra.mrb[8].mxu1 %v21800_v5 }
 0x718   : > { %12078 = vmatpush1.bf16.msra.mxu0 %v19006_v4  ;;  %12109 = vmatprep.mubr.bf16.mxu0 %v21622_v27  ;;  %v19018_v27 = vld [vmem:[%s20180_s17 + $0x150] ss:$40 sps:$4 sm:$0xff]   ;;  %v19182_v4 = vld [vmem:[%s20180_s17 + $0x2ec] ss:$40 sps:$4 sm:$0xff]  }
 0x719   : > { %12079 = vmatprep.subr.bf16.mxu0 %v19011_v6  ;;  %13411 = vmatpush1.bf16.msra.mxu1 %v19126_v23  ;;  %v19057_v6 = vld [vmem:[%s20180_s17 + $0x560] ss:$40 sps:$4 sm:$0xff]   ;;  %v19072_v23 = vld [vmem:[%s20180_s17 + $0x6f0] ss:$40 sps:$4 sm:$0xff]  }
 0x71a   : > { %13412 = vmatprep.subr.bf16.mxu1 %v19134_v28  ;;  %v19077_v28 = vld [vmem:[%s20180_s17 + $0x744] ss:$40 sps:$4 sm:$0xff]  }
 0x71c   : > { %12080 = vmatpush1.bf16.msra.mxu0 %v19009_v7  ;;  %v19062_v7 = vld [vmem:[%s20180_s17 + $0x5b4] ss:$40 sps:$4 sm:$0xff]  }
 0x71d   : > { %12081 = vmatprep.subr.bf16.mxu0 %v19014_v39  ;;  %13413 = vmatpush1.bf16.msra.mxu1 %v19132_v17  ;;  %v19188_v39 = vld [vmem:[%s20180_s17 + $0x33c] ss:$40 sps:$4 sm:$0xff]   ;;  %v19075_v17 = vld [vmem:[%s20180_s17 + $0x740] ss:$40 sps:$4 sm:$0xff]  }
 0x71e   : > { %13414 = vmatprep.subr.bf16.mxu1 %v19140_v31  ;;  %v19080_v31 = vld [vmem:[%s20180_s17 + $0x794] ss:$40 sps:$4 sm:$0xff]  }
 0x720   : > { %12082 = vmatpush1.bf16.msra.mxu0 %v19012_v8  ;;  %v19186_v8 = vld [vmem:[%s20180_s17 + $0x338] ss:$40 sps:$4 sm:$0xff]  }
 0x721   : > { %12083 = vmatprep.subr.bf16.mxu0 %v19017_v9  ;;  %13415 = vmatpush1.bf16.msra.mxu1 %v19138_v49  ;;  %v19065_v9 = vld [vmem:[%s20180_s17 + $0x604] ss:$40 sps:$4 sm:$0xff]   ;;  %v19078_v49 = vld [vmem:[%s20180_s17 + $0x790] ss:$40 sps:$4 sm:$0xff]  }
 0x722   : > { %13416 = vmatprep.subr.bf16.mxu1 %v19146_v36  ;;  %v19081_v36 = vld [vmem:[%s20180_s17 + $0x7e0] ss:$40 sps:$4 sm:$0xff]  }
 0x724   : > { %12084 = vmatpush1.bf16.msra.mxu0 %v19015_v10  ;;  %v19194_v10 = vld [vmem:[%s20180_s17 + $0x38c] ss:$40 sps:$4 sm:$0xff]  }
 0x725   : > { %12085 = vmatprep.subr.bf16.mxu0 %v19020_v34  ;;  %13417 = vmatpush1.bf16.msra.mxu1 %v19144_v40  ;;  %v19063_v34 = vld [vmem:[%s20180_s17 + $0x600] ss:$40 sps:$4 sm:$0xff]   ;;  %v19084_v40 = vld [vmem:[%s20180_s17 + $0x830] ss:$40 sps:$4 sm:$0xff]  }
 0x726   : > { %13418 = vmatprep.subr.bf16.mxu1 %v19152_v26  ;;  %v19087_v26 = vld [vmem:[%s20180_s17 + $0x880] ss:$40 sps:$4 sm:$0xff]  }
 0x728   : > { %12086 = vmatpush1.bf16.msra.mxu0 %v19018_v27  ;;  %v19068_v27 = vld [vmem:[%s20180_s17 + $0x654] ss:$40 sps:$4 sm:$0xff]  }
 0x729   : > { %12087 = vmatprep.subr.bf16.mxu0 %v19023_v11  ;;  %13419 = vmatpush1.bf16.msra.mxu1 %v19150_v42  ;;  %v19200_v11 = vld [vmem:[%s20180_s17 + $0x3dc] ss:$40 sps:$4 sm:$0xff]   ;;  %v19090_v42 = vld [vmem:[%s20180_s17 + $0x8d0] ss:$40 sps:$4 sm:$0xff]  }
 0x72a   : > { %13420 = vmatprep.subr.bf16.mxu1 %v19158_v38  ;;  %v19093_v38 = vld [vmem:[%s20180_s17 + $0x920] ss:$40 sps:$4 sm:$0xff]  }
 0x72c   : > { %12088 = vmatpush1.bf16.msra.mxu0 %v19021_v12  ;;  %v19198_v12 = vld [vmem:[%s20180_s17 + $0x3d8] ss:$40 sps:$4 sm:$0xff]  }
 0x72d   : > { %12089 = vmatprep.subr.bf16.mxu0 %v19026_v14  ;;  %13421 = vmatpush1.bf16.msra.mxu1 %v19156_v44  ;;  %v19066_v14 = vld [vmem:[%s20180_s17 + $0x650] ss:$40 sps:$4 sm:$0xff]  }
 0x72e   : > { %13422 = vmatprep.subr.bf16.mxu1 %v19164_v33  ;;  %v19096_v44 = vld [vmem:[%s20180_s17 + $0x970] ss:$40 sps:$4 sm:$0xff]   ;;  %v19099_v33 = vld [vmem:[%s20180_s17 + $0x9c0] ss:$40 sps:$4 sm:$0xff]  }
 0x730   : > { %12090 = vmatpush1.bf16.msra.mxu0 %v19024_v15  ;;  %v19071_v15 = vld [vmem:[%s20180_s17 + $0x6a4] ss:$40 sps:$4 sm:$0xff]  }
 0x731   : > { %12091 = vmatprep.subr.bf16.mxu0 %v19029_v58  ;;  %13423 = vmatpush1.bf16.msra.mxu1 %v19162_v51  ;;  %v19206_v58 = vld [vmem:[%s20180_s17 + $0x42c] ss:$40 sps:$4 sm:$0xff]   ;;  %v19102_v51 = vld [vmem:[%s20180_s17 + $0xa10] ss:$40 sps:$4 sm:$0xff]  }
 0x732   : > { %13424 = vmatprep.subr.bf16.mxu1 %v19170_v55  ;;  %v19105_v55 = vld [vmem:[%s20180_s17 + $0xa60] ss:$40 sps:$4 sm:$0xff]  }
 0x734   : > { %12092 = vmatpush1.bf16.msra.mxu0 %v19027_v19  ;;  %v19204_v19 = vld [vmem:[%s20180_s17 + $0x428] ss:$40 sps:$4 sm:$0xff]  }
 0x735   : > { %12093 = vmatprep.subr.bf16.mxu0 %v19032_v20  ;;  %13425 = vmatpush1.bf16.msra.mxu1 %v19168_v18  ;;  %v19069_v20 = vld [vmem:[%s20180_s17 + $0x6a0] ss:$40 sps:$4 sm:$0xff]   ;;  %v19108_v18 = vld [vmem:[%s20180_s17 + $0xab0] ss:$40 sps:$4 sm:$0xff]  }
 0x736   : > { %13426 = vmatprep.subr.bf16.mxu1 %v19176_v59  ;;  %v19111_v59 = vld [vmem:[%s20180_s17 + $0xb00] ss:$40 sps:$4 sm:$0xff]  }
 0x738   : > { %12094 = vmatpush1.bf16.msra.mxu0 %v19030_v48  ;;  %v19212_v48 = vld [vmem:[%s20180_s17 + $0x47c] ss:$40 sps:$4 sm:$0xff]  }
 0x739   : > { %12095 = vmatprep.subr.bf16.mxu0 %v19035_v13  ;;  %13427 = vmatpush1.bf16.msra.mxu1 %v19174_v61  ;;  %v19210_v13 = vld [vmem:[%s20180_s17 + $0x478] ss:$40 sps:$4 sm:$0xff]  }
 0x73a   : > { %13428 = vmatprep.subr.bf16.mxu1 %v19182_v4  ;;  %v19117_v61 = vld [vmem:[%s20180_s17 + $0xba0] ss:$40 sps:$4 sm:$0xff]   ;;  %v19125_v4 = vld [vmem:[%s20180_s17 + $0xc44] ss:$40 sps:$4 sm:$0xff]  }
 0x73c   : > { %12096 = vmatpush1.bf16.msra.mxu0 %v19033_v16  ;;  %v19218_v16 = vld [vmem:[%s20180_s17 + $0x4cc] ss:$40 sps:$4 sm:$0xff]  }
 0x73d   : > { %12097 = vmatprep.subr.bf16.mxu0 %v19038_v30  ;;  %13429 = vmatpush1.bf16.msra.mxu1 %v19180_v3  ;;  %v19216_v30 = vld [vmem:[%s20180_s17 + $0x4c8] ss:$40 sps:$4 sm:$0xff]  }
 0x73e   : > { %13430 = vmatprep.subr.bf16.mxu1 %v19188_v39  ;;  %v19120_v3 = vld [vmem:[%s20180_s17 + $0xbf0] ss:$40 sps:$4 sm:$0xff]  }
 0x73f   : > { %v19129_v39 = vld [vmem:[%s20180_s17 + $0xc90] ss:$40 sps:$4 sm:$0xff]  }
 0x740   : > { %12098 = vmatpush1.bf16.msra.mxu0 %v19036_v32  ;;  %v19224_v32 = vld [vmem:[%s20180_s17 + $0x51c] ss:$40 sps:$4 sm:$0xff]  }
 0x741   : > { %12099 = vmatprep.subr.bf16.mxu0 %v19041_v35  ;;  %13431 = vmatpush1.bf16.msra.mxu1 %v19186_v8  ;;  %v19083_v35 = vld [vmem:[%s20180_s17 + $0x7e4] ss:$40 sps:$4 sm:$0xff]  }
 0x742   : > { %13432 = vmatprep.subr.bf16.mxu1 %v19194_v10  ;;  %v19137_v8 = vld [vmem:[%s20180_s17 + $0xce4] ss:$40 sps:$4 sm:$0xff]   ;;  %v19141_v10 = vld [vmem:[%s20180_s17 + $0xd30] ss:$40 sps:$4 sm:$0xff]  }
 0x744   : > { %12100 = vmatpush1.bf16.msra.mxu0 %v19039_v37  ;;  %v19086_v37 = vld [vmem:[%s20180_s17 + $0x834] ss:$40 sps:$4 sm:$0xff]  }
 0x745   : > { %12101 = vmatprep.subr.bf16.mxu0 %v19044_v25  ;;  %v19089_v25 = vld [vmem:[%s20180_s17 + $0x884] ss:$40 sps:$4 sm:$0xff]  }
 0x748   : > { %12102 = vmatpush1.bf16.msra.mxu0 %v19042_v41  ;;  %v19092_v41 = vld [vmem:[%s20180_s17 + $0x8d4] ss:$40 sps:$4 sm:$0xff]  }
 0x749   : > { %12103 = vmatprep.subr.bf16.mxu0 %v19047_v52  ;;  %v19095_v52 = vld [vmem:[%s20180_s17 + $0x924] ss:$40 sps:$4 sm:$0xff]  }
 0x74c   : > { %12104 = vmatpush1.bf16.msra.mxu0 %v19045_v43  ;;  %v19098_v43 = vld [vmem:[%s20180_s17 + $0x974] ss:$40 sps:$4 sm:$0xff]  }
 0x74d   : > { %12105 = vmatprep.subr.bf16.mxu0 %v19050_v45  ;;  %v19101_v45 = vld [vmem:[%s20180_s17 + $0x9c4] ss:$40 sps:$4 sm:$0xff]  }
 0x750   : > { %12106 = vmatpush1.bf16.msra.mxu0 %v19048_v50  ;;  %v19104_v50 = vld [vmem:[%s20180_s17 + $0xa14] ss:$40 sps:$4 sm:$0xff]  }
 0x751   : > { %12107 = vmatprep.subr.bf16.mxu0 %v19053_v53  ;;  %v19107_v53 = vld [vmem:[%s20180_s17 + $0xa64] ss:$40 sps:$4 sm:$0xff]  }
 0x754   : > { %12108 = vmatpush1.bf16.msra.mxu0 %v19051_v24  ;;  %v19110_v24 = vld [vmem:[%s20180_s17 + $0xab4] ss:$40 sps:$4 sm:$0xff]  }
 0x755   : > { %12120 = vmatprep.subr.bf16.mxu0 %v19056_v29  ;;  %v19113_v29 = vld [vmem:[%s20180_s17 + $0xb04] ss:$40 sps:$4 sm:$0xff]  }
 0x757   : > { %12110 = vmatmul.mubr.bf16.vlgmr.msra.gmra.mrb[12].mxu0 %v21619_v22  ;;  %v19060_v22 = vld [vmem:[%s20180_s17 + $0x5b0] ss:$40 sps:$4 sm:$0xff]  }
 0x758   : > { %12121 = vmatpush1.bf16.msra.mxu0 %v19054_v60  ;;  %12152 = vmatprep.mubr.bf16.mxu0 %v21802_v47  ;;  %v19192_v47 = vld [vmem:[%s20180_s17 + $0x388] ss:$40 sps:$4 sm:$0xff]  }
 0x759   : > { %12122 = vmatprep.subr.bf16.mxu0 %v19059_v62  ;;  %13433 = vmatpush1.bf16.msra.mxu1 %v19192_v47  ;;  %v19114_v60 = vld [vmem:[%s20180_s17 + $0xb50] ss:$40 sps:$4 sm:$0xff]   ;;  %v19122_v62 = vld [vmem:[%s20180_s17 + $0xbf4] ss:$40 sps:$4 sm:$0xff]   ;;  %v19149_v47 = vld [vmem:[%s20180_s17 + $0xd84] ss:$40 sps:$4 sm:$0xff]  }
 0x75a   : > { %13434 = vmatprep.subr.bf16.mxu1 %v19200_v11  ;;  %v19153_v11 = vld [vmem:[%s20180_s17 + $0xdd0] ss:$40 sps:$4 sm:$0xff]  }
 0x75c   : > { %12123 = vmatpush1.bf16.msra.mxu0 %v19057_v6  ;;  %v19123_v6 = vld [vmem:[%s20180_s17 + $0xc40] ss:$40 sps:$4 sm:$0xff]  }
 0x75d   : > { %12124 = vmatprep.subr.bf16.mxu0 %v19062_v7  ;;  %13435 = vmatpush1.bf16.msra.mxu1 %v19198_v12  ;;  %v19131_v7 = vld [vmem:[%s20180_s17 + $0xc94] ss:$40 sps:$4 sm:$0xff]   ;;  %v19161_v12 = vld [vmem:[%s20180_s17 + $0xe24] ss:$40 sps:$4 sm:$0xff]  }
 0x75e   : > { %13436 = vmatprep.subr.bf16.mxu1 %v19206_v58  ;;  %v19165_v58 = vld [vmem:[%s20180_s17 + $0xe70] ss:$40 sps:$4 sm:$0xff]  }
 0x760   : > { %12125 = vmatpush1.bf16.msra.mxu0 %v19060_v22  ;;  %v19135_v22 = vld [vmem:[%s20180_s17 + $0xce0] ss:$40 sps:$4 sm:$0xff]  }
 0x761   : > { %12126 = vmatprep.subr.bf16.mxu0 %v19065_v9  ;;  %13437 = vmatpush1.bf16.msra.mxu1 %v19204_v19  ;;  %v19143_v9 = vld [vmem:[%s20180_s17 + $0xd34] ss:$40 sps:$4 sm:$0xff]   ;;  %v19173_v19 = vld [vmem:[%s20180_s17 + $0xec4] ss:$40 sps:$4 sm:$0xff]  }
 0x762   : > { %13438 = vmatprep.subr.bf16.mxu1 %v19212_v48  ;;  %v19177_v48 = vld [vmem:[%s20180_s17 + $0x20] ss:$40 sps:$4 sm:$0xff]  }
 0x764   : > { %12127 = vmatpush1.bf16.msra.mxu0 %v19063_v34  ;;  %v19147_v34 = vld [vmem:[%s20180_s17 + $0xd80] ss:$40 sps:$4 sm:$0xff]  }
 0x765   : > { %12128 = vmatprep.subr.bf16.mxu0 %v19068_v27  ;;  %13439 = vmatpush1.bf16.msra.mxu1 %v19210_v13  ;;  %v19155_v27 = vld [vmem:[%s20180_s17 + $0xdd4] ss:$40 sps:$4 sm:$0xff]   ;;  %v19183_v13 = vld [vmem:[%s20180_s17 + $0x70] ss:$40 sps:$4 sm:$0xff]  }
 0x766   : > { %13440 = vmatprep.subr.bf16.mxu1 %v19218_v16  ;;  %v19189_v16 = vld [vmem:[%s20180_s17 + $0xc0] ss:$40 sps:$4 sm:$0xff]  }
 0x768   : > { %12129 = vmatpush1.bf16.msra.mxu0 %v19066_v14  ;;  %v19159_v14 = vld [vmem:[%s20180_s17 + $0xe20] ss:$40 sps:$4 sm:$0xff]  }
 0x769   : > { %12130 = vmatprep.subr.bf16.mxu0 %v19071_v15  ;;  %13441 = vmatpush1.bf16.msra.mxu1 %v19216_v30  ;;  %v19167_v15 = vld [vmem:[%s20180_s17 + $0xe74] ss:$40 sps:$4 sm:$0xff]   ;;  %v19195_v30 = vld [vmem:[%s20180_s17 + $0x110] ss:$40 sps:$4 sm:$0xff]  }
 0x76a   : > { %13453 = vmatprep.subr.bf16.mxu1 %v19224_v32  ;;  %v22023_v32 = vld [vmem:[%s20193_s27 + $0x14] sm:$0x3f] }
 0x76c   : > { %12131 = vmatpush1.bf16.msra.mxu0 %v19069_v20  ;;  %v19171_v20 = vld [vmem:[%s20180_s17 + $0xec0] ss:$40 sps:$4 sm:$0xff]  }
 0x76d   : > { %12132 = vmatprep.subr.bf16.mxu0 %v19074_v21  ;;  %v19179_v21 = vld [vmem:[%s20180_s17 + $0x24] ss:$40 sps:$4 sm:$0xff]  }
 0x770   : > { %12133 = vmatpush1.bf16.msra.mxu0 %v19072_v23  ;;  %v19185_v23 = vld [vmem:[%s20180_s17 + $0x74] ss:$40 sps:$4 sm:$0xff]  }
 0x771   : > { %12134 = vmatprep.subr.bf16.mxu0 %v19077_v28  ;;  %v19191_v28 = vld [vmem:[%s20180_s17 + $0xc4] ss:$40 sps:$4 sm:$0xff]  }
 0x774   : > { %12135 = vmatpush1.bf16.msra.mxu0 %v19075_v17  ;;  %v19197_v17 = vld [vmem:[%s20180_s17 + $0x114] ss:$40 sps:$4 sm:$0xff]  }
 0x775   : > { %12136 = vmatprep.subr.bf16.mxu0 %v19080_v31  ;;  %v22020_v31 = vld [vmem:[%s20193_s27 + $0x8] sm:$0x3f] }
 0x778   : > { %12137 = vmatpush1.bf16.msra.mxu0 %v19078_v49  ;;  %v19203_v49 = vld [vmem:[%s20180_s17 + $0x164] ss:$40 sps:$4 sm:$0xff]  }
 0x779   : > { %12138 = vmatprep.subr.bf16.mxu0 %v19083_v35  ;;  %v10352_v35 = vrot.slane %v22023_v32, %v20741_v63 }
 0x77c   : > { %12139 = vmatpush1.bf16.msra.mxu0 %v19081_v36  ;;  %v4734_v36 = vrot.slane %v22020_v31, %v20744_v0 }
 0x77d   : > { %12140 = vmatprep.subr.bf16.mxu0 %v19086_v37  ;;  %v10360_v37 = vrot.slane %v22023_v32, %v20744_v0 }
 0x780   : > { %12141 = vmatpush1.bf16.msra.mxu0 %v19084_v40  ;;  %v19201_v40 = vld [vmem:[%s20180_s17 + $0x160] ss:$40 sps:$4 sm:$0xff]  }
 0x781   : > { %12142 = vmatprep.subr.bf16.mxu0 %v19089_v25  ;;  %v4730_v25 = vrot.slane %v22020_v31, %v20747_v1 }
 0x784   : > { %12143 = vmatpush1.bf16.msra.mxu0 %v19087_v26  ;;  %v10356_v26 = vrot.slane %v22023_v32, %v20747_v1 }
 0x785   : > { %12144 = vmatprep.subr.bf16.mxu0 %v19092_v41  ;;  %v4738_v41 = vrot.slane %v22020_v31, %v20750_v2 }
 0x788   : > { %12145 = vmatpush1.bf16.msra.mxu0 %v19090_v42  ;;  %v10364_v42 = vrot.slane %v22023_v32, %v20750_v2 }
 0x789   : > { %12146 = vmatprep.subr.bf16.mxu0 %v19095_v52  ;;  %v19209_v52 = vld [vmem:[%s20180_s17 + $0x1b4] ss:$40 sps:$4 sm:$0xff]  }
 0x78c   : > { %12147 = vmatpush1.bf16.msra.mxu0 %v19093_v38 }
 0x78d   : > { %12148 = vmatprep.subr.bf16.mxu0 %v19098_v43  ;;  %v16468_v43 = vadd.f32 %v10360_v37, %v4734_v36  ;;  %v19237_v36 = vld [vmem:[%s20180_s17 + $0x340] ss:$40 sps:$4 sm:$0xff]   ;;  %v19245_v37 = vld [vmem:[%s20180_s17 + $0x394] ss:$40 sps:$4 sm:$0xff]  }
 0x790   : > { %12149 = vmatpush1.bf16.msra.mxu0 %v19096_v44  ;;  %v16462_v44 = vadd.f32 %v10356_v26, %v4730_v25  ;;  %v19248_v25 = vld [vmem:[%s20180_s17 + $0x65c] ss:$40 sps:$4 sm:$0xff]   ;;  %v19243_v26 = vld [vmem:[%s20180_s17 + $0x390] ss:$40 sps:$4 sm:$0xff]  }
 0x791   : > { %12150 = vmatprep.subr.bf16.mxu0 %v19101_v45  ;;  %v16470_v45 = vadd.f32 %v10364_v42, %v4738_v41  ;;  %v19251_v41 = vld [vmem:[%s20180_s17 + $0x3e4] ss:$40 sps:$4 sm:$0xff]   ;;  %v19246_v42 = vld [vmem:[%s20180_s17 + $0x658] ss:$40 sps:$4 sm:$0xff]  }
 0x794   : > { %12151 = vmatpush1.bf16.msra.mxu0 %v19099_v33  ;;  %v19207_v33 = vld [vmem:[%s20180_s17 + $0x1b0] ss:$40 sps:$4 sm:$0xff]  }
 0x795   : > { %12163 = vmatprep.subr.bf16.mxu0 %v19104_v50  ;;  %v19215_v50 = vld [vmem:[%s20180_s17 + $0x204] ss:$40 sps:$4 sm:$0xff]  }
 0x797   : > { %12153 = vmatmul.mubr.bf16.vlgmr.msra.gmra.mrb[12].mxu0 %v21798_v46  ;;  %v19116_v46 = vld [vmem:[%s20180_s17 + $0xb54] ss:$40 sps:$4 sm:$0xff]  }
 0x798   : > { %12164 = vmatpush1.bf16.msra.mxu0 %v19102_v51  ;;  %12195 = vmatprep.mubr.bf16.mxu0 %v21806_v54  ;;  %v19119_v54 = vld [vmem:[%s20180_s17 + $0xba4] ss:$40 sps:$4 sm:$0xff]  }
 0x799   : > { %12165 = vmatprep.subr.bf16.mxu0 %v19107_v53 }
 0x79c   : > { %12166 = vmatpush1.bf16.msra.mxu0 %v19105_v55 }
 0x79d   : > { %12167 = vmatprep.subr.bf16.mxu0 %v19110_v24 }
 0x7a0   : > { %12168 = vmatpush1.bf16.msra.mxu0 %v19108_v18 }
 0x7a1   : > { %12169 = vmatprep.subr.bf16.mxu0 %v19113_v29 }
 0x7a4   : > { %12170 = vmatpush1.bf16.msra.mxu0 %v19111_v59 }
 0x7a5   : > { %12171 = vmatprep.subr.bf16.mxu0 %v19116_v46 }
 0x7a8   : > { %12172 = vmatpush1.bf16.msra.mxu0 %v19114_v60 }
 0x7a9   : > { %12173 = vmatprep.subr.bf16.mxu0 %v19119_v54 }
 0x7ac   : > { %12174 = vmatpush1.bf16.msra.mxu0 %v19117_v61  ;;  %v19213_v61 = vld [vmem:[%s20180_s17 + $0x200] ss:$40 sps:$4 sm:$0xff]  }
 0x7ad   : > { %12175 = vmatprep.subr.bf16.mxu0 %v19122_v62 }
 0x7b0   : > { %12176 = vmatpush1.bf16.msra.mxu0 %v19120_v3 }
 0x7b1   : > { %12177 = vmatprep.subr.bf16.mxu0 %v19125_v4 }
 0x7b4   : > { %12178 = vmatpush1.bf16.msra.mxu0 %v19123_v6 }
 0x7b5   : > { %12179 = vmatprep.subr.bf16.mxu0 %v19131_v7  ;;  %v19221_v7 = vld [vmem:[%s20180_s17 + $0x254] ss:$40 sps:$4 sm:$0xff]  }
 0x7b8   : > { %12180 = vmatpush1.bf16.msra.mxu0 %v19129_v39 }
 0x7b9   : > { %12181 = vmatprep.subr.bf16.mxu0 %v19137_v8 }
 0x7bc   : > { %12182 = vmatpush1.bf16.msra.mxu0 %v19135_v22 }
 0x7bd   : > { %12183 = vmatprep.subr.bf16.mxu0 %v19143_v9 }
 0x7c0   : > { %12184 = vmatpush1.bf16.msra.mxu0 %v19141_v10 }
 0x7c1   : > { %12185 = vmatprep.subr.bf16.mxu0 %v19149_v47 }
 0x7c4   : > { %12186 = vmatpush1.bf16.msra.mxu0 %v19147_v34 }
 0x7c5   : > { %12187 = vmatprep.subr.bf16.mxu0 %v19155_v27 }
 0x7c8   : > { %12188 = vmatpush1.bf16.msra.mxu0 %v19153_v11 }
 0x7c9   : > { %12189 = vmatprep.subr.bf16.mxu0 %v19161_v12 }
 0x7cc   : > { %12190 = vmatpush1.bf16.msra.mxu0 %v19159_v14  ;;  %v19219_v14 = vld [vmem:[%s20180_s17 + $0x250] ss:$40 sps:$4 sm:$0xff]  }
 0x7cd   : > { %12191 = vmatprep.subr.bf16.mxu0 %v19167_v15 }
 0x7d0   : > { %12192 = vmatpush1.bf16.msra.mxu0 %v19165_v58 }
 0x7d1   : > { %12193 = vmatprep.subr.bf16.mxu0 %v19173_v19 }
 0x7d4   : > { %12194 = vmatpush1.bf16.msra.mxu0 %v19171_v20 }
 0x7d5   : > { %13539 = vmatprep.subr.bf16.mxu0 %v19179_v21  ;;  %v19222_v21 = vld [vmem:[%s20180_s17 + $0x518] ss:$40 sps:$4 sm:$0xff]  }
 0x7d7   : > { %12196 = vmatmul.mubr.bf16.vlgmr.msra.gmra.mrb[12].mxu0 %v21800_v5  ;;  %v4726_v5 = vrot.slane %v22020_v31, %v20741_v63 }
 0x7d8   : > { %13540 = vmatpush1.bf16.msra.mxu0 %v19177_v48  ;;  %v19227_v48 = vld [vmem:[%s20180_s17 + $0x2a4] ss:$40 sps:$4 sm:$0xff]  }
 0x7d9   : > { %13541 = vmatprep.subr.bf16.mxu0 %v19185_v23  ;;  %v16460_v38 = vadd.f32 %v10352_v35, %v4726_v5  ;;  %v19230_v23 = vld [vmem:[%s20180_s17 + $0x56c] ss:$40 sps:$4 sm:$0xff]   ;;  %v19234_v5 = vld [vmem:[%s20180_s17 + $0x5b8] ss:$40 sps:$4 sm:$0xff]  }
 0x7da   : > { %v19242_v35 = vld [vmem:[%s20180_s17 + $0x60c] ss:$40 sps:$4 sm:$0xff]  }
 0x7dc   : > { %13542 = vmatpush1.bf16.msra.mxu0 %v19183_v13  ;;  %v19225_v13 = vld [vmem:[%s20180_s17 + $0x2a0] ss:$40 sps:$4 sm:$0xff]  }
 0x7dd   : > { %13543 = vmatprep.subr.bf16.mxu0 %v19191_v28  ;;  %v19233_v28 = vld [vmem:[%s20180_s17 + $0x2f4] ss:$40 sps:$4 sm:$0xff]  }
 0x7e0   : > { %13544 = vmatpush1.bf16.msra.mxu0 %v19189_v16  ;;  %v19228_v16 = vld [vmem:[%s20180_s17 + $0x568] ss:$40 sps:$4 sm:$0xff]  }
 0x7e1   : > { %13545 = vmatprep.subr.bf16.mxu0 %v19197_v17  ;;  %v19236_v17 = vld [vmem:[%s20180_s17 + $0x5bc] ss:$40 sps:$4 sm:$0xff]  }
 0x7e4   : > { %13546 = vmatpush1.bf16.msra.mxu0 %v19195_v30  ;;  %v19231_v30 = vld [vmem:[%s20180_s17 + $0x2f0] ss:$40 sps:$4 sm:$0xff]  }
 0x7e5   : > { %13547 = vmatprep.subr.bf16.mxu0 %v19203_v49  ;;  %v19239_v49 = vld [vmem:[%s20180_s17 + $0x344] ss:$40 sps:$4 sm:$0xff]  }
 0x7e8   : > { %13548 = vmatpush1.bf16.msra.mxu0 %v19201_v40  ;;  %v19240_v40 = vld [vmem:[%s20180_s17 + $0x608] ss:$40 sps:$4 sm:$0xff]  }
 0x7e9   : > { %13549 = vmatprep.subr.bf16.mxu0 %v19209_v52  ;;  %v19254_v52 = vld [vmem:[%s20180_s17 + $0x6ac] ss:$40 sps:$4 sm:$0xff]  }
 0x7ea   : > { %v11939_v51 = vpop.f32.mrb[8].mxu0  ;;  %v12068_v53 = vpop.f32.mrb[8].mxu1 }
 0x7eb   : > { %v16461_v55 = vadd.f32 %v16460_v38, %v11939_v51  ;;  %v16469_v24 = vadd.f32 %v16468_v43, %v12068_v53  ;;  %v11941_v18 = vpop.f32.mrb[9].mxu0  ;;  %v12070_v29 = vpop.f32.mrb[9].mxu1  ;;  %v19258_v51 = vld [vmem:[%s20180_s17 + $0x6f8] ss:$40 sps:$4 sm:$0xff]   ;;  %v19266_v53 = vld [vmem:[%s20180_s17 + $0x74c] ss:$40 sps:$4 sm:$0xff]  }
 0x7ec   : > { %v16463_v59 = vadd.f32 %v16462_v44, %v11941_v18  ;;  %v16471_v46 = vadd.f32 %v16470_v45, %v12070_v29  ;;  %v11943_v60 = vpop.f32.mrb[10].mxu0  ;;  %v12072_v54 = vpop.f32.mrb[10].mxu1  ;;  %13550 = vmatpush1.bf16.msra.mxu0 %v19207_v33  ;;  %v19255_v33 = vld [vmem:[%s20180_s17 + $0x430] ss:$40 sps:$4 sm:$0xff]   ;;  %v19272_v29 = vld [vmem:[%s20180_s17 + $0x79c] ss:$40 sps:$4 sm:$0xff]  }
 0x7ed   : > { %v16465_v62 = vadd.f32 %v16460_v38, %v11943_v60  ;;  %v16473_v3 = vadd.f32 %v16468_v43, %v12072_v54  ;;  %v11945_v4 = vpop.f32.mrb[11].mxu0  ;;  %v12074_v6 = vpop.f32.mrb[11].mxu1  ;;  %13551 = vmatprep.subr.bf16.mxu0 %v19215_v50  ;;  %v12218_v22 = vmax.f32 %v16461_v55, 0.0  ;;  %v12220_v9 = vmax.f32 %v16469_v24, 0.0  ;;  %v19249_v38 = vld [vmem:[%s20180_s17 + $0x3e0] ss:$40 sps:$4 sm:$0xff]  }
 0x7ee   : > { %v16467_v39 = vadd.f32 %v16462_v44, %v11945_v4  ;;  %v16475_v8 = vadd.f32 %v16470_v45, %v12074_v6  ;;  %v12219_v34 = vmax.f32 %v16463_v59, 0.0  ;;  %v12221_v27 = vmax.f32 %v16471_v46, 0.0  ;;  %v19257_v43 = vld [vmem:[%s20180_s17 + $0x434] ss:$40 sps:$4 sm:$0xff]   ;;  %v19252_v44 = vld [vmem:[%s20180_s17 + $0x6a8] ss:$40 sps:$4 sm:$0xff]  }
 0x7ef   : > { %v12224_v10 = vmax.f32 %v16465_v62, 0.0  ;;  %v12226_v47 = vmax.f32 %v16473_v3, 0.0  ;;  %v19260_v45 = vld [vmem:[%s20180_s17 + $0x6fc] ss:$40 sps:$4 sm:$0xff]   ;;  %v19261_v55 = vld [vmem:[%s20180_s17 + $0x480] ss:$40 sps:$4 sm:$0xff]  }
 0x7f0   : > { %v12225_v11 = vmax.f32 %v16467_v39, 0.0  ;;  %v12227_v12 = vmax.f32 %v16475_v8, 0.0  ;;  %13552 = vmatpush1.bf16.msra.mxu0 %v19213_v61  ;;  %v19263_v50 = vld [vmem:[%s20180_s17 + $0x484] ss:$40 sps:$4 sm:$0xff]   ;;  %v19269_v24 = vld [vmem:[%s20180_s17 + $0x4d4] ss:$40 sps:$4 sm:$0xff]  }
 0x7f1   : > { %v22049_v15 = vpack.c.bf16 %v12224_v10, %v12218_v22  ;;  %v22051_v58 = vpack.c.bf16 %v12226_v47, %v12220_v9  ;;  %13553 = vmatprep.subr.bf16.mxu0 %v19221_v7  ;;  %v19264_v18 = vld [vmem:[%s20180_s17 + $0x748] ss:$40 sps:$4 sm:$0xff]   ;;  %v19275_v46 = vld [vmem:[%s20180_s17 + $0x524] ss:$40 sps:$4 sm:$0xff]   ;;  %v19270_v60 = vld [vmem:[%s20180_s17 + $0x798] ss:$40 sps:$4 sm:$0xff]  }
 0x7f2   : > { %v12231_v19 = vpack.c.bf16 %v12225_v11, %v12219_v34  ;;  %v22053_v20 = vpack.c.bf16 %v12227_v12, %v12221_v27  ;;  %v19267_v59 = vld [vmem:[%s20180_s17 + $0x4d0] ss:$40 sps:$4 sm:$0xff]   ;;  %v19278_v54 = vld [vmem:[%s20180_s17 + $0x7ec] ss:$40 sps:$4 sm:$0xff]   ;;  %v19273_v61 = vld [vmem:[%s20180_s17 + $0x520] ss:$40 sps:$4 sm:$0xff]  }
 0x7f3   : > { %v19281_v62 = vld [vmem:[%s20180_s17 + $0x574] ss:$40 sps:$4 sm:$0xff]   ;;  %v19276_v3 = vld [vmem:[%s20180_s17 + $0x7e8] ss:$40 sps:$4 sm:$0xff]   ;;  %v19287_v7 = vld [vmem:[%s20180_s17 + $0x5c4] ss:$40 sps:$4 sm:$0xff]  }
 0x7f4   : > { %13442 = vmatprep.mubr.bf16.mxu1 %v12231_v19  ;;  %13554 = vmatpush1.bf16.msra.mxu0 %v19219_v14  ;;  %v19284_v4 = vld [vmem:[%s20180_s17 + $0x83c] ss:$40 sps:$4 sm:$0xff]   ;;  %v19279_v6 = vld [vmem:[%s20180_s17 + $0x570] ss:$40 sps:$4 sm:$0xff]   ;;  %v19290_v8 = vld [vmem:[%s20180_s17 + $0x88c] ss:$40 sps:$4 sm:$0xff]  }
 0x7f5   : > { %13571 = vmatprep.mubr.bf16.mxu0 %v12231_v19  ;;  %13443 = vmatmul.mubr.bf16.vlgmr.msra.gmra.mrb[20].mxu1 %v22049_v15  ;;  %v19282_v39 = vld [vmem:[%s20180_s17 + $0x838] ss:$40 sps:$4 sm:$0xff]   ;;  %v19293_v9 = vld [vmem:[%s20180_s17 + $0x614] ss:$40 sps:$4 sm:$0xff]   ;;  %v19288_v10 = vld [vmem:[%s20180_s17 + $0x888] ss:$40 sps:$4 sm:$0xff]  }
 0x7f6   : > { %13454 = vmatpush1.bf16.msra.mxu1 %v19222_v21  ;;  %13485 = vmatprep.mubr.bf16.mxu1 %v22053_v20  ;;  %v19285_v22 = vld [vmem:[%s20180_s17 + $0x5c0] ss:$40 sps:$4 sm:$0xff]   ;;  %v19296_v47 = vld [vmem:[%s20180_s17 + $0x8dc] ss:$40 sps:$4 sm:$0xff]   ;;  %v19291_v34 = vld [vmem:[%s20180_s17 + $0x610] ss:$40 sps:$4 sm:$0xff]  }
 0x7f7   : > { %13555 = vmatprep.subr.bf16.mxu0 %v19227_v48  ;;  %13455 = vmatprep.subr.bf16.mxu1 %v19230_v23  ;;  %v19299_v27 = vld [vmem:[%s20180_s17 + $0x664] ss:$40 sps:$4 sm:$0xff]   ;;  %v19294_v11 = vld [vmem:[%s20180_s17 + $0x8d8] ss:$40 sps:$4 sm:$0xff]   ;;  %v19300_v19 = vld [vmem:[%s20180_s17 + $0x928] ss:$40 sps:$4 sm:$0xff]  }
 0x7f8   : > { %13556 = vmatpush1.bf16.msra.mxu0 %v19225_v13  ;;  %v19302_v12 = vld [vmem:[%s20180_s17 + $0x92c] ss:$40 sps:$4 sm:$0xff]   ;;  %v19297_v14 = vld [vmem:[%s20180_s17 + $0x660] ss:$40 sps:$4 sm:$0xff]   ;;  %v19303_v21 = vld [vmem:[%s20180_s17 + $0x6b0] ss:$40 sps:$4 sm:$0xff]  }
 0x7f9   : > { %13557 = vmatprep.subr.bf16.mxu0 %v19233_v28  ;;  %v19311_v48 = vld [vmem:[%s20180_s17 + $0x704] ss:$40 sps:$4 sm:$0xff]   ;;  %v19306_v23 = vld [vmem:[%s20180_s17 + $0x978] ss:$40 sps:$4 sm:$0xff]  }
 0x7fa   : > { %13456 = vmatpush1.bf16.msra.mxu1 %v19228_v16  ;;  %v19314_v13 = vld [vmem:[%s20180_s17 + $0x9cc] ss:$40 sps:$4 sm:$0xff]   ;;  %v19309_v28 = vld [vmem:[%s20180_s17 + $0x700] ss:$40 sps:$4 sm:$0xff]  }
 0x7fb   : > { %13457 = vmatprep.subr.bf16.mxu1 %v19236_v17  ;;  %v19317_v16 = vld [vmem:[%s20180_s17 + $0x754] ss:$40 sps:$4 sm:$0xff]   ;;  %v19312_v17 = vld [vmem:[%s20180_s17 + $0x9c8] ss:$40 sps:$4 sm:$0xff]  }
 0x7fc   : > { %13558 = vmatpush1.bf16.msra.mxu0 %v19231_v30  ;;  %v19344_v30 = vld [vmem:[%s20180_s17 + $0xa1c] ss:$40 sps:$4 sm:$0xff]  }
 0x7fd   : > { %13559 = vmatprep.subr.bf16.mxu0 %v19239_v49  ;;  %v19315_v49 = vld [vmem:[%s20180_s17 + $0x750] ss:$40 sps:$4 sm:$0xff]  }
 0x7fe   : > { %13458 = vmatpush1.bf16.msra.mxu1 %v19234_v5  ;;  %v19320_v5 = vld [vmem:[%s20180_s17 + $0x7a4] ss:$40 sps:$4 sm:$0xff]  }
 0x7ff   : > { %13459 = vmatprep.subr.bf16.mxu1 %v19242_v35  ;;  %v19342_v35 = vld [vmem:[%s20180_s17 + $0xa18] ss:$40 sps:$4 sm:$0xff]  }
 0x800   : > { %13560 = vmatpush1.bf16.msra.mxu0 %v19237_v36  ;;  %v19350_v36 = vld [vmem:[%s20180_s17 + $0xa6c] ss:$40 sps:$4 sm:$0xff]  }
 0x801   : > { %13561 = vmatprep.subr.bf16.mxu0 %v19245_v37  ;;  %v19318_v37 = vld [vmem:[%s20180_s17 + $0x7a0] ss:$40 sps:$4 sm:$0xff]  }
 0x802   : > { %13460 = vmatpush1.bf16.msra.mxu1 %v19240_v40  ;;  %v19323_v40 = vld [vmem:[%s20180_s17 + $0x7f4] ss:$40 sps:$4 sm:$0xff]  }
 0x803   : > { %13461 = vmatprep.subr.bf16.mxu1 %v19248_v25  ;;  %v19348_v25 = vld [vmem:[%s20180_s17 + $0xa68] ss:$40 sps:$4 sm:$0xff]  }
 0x804   : > { %13562 = vmatpush1.bf16.msra.mxu0 %v19243_v26  ;;  %v19356_v26 = vld [vmem:[%s20180_s17 + $0xabc] ss:$40 sps:$4 sm:$0xff]  }
 0x805   : > { %13563 = vmatprep.subr.bf16.mxu0 %v19251_v41  ;;  %v19321_v41 = vld [vmem:[%s20180_s17 + $0x7f0] ss:$40 sps:$4 sm:$0xff]  }
 0x806   : > { %13462 = vmatpush1.bf16.msra.mxu1 %v19246_v42  ;;  %v19326_v42 = vld [vmem:[%s20180_s17 + $0x844] ss:$40 sps:$4 sm:$0xff]  }
 0x807   : > { %13463 = vmatprep.subr.bf16.mxu1 %v19254_v52  ;;  %v19354_v52 = vld [vmem:[%s20180_s17 + $0xab8] ss:$40 sps:$4 sm:$0xff]  }
 0x808   : > { %13564 = vmatpush1.bf16.msra.mxu0 %v19249_v38  ;;  %v19362_v38 = vld [vmem:[%s20180_s17 + $0xb0c] ss:$40 sps:$4 sm:$0xff]  }
 0x809   : > { %13565 = vmatprep.subr.bf16.mxu0 %v19257_v43  ;;  %v19324_v43 = vld [vmem:[%s20180_s17 + $0x840] ss:$40 sps:$4 sm:$0xff]  }
 0x80a   : > { %13464 = vmatpush1.bf16.msra.mxu1 %v19252_v44  ;;  %v19329_v44 = vld [vmem:[%s20180_s17 + $0x894] ss:$40 sps:$4 sm:$0xff]  }
 0x80b   : > { %13465 = vmatprep.subr.bf16.mxu1 %v19260_v45  ;;  %v19360_v45 = vld [vmem:[%s20180_s17 + $0xb08] ss:$40 sps:$4 sm:$0xff]  }
 0x80c   : > { %13566 = vmatpush1.bf16.msra.mxu0 %v19255_v33  ;;  %v19368_v33 = vld [vmem:[%s20180_s17 + $0xb5c] ss:$40 sps:$4 sm:$0xff]  }
 0x80d   : > { %13567 = vmatprep.subr.bf16.mxu0 %v19263_v50  ;;  %v19327_v50 = vld [vmem:[%s20180_s17 + $0x890] ss:$40 sps:$4 sm:$0xff]  }
 0x80e   : > { %13466 = vmatpush1.bf16.msra.mxu1 %v19258_v51  ;;  %v19332_v51 = vld [vmem:[%s20180_s17 + $0x8e4] ss:$40 sps:$4 sm:$0xff]  }
 0x80f   : > { %13467 = vmatprep.subr.bf16.mxu1 %v19266_v53  ;;  %v19366_v53 = vld [vmem:[%s20180_s17 + $0xb58] ss:$40 sps:$4 sm:$0xff]  }
 0x810   : > { %13568 = vmatpush1.bf16.msra.mxu0 %v19261_v55  ;;  %v19374_v55 = vld [vmem:[%s20180_s17 + $0xbac] ss:$40 sps:$4 sm:$0xff]  }
 0x811   : > { %13569 = vmatprep.subr.bf16.mxu0 %v19269_v24  ;;  %v19330_v24 = vld [vmem:[%s20180_s17 + $0x8e0] ss:$40 sps:$4 sm:$0xff]  }
 0x812   : > { %13468 = vmatpush1.bf16.msra.mxu1 %v19264_v18  ;;  %v19335_v18 = vld [vmem:[%s20180_s17 + $0x934] ss:$40 sps:$4 sm:$0xff]  }
 0x813   : > { %13469 = vmatprep.subr.bf16.mxu1 %v19272_v29  ;;  %v19372_v29 = vld [vmem:[%s20180_s17 + $0xba8] ss:$40 sps:$4 sm:$0xff]  }
 0x814   : > { %13570 = vmatpush1.bf16.msra.mxu0 %v19267_v59  ;;  %v19380_v59 = vld [vmem:[%s20180_s17 + $0xbfc] ss:$40 sps:$4 sm:$0xff]  }
 0x815   : > { %13582 = vmatprep.subr.bf16.mxu0 %v19275_v46  ;;  %v19333_v46 = vld [vmem:[%s20180_s17 + $0x930] ss:$40 sps:$4 sm:$0xff]  }
 0x816   : > { %13470 = vmatpush1.bf16.msra.mxu1 %v19270_v60  ;;  %v19338_v60 = vld [vmem:[%s20180_s17 + $0x984] ss:$40 sps:$4 sm:$0xff]  }
 0x817   : > { %13572 = vmatmul.mubr.bf16.vlgmr.msra.gmra.mrb[20].mxu0 %v22049_v15  ;;  %13471 = vmatprep.subr.bf16.mxu1 %v19278_v54  ;;  %v19305_v15 = vld [vmem:[%s20180_s17 + $0x6b4] ss:$40 sps:$4 sm:$0xff]   ;;  %v19378_v54 = vld [vmem:[%s20180_s17 + $0xbf8] ss:$40 sps:$4 sm:$0xff]  }
 0x818   : > { %13583 = vmatpush1.bf16.msra.mxu0 %v19273_v61  ;;  %13614 = vmatprep.mubr.bf16.mxu0 %v22053_v20  ;;  %v19308_v20 = vld [vmem:[%s20180_s17 + $0x97c] ss:$40 sps:$4 sm:$0xff]   ;;  %v19386_v61 = vld [vmem:[%s20180_s17 + $0xc4c] ss:$40 sps:$4 sm:$0xff]  }
 0x819   : > { %13584 = vmatprep.subr.bf16.mxu0 %v19281_v62  ;;  %v19336_v62 = vld [vmem:[%s20180_s17 + $0x980] ss:$40 sps:$4 sm:$0xff]  }
 0x81a   : > { %13472 = vmatpush1.bf16.msra.mxu1 %v19276_v3  ;;  %v19341_v3 = vld [vmem:[%s20180_s17 + $0x9d4] ss:$40 sps:$4 sm:$0xff]  }
 0x81b   : > { %13473 = vmatprep.subr.bf16.mxu1 %v19284_v4  ;;  %v19384_v4 = vld [vmem:[%s20180_s17 + $0xc48] ss:$40 sps:$4 sm:$0xff]  }
 0x81c   : > { %13585 = vmatpush1.bf16.msra.mxu0 %v19279_v6  ;;  %v19392_v6 = vld [vmem:[%s20180_s17 + $0xc9c] ss:$40 sps:$4 sm:$0xff]  }
 0x81d   : > { %13586 = vmatprep.subr.bf16.mxu0 %v19287_v7  ;;  %v19339_v7 = vld [vmem:[%s20180_s17 + $0x9d0] ss:$40 sps:$4 sm:$0xff]  }
 0x81e   : > { %13474 = vmatpush1.bf16.msra.mxu1 %v19282_v39  ;;  %v19347_v39 = vld [vmem:[%s20180_s17 + $0xa24] ss:$40 sps:$4 sm:$0xff]  }
 0x81f   : > { %13475 = vmatprep.subr.bf16.mxu1 %v19290_v8  ;;  %v19390_v8 = vld [vmem:[%s20180_s17 + $0xc98] ss:$40 sps:$4 sm:$0xff]  }
 0x820   : > { %13587 = vmatpush1.bf16.msra.mxu0 %v19285_v22  ;;  %v19398_v22 = vld [vmem:[%s20180_s17 + $0xcec] ss:$40 sps:$4 sm:$0xff]  }
 0x821   : > { %13588 = vmatprep.subr.bf16.mxu0 %v19293_v9  ;;  %v19345_v9 = vld [vmem:[%s20180_s17 + $0xa20] ss:$40 sps:$4 sm:$0xff]  }
 0x822   : > { %13476 = vmatpush1.bf16.msra.mxu1 %v19288_v10  ;;  %v19353_v10 = vld [vmem:[%s20180_s17 + $0xa74] ss:$40 sps:$4 sm:$0xff]  }
 0x823   : > { %13477 = vmatprep.subr.bf16.mxu1 %v19296_v47  ;;  %v19396_v47 = vld [vmem:[%s20180_s17 + $0xce8] ss:$40 sps:$4 sm:$0xff]  }
 0x824   : > { %13589 = vmatpush1.bf16.msra.mxu0 %v19291_v34  ;;  %v19404_v34 = vld [vmem:[%s20180_s17 + $0xd3c] ss:$40 sps:$4 sm:$0xff]  }
 0x825   : > { %13590 = vmatprep.subr.bf16.mxu0 %v19299_v27  ;;  %v19351_v27 = vld [vmem:[%s20180_s17 + $0xa70] ss:$40 sps:$4 sm:$0xff]  }
 0x826   : > { %13478 = vmatpush1.bf16.msra.mxu1 %v19294_v11  ;;  %v19359_v11 = vld [vmem:[%s20180_s17 + $0xac4] ss:$40 sps:$4 sm:$0xff]  }
 0x827   : > { %13479 = vmatprep.subr.bf16.mxu1 %v19302_v12  ;;  %v19402_v12 = vld [vmem:[%s20180_s17 + $0xd38] ss:$40 sps:$4 sm:$0xff]  }
 0x828   : > { %13591 = vmatpush1.bf16.msra.mxu0 %v19297_v14  ;;  %v19410_v14 = vld [vmem:[%s20180_s17 + $0xd8c] ss:$40 sps:$4 sm:$0xff]  }
 0x829   : > { %13592 = vmatprep.subr.bf16.mxu0 %v19305_v15  ;;  %v19357_v15 = vld [vmem:[%s20180_s17 + $0xac0] ss:$40 sps:$4 sm:$0xff]  }
 0x82a   : > { %13480 = vmatpush1.bf16.msra.mxu1 %v19300_v19  ;;  %v19408_v19 = vld [vmem:[%s20180_s17 + $0xd88] ss:$40 sps:$4 sm:$0xff]  }
 0x82b   : > { %13481 = vmatprep.subr.bf16.mxu1 %v19308_v20  ;;  %v19416_v20 = vld [vmem:[%s20180_s17 + $0xddc] ss:$40 sps:$4 sm:$0xff]  }
 0x82c   : > { %13593 = vmatpush1.bf16.msra.mxu0 %v19303_v21  ;;  %v19363_v21 = vld [vmem:[%s20180_s17 + $0xb10] ss:$40 sps:$4 sm:$0xff]  }
 0x82d   : > { %13594 = vmatprep.subr.bf16.mxu0 %v19311_v48  ;;  %v19371_v48 = vld [vmem:[%s20180_s17 + $0xb64] ss:$40 sps:$4 sm:$0xff]  }
 0x82e   : > { %13482 = vmatpush1.bf16.msra.mxu1 %v19306_v23  ;;  %v19414_v23 = vld [vmem:[%s20180_s17 + $0xdd8] ss:$40 sps:$4 sm:$0xff]  }
 0x82f   : > { %13483 = vmatprep.subr.bf16.mxu1 %v19314_v13  ;;  %v19422_v13 = vld [vmem:[%s20180_s17 + $0xe2c] ss:$40 sps:$4 sm:$0xff]  }
 0x830   : > { %13595 = vmatpush1.bf16.msra.mxu0 %v19309_v28  ;;  %v19369_v28 = vld [vmem:[%s20180_s17 + $0xb60] ss:$40 sps:$4 sm:$0xff]  }
 0x831   : > { %13596 = vmatprep.subr.bf16.mxu0 %v19317_v16  ;;  %v19377_v16 = vld [vmem:[%s20180_s17 + $0xbb4] ss:$40 sps:$4 sm:$0xff]  }
 0x832   : > { %13484 = vmatpush1.bf16.msra.mxu1 %v19312_v17  ;;  %v19420_v17 = vld [vmem:[%s20180_s17 + $0xe28] ss:$40 sps:$4 sm:$0xff]  }
 0x833   : > { %13496 = vmatprep.subr.bf16.mxu1 %v19344_v30  ;;  %v19428_v30 = vld [vmem:[%s20180_s17 + $0xe7c] ss:$40 sps:$4 sm:$0xff]  }
 0x834   : > { %13597 = vmatpush1.bf16.msra.mxu0 %v19315_v49  ;;  %v19375_v49 = vld [vmem:[%s20180_s17 + $0xbb0] ss:$40 sps:$4 sm:$0xff]  }
 0x835   : > { %13486 = vmatmul.mubr.bf16.vlgmr.msra.gmra.mrb[20].mxu1 %v22051_v58  ;;  %13598 = vmatprep.subr.bf16.mxu0 %v19320_v5  ;;  %v19383_v5 = vld [vmem:[%s20180_s17 + $0xc04] ss:$40 sps:$4 sm:$0xff]  }
 0x836   : > { %13497 = vmatpush1.bf16.msra.mxu1 %v19342_v35  ;;  %v19426_v35 = vld [vmem:[%s20180_s17 + $0xe78] ss:$40 sps:$4 sm:$0xff]  }
 0x837   : > { %13498 = vmatprep.subr.bf16.mxu1 %v19350_v36  ;;  %v19434_v36 = vld [vmem:[%s20180_s17 + $0xecc] ss:$40 sps:$4 sm:$0xff]  }
 0x838   : > { %13599 = vmatpush1.bf16.msra.mxu0 %v19318_v37  ;;  %v19381_v37 = vld [vmem:[%s20180_s17 + $0xc00] ss:$40 sps:$4 sm:$0xff]  }
 0x839   : > { %13600 = vmatprep.subr.bf16.mxu0 %v19323_v40  ;;  %v19389_v40 = vld [vmem:[%s20180_s17 + $0xc54] ss:$40 sps:$4 sm:$0xff]  }
 0x83a   : > { %13499 = vmatpush1.bf16.msra.mxu1 %v19348_v25  ;;  %v19432_v25 = vld [vmem:[%s20180_s17 + $0xec8] ss:$40 sps:$4 sm:$0xff]  }
 0x83b   : > { %13500 = vmatprep.subr.bf16.mxu1 %v19356_v26  ;;  %v19440_v26 = vld [vmem:[%s20182_s16 + $0x4] ss:$8 sps:$4 sm:$0xff]  }
 0x83c   : > { %13601 = vmatpush1.bf16.msra.mxu0 %v19321_v41  ;;  %v19387_v41 = vld [vmem:[%s20180_s17 + $0xc50] ss:$40 sps:$4 sm:$0xff]  }
 0x83d   : > { %13602 = vmatprep.subr.bf16.mxu0 %v19326_v42  ;;  %v19395_v42 = vld [vmem:[%s20180_s17 + $0xca4] ss:$40 sps:$4 sm:$0xff]  }
 0x83e   : > { %13501 = vmatpush1.bf16.msra.mxu1 %v19354_v52  ;;  %v19393_v52 = vld [vmem:[%s20180_s17 + $0xca0] ss:$40 sps:$4 sm:$0xff]  }
 0x83f   : > { %13502 = vmatprep.subr.bf16.mxu1 %v19362_v38  ;;  %v19401_v38 = vld [vmem:[%s20180_s17 + $0xcf4] ss:$40 sps:$4 sm:$0xff]  }
 0x840   : > { %13603 = vmatpush1.bf16.msra.mxu0 %v19324_v43  ;;  %v19399_v43 = vld [vmem:[%s20180_s17 + $0xcf0] ss:$40 sps:$4 sm:$0xff]  }
 0x841   : > { %13604 = vmatprep.subr.bf16.mxu0 %v19329_v44  ;;  %v19407_v44 = vld [vmem:[%s20180_s17 + $0xd44] ss:$40 sps:$4 sm:$0xff]  }
 0x842   : > { %13503 = vmatpush1.bf16.msra.mxu1 %v19360_v45  ;;  %v19405_v45 = vld [vmem:[%s20180_s17 + $0xd40] ss:$40 sps:$4 sm:$0xff]  }
 0x843   : > { %13504 = vmatprep.subr.bf16.mxu1 %v19368_v33  ;;  %v19413_v33 = vld [vmem:[%s20180_s17 + $0xd94] ss:$40 sps:$4 sm:$0xff]  }
 0x844   : > { %13605 = vmatpush1.bf16.msra.mxu0 %v19327_v50  ;;  %v19411_v50 = vld [vmem:[%s20180_s17 + $0xd90] ss:$40 sps:$4 sm:$0xff]  }
 0x845   : > { %13606 = vmatprep.subr.bf16.mxu0 %v19332_v51  ;;  %v19419_v51 = vld [vmem:[%s20180_s17 + $0xde4] ss:$40 sps:$4 sm:$0xff]  }
 0x846   : > { %13505 = vmatpush1.bf16.msra.mxu1 %v19366_v53  ;;  %v19417_v53 = vld [vmem:[%s20180_s17 + $0xde0] ss:$40 sps:$4 sm:$0xff]  }
 0x847   : > { %13506 = vmatprep.subr.bf16.mxu1 %v19374_v55  ;;  %v19425_v55 = vld [vmem:[%s20180_s17 + $0xe34] ss:$40 sps:$4 sm:$0xff]  }
 0x848   : > { %13607 = vmatpush1.bf16.msra.mxu0 %v19330_v24  ;;  %v19423_v24 = vld [vmem:[%s20180_s17 + $0xe30] ss:$40 sps:$4 sm:$0xff]  }
 0x849   : > { %13608 = vmatprep.subr.bf16.mxu0 %v19335_v18  ;;  %v19431_v18 = vld [vmem:[%s20180_s17 + $0xe84] ss:$40 sps:$4 sm:$0xff]  }
 0x84a   : > { %13507 = vmatpush1.bf16.msra.mxu1 %v19372_v29  ;;  %v19429_v29 = vld [vmem:[%s20180_s17 + $0xe80] ss:$40 sps:$4 sm:$0xff]  }
 0x84b   : > { %13508 = vmatprep.subr.bf16.mxu1 %v19380_v59  ;;  %v19437_v59 = vld [vmem:[%s20180_s17 + $0xed4] ss:$40 sps:$4 sm:$0xff]  }
 0x84c   : > { %13609 = vmatpush1.bf16.msra.mxu0 %v19333_v46  ;;  %v19435_v46 = vld [vmem:[%s20180_s17 + $0xed0] ss:$40 sps:$4 sm:$0xff]  }
 0x84d   : > { %13610 = vmatprep.subr.bf16.mxu0 %v19338_v60  ;;  %v4742_v60 = vrot.slane %v22020_v31, %v21013_v56 }
 0x84e   : > { %13509 = vmatpush1.bf16.msra.mxu1 %v19378_v54  ;;  %v10368_v54 = vrot.slane %v22023_v32, %v21013_v56 }
 0x84f   : > { %13510 = vmatprep.subr.bf16.mxu1 %v19386_v61  ;;  %v4746_v61 = vrot.slane %v22020_v31, %v21017_v57 }
 0x850   : > { %13611 = vmatpush1.bf16.msra.mxu0 %v19336_v62  ;;  %v10372_v62 = vrot.slane %v22023_v32, %v21017_v57 }
 0x851   : > { %13612 = vmatprep.subr.bf16.mxu0 %v19341_v3  ;;  %v16476_v3 = vadd.f32 %v10368_v54, %v4742_v60 }
 0x852   : > { %13511 = vmatpush1.bf16.msra.mxu1 %v19384_v4  ;;  %v16478_v4 = vadd.f32 %v10372_v62, %v4746_v61 }
 0x853   : > { %13512 = vmatprep.subr.bf16.mxu1 %v19392_v6 }
 0x854   : > { %13613 = vmatpush1.bf16.msra.mxu0 %v19339_v7 }
 0x855   : > { %13625 = vmatprep.subr.bf16.mxu0 %v19347_v39 }
 0x856   : > { %13513 = vmatpush1.bf16.msra.mxu1 %v19390_v8 }
 0x857   : > { %13615 = vmatmul.mubr.bf16.vlgmr.msra.gmra.mrb[20].mxu0 %v22051_v58  ;;  %13514 = vmatprep.subr.bf16.mxu1 %v19398_v22  ;;  %v19365_v58 = vld [vmem:[%s20180_s17 + $0xb14] ss:$40 sps:$4 sm:$0xff]  }
 0x858   : > { %13626 = vmatpush1.bf16.msra.mxu0 %v19345_v9 }
 0x859   : > { %13627 = vmatprep.subr.bf16.mxu0 %v19353_v10 }
 0x85a   : > { %13515 = vmatpush1.bf16.msra.mxu1 %v19396_v47 }
 0x85b   : > { %13516 = vmatprep.subr.bf16.mxu1 %v19404_v34 }
 0x85c   : > { %13628 = vmatpush1.bf16.msra.mxu0 %v19351_v27 }
 0x85d   : > { %13629 = vmatprep.subr.bf16.mxu0 %v19359_v11  ;;  %v19438_v11 = vld [vmem:[%s20182_s16] ss:$8 sps:$4 sm:$0xff]  }
 0x85e   : > { %13517 = vmatpush1.bf16.msra.mxu1 %v19402_v12  ;;  %v19443_v12 = vld [vmem:[%s20182_s16 + $0x14] ss:$8 sps:$4 sm:$0xff]  }
 0x85f   : > { %13518 = vmatprep.subr.bf16.mxu1 %v19410_v14  ;;  %v19441_v14 = vld [vmem:[%s20182_s16 + $0x10] ss:$8 sps:$4 sm:$0xff]  }
 0x860   : > { %13630 = vmatpush1.bf16.msra.mxu0 %v19357_v15  ;;  %v19446_v15 = vld [vmem:[%s20182_s16 + $0x24] ss:$8 sps:$4 sm:$0xff]  }
 0x861   : > { %13631 = vmatprep.subr.bf16.mxu0 %v19365_v58  ;;  %v19444_v58 = vld [vmem:[%s20182_s16 + $0x20] ss:$8 sps:$4 sm:$0xff]  }
 0x862   : > { %13519 = vmatpush1.bf16.msra.mxu1 %v19408_v19  ;;  %v19449_v19 = vld [vmem:[%s20182_s16 + $0x34] ss:$8 sps:$4 sm:$0xff]  }
 0x863   : > { %13520 = vmatprep.subr.bf16.mxu1 %v19416_v20  ;;  %v19447_v20 = vld [vmem:[%s20182_s16 + $0x30] ss:$8 sps:$4 sm:$0xff]  }
 0x864   : > { %13632 = vmatpush1.bf16.msra.mxu0 %v19363_v21  ;;  %v19452_v21 = vld [vmem:[%s20182_s16 + $0x44] ss:$8 sps:$4 sm:$0xff]  }
 0x865   : > { %13633 = vmatprep.subr.bf16.mxu0 %v19371_v48  ;;  %v19450_v48 = vld [vmem:[%s20182_s16 + $0x40] ss:$8 sps:$4 sm:$0xff]  }
 0x866   : > { %13521 = vmatpush1.bf16.msra.mxu1 %v19414_v23  ;;  %v19455_v23 = vld [vmem:[%s20182_s16 + $0x54] ss:$8 sps:$4 sm:$0xff]  }
 0x867   : > { %13522 = vmatprep.subr.bf16.mxu1 %v19422_v13  ;;  %v19453_v13 = vld [vmem:[%s20182_s16 + $0x50] ss:$8 sps:$4 sm:$0xff]  }
 0x868   : > { %13634 = vmatpush1.bf16.msra.mxu0 %v19369_v28  ;;  %v19458_v28 = vld [vmem:[%s20182_s16 + $0x64] ss:$8 sps:$4 sm:$0xff]  }
 0x869   : > { %13635 = vmatprep.subr.bf16.mxu0 %v19377_v16  ;;  %v19456_v16 = vld [vmem:[%s20182_s16 + $0x60] ss:$8 sps:$4 sm:$0xff]  }
 0x86a   : > { %13523 = vmatpush1.bf16.msra.mxu1 %v19420_v17  ;;  %v19461_v17 = vld [vmem:[%s20182_s16 + $0x74] ss:$8 sps:$4 sm:$0xff]  }
 0x86b   : > { %13524 = vmatprep.subr.bf16.mxu1 %v19428_v30  ;;  %v19459_v30 = vld [vmem:[%s20182_s16 + $0x70] ss:$8 sps:$4 sm:$0xff]  }
 0x86c   : > { %13636 = vmatpush1.bf16.msra.mxu0 %v19375_v49  ;;  %v19464_v49 = vld [vmem:[%s20182_s16 + $0x84] ss:$8 sps:$4 sm:$0xff]  }
 0x86d   : > { %13637 = vmatprep.subr.bf16.mxu0 %v19383_v5  ;;  %v19462_v5 = vld [vmem:[%s20182_s16 + $0x80] ss:$8 sps:$4 sm:$0xff]  }
 0x86e   : > { %13525 = vmatpush1.bf16.msra.mxu1 %v19426_v35  ;;  %v19467_v35 = vld [vmem:[%s20182_s16 + $0x94] ss:$8 sps:$4 sm:$0xff]  }
 0x86f   : > { %13526 = vmatprep.subr.bf16.mxu1 %v19434_v36  ;;  %v19465_v36 = vld [vmem:[%s20182_s16 + $0x90] ss:$8 sps:$4 sm:$0xff]  }
 0x870   : > { %13638 = vmatpush1.bf16.msra.mxu0 %v19381_v37  ;;  %v19470_v37 = vld [vmem:[%s20182_s16 + $0xa4] ss:$8 sps:$4 sm:$0xff]  }
 0x871   : > { %13639 = vmatprep.subr.bf16.mxu0 %v19389_v40  ;;  %v19468_v40 = vld [vmem:[%s20182_s16 + $0xa0] ss:$8 sps:$4 sm:$0xff]  }
 0x872   : > { %13527 = vmatpush1.bf16.msra.mxu1 %v19432_v25  ;;  %v19473_v25 = vld [vmem:[%s20182_s16 + $0xb4] ss:$8 sps:$4 sm:$0xff]  }
 0x873   : > { %14076 = vmatprep.subr.bf16.mxu1 %v19440_v26  ;;  %v19471_v26 = vld [vmem:[%s20182_s16 + $0xb0] ss:$8 sps:$4 sm:$0xff]  }
 0x874   : > { %13640 = vmatpush1.bf16.msra.mxu0 %v19387_v41  ;;  %v19476_v41 = vld [vmem:[%s20182_s16 + $0xc4] ss:$8 sps:$4 sm:$0xff]  }
 0x875   : > { %13641 = vmatprep.subr.bf16.mxu0 %v19395_v42  ;;  %v19474_v42 = vld [vmem:[%s20182_s16 + $0xc0] ss:$8 sps:$4 sm:$0xff]  }
 0x878   : > { %13642 = vmatpush1.bf16.msra.mxu0 %v19393_v52  ;;  %v19479_v52 = vld [vmem:[%s20182_s16 + $0xd4] ss:$8 sps:$4 sm:$0xff]  }
 0x879   : > { %13643 = vmatprep.subr.bf16.mxu0 %v19401_v38  ;;  %v19477_v38 = vld [vmem:[%s20182_s16 + $0xd0] ss:$8 sps:$4 sm:$0xff]  }
 0x87c   : > { %13644 = vmatpush1.bf16.msra.mxu0 %v19399_v43  ;;  %v19482_v43 = vld [vmem:[%s20182_s16 + $0xe4] ss:$8 sps:$4 sm:$0xff]  }
 0x87d   : > { %13645 = vmatprep.subr.bf16.mxu0 %v19407_v44  ;;  %v19480_v44 = vld [vmem:[%s20182_s16 + $0xe0] ss:$8 sps:$4 sm:$0xff]  }
 0x880   : > { %13646 = vmatpush1.bf16.msra.mxu0 %v19405_v45  ;;  %v19485_v45 = vld [vmem:[%s20182_s16 + $0xf4] ss:$8 sps:$4 sm:$0xff]  }
 0x881   : > { %13647 = vmatprep.subr.bf16.mxu0 %v19413_v33  ;;  %v19483_v33 = vld [vmem:[%s20182_s16 + $0xf0] ss:$8 sps:$4 sm:$0xff]  }
 0x884   : > { %13648 = vmatpush1.bf16.msra.mxu0 %v19411_v50  ;;  %v19488_v50 = vld [vmem:[%s20182_s16 + $0x104] ss:$8 sps:$4 sm:$0xff]  }
 0x885   : > { %13649 = vmatprep.subr.bf16.mxu0 %v19419_v51  ;;  %v12428_v51 = vld [vmem:[%s20193_s27 + $0x1a] sm:$0xf] }
 0x888   : > { %13650 = vmatpush1.bf16.msra.mxu0 %v19417_v53  ;;  %v12433_v53 = vrot.slane %v12428_v51, %v20741_v63 }
 0x889   : > { %13651 = vmatprep.subr.bf16.mxu0 %v19425_v55  ;;  %v12441_v55 = vrot.slane %v12428_v51, %v20744_v0 }
 0x88c   : > { %13652 = vmatpush1.bf16.msra.mxu0 %v19423_v24  ;;  %v12437_v24 = vrot.slane %v12428_v51, %v20747_v1 }
 0x88d   : > { %13653 = vmatprep.subr.bf16.mxu0 %v19431_v18  ;;  %v12445_v18 = vrot.slane %v12428_v51, %v20750_v2  ;;  %v19533_v51 = vld [vmem:[%s20182_s16 + $0x1f4] ss:$8 sps:$4 sm:$0xff]  }
 0x890   : > { %13654 = vmatpush1.bf16.msra.mxu0 %v19429_v29 }
 0x891   : > { %13655 = vmatprep.subr.bf16.mxu0 %v19437_v59 }
 0x894   : > { %13656 = vmatpush1.bf16.msra.mxu0 %v19435_v46 }
 0x8aa   : > { %v12197_v6 = vpop.f32.mrb[12].mxu0 }
 0x8ab   : > { %v16477_v7 = vadd.f32 %v16476_v3, %v12197_v6  ;;  %v12199_v39 = vpop.f32.mrb[13].mxu0 }
 0x8ac   : > { %v16479_v8 = vadd.f32 %v16478_v4, %v12199_v39  ;;  %v12201_v22 = vpop.f32.mrb[14].mxu0 }
 0x8ad   : > { %v16481_v9 = vadd.f32 %v16476_v3, %v12201_v22  ;;  %v12203_v10 = vpop.f32.mrb[15].mxu0  ;;  %v12222_v56 = vmax.f32 %v16477_v7, 0.0 }
 0x8ae   : > { %v16483_v47 = vadd.f32 %v16478_v4, %v12203_v10  ;;  %v12223_v31 = vmax.f32 %v16479_v8, 0.0 }
 0x8af   : > { %v12228_v34 = vmax.f32 %v16481_v9, 0.0 }
 0x8b0   : > { %v12229_v27 = vmax.f32 %v16483_v47, 0.0 }
 0x8b1   : > { %v12234_v57 = vpack.c.bf16 %v12228_v34, %v12222_v56 }
 0x8b2   : > { %v12235_v32 = vpack.c.bf16 %v12229_v27, %v12223_v31 }
 0x8b4   : > { %13528 = vmatprep.mubr.bf16.mxu1 %v12235_v32  ;;  %13657 = vmatprep.mubr.bf16.mxu0 %v12235_v32 }
 0x8b5   : > { %13529 = vmatmul.mubr.bf16.vlgmr.msra.gmra.mrb[20].mxu1 %v12234_v57  ;;  %13658 = vmatmul.mubr.bf16.vlgmr.msra.gmra.mrb[20].mxu0 %v12234_v57 }
 0x8b6   : > { %14077 = vmatpush1.bf16.msra.mxu1 %v19438_v11 }
 0x8b7   : > { %14078 = vmatprep.subr.bf16.mxu1 %v19443_v12 }
 0x8ba   : > { %14079 = vmatpush1.bf16.msra.mxu1 %v19441_v14 }
 0x8bb   : > { %14080 = vmatprep.subr.bf16.mxu1 %v19446_v15  ;;  %v19486_v15 = vld [vmem:[%s20182_s16 + $0x100] ss:$8 sps:$4 sm:$0xff]  }
 0x8be   : > { %14081 = vmatpush1.bf16.msra.mxu1 %v19444_v58  ;;  %v19491_v58 = vld [vmem:[%s20182_s16 + $0x114] ss:$8 sps:$4 sm:$0xff]  }
 0x8bf   : > { %14082 = vmatprep.subr.bf16.mxu1 %v19449_v19  ;;  %v19489_v19 = vld [vmem:[%s20182_s16 + $0x110] ss:$8 sps:$4 sm:$0xff]  }
 0x8c2   : > { %14083 = vmatpush1.bf16.msra.mxu1 %v19447_v20  ;;  %v19494_v20 = vld [vmem:[%s20182_s16 + $0x124] ss:$8 sps:$4 sm:$0xff]  }
 0x8c3   : > { %14084 = vmatprep.subr.bf16.mxu1 %v19452_v21  ;;  %v19492_v21 = vld [vmem:[%s20182_s16 + $0x120] ss:$8 sps:$4 sm:$0xff]  }
 0x8c6   : > { %14085 = vmatpush1.bf16.msra.mxu1 %v19450_v48  ;;  %v19497_v48 = vld [vmem:[%s20182_s16 + $0x134] ss:$8 sps:$4 sm:$0xff]  }
 0x8c7   : > { %14086 = vmatprep.subr.bf16.mxu1 %v19455_v23  ;;  %v19495_v23 = vld [vmem:[%s20182_s16 + $0x130] ss:$8 sps:$4 sm:$0xff]  }
 0x8ca   : > { %14087 = vmatpush1.bf16.msra.mxu1 %v19453_v13  ;;  %v19500_v13 = vld [vmem:[%s20182_s16 + $0x144] ss:$8 sps:$4 sm:$0xff]  }
 0x8cb   : > { %14088 = vmatprep.subr.bf16.mxu1 %v19458_v28  ;;  %v19498_v28 = vld [vmem:[%s20182_s16 + $0x140] ss:$8 sps:$4 sm:$0xff]  }
 0x8ce   : > { %14089 = vmatpush1.bf16.msra.mxu1 %v19456_v16  ;;  %v19503_v16 = vld [vmem:[%s20182_s16 + $0x154] ss:$8 sps:$4 sm:$0xff]  }
 0x8cf   : > { %14090 = vmatprep.subr.bf16.mxu1 %v19461_v17  ;;  %v19501_v17 = vld [vmem:[%s20182_s16 + $0x150] ss:$8 sps:$4 sm:$0xff]  }
 0x8d2   : > { %14091 = vmatpush1.bf16.msra.mxu1 %v19459_v30  ;;  %v19506_v30 = vld [vmem:[%s20182_s16 + $0x164] ss:$8 sps:$4 sm:$0xff]  }
 0x8d3   : > { %14092 = vmatprep.subr.bf16.mxu1 %v19464_v49  ;;  %v19504_v49 = vld [vmem:[%s20182_s16 + $0x160] ss:$8 sps:$4 sm:$0xff]  }
 0x8d6   : > { %14093 = vmatpush1.bf16.msra.mxu1 %v19462_v5  ;;  %v19509_v5 = vld [vmem:[%s20182_s16 + $0x174] ss:$8 sps:$4 sm:$0xff]  }
 0x8d7   : > { %14094 = vmatprep.subr.bf16.mxu1 %v19467_v35  ;;  %v19507_v35 = vld [vmem:[%s20182_s16 + $0x170] ss:$8 sps:$4 sm:$0xff]  }
 0x8da   : > { %14095 = vmatpush1.bf16.msra.mxu1 %v19465_v36  ;;  %v19512_v36 = vld [vmem:[%s20182_s16 + $0x184] ss:$8 sps:$4 sm:$0xff]  }
 0x8db   : > { %14096 = vmatprep.subr.bf16.mxu1 %v19470_v37  ;;  %v19510_v37 = vld [vmem:[%s20182_s16 + $0x180] ss:$8 sps:$4 sm:$0xff]  }
 0x8de   : > { %14097 = vmatpush1.bf16.msra.mxu1 %v19468_v40  ;;  %v19515_v40 = vld [vmem:[%s20182_s16 + $0x194] ss:$8 sps:$4 sm:$0xff]  }
 0x8df   : > { %14098 = vmatprep.subr.bf16.mxu1 %v19473_v25  ;;  %v19513_v25 = vld [vmem:[%s20182_s16 + $0x190] ss:$8 sps:$4 sm:$0xff]  }
 0x8e2   : > { %14099 = vmatpush1.bf16.msra.mxu1 %v19471_v26  ;;  %v19518_v26 = vld [vmem:[%s20182_s16 + $0x1a4] ss:$8 sps:$4 sm:$0xff]  }
 0x8e3   : > { %14100 = vmatprep.subr.bf16.mxu1 %v19476_v41  ;;  %v19516_v41 = vld [vmem:[%s20182_s16 + $0x1a0] ss:$8 sps:$4 sm:$0xff]  }
 0x8e6   : > { %14101 = vmatpush1.bf16.msra.mxu1 %v19474_v42  ;;  %v19521_v42 = vld [vmem:[%s20182_s16 + $0x1b4] ss:$8 sps:$4 sm:$0xff]  }
 0x8e7   : > { %14102 = vmatprep.subr.bf16.mxu1 %v19479_v52  ;;  %v19519_v52 = vld [vmem:[%s20182_s16 + $0x1b0] ss:$8 sps:$4 sm:$0xff]  }
 0x8ea   : > { %14103 = vmatpush1.bf16.msra.mxu1 %v19477_v38  ;;  %v19524_v38 = vld [vmem:[%s20182_s16 + $0x1c4] ss:$8 sps:$4 sm:$0xff]  }
 0x8eb   : > { %14104 = vmatprep.subr.bf16.mxu1 %v19482_v43  ;;  %v19522_v43 = vld [vmem:[%s20182_s16 + $0x1c0] ss:$8 sps:$4 sm:$0xff]  }
 0x8ee   : > { %14105 = vmatpush1.bf16.msra.mxu1 %v19480_v44  ;;  %v19527_v44 = vld [vmem:[%s20182_s16 + $0x1d4] ss:$8 sps:$4 sm:$0xff]  }
 0x8ef   : > { %14106 = vmatprep.subr.bf16.mxu1 %v19485_v45  ;;  %v19525_v45 = vld [vmem:[%s20182_s16 + $0x1d0] ss:$8 sps:$4 sm:$0xff]  }
 0x8f2   : > { %14107 = vmatpush1.bf16.msra.mxu1 %v19483_v33  ;;  %v19530_v33 = vld [vmem:[%s20182_s16 + $0x1e4] ss:$8 sps:$4 sm:$0xff]  }
 0x8f3   : > { %14119 = vmatprep.subr.bf16.mxu1 %v19488_v50  ;;  %v19528_v50 = vld [vmem:[%s20182_s16 + $0x1e0] ss:$8 sps:$4 sm:$0xff]  }
 0x988   : > { %v13530_v29 = vpop.f32.mrb[20].mxu1  ;;  %v13659_v59 = vpop.f32.mrb[20].mxu0 }
 0x989   : > { %v16496_v46 = vadd.f32 %v13530_v29, %v12433_v53  ;;  %v16500_v60 = vadd.f32 %v13659_v59, %v12441_v55  ;;  %v13532_v54 = vpop.f32.mrb[21].mxu1  ;;  %v13661_v61 = vpop.f32.mrb[21].mxu0  ;;  %v19537_v29 = vld [vmem:[%s20190_s29 + $0x8] sm:$0xff]   ;;  %v19538_v59 = vld [vmem:[%s20190_s29 + $0x50] sm:$0xff]  }
 0x98a   : > { %v16497_v62 = vadd.f32 %v13532_v54, %v12437_v24  ;;  %v16501_v3 = vadd.f32 %v13661_v61, %v12445_v18  ;;  %v13534_v4 = vpop.f32.mrb[22].mxu1  ;;  %v13663_v6 = vpop.f32.mrb[22].mxu0  ;;  %v19541_v54 = vld [vmem:[%s20190_s29 + $0x18] sm:$0xff]   ;;  %v19542_v61 = vld [vmem:[%s20190_s29 + $0x60] sm:$0xff]  }
 0x98b   : > { %v16498_v7 = vadd.f32 %v13534_v4, %v12433_v53  ;;  %v16502_v39 = vadd.f32 %v13663_v6, %v12441_v55  ;;  %v13536_v8 = vpop.f32.mrb[23].mxu1  ;;  %v13665_v22 = vpop.f32.mrb[23].mxu0  ;;  %v13668_v10 = vmax.f32 %v16496_v46, 0.0  ;;  %v13670_v2 = vmax.f32 %v16500_v60, 0.0  ;;  %v19531_v53 = vld [vmem:[%s20182_s16 + $0x1f0] ss:$8 sps:$4 sm:$0xff]  }
 0x98c   : > { %v16499_v0 = vadd.f32 %v13536_v8, %v12437_v24  ;;  %v16503_v9 = vadd.f32 %v13665_v22, %v12445_v18  ;;  %v13669_v34 = vmax.f32 %v16497_v62, 0.0  ;;  %v13671_v31 = vmax.f32 %v16501_v3, 0.0  ;;  %v19534_v55 = vld [vmem:[%s20190_s29 + $0x40] sm:$0xff]   ;;  %v19536_v18 = vld [vmem:[%s20190_s29 + $0x48] sm:$0xff]   ;;  %v19539_v46 = vld [vmem:[%s20190_s29 + $0x10] sm:$0xff]  }
 0x98d   : > { %v13672_v47 = vmax.f32 %v16498_v7, 0.0  ;;  %v13674_v56 = vmax.f32 %v16502_v39, 0.0  ;;  %v19535_v24 = vld [vmem:[%s20190_s29] sm:$0xff]   ;;  %v19540_v60 = vld [vmem:[%s20190_s29 + $0x58] sm:$0xff]   ;;  %v19544_v3 = vld [vmem:[%s20190_s29 + $0x68] sm:$0xff]  }
 0x98e   : > { %v13673_v27 = vmax.f32 %v16499_v0, 0.0  ;;  %v13675_v57 = vmax.f32 %v16503_v9, 0.0  ;;  %v19543_v62 = vld [vmem:[%s20190_s29 + $0x20] sm:$0xff]   ;;  %v19545_v4 = vld [vmem:[%s20190_s29 + $0x28] sm:$0xff]   ;;  %v19546_v6 = vld [vmem:[%s20190_s29 + $0x70] sm:$0xff]  }
 0x98f   : > { %v13676_v32 = vpack.c.bf16 %v13672_v47, %v13668_v10  ;;  %v22250_v11 = vpack.c.bf16 %v13674_v56, %v13670_v2  ;;  %v19547_v7 = vld [vmem:[%s20190_s29 + $0x30] sm:$0xff]   ;;  %v19548_v39 = vld [vmem:[%s20190_s29 + $0x78] sm:$0xff]  }
 0x990   : > { %v13677_v12 = vpack.c.bf16 %v13673_v27, %v13669_v34  ;;  %v13679_v14 = vpack.c.bf16 %v13675_v57, %v13671_v31  ;;  %v19549_v8 = vld [vmem:[%s20190_s29 + $0x38] sm:$0xff]  }
 0x991   : > { %v13744_v22 = vld [vmem:[%s20193_s27 + $0x1e] sm:$0x3] }
 0x992   : > { %14108 = vmatprep.mubr.bf16.mxu1 %v13677_v12  ;;  %v13749_v0 = vrot.slane %v13744_v22, %v20741_v63  ;;  %v13753_v9 = vrot.slane %v13744_v22, %v20747_v1  ;;  %v16397_v1 = vld [vmem:[%s20193_s27 + $0x20] ss:$0 sm:$0xff] }
 0x993   : > { %14109 = vmatmul.mubr.bf16.vlgmr.msra.gmra.mrb[24].mxu1 %v13676_v32 }
 0x994   : > { %14120 = vmatpush1.bf16.msra.mxu1 %v19486_v15  ;;  %14151 = vmatprep.mubr.bf16.mxu1 %v13679_v14 }
 0x995   : > { %14121 = vmatprep.subr.bf16.mxu1 %v19491_v58 }
 0x998   : > { %14122 = vmatpush1.bf16.msra.mxu1 %v19489_v19 }
 0x999   : > { %14123 = vmatprep.subr.bf16.mxu1 %v19494_v20 }
 0x99c   : > { %14124 = vmatpush1.bf16.msra.mxu1 %v19492_v21 }
 0x99d   : > { %14125 = vmatprep.subr.bf16.mxu1 %v19497_v48 }
 0x9a0   : > { %14126 = vmatpush1.bf16.msra.mxu1 %v19495_v23 }
 0x9a1   : > { %14127 = vmatprep.subr.bf16.mxu1 %v19500_v13 }
 0x9a4   : > { %14128 = vmatpush1.bf16.msra.mxu1 %v19498_v28 }
 0x9a5   : > { %14129 = vmatprep.subr.bf16.mxu1 %v19503_v16 }
 0x9a8   : > { %14130 = vmatpush1.bf16.msra.mxu1 %v19501_v17 }
 0x9a9   : > { %14131 = vmatprep.subr.bf16.mxu1 %v19506_v30 }
 0x9ac   : > { %14132 = vmatpush1.bf16.msra.mxu1 %v19504_v49 }
 0x9ad   : > { %14133 = vmatprep.subr.bf16.mxu1 %v19509_v5 }
 0x9b0   : > { %14134 = vmatpush1.bf16.msra.mxu1 %v19507_v35 }
 0x9b1   : > { %14135 = vmatprep.subr.bf16.mxu1 %v19512_v36 }
 0x9b4   : > { %14136 = vmatpush1.bf16.msra.mxu1 %v19510_v37 }
 0x9b5   : > { %14137 = vmatprep.subr.bf16.mxu1 %v19515_v40 }
 0x9b8   : > { %14138 = vmatpush1.bf16.msra.mxu1 %v19513_v25 }
 0x9b9   : > { %14139 = vmatprep.subr.bf16.mxu1 %v19518_v26 }
 0x9bc   : > { %14140 = vmatpush1.bf16.msra.mxu1 %v19516_v41 }
 0x9bd   : > { %14141 = vmatprep.subr.bf16.mxu1 %v19521_v42 }
 0x9c0   : > { %14142 = vmatpush1.bf16.msra.mxu1 %v19519_v52 }
 0x9c1   : > { %14143 = vmatprep.subr.bf16.mxu1 %v19524_v38 }
 0x9c4   : > { %14144 = vmatpush1.bf16.msra.mxu1 %v19522_v43 }
 0x9c5   : > { %14145 = vmatprep.subr.bf16.mxu1 %v19527_v44 }
 0x9c8   : > { %14146 = vmatpush1.bf16.msra.mxu1 %v19525_v45 }
 0x9c9   : > { %14147 = vmatprep.subr.bf16.mxu1 %v19530_v33 }
 0x9cc   : > { %14148 = vmatpush1.bf16.msra.mxu1 %v19528_v50 }
 0x9cd   : > { %14149 = vmatprep.subr.bf16.mxu1 %v19533_v51 }
 0x9d0   : > { %14150 = vmatpush1.bf16.msra.mxu1 %v19531_v53 }
 0x9d1   : > { %16422 = vmatprep.subr.bf16.mxu1 %v19534_v55 }
 0x9d3   : > { %14152 = vmatmul.mubr.bf16.vlgmr.msra.gmra.mrb[24].mxu1 %v22250_v11 }
 0x9d4   : > { %16423 = vmatpush3.bf16.msra.mxu1 %v19535_v24 }
 0x9d5   : > { %16424 = vmatprep.subr.bf16.mxu1 %v19536_v18 }
 0x9d8   : > { %16425 = vmatpush3.bf16.msra.mxu1 %v19537_v29 }
 0x9d9   : > { %16426 = vmatprep.subr.bf16.mxu1 %v19538_v59 }
 0x9dc   : > { %16427 = vmatpush3.bf16.msra.mxu1 %v19539_v46 }
 0x9dd   : > { %16428 = vmatprep.subr.bf16.mxu1 %v19540_v60 }
 0x9e0   : > { %16429 = vmatpush3.bf16.msra.mxu1 %v19541_v54 }
 0x9e1   : > { %16430 = vmatprep.subr.bf16.mxu1 %v19542_v61 }
 0x9e4   : > { %16431 = vmatpush3.bf16.msra.mxu1 %v19543_v62 }
 0x9e5   : > { %16432 = vmatprep.subr.bf16.mxu1 %v19544_v3 }
 0x9e8   : > { %16433 = vmatpush3.bf16.msra.mxu1 %v19545_v4 }
 0x9e9   : > { %16434 = vmatprep.subr.bf16.mxu1 %v19546_v6 }
 0x9ec   : > { %16435 = vmatpush3.bf16.msra.mxu1 %v19547_v7 }
 0x9ed   : > { %16436 = vmatprep.subr.bf16.mxu1 %v19548_v39 }
 0x9f0   : > { %16437 = vmatpush3.bf16.msra.mxu1 %v19549_v8 }
 0xaa6   : > { %v14153_v10 = vpop.f32.mrb[24].mxu1 }
 0xaa7   : > { %v16504_v2 = vadd.f32 %v14153_v10, %v13749_v0  ;;  %v14155_v47 = vpop.f32.mrb[25].mxu1 }
 0xaa8   : > { %v16505_v56 = vadd.f32 %v14155_v47, %v13753_v9  ;;  %v14157_v34 = vpop.f32.mrb[26].mxu1 }
 0xaa9   : > { %v16506_v31 = vadd.f32 %v14157_v34, %v13749_v0  ;;  %v14159_v27 = vpop.f32.mrb[27].mxu1  ;;  %v14162_v32 = vmax.f32 %v16504_v2, 0.0 }
 0xaaa   : > { %v16507_v57 = vadd.f32 %v14159_v27, %v13753_v9  ;;  %v14163_v12 = vmax.f32 %v16505_v56, 0.0 }
 0xaab   : > { %v14164_v11 = vmax.f32 %v16506_v31, 0.0 }
 0xaac   : > { %v14165_v14 = vmax.f32 %v16507_v57, 0.0 }
 0xaad   : > { %v14166_v15 = vpack.c.bf16 %v14164_v11, %v14162_v32 }
 0xaae   : > { %v14167_v58 = vpack.c.bf16 %v14165_v14, %v14163_v12 }
 0xab0   : > { %14335 = vmatprep.mubr.bf16.mxu1 %v14167_v58 }
 0xab1   : > { %14336 = vmatmul.mubr.bf16.vlgmr.msra.gmra.mrb[28].mxu1 %v14166_v15 }
 0xb84   : > { %v16438_v63 = vpop.f32.mrb[28].mxu1 }
 0xb85   : > { %v16439_v19 = vpop.f32.mrb[29].mxu1 }
 0xb86   : > { %v16440_v20 = vadd.f32 %v16439_v19, %v16438_v63  ;;  %v16441_v21 = vpop.f32.mrb[30].mxu1 }
 0xb87   : > { %v16442_v48 = vpop.f32.mrb[31].mxu1 }
 0xb88   : > { %v14338_v23 = vadd.f32 %v16440_v20, %v16397_v1  ;;  %v16443_v13 = vadd.f32 %v16442_v48, %v16441_v21 }
 0xb8a   : > { %14344 = vst [vmem:[%s459_s3] sm:$0xff] %v14338_v23  ;;  %v14341_v28 = vadd.f32 %v16443_v13, %v16397_v1 }
 0xb8c   : > { %14345 = vst [vmem:[%s459_s3 + $0x8] sm:$0xff] %v14341_v28 }
 0xb8d   : > { %19742 = shalt.err (!%p19739_p5)
}
 0xb8e   : > { %s19743_s28 = scalar_lea.hbm %s22311_s10, 256  ;;  %s19747_s13 = scalar_lea.hbm %s22410_s20, 512 }
 0xb8f   : > { %p19744_p2 = scmp.ne.s32.totalorder %s22311_s10, %s19743_s28  ;;  %p19748_p4 = scmp.lt.u32.totalorder %s22311_s10, %s22410_s20 }
 0xb90   : > { %p19749_p7 = scmp.lt.u32.totalorder %s19747_s13, %s19743_s28  ;;  %p19751_p9 = scmp.lt.u32.totalorder %s19743_s28, %s22311_s10 }
 0xb91   : > { %p19745_p3 = pnand %p19744_p2, %p22411_p13 }
 0xb92   : > { %p19750_p8 = por %p19749_p7, %p19748_p4 }
 0xb93   : > { %p19746_p12 = pneg %p19745_p3 }
 0xb94   : > { %p19752_p1 = por %p19751_p9, %p19750_p8 }
 0xb96   : > { %p19753_p0 = pnand %p19752_p1, %p19746_p12 }
 0xb98   : > { %19756 = shalt.err (!%p19753_p0)
}
 0xb99   : > { %s19842_s21 = smov 128   ;;  %s19843_s29 = smov 8  }
 0xb9a   : > { %16707 = dma.vmem_to_hbm [thread:$0]  (%p22411_p13), %s22306_s6, 256, %s22311_s10, %s14347_s19, %s19842_s21, %s19842_s21, %s19843_s29  }
 0xb9b PF: > { %s22412_s1 = sld [smem:[#allocation19_spill]]  ;;  %s22413_s27 = sld [smem:[#allocation24_spill]] }
 0xb9c   : > { %s22414_s18 = sld [smem:[#allocation21_spill]] }
 0xba1   : > { %s14377_s3 = sand.u32 1, %s22412_s1   ;;  %p22415_p6 = scmp.ne.s32.totalorder %s22413_s27, 0 }
 0xba2   : > { %p22416_p10 = scmp.ge.s32.totalorder %s22414_s18, 2  ;;  %s14378_s23 = scalar_lea.sflag [#allocation4], %s14377_s3 }
 0xba4   : > { %p16730_p11 = pnand %p22416_p10, %p22415_p6 }
 0xba6   : > { %19798 = dma.done.wait (!%p16730_p11), %s14378_s23, 256  }
 0xba7   : > { %19800 = vsyncadd (!%p16730_p11), %s14378_s23, 4294967040  ;;  %s29_s26 = sadd.s32 1, %s22414_s18   ;;  %s22417_s7 = sld [smem:[#allocation20_spill]] }
 0xba8   : > { %p26_p5 = scmp.ge.s32.totalorder %s29_s26, 4   ;;  %s22418_s23 = sld [smem:[#allocation23_spill]] }
 0xba9   : > { %s22419_s11 = sld [smem:[#allocation22_spill]]  ;;  %s22420_s21 = smov %s19807_s22 }
 0xbaa   : > { %s22422_s24 = smov %s19819_s25  ;;  %28 = sbr.rel (!%p26_p5) target bundleno = 15 (0xf), region = 143 }
 0xbad   : > { %s22421_s22 = smov %s22417_s7 }
 0xbaf   : > { %s22423_s25 = smov %s22419_s11 }
 0xbb1   :  { %14383 = vsyncpa [#allocation3], 1 }
 0xbb2   :  { %14385 = vsyncpa [#allocation3 + $0x1], 1 }
 0xbb3   :  { %14386 = vsyncpa [#allocation6], 1 }
 0xbb4   :  { %14388 = vsyncpa [#allocation6 + $0x1], 1 }
 0xbb5   :  { %14389 = vsyncpa [#allocation9], 1 }
 0xbb6   :  { %14391 = vsyncpa [#allocation9 + $0x1], 1 }
 0xbb7   :  { %14392 = vsyncpa [#allocation12], 1 }
 0xbb8   :  { %14394 = vsyncpa [#allocation12 + $0x1], 1 }
 0xbb9   :  { %14395 = vsyncpa [#allocation4], 1 }
 0xbba   :  { %14397 = vsyncpa [#allocation4 + $0x1], 1 }

</bundles_post_ra>
